<compile_context>
chip_gen: v7x
topology: tpu7x:2x2x1
jax: 0.10.0
libtpu: 0.0.40
codegen_flags: <defaults>
</compile_context>

<pallas_src>
import numpy as np

import jax
import jax.numpy as jnp
from jax import lax
from jax.experimental import pallas as pl
from jax.experimental.pallas import tpu as pltpu


# Feature-block sizes (all multiples of 128 where they hit lane slicing).
F1 = 12 * 12 * 6      # conv1 features per pool-parity block
F1P = 896             # padded to 7*128
F2 = 4 * 4 * 16       # conv2 features per pool-parity block
F2P = 256             # already 2*128
FCP = 128              # padded FC width


# ------------------------------ Pallas kernel ------------------------------ #

def _lenet_kernel(x_ref, w1_ref, b1_ref, w2_ref, b2_ref,
                  wf1_ref, bf1_ref, wf2_ref, bf2_ref, wf3_ref, bf3_ref, o_ref):
    def mm(a, w_ref, b_ref):
        # bf16 MXU matmul, f32 accumulation, f32 bias add.
        return jnp.dot(a.astype(jnp.bfloat16), w_ref[...],
                       preferred_element_type=jnp.float32) + b_ref[...]

    def sigmoid(y):
        return pl.reciprocal(1.0 + jnp.exp(-y), approx=True)

    def pool4(y, blk):
        # 2x2 max-pool == elementwise max over the 4 lane-aligned parity blocks.
        return jnp.maximum(jnp.maximum(y[:, 0 * blk:1 * blk], y[:, 1 * blk:2 * blk]),
                           jnp.maximum(y[:, 2 * blk:3 * blk], y[:, 3 * blk:4 * blk]))

    x = x_ref[...]                                    # (TB, 784) f32
    y1 = jnp.maximum(mm(x, w1_ref, b1_ref), 0.0)      # conv1 + ReLU   -> (TB, 4*F1P)
    a1 = pool4(y1, F1P)                               # MaxPool2d(2,2) -> (TB, F1P)
    y2 = jnp.maximum(mm(a1, w2_ref, b2_ref), 0.0)     # conv2 + ReLU   -> (TB, 4*F2P)
    a2 = pool4(y2, F2P)                               # MaxPool2d(2,2) -> (TB, 256)
    h = sigmoid(mm(a2, wf1_ref, bf1_ref))             # fc1 + sigmoid  -> (TB, 128)
    h = sigmoid(mm(h, wf2_ref, bf2_ref))              # fc2 + sigmoid  -> (TB, 128)
    o_ref[...] = mm(h, wf3_ref, bf3_ref).astype(o_ref.dtype)   # fc3 -> (TB, 128)


# --------------------------- host-side weight prep -------------------------- #

def _dense_conv_weight(w, b, h_in, w_in, block_pad):
    """Fold a VALID KxK conv into a dense (h_in*w_in*c_in, 4*block_pad) matrix.

    Input features flattened (h, w, c_in).  Output features ordered
    (row_parity p, col_parity q, h//2, w//2, c_out); each (p,q) block is
    zero-padded to `block_pad` lanes so the following 2x2 max-pool is a max
    over 4 lane-aligned slices.
    """
    c_out, c_in, k, _ = w.shape
    h_out, w_out = h_in - k + 1, w_in - k + 1
    hh, wh = h_out // 2, w_out // 2
    wd = np.zeros((h_in, w_in, c_in, 2, 2, block_pad), np.float32)
    for p in range(2):
        for q in range(2):
            for oh in range(hh):
                for ow in range(wh):
                    oy, ox = 2 * oh + p, 2 * ow + q
                    col = (oh * wh + ow) * c_out
                    for dy in range(k):
                        for dx in range(k):
                            wd[oy + dy, ox + dx, :, p, q, col:col + c_out] = w[:, :, dy, dx].T
    bias = np.zeros((2, 2, block_pad), np.float32)
    bias[:, :, :hh * wh * c_out] = np.tile(b, hh * wh)
    return wd.reshape(h_in * w_in * c_in, 4 * block_pad), bias.reshape(1, 4 * block_pad)


def _pad2(a, rows, cols):
    out = np.zeros((rows, cols), np.float32)
    out[:a.shape[0], :a.shape[1]] = a
    return out


def pack_params(p):
    """PyTorch-layout params -> kernel operands (bf16 weights, f32 biases)."""
    w1, b1 = _dense_conv_weight(np.asarray(p["conv1_w"]), np.asarray(p["conv1_b"]), 28, 28, F1P)
    w2, b2 = _dense_conv_weight(np.asarray(p["conv2_w"]), np.asarray(p["conv2_b"]), 12, 12, F2P)
    w2 = _pad2(w2, F1P, 4 * F2P)          # pool1 output carries F1P (padded) lanes

    # PyTorch flattens (c, h, w); the kernel's pool2 output is (h, w, c): permute fc1 rows.
    perm = np.zeros(256, np.int32)
    for h in range(4):
        for w_ in range(4):
            for c in range(16):
                perm[h * 64 + w_ * 16 + c] = c * 16 + h * 4 + w_
    wf1 = np.asarray(p["fc1_w"]).T[perm, :]            # (256, 120)
    wf2 = np.asarray(p["fc2_w"]).T                     # (120, 84)
    wf3 = np.asarray(p["fc3_w"]).T                     # (84, 10)

    bf = jnp.bfloat16
    return {
        "w1": jnp.asarray(w1, bf), "b1": jnp.asarray(b1),
        "w2": jnp.asarray(w2, bf), "b2": jnp.asarray(b2),
        "wf1": jnp.asarray(_pad2(wf1, 256, FCP), bf),
        "bf1": jnp.asarray(_pad2(np.asarray(p["fc1_b"])[None, :], 1, FCP)),
        "wf2": jnp.asarray(_pad2(wf2, FCP, FCP), bf),
        "bf2": jnp.asarray(_pad2(np.asarray(p["fc2_b"])[None, :], 1, FCP)),
        "wf3": jnp.asarray(_pad2(wf3, FCP, FCP), bf),
        "bf3": jnp.asarray(_pad2(np.asarray(p["fc3_b"])[None, :], 1, FCP)),
    }


# ------------------------------ forward wrapper ----------------------------- #

def lenet_forward(x, kp):
    """x: (N, 1, 28, 28) f32 (NCHW, like PyTorch) -> (N, 10) f32."""
    N = x.shape[0]
    xf = x.reshape(N, 28 * 28).astype(jnp.float32)

    TB = min(128, ((N + 7) // 8) * 8)                 # batch tile (sublane-aligned)
    Np = ((N + TB - 1) // TB) * TB
    if Np != N:
        xf = jnp.pad(xf, ((0, Np - N), (0, 0)))

    def full(a):  # whole-array block, constant index_map => DMA'd once, stays in VMEM
        return pl.BlockSpec(a.shape, lambda i: (0,) * a.ndim)

    weights = (kp["w1"], kp["b1"], kp["w2"], kp["b2"],
               kp["wf1"], kp["bf1"], kp["wf2"], kp["bf2"], kp["wf3"], kp["bf3"])

    out = pl.pallas_call(
        _lenet_kernel,
        out_shape=jax.ShapeDtypeStruct((Np, FCP), jnp.float32),
        grid_spec=pltpu.PrefetchScalarGridSpec(
            num_scalar_prefetch=0,
            grid=(Np // TB,),
            in_specs=[pl.BlockSpec((TB, 28 * 28), lambda i: (i, 0))]
                     + [full(w) for w in weights],
            out_specs=pl.BlockSpec((TB, FCP), lambda i: (i, 0)),
        ),
        compiler_params=pltpu.CompilerParams(
            dimension_semantics=("parallel",),
            vmem_limit_bytes=40 * 1024 * 1024),
    )(xf, *weights)
    return out[:N, :10]


# ------------------------------ reference & main ---------------------------- #

def init_torch_params(key):
    ks = jax.random.split(key, 10)
    r = lambda k, s, sc: jax.random.normal(k, s, jnp.float32) * sc
    return {
        "conv1_w": r(ks[0], (6, 1, 5, 5), 0.1),  "conv1_b": r(ks[1], (6,), 0.1),
        "conv2_w": r(ks[2], (16, 6, 5, 5), 0.1), "conv2_b": r(ks[3], (16,), 0.1),
        "fc1_w": r(ks[4], (120, 256), 0.05),     "fc1_b": r(ks[5], (120,), 0.05),
        "fc2_w": r(ks[6], (84, 120), 0.05),      "fc2_b": r(ks[7], (84,), 0.05),
        "fc3_w": r(ks[8], (10, 84), 0.05),       "fc3_b": r(ks[9], (10,), 0.05),
    }


def reference_forward(x, p):
    hi = lax.Precision.HIGHEST
    dn = ("NCHW", "OIHW", "NCHW")
    y = lax.conv_general_dilated(x, p["conv1_w"], (1, 1), "VALID",
                                 dimension_numbers=dn, precision=hi)
    y = jnp.maximum(y + p["conv1_b"][None, :, None, None], 0.0)
    y = lax.reduce_window(y, -jnp.inf, lax.max, (1, 1, 2, 2), (1, 1, 2, 2), "VALID")
    y = lax.conv_general_dilated(y, p["conv2_w"], (1, 1), "VALID",
                                 dimension_numbers=dn, precision=hi)
    y = jnp.maximum(y + p["conv2_b"][None, :, None, None], 0.0)
    y = lax.reduce_window(y, -jnp.inf, lax.max, (1, 1, 2, 2), (1, 1, 2, 2), "VALID")
    f = y.reshape(x.shape[0], 16 * 4 * 4)
    h = jax.nn.sigmoid(jnp.dot(f, p["fc1_w"].T, precision=hi) + p["fc1_b"])
    h = jax.nn.sigmoid(jnp.dot(h, p["fc2_w"].T, precision=hi) + p["fc2_b"])
    return jnp.dot(h, p["fc3_w"].T, precision=hi) + p["fc3_b"]


if __name__ == "__main__":
    key = jax.random.PRNGKey(0)
    kx, kp = jax.random.split(key)

    x = jax.random.normal(kx, (2, 1, 28, 28), jnp.float32)
    tparams = init_torch_params(kp)
    kparams = pack_params(tparams)

    fwd = jax.jit(lenet_forward)
    out = jax.block_until_ready(fwd(x, kparams))
    assert out.shape == (2, 10), out.shape

    ref = reference_forward(x, tparams)
    err = float(jnp.max(jnp.abs(out - ref)))
    assert err < 0.08, f"max |out - ref| = {err}"
    print("KERNEL_OK")
</pallas_src>

<mosaic_0001>
module attributes {stable_mosaic.version = 11 : i64} {
  func.func @_lenet_kernel(%arg0: i32, %arg1: memref<8x784xf32, #tpu.memory_space<vmem>>, %arg2: memref<784x3584xbf16, #tpu.memory_space<vmem>>, %arg3: memref<1x3584xf32, #tpu.memory_space<vmem>>, %arg4: memref<896x1024xbf16, #tpu.memory_space<vmem>>, %arg5: memref<1x1024xf32, #tpu.memory_space<vmem>>, %arg6: memref<256x128xbf16, #tpu.memory_space<vmem>>, %arg7: memref<1x128xf32, #tpu.memory_space<vmem>>, %arg8: memref<128x128xbf16, #tpu.memory_space<vmem>>, %arg9: memref<1x128xf32, #tpu.memory_space<vmem>>, %arg10: memref<128x128xbf16, #tpu.memory_space<vmem>>, %arg11: memref<1x128xf32, #tpu.memory_space<vmem>>, %arg12: memref<8x128xf32, #tpu.memory_space<vmem>>) attributes {dimension_semantics = [#tpu.dimension_semantics<parallel>], iteration_bounds = array<i64: 1>, scalar_prefetch = 0 : i64, scratch_operands = 0 : i64, tpu.core_type = #tpu.core_type<tc>, window_params = [{transform_indices = @transform_0, window_bounds = array<i64: 8, 784>}, {pipeline_mode = #tpu.pipeline_mode<synchronous>, transform_indices = @transform_1, window_bounds = array<i64: 784, 3584>}, {pipeline_mode = #tpu.pipeline_mode<synchronous>, transform_indices = @transform_2, window_bounds = array<i64: 1, 3584>}, {pipeline_mode = #tpu.pipeline_mode<synchronous>, transform_indices = @transform_3, window_bounds = array<i64: 896, 1024>}, {pipeline_mode = #tpu.pipeline_mode<synchronous>, transform_indices = @transform_4, window_bounds = array<i64: 1, 1024>}, {pipeline_mode = #tpu.pipeline_mode<synchronous>, transform_indices = @transform_5, window_bounds = array<i64: 256, 128>}, {pipeline_mode = #tpu.pipeline_mode<synchronous>, transform_indices = @transform_6, window_bounds = array<i64: 1, 128>}, {pipeline_mode = #tpu.pipeline_mode<synchronous>, transform_indices = @transform_7, window_bounds = array<i64: 128, 128>}, {pipeline_mode = #tpu.pipeline_mode<synchronous>, transform_indices = @transform_8, window_bounds = array<i64: 1, 128>}, {pipeline_mode = #tpu.pipeline_mode<synchronous>, transform_indices = @transform_9, window_bounds = array<i64: 128, 128>}, {pipeline_mode = #tpu.pipeline_mode<synchronous>, transform_indices = @transform_10, window_bounds = array<i64: 1, 128>}, {transform_indices = @transform_11, window_bounds = array<i64: 8, 128>}]} {
    %c0 = arith.constant 0 : index
    %c0_0 = arith.constant 0 : index
    %0 = vector.load %arg1[%c0, %c0_0] : memref<8x784xf32, #tpu.memory_space<vmem>>, vector<8x784xf32>
    %1 = arith.truncf %0 : vector<8x784xf32> to vector<8x784xbf16>
    %c0_1 = arith.constant 0 : index
    %c0_2 = arith.constant 0 : index
    %2 = vector.load %arg2[%c0_1, %c0_2] : memref<784x3584xbf16, #tpu.memory_space<vmem>>, vector<784x3584xbf16>
    %cst = arith.constant dense<0.000000e+00> : vector<8x3584xf32>
    %3 = tpu.matmul %1, %2, %cst {dimension_numbers = #tpu.dot_dimension_numbers<[1], [0], [0], [1], [0, 0, 1, 1], [], []>} : vector<8x784xbf16>, vector<784x3584xbf16>, vector<8x3584xf32> -> vector<8x3584xf32>
    %c0_3 = arith.constant 0 : index
    %c0_4 = arith.constant 0 : index
    %4 = vector.load %arg3[%c0_3, %c0_4] : memref<1x3584xf32, #tpu.memory_space<vmem>>, vector<1x3584xf32>
    %5 = vector.broadcast %4 : vector<1x3584xf32> to vector<8x3584xf32>
    %6 = arith.addf %3, %5 : vector<8x3584xf32>
    %cst_5 = arith.constant 0.000000e+00 : f32
    %7 = vector.broadcast %cst_5 : f32 to vector<8x3584xf32>
    %8 = arith.maximumf %6, %7 : vector<8x3584xf32>
    %9 = vector.extract_strided_slice %8 {offsets = [0, 0], sizes = [8, 896], strides = [1, 1]} : vector<8x3584xf32> to vector<8x896xf32>
    %10 = vector.extract_strided_slice %8 {offsets = [0, 896], sizes = [8, 896], strides = [1, 1]} : vector<8x3584xf32> to vector<8x896xf32>
    %11 = arith.maximumf %9, %10 : vector<8x896xf32>
    %12 = vector.extract_strided_slice %8 {offsets = [0, 1792], sizes = [8, 896], strides = [1, 1]} : vector<8x3584xf32> to vector<8x896xf32>
    %13 = vector.extract_strided_slice %8 {offsets = [0, 2688], sizes = [8, 896], strides = [1, 1]} : vector<8x3584xf32> to vector<8x896xf32>
    %14 = arith.maximumf %12, %13 : vector<8x896xf32>
    %15 = arith.maximumf %11, %14 : vector<8x896xf32>
    %16 = arith.truncf %15 : vector<8x896xf32> to vector<8x896xbf16>
    %c0_6 = arith.constant 0 : index
    %c0_7 = arith.constant 0 : index
    %17 = vector.load %arg4[%c0_6, %c0_7] : memref<896x1024xbf16, #tpu.memory_space<vmem>>, vector<896x1024xbf16>
    %cst_8 = arith.constant dense<0.000000e+00> : vector<8x1024xf32>
    %18 = tpu.matmul %16, %17, %cst_8 {dimension_numbers = #tpu.dot_dimension_numbers<[1], [0], [0], [1], [0, 0, 1, 1], [], []>} : vector<8x896xbf16>, vector<896x1024xbf16>, vector<8x1024xf32> -> vector<8x1024xf32>
    %c0_9 = arith.constant 0 : index
    %c0_10 = arith.constant 0 : index
    %19 = vector.load %arg5[%c0_9, %c0_10] : memref<1x1024xf32, #tpu.memory_space<vmem>>, vector<1x1024xf32>
    %20 = vector.broadcast %19 : vector<1x1024xf32> to vector<8x1024xf32>
    %21 = arith.addf %18, %20 : vector<8x1024xf32>
    %cst_11 = arith.constant 0.000000e+00 : f32
    %22 = vector.broadcast %cst_11 : f32 to vector<8x1024xf32>
    %23 = arith.maximumf %21, %22 : vector<8x1024xf32>
    %24 = vector.extract_strided_slice %23 {offsets = [0, 0], sizes = [8, 256], strides = [1, 1]} : vector<8x1024xf32> to vector<8x256xf32>
    %25 = vector.extract_strided_slice %23 {offsets = [0, 256], sizes = [8, 256], strides = [1, 1]} : vector<8x1024xf32> to vector<8x256xf32>
    %26 = arith.maximumf %24, %25 : vector<8x256xf32>
    %27 = vector.extract_strided_slice %23 {offsets = [0, 512], sizes = [8, 256], strides = [1, 1]} : vector<8x1024xf32> to vector<8x256xf32>
    %28 = vector.extract_strided_slice %23 {offsets = [0, 768], sizes = [8, 256], strides = [1, 1]} : vector<8x1024xf32> to vector<8x256xf32>
    %29 = arith.maximumf %27, %28 : vector<8x256xf32>
    %30 = arith.maximumf %26, %29 : vector<8x256xf32>
    %31 = arith.truncf %30 : vector<8x256xf32> to vector<8x256xbf16>
    %c0_12 = arith.constant 0 : index
    %c0_13 = arith.constant 0 : index
    %32 = vector.load %arg6[%c0_12, %c0_13] : memref<256x128xbf16, #tpu.memory_space<vmem>>, vector<256x128xbf16>
    %cst_14 = arith.constant dense<0.000000e+00> : vector<8x128xf32>
    %33 = tpu.matmul %31, %32, %cst_14 {dimension_numbers = #tpu.dot_dimension_numbers<[1], [0], [0], [1], [0, 0, 1, 1], [], []>} : vector<8x256xbf16>, vector<256x128xbf16>, vector<8x128xf32> -> vector<8x128xf32>
    %c0_15 = arith.constant 0 : index
    %c0_16 = arith.constant 0 : index
    %34 = vector.load %arg7[%c0_15, %c0_16] : memref<1x128xf32, #tpu.memory_space<vmem>>, vector<1x128xf32>
    %35 = vector.broadcast %34 : vector<1x128xf32> to vector<8x128xf32>
    %36 = arith.addf %33, %35 : vector<8x128xf32>
    %cst_17 = arith.constant 0.000000e+00 : f32
    %37 = vector.broadcast %cst_17 : f32 to vector<8x128xf32>
    %38 = arith.subf %37, %36 : vector<8x128xf32>
    %39 = math.exp %38 : vector<8x128xf32>
    %cst_18 = arith.constant 1.000000e+00 : f32
    %40 = vector.broadcast %cst_18 : f32 to vector<8x128xf32>
    %41 = arith.addf %40, %39 : vector<8x128xf32>
    %42 = tpu.reciprocal %41 {approx = true} : vector<8x128xf32> -> vector<8x128xf32>
    %43 = arith.truncf %42 : vector<8x128xf32> to vector<8x128xbf16>
    %c0_19 = arith.constant 0 : index
    %c0_20 = arith.constant 0 : index
    %44 = vector.load %arg8[%c0_19, %c0_20] : memref<128x128xbf16, #tpu.memory_space<vmem>>, vector<128x128xbf16>
    %cst_21 = arith.constant dense<0.000000e+00> : vector<8x128xf32>
    %45 = tpu.matmul %43, %44, %cst_21 {dimension_numbers = #tpu.dot_dimension_numbers<[1], [0], [0], [1], [0, 0, 1, 1], [], []>} : vector<8x128xbf16>, vector<128x128xbf16>, vector<8x128xf32> -> vector<8x128xf32>
    %c0_22 = arith.constant 0 : index
    %c0_23 = arith.constant 0 : index
    %46 = vector.load %arg9[%c0_22, %c0_23] : memref<1x128xf32, #tpu.memory_space<vmem>>, vector<1x128xf32>
    %47 = vector.broadcast %46 : vector<1x128xf32> to vector<8x128xf32>
    %48 = arith.addf %45, %47 : vector<8x128xf32>
    %cst_24 = arith.constant 0.000000e+00 : f32
    %49 = vector.broadcast %cst_24 : f32 to vector<8x128xf32>
    %50 = arith.subf %49, %48 : vector<8x128xf32>
    %51 = math.exp %50 : vector<8x128xf32>
    %cst_25 = arith.constant 1.000000e+00 : f32
    %52 = vector.broadcast %cst_25 : f32 to vector<8x128xf32>
    %53 = arith.addf %52, %51 : vector<8x128xf32>
    %54 = tpu.reciprocal %53 {approx = true} : vector<8x128xf32> -> vector<8x128xf32>
    %55 = arith.truncf %54 : vector<8x128xf32> to vector<8x128xbf16>
    %c0_26 = arith.constant 0 : index
    %c0_27 = arith.constant 0 : index
    %56 = vector.load %arg10[%c0_26, %c0_27] : memref<128x128xbf16, #tpu.memory_space<vmem>>, vector<128x128xbf16>
    %cst_28 = arith.constant dense<0.000000e+00> : vector<8x128xf32>
    %57 = tpu.matmul %55, %56, %cst_28 {dimension_numbers = #tpu.dot_dimension_numbers<[1], [0], [0], [1], [0, 0, 1, 1], [], []>} : vector<8x128xbf16>, vector<128x128xbf16>, vector<8x128xf32> -> vector<8x128xf32>
    %c0_29 = arith.constant 0 : index
    %c0_30 = arith.constant 0 : index
    %58 = vector.load %arg11[%c0_29, %c0_30] : memref<1x128xf32, #tpu.memory_space<vmem>>, vector<1x128xf32>
    %59 = vector.broadcast %58 : vector<1x128xf32> to vector<8x128xf32>
    %60 = arith.addf %57, %59 : vector<8x128xf32>
    %c0_31 = arith.constant 0 : index
    %c0_32 = arith.constant 0 : index
    %61 = vector.load %arg12[%c0_31, %c0_32] : memref<8x128xf32, #tpu.memory_space<vmem>>, vector<8x128xf32>
    tpu.vector_store %arg12[%c0_31, %c0_32], %60 {strides = array<i32>} : memref<8x128xf32, #tpu.memory_space<vmem>>, vector<8x128xf32>,
    return
  }
  func.func @transform_0(%arg0: i32) -> (i32, i32) {
    %c0_i32 = arith.constant 0 : i32
    %c0_i32_0 = arith.constant 0 : i32
    return %arg0, %c0_i32 : i32, i32
  }
  func.func @transform_1(%arg0: i32) -> (i32, i32) {
    %c0_i32 = arith.constant 0 : i32
    %c0_i32_0 = arith.constant 0 : i32
    %c0_i32_1 = arith.constant 0 : i32
    return %c0_i32, %c0_i32_0 : i32, i32
  }
  func.func @transform_2(%arg0: i32) -> (i32, i32) {
    %c0_i32 = arith.constant 0 : i32
    %c0_i32_0 = arith.constant 0 : i32
    %c0_i32_1 = arith.constant 0 : i32
    return %c0_i32, %c0_i32_0 : i32, i32
  }
  func.func @transform_3(%arg0: i32) -> (i32, i32) {
    %c0_i32 = arith.constant 0 : i32
    %c0_i32_0 = arith.constant 0 : i32
    %c0_i32_1 = arith.constant 0 : i32
    return %c0_i32, %c0_i32_0 : i32, i32
  }
  func.func @transform_4(%arg0: i32) -> (i32, i32) {
    %c0_i32 = arith.constant 0 : i32
    %c0_i32_0 = arith.constant 0 : i32
    %c0_i32_1 = arith.constant 0 : i32
    return %c0_i32, %c0_i32_0 : i32, i32
  }
  func.func @transform_5(%arg0: i32) -> (i32, i32) {
    %c0_i32 = arith.constant 0 : i32
    %c0_i32_0 = arith.constant 0 : i32
    %c0_i32_1 = arith.constant 0 : i32
    return %c0_i32, %c0_i32_0 : i32, i32
  }
  func.func @transform_6(%arg0: i32) -> (i32, i32) {
    %c0_i32 = arith.constant 0 : i32
    %c0_i32_0 = arith.constant 0 : i32
    %c0_i32_1 = arith.constant 0 : i32
    return %c0_i32, %c0_i32_0 : i32, i32
  }
  func.func @transform_7(%arg0: i32) -> (i32, i32) {
    %c0_i32 = arith.constant 0 : i32
    %c0_i32_0 = arith.constant 0 : i32
    %c0_i32_1 = arith.constant 0 : i32
    return %c0_i32, %c0_i32_0 : i32, i32
  }
  func.func @transform_8(%arg0: i32) -> (i32, i32) {
    %c0_i32 = arith.constant 0 : i32
    %c0_i32_0 = arith.constant 0 : i32
    %c0_i32_1 = arith.constant 0 : i32
    return %c0_i32, %c0_i32_0 : i32, i32
  }
  func.func @transform_9(%arg0: i32) -> (i32, i32) {
    %c0_i32 = arith.constant 0 : i32
    %c0_i32_0 = arith.constant 0 : i32
    %c0_i32_1 = arith.constant 0 : i32
    return %c0_i32, %c0_i32_0 : i32, i32
  }
  func.func @transform_10(%arg0: i32) -> (i32, i32) {
    %c0_i32 = arith.constant 0 : i32
    %c0_i32_0 = arith.constant 0 : i32
    %c0_i32_1 = arith.constant 0 : i32
    return %c0_i32, %c0_i32_0 : i32, i32
  }
  func.func @transform_11(%arg0: i32) -> (i32, i32) {
    %c0_i32 = arith.constant 0 : i32
    %c0_i32_0 = arith.constant 0 : i32
    return %arg0, %c0_i32 : i32, i32
  }
}

</mosaic_0001>

<bundles_post_ra>
// kernel: lenet_forward.1
= control target key start
LH: loop header
LB: loop body
LE: loop exit
PB: predicated region body
PF: predicated region fallthrough
CT: control target
= control target key end

     0   :  { %16 = vsyncpa [#allocation3], 0  ;;  %s19939_s0 = inlined_call_operand.vmem [shape: f32[8,784], index: 0, kind: input, shape index: {}]   ;;  %s19940_s1 = inlined_call_operand.hbm [shape: bf16[784,3584], index: 1, kind: input, shape index: {}]   ;;  %s19941_s2 = inlined_call_operand.hbm [shape: f32[1,3584], index: 2, kind: input, shape index: {}]   ;;  %s19942_s3 = inlined_call_operand.hbm [shape: bf16[896,1024], index: 3, kind: input, shape index: {}]   ;;  %s19943_s4 = inlined_call_operand.hbm [shape: f32[1,1024], index: 4, kind: input, shape index: {}]   ;;  %s19944_s5 = inlined_call_operand.hbm [shape: bf16[256,128], index: 5, kind: input, shape index: {}]   ;;  %s19945_s6 = inlined_call_operand.hbm [shape: f32[1,128], index: 6, kind: input, shape index: {}]   ;;  %s19946_s7 = inlined_call_operand.hbm [shape: bf16[128,128], index: 7, kind: input, shape index: {}]   ;;  %s19947_s8 = inlined_call_operand.hbm [shape: f32[1,128], index: 8, kind: input, shape index: {}]   ;;  %s19948_s9 = inlined_call_operand.hbm [shape: bf16[128,128], index: 9, kind: input, shape index: {}]   ;;  %s19949_s10 = inlined_call_operand.hbm [shape: f32[1,128], index: 10, kind: input, shape index: {}]   ;;  %s19950_s11 = inlined_call_operand.vmem [shape: f32[8,128], index: 11, kind: output, shape index: {}]  }
   0x1   :  { %17 = vsyncpa [#allocation5], 0 }
   0x2   :  { %18 = vsyncpa [#allocation8], 0 }
   0x3   :  { %19 = vsyncpa [#allocation11], 0 }
   0x4   :  { %20 = vsyncpa [#allocation14], 0 }
   0x5   :  { %21 = vsyncpa [#allocation17], 0  ;;  %s19287_s17 = smov [#allocation4]   ;;  %s19288_s19 = smov [#allocation7]  }
   0x6   :  { %s42_s18 = sshll.u32 %s19287_s17, 4  ;;  %s64_s20 = sshll.u32 %s19288_s19, 4  ;;  %s43_s18 = int_to_ptr.vmem [resolvable:$true] %s42_s18  ;;  %s65_s20 = int_to_ptr.vmem [resolvable:$true] %s64_s20 }
   0x7   :  { %s19055_s23 = scalar_lea.hbm %s19941_s2, 448 }
   0x8   :  { %p19056_p0 = scmp.ne.s32.totalorder %s19941_s2, %s19055_s23  ;;  %p19059_p1 = scmp.lt.u32.totalorder %s19055_s23, %s19941_s2 }
   0xa   :  { %p19061_p2 = pnand %p19059_p1, %p19056_p0 }
   0xc   :  { %19064 = shalt.err (!%p19061_p2)
}
   0xd   :  { %s19065_s28 = scalar_lea.vmem %s43_s18, 448  ;;  %p19070_p4 = scmp.lt.s32.totalorder %s43_s18, %s43_s18 }
   0xe   :  { %p19066_p3 = scmp.ne.s32.totalorder %s43_s18, %s19065_s28  ;;  %p19071_p5 = scmp.lt.s32.totalorder %s19065_s28, %s19065_s28 }
  0x10   :  { %p19072_p6 = por %p19071_p5, %p19070_p4 }
  0x12   :  { %p19073_p7 = pnand %p19072_p6, %p19066_p3 }
  0x14   :  { %19076 = shalt.err (!%p19073_p7)
}
  0x15   :  { %45 = dma.hbm_to_vmem [thread:$0]  %s19941_s2, 448, %s43_s18, [#allocation5]  }
  0x16   :  { %s19077_s14 = scalar_lea.hbm %s19943_s4, 128 }
  0x17   :  { %p19078_p8 = scmp.ne.s32.totalorder %s19943_s4, %s19077_s14  ;;  %p19081_p9 = scmp.lt.u32.totalorder %s19077_s14, %s19943_s4 }
  0x19   :  { %p19083_p10 = pnand %p19081_p9, %p19078_p8 }
  0x1b   :  { %19086 = shalt.err (!%p19083_p10)
}
  0x1c   :  { %s19087_s21 = scalar_lea.vmem %s65_s20, 128  ;;  %p19092_p12 = scmp.lt.s32.totalorder %s65_s20, %s65_s20 }
  0x1d   :  { %p19088_p11 = scmp.ne.s32.totalorder %s65_s20, %s19087_s21  ;;  %p19093_p13 = scmp.lt.s32.totalorder %s19087_s21, %s19087_s21 }
  0x1f   :  { %p19094_p0 = por %p19093_p13, %p19092_p12 }
  0x21   :  { %p19095_p1 = pnand %p19094_p0, %p19088_p11 }
  0x23   :  { %19098 = shalt.err (!%p19095_p1)
}
  0x24   :  { %67 = dma.hbm_to_vmem [thread:$0]  %s19943_s4, 128, %s65_s20, [#allocation8]  }
  0x25   :  { %s19289_s22 = smov [#allocation10]   ;;  %s19290_s24 = smov [#allocation13]  }
  0x26   :  { %s86_s23 = sshll.u32 %s19289_s22, 4  ;;  %s108_s25 = sshll.u32 %s19290_s24, 4  ;;  %s87_s23 = int_to_ptr.vmem [resolvable:$true] %s86_s23  ;;  %s109_s25 = int_to_ptr.vmem [resolvable:$true] %s108_s25 }
  0x27   :  { %s19099_s28 = scalar_lea.hbm %s19945_s6, 16 }
  0x28   :  { %p19100_p2 = scmp.ne.s32.totalorder %s19945_s6, %s19099_s28  ;;  %p19103_p3 = scmp.lt.u32.totalorder %s19099_s28, %s19945_s6 }
  0x2a   :  { %p19105_p4 = pnand %p19103_p3, %p19100_p2 }
  0x2c   :  { %19108 = shalt.err (!%p19105_p4)
}
  0x2d   :  { %s19109_s4 = scalar_lea.vmem %s87_s23, 16  ;;  %s19113_s20 = scalar_lea.vmem %s87_s23, 32 }
  0x2e   :  { %p19110_p5 = scmp.ne.s32.totalorder %s87_s23, %s19109_s4  ;;  %p19114_p6 = scmp.lt.s32.totalorder %s87_s23, %s87_s23 }
  0x2f   :  { %p19115_p7 = scmp.lt.s32.totalorder %s19113_s20, %s19109_s4 }
  0x31   :  { %p19116_p8 = por %p19115_p7, %p19114_p6 }
  0x33   :  { %p19117_p9 = pnand %p19116_p8, %p19110_p5 }
  0x35   :  { %19120 = shalt.err (!%p19117_p9)
}
  0x36   :  { %89 = dma.hbm_to_vmem [thread:$0]  %s19945_s6, 16, %s87_s23, [#allocation11]  }
  0x37   :  { %s19121_s19 = scalar_lea.hbm %s19947_s8, 16 }
  0x38   :  { %p19122_p10 = scmp.ne.s32.totalorder %s19947_s8, %s19121_s19  ;;  %p19125_p11 = scmp.lt.u32.totalorder %s19121_s19, %s19947_s8 }
  0x3a   :  { %p19127_p12 = pnand %p19125_p11, %p19122_p10 }
  0x3c   :  { %19130 = shalt.err (!%p19127_p12)
}
  0x3d   :  { %s19131_s24 = scalar_lea.vmem %s109_s25, 16  ;;  %s19135_s26 = scalar_lea.vmem %s109_s25, 32 }
  0x3e   :  { %p19132_p13 = scmp.ne.s32.totalorder %s109_s25, %s19131_s24  ;;  %p19136_p0 = scmp.lt.s32.totalorder %s109_s25, %s109_s25 }
  0x3f   :  { %p19137_p1 = scmp.lt.s32.totalorder %s19135_s26, %s19131_s24 }
  0x41   :  { %p19138_p2 = por %p19137_p1, %p19136_p0 }
  0x43   :  { %p19139_p3 = pnand %p19138_p2, %p19132_p13 }
  0x45   :  { %19142 = shalt.err (!%p19139_p3)
}
  0x46   :  { %111 = dma.hbm_to_vmem [thread:$0]  %s19947_s8, 16, %s109_s25, [#allocation14]  }
  0x47   :  { %s19291_s27 = smov [#allocation2]   ;;  %s19143_s12 = scalar_lea.hbm %s19940_s1, 175616 }
  0x48   :  { %s29_s28 = sshll.u32 %s19291_s27, 4  ;;  %p19144_p4 = scmp.ne.s32.totalorder %s19940_s1, %s19143_s12  ;;  %s30_s28 = int_to_ptr.vmem [resolvable:$true] %s29_s28 }
  0x49   :  { %p19147_p5 = scmp.lt.u32.totalorder %s19143_s12, %s19940_s1 }
  0x4b   :  { %p19149_p6 = pnand %p19147_p5, %p19144_p4 }
  0x4d   :  { %19152 = shalt.err (!%p19149_p6)
}
  0x4e   :  { %s19153_s15 = scalar_lea.vmem %s30_s28, 175616  ;;  %p19158_p8 = scmp.lt.s32.totalorder %s30_s28, %s30_s28 }
  0x4f   :  { %p19154_p7 = scmp.ne.s32.totalorder %s30_s28, %s19153_s15  ;;  %p19159_p9 = scmp.lt.s32.totalorder %s19153_s15, %s19153_s15 }
  0x51   :  { %p19160_p10 = por %p19159_p9, %p19158_p8 }
  0x53   :  { %p19161_p11 = pnand %p19160_p10, %p19154_p7 }
  0x55   :  { %19164 = shalt.err (!%p19161_p11)
}
  0x56   :  { %s19292_s8 = smov 1792   ;;  %s19293_s25 = smov 112  }
  0x57   :  { %35 = dma.hbm_to_vmem [thread:$0]  %s19940_s1, 175616, %s30_s28, [#allocation3], %s19292_s8, %s19292_s8, %s19293_s25  }
  0x58   :  { %s19294_s19 = smov [#allocation6]   ;;  %s19165_s22 = scalar_lea.hbm %s19942_s3, 57344 }
  0x59   :  { %s51_s21 = sshll.u32 %s19294_s19, 4  ;;  %p19166_p12 = scmp.ne.s32.totalorder %s19942_s3, %s19165_s22  ;;  %s52_s21 = int_to_ptr.vmem [resolvable:$true] %s51_s21 }
  0x5a   :  { %p19169_p13 = scmp.lt.u32.totalorder %s19165_s22, %s19942_s3 }
  0x5c   :  { %p19171_p0 = pnand %p19169_p13, %p19166_p12 }
  0x5e   :  { %19174 = shalt.err (!%p19171_p0)
}
  0x5f   :  { %s19175_s27 = scalar_lea.vmem %s52_s21, 57344  ;;  %p19180_p2 = scmp.lt.s32.totalorder %s52_s21, %s52_s21 }
  0x60   :  { %p19176_p1 = scmp.ne.s32.totalorder %s52_s21, %s19175_s27  ;;  %p19181_p3 = scmp.lt.s32.totalorder %s19175_s27, %s19175_s27 }
  0x62   :  { %p19182_p4 = por %p19181_p3, %p19180_p2 }
  0x64   :  { %p19183_p5 = pnand %p19182_p4, %p19176_p1 }
  0x66   :  { %19186 = shalt.err (!%p19183_p5)
}
  0x67   :  { %s19295_s1 = smov 512   ;;  %s19296_s28 = smov 32  }
  0x68   :  { %57 = dma.hbm_to_vmem [thread:$0]  %s19942_s3, 57344, %s52_s21, [#allocation5], %s19295_s1, %s19295_s1, %s19296_s28  }
  0x69   :  { %s19297_s12 = smov [#allocation9]   ;;  %s19187_s14 = scalar_lea.hbm %s19944_s5, 2048 }
  0x6a   :  { %s73_s13 = sshll.u32 %s19297_s12, 4  ;;  %p19188_p6 = scmp.ne.s32.totalorder %s19944_s5, %s19187_s14  ;;  %s74_s13 = int_to_ptr.vmem [resolvable:$true] %s73_s13 }
  0x6b   :  { %p19191_p7 = scmp.lt.u32.totalorder %s19187_s14, %s19944_s5 }
  0x6d   :  { %p19193_p8 = pnand %p19191_p7, %p19188_p6 }
  0x6f   :  { %19196 = shalt.err (!%p19193_p8)
}
  0x70   :  { %s19197_s17 = scalar_lea.vmem %s74_s13, 2048  ;;  %p19202_p10 = scmp.lt.s32.totalorder %s74_s13, %s74_s13 }
  0x71   :  { %p19198_p9 = scmp.ne.s32.totalorder %s74_s13, %s19197_s17  ;;  %p19203_p11 = scmp.lt.s32.totalorder %s19197_s17, %s19197_s17 }
  0x73   :  { %p19204_p12 = por %p19203_p11, %p19202_p10 }
  0x75   :  { %p19205_p13 = pnand %p19204_p12, %p19198_p9 }
  0x77   :  { %19208 = shalt.err (!%p19205_p13)
}
  0x78   :  { %s19298_s3 = smov 64   ;;  %s19299_s19 = smov 4  }
  0x79   :  { %79 = dma.hbm_to_vmem [thread:$0]  %s19944_s5, 2048, %s74_s13, [#allocation8], %s19298_s3, %s19298_s3, %s19299_s19  }
  0x7a   :  { %s19300_s18 = smov [#allocation12]   ;;  %s19301_s24 = smov [#allocation15]  }
  0x7b   :  { %s95_s22 = sshll.u32 %s19300_s18, 4  ;;  %s117_s26 = sshll.u32 %s19301_s24, 4  ;;  %s96_s22 = int_to_ptr.vmem [resolvable:$true] %s95_s22  ;;  %s118_s26 = int_to_ptr.vmem [resolvable:$true] %s117_s26 }
  0x7c   :  { %s19209_s27 = scalar_lea.hbm %s19946_s7, 1024 }
  0x7d   :  { %p19210_p0 = scmp.ne.s32.totalorder %s19946_s7, %s19209_s27  ;;  %p19213_p1 = scmp.lt.u32.totalorder %s19209_s27, %s19946_s7 }
  0x7f   :  { %p19215_p2 = pnand %p19213_p1, %p19210_p0 }
  0x81   :  { %19218 = shalt.err (!%p19215_p2)
}
  0x82   :  { %s19219_s5 = scalar_lea.vmem %s96_s22, 1024  ;;  %p19224_p4 = scmp.lt.s32.totalorder %s96_s22, %s96_s22 }
  0x83   :  { %p19220_p3 = scmp.ne.s32.totalorder %s96_s22, %s19219_s5  ;;  %p19225_p5 = scmp.lt.s32.totalorder %s19219_s5, %s19219_s5 }
  0x85   :  { %p19226_p6 = por %p19225_p5, %p19224_p4 }
  0x87   :  { %p19227_p7 = pnand %p19226_p6, %p19220_p3 }
  0x89   :  { %19230 = shalt.err (!%p19227_p7)
}
  0x8a   :  { %101 = dma.hbm_to_vmem [thread:$0]  %s19946_s7, 1024, %s96_s22, [#allocation11], %s19298_s3, %s19298_s3, %s19299_s19  }
  0x8b   :  { %s19231_s14 = scalar_lea.hbm %s19948_s9, 1024 }
  0x8c   :  { %p19232_p8 = scmp.ne.s32.totalorder %s19948_s9, %s19231_s14  ;;  %p19235_p9 = scmp.lt.u32.totalorder %s19231_s14, %s19948_s9 }
  0x8e   :  { %p19237_p10 = pnand %p19235_p9, %p19232_p8 }
  0x90   :  { %19240 = shalt.err (!%p19237_p10)
}
  0x91   :  { %s19241_s17 = scalar_lea.vmem %s118_s26, 1024  ;;  %p19246_p12 = scmp.lt.s32.totalorder %s118_s26, %s118_s26 }
  0x92   :  { %p19242_p11 = scmp.ne.s32.totalorder %s118_s26, %s19241_s17  ;;  %p19247_p13 = scmp.lt.s32.totalorder %s19241_s17, %s19241_s17 }
  0x94   :  { %p19248_p0 = por %p19247_p13, %p19246_p12 }
  0x96   :  { %p19249_p1 = pnand %p19248_p0, %p19242_p11 }
  0x98   :  { %19252 = shalt.err (!%p19249_p1)
}
  0x99   :  { %123 = dma.hbm_to_vmem [thread:$0]  %s19948_s9, 1024, %s118_s26, [#allocation14], %s19298_s3, %s19298_s3, %s19299_s19  }
  0x9a   :  { %s19302_s2 = smov [#allocation16]   ;;  %s19253_s6 = scalar_lea.hbm %s19949_s10, 16 }
  0x9b   :  { %s130_s18 = sshll.u32 %s19302_s2, 4  ;;  %p19254_p2 = scmp.ne.s32.totalorder %s19949_s10, %s19253_s6  ;;  %s131_s18 = int_to_ptr.vmem [resolvable:$true] %s130_s18 }
  0x9c   :  { %p19257_p3 = scmp.lt.u32.totalorder %s19253_s6, %s19949_s10 }
  0x9e   :  { %p19259_p4 = pnand %p19257_p3, %p19254_p2 }
  0xa0   :  { %19262 = shalt.err (!%p19259_p4)
}
  0xa1   :  { %s19263_s29 = scalar_lea.vmem %s131_s18, 16  ;;  %s19267_s9 = scalar_lea.vmem %s131_s18, 32 }
  0xa2   :  { %p19264_p5 = scmp.ne.s32.totalorder %s131_s18, %s19263_s29  ;;  %p19268_p6 = scmp.lt.s32.totalorder %s131_s18, %s131_s18 }
  0xa3   :  { %p19269_p7 = scmp.lt.s32.totalorder %s19267_s9, %s19263_s29 }
  0xa5   :  { %p19270_p8 = por %p19269_p7, %p19268_p6 }
  0xa7   :  { %p19271_p9 = pnand %p19270_p8, %p19264_p5 }
  0xa9   :  { %19274 = shalt.err (!%p19271_p9)
}
  0xaa   :  { %133 = dma.hbm_to_vmem [thread:$0]  %s19949_s10, 16, %s131_s18, [#allocation17]  }
  0xab   :  { %19275 = dma.done.wait [#allocation3], 175616  }
  0xac   :  { %19276 = vsyncadd [#allocation3], 4294791680 }
  0xad   :  { %19277 = dma.done.wait [#allocation5], 57792  }
  0xae   :  { %19278 = vsyncadd [#allocation5], 4294909504 }
  0xaf   :  { %19279 = dma.done.wait [#allocation8], 2176  }
  0xb0   :  { %19280 = vsyncadd [#allocation8], 4294965120 }
  0xb1   :  { %19281 = dma.done.wait [#allocation11], 1040  }
  0xb2   :  { %19282 = vsyncadd [#allocation11], 4294966256 }
  0xb3   :  { %19283 = dma.done.wait [#allocation14], 1040  }
  0xb4   :  { %19284 = vsyncadd [#allocation14], 4294966256 }
  0xb5   :  { %19285 = dma.done.wait [#allocation17], 16  }
  0xb6   :  { %19286 = vsyncadd [#allocation17], 4294967280  ;;  %v19303_v0 = vmov 0   ;;  %v16953_v1 = vld [vmem:[#allocation2 + $0x4] ss:$112 sps:$4 sm:$0xff]   ;;  %vm8559_vm0 = vcmask 130048  }
  0xb7   :  { %8718 = vmatprep.mubr.bf16.mxu1 %v19303_v0  ;;  %v16955_v2 = vld [vmem:[#allocation2 + $0x2a04] ss:$112 sps:$4 sm:$0xff]   ;;  %8563 = vmatprep.subr.bf16.mxu0 %v16953_v1  ;;  %v16957_v3 = vld [vmem:[#allocation2] ss:$112 sps:$4 sm:$0xff]   ;;  %v16961_v6 = vld [vmem:[#allocation2 + $0x8] ss:$112 sps:$4 sm:$0xff]  }
  0xb8   :  { %v16958_v4 = vld [vmem:[#allocation2 + $0x2a00] ss:$112 sps:$4 sm:$0xff]   ;;  %8686 = vmatprep.subr.bf16.mxu1 %v16955_v2  ;;  %v16959_v5 = vld [vmem:[#allocation2 + $0xe4] ss:$112 sps:$4 sm:$0xff]   ;;  %8564 = vmatpush1.bf16.msra.mxu0 %v16957_v3  ;;  %v16963_v7 = vld [vmem:[#allocation2 + $0xc] ss:$112 sps:$4 sm:$0xff]  }
  0xb9   :  { %8687 = vmatpush1.bf16.msra.mxu1 %v16958_v4  ;;  %8565 = vmatprep.subr.bf16.mxu0 %v16959_v5  ;;  %v16964_v8 = vld [vmem:[#allocation2 + $0xe0] ss:$112 sps:$4 sm:$0xff]   ;;  %v16965_v11 = vld [vmem:[#allocation2 + $0x1c4] ss:$112 sps:$4 sm:$0xff]   ;;  %v16967_v12 = vld [vmem:[#allocation2 + $0xe8] ss:$112 sps:$4 sm:$0xff]  }
  0xba   :  { %v171_v9 = vld [vmem:[%s19939_s0 + $0x30] sm:$0xff]  ;;  %8727 = vmatprep.subr.bf16.mxu1 %v16963_v7  ;;  %v16969_v13 = vld [vmem:[#allocation2 + $0xec] ss:$112 sps:$4 sm:$0xff]   ;;  %v16973_v18 = vld [vmem:[#allocation2 + $0x1c8] ss:$112 sps:$4 sm:$0xff]   ;;  %vm19305_vm1 = vmmov 0  }
  0xbb   :  { %v19499_v10 = vpack.c.bf16 %v171_v9, %v171_v9  ;;  %v16970_v14 = vld [vmem:[#allocation2 + $0x1c0] ss:$112 sps:$4 sm:$0xff]   ;;  %v16971_v15 = vld [vmem:[#allocation2 + $0x2a4] ss:$112 sps:$4 sm:$0xff]   ;;  %v16975_v16 = vld [vmem:[#allocation2 + $0x1cc] ss:$112 sps:$4 sm:$0xff]  }
  0xbc   :  { %8566 = vmatpush1.bf16.msra.mxu0 %v16964_v8  ;;  %v16976_v17 = vld [vmem:[#allocation2 + $0x2a0] ss:$112 sps:$4 sm:$0xff]   ;;  %v16977_v19 = vld [vmem:[#allocation2 + $0x384] ss:$112 sps:$4 sm:$0xff]   ;;  %v16981_v20 = vld [vmem:[#allocation2 + $0x2ac] ss:$112 sps:$4 sm:$0xff]  }
  0xbd   :  { %16109 = vmatmul.mubr.msk.bf16.vlgmr.msra.gmra.mrb[0].mxu1 %vm8559_vm0, %v19499_v10  ;;  %8567 = vmatprep.subr.bf16.mxu0 %v16965_v11  ;;  %v16979_v21 = vld [vmem:[#allocation2 + $0x2a8] ss:$112 sps:$4 sm:$0xff]   ;;  %v16982_v22 = vld [vmem:[#allocation2 + $0x380] ss:$112 sps:$4 sm:$0xff]   ;;  %v16983_v23 = vld [vmem:[#allocation2 + $0x464] ss:$112 sps:$4 sm:$0xff]  }
  0xbe   :  { %8728 = vmatpush1.bf16.msra.mxu1 %v16961_v6  ;;  %v16987_v24 = vld [vmem:[#allocation2 + $0x38c] ss:$112 sps:$4 sm:$0xff]   ;;  %v16988_v25 = vld [vmem:[#allocation2 + $0x460] ss:$112 sps:$4 sm:$0xff]   ;;  %v16985_v26 = vld [vmem:[#allocation2 + $0x388] ss:$112 sps:$4 sm:$0xff]  }
  0xbf   :  { %8729 = vmatprep.subr.bf16.mxu1 %v16969_v13  ;;  %v16989_v27 = vld [vmem:[#allocation2 + $0x544] ss:$112 sps:$4 sm:$0xff]   ;;  %v16993_v28 = vld [vmem:[#allocation2 + $0x46c] ss:$112 sps:$4 sm:$0xff]   ;;  %v16991_v29 = vld [vmem:[#allocation2 + $0x468] ss:$112 sps:$4 sm:$0xff]  }
  0xc0   :  { %8568 = vmatpush1.bf16.msra.mxu0 %v16970_v14  ;;  %v16994_v30 = vld [vmem:[#allocation2 + $0x540] ss:$112 sps:$4 sm:$0xff]   ;;  %v16995_v31 = vld [vmem:[#allocation2 + $0x624] ss:$112 sps:$4 sm:$0xff]   ;;  %v16999_v32 = vld [vmem:[#allocation2 + $0x54c] ss:$112 sps:$4 sm:$0xff]  }
  0xc1   :  { %8569 = vmatprep.subr.bf16.mxu0 %v16971_v15  ;;  %v17000_v33 = vld [vmem:[#allocation2 + $0x620] ss:$112 sps:$4 sm:$0xff]   ;;  %v16997_v34 = vld [vmem:[#allocation2 + $0x548] ss:$112 sps:$4 sm:$0xff]   ;;  %v17001_v35 = vld [vmem:[#allocation2 + $0x704] ss:$112 sps:$4 sm:$0xff]  }
  0xc2   :  { %8730 = vmatpush1.bf16.msra.mxu1 %v16967_v12  ;;  %v17005_v36 = vld [vmem:[#allocation2 + $0x62c] ss:$112 sps:$4 sm:$0xff]   ;;  %v17003_v37 = vld [vmem:[#allocation2 + $0x628] ss:$112 sps:$4 sm:$0xff]   ;;  %v17006_v38 = vld [vmem:[#allocation2 + $0x700] ss:$112 sps:$4 sm:$0xff]  }
  0xc3   :  { %8731 = vmatprep.subr.bf16.mxu1 %v16975_v16  ;;  %v17007_v39 = vld [vmem:[#allocation2 + $0x7e4] ss:$112 sps:$4 sm:$0xff]   ;;  %v17011_v40 = vld [vmem:[#allocation2 + $0x70c] ss:$112 sps:$4 sm:$0xff]   ;;  %v17012_v41 = vld [vmem:[#allocation2 + $0x7e0] ss:$112 sps:$4 sm:$0xff]  }
  0xc4   :  { %8570 = vmatpush1.bf16.msra.mxu0 %v16976_v17  ;;  %v17009_v42 = vld [vmem:[#allocation2 + $0x708] ss:$112 sps:$4 sm:$0xff]   ;;  %v17013_v43 = vld [vmem:[#allocation2 + $0x8c4] ss:$112 sps:$4 sm:$0xff]   ;;  %v17017_v44 = vld [vmem:[#allocation2 + $0x7ec] ss:$112 sps:$4 sm:$0xff]  }
  0xc5   :  { %8571 = vmatprep.subr.bf16.mxu0 %v16977_v19  ;;  %v17015_v45 = vld [vmem:[#allocation2 + $0x7e8] ss:$112 sps:$4 sm:$0xff]   ;;  %v17018_v46 = vld [vmem:[#allocation2 + $0x8c0] ss:$112 sps:$4 sm:$0xff]   ;;  %v17019_v47 = vld [vmem:[#allocation2 + $0x9a4] ss:$112 sps:$4 sm:$0xff]  }
  0xc6   :  { %8732 = vmatpush1.bf16.msra.mxu1 %v16973_v18  ;;  %v17023_v48 = vld [vmem:[#allocation2 + $0x8cc] ss:$112 sps:$4 sm:$0xff]   ;;  %v17024_v50 = vld [vmem:[#allocation2 + $0x9a0] ss:$112 sps:$4 sm:$0xff]   ;;  %v17021_v52 = vld [vmem:[#allocation2 + $0x8c8] ss:$112 sps:$4 sm:$0xff]  }
  0xc7   :  { %8733 = vmatprep.subr.bf16.mxu1 %v16981_v20  ;;  %v166_v49 = vld [vmem:[%s19939_s0 + $0x8] sm:$0xff]  ;;  %v17025_v53 = vld [vmem:[#allocation2 + $0xa84] ss:$112 sps:$4 sm:$0xff]   ;;  %v17030_v56 = vld [vmem:[#allocation2 + $0xa80] ss:$112 sps:$4 sm:$0xff]  }
  0xc8   :  { %8572 = vmatpush1.bf16.msra.mxu0 %v16982_v22  ;;  %v19506_v51 = vpack.c.bf16 %v166_v49, %v166_v49  ;;  %v17029_v54 = vld [vmem:[#allocation2 + $0x9ac] ss:$112 sps:$4 sm:$0xff]   ;;  %v17027_v55 = vld [vmem:[#allocation2 + $0x9a8] ss:$112 sps:$4 sm:$0xff]   ;;  %v17031_v57 = vld [vmem:[#allocation2 + $0xb64] ss:$112 sps:$4 sm:$0xff]  }
  0xc9   :  { %8573 = vmatprep.subr.bf16.mxu0 %v16983_v23  ;;  %v17035_v58 = vld [vmem:[#allocation2 + $0xa8c] ss:$112 sps:$4 sm:$0xff]   ;;  %v17033_v59 = vld [vmem:[#allocation2 + $0xa88] ss:$112 sps:$4 sm:$0xff]   ;;  %v17036_v60 = vld [vmem:[#allocation2 + $0xb60] ss:$112 sps:$4 sm:$0xff]  }
  0xca   :  { %8734 = vmatpush1.bf16.msra.mxu1 %v16979_v21  ;;  %8595 = vmatprep.mubr.bf16.mxu0 %v19506_v51  ;;  %v17037_v61 = vld [vmem:[#allocation2 + $0xc44] ss:$112 sps:$4 sm:$0xff]   ;;  %v17041_v62 = vld [vmem:[#allocation2 + $0xb6c] ss:$112 sps:$4 sm:$0xff]   ;;  %v17039_v63 = vld [vmem:[#allocation2 + $0xb68] ss:$112 sps:$4 sm:$0xff]  }
  0xcb   :  { %8735 = vmatprep.subr.bf16.mxu1 %v16987_v24  ;;  %8759 = vmatprep.mubr.bf16.mxu1 %v19506_v51  ;;  %v17042_v1 = vld [vmem:[#allocation2 + $0xc40] ss:$112 sps:$4 sm:$0xff]   ;;  %v17043_v2 = vld [vmem:[#allocation2 + $0xd24] ss:$112 sps:$4 sm:$0xff]   ;;  %v17047_v3 = vld [vmem:[#allocation2 + $0xc4c] ss:$112 sps:$4 sm:$0xff]  }
  0xcc   :  { %8574 = vmatpush1.bf16.msra.mxu0 %v16988_v25  ;;  %v17045_v4 = vld [vmem:[#allocation2 + $0xc48] ss:$112 sps:$4 sm:$0xff]   ;;  %v17048_v5 = vld [vmem:[#allocation2 + $0xd20] ss:$112 sps:$4 sm:$0xff]   ;;  %v17051_v7 = vld [vmem:[#allocation2 + $0xe04] ss:$112 sps:$4 sm:$0xff]  }
  0xcd   :  { %8575 = vmatprep.subr.bf16.mxu0 %v16989_v27  ;;  %v165_v6 = vld [vmem:[%s19939_s0] sm:$0xff]  ;;  %v17054_v8 = vld [vmem:[#allocation2 + $0xd2c] ss:$112 sps:$4 sm:$0xff]   ;;  %v17052_v12 = vld [vmem:[#allocation2 + $0xd28] ss:$112 sps:$4 sm:$0xff]  }
  0xce   :  { %8736 = vmatpush1.bf16.msra.mxu1 %v16985_v26  ;;  %v19513_v9 = vpack.c.bf16 %v165_v6, %v165_v6  ;;  %v17049_v11 = vld [vmem:[#allocation2 + $0xe00] ss:$112 sps:$4 sm:$0xff]   ;;  %v17057_v13 = vld [vmem:[#allocation2 + $0xee4] ss:$112 sps:$4 sm:$0xff]   ;;  %v17060_v14 = vld [vmem:[#allocation2 + $0xe0c] ss:$112 sps:$4 sm:$0xff]  }
  0xcf   :  { %8737 = vmatprep.subr.bf16.mxu1 %v16993_v28  ;;  %v17055_v15 = vld [vmem:[#allocation2 + $0xee0] ss:$112 sps:$4 sm:$0xff]   ;;  %v17058_v16 = vld [vmem:[#allocation2 + $0xe08] ss:$112 sps:$4 sm:$0xff]   ;;  %v17063_v17 = vld [vmem:[#allocation2 + $0xfc4] ss:$112 sps:$4 sm:$0xff]  }
  0xd0   :  { %8576 = vmatpush1.bf16.msra.mxu0 %v16994_v30  ;;  %v17066_v18 = vld [vmem:[#allocation2 + $0xeec] ss:$112 sps:$4 sm:$0xff]   ;;  %v17061_v19 = vld [vmem:[#allocation2 + $0xfc0] ss:$112 sps:$4 sm:$0xff]   ;;  %v17064_v20 = vld [vmem:[#allocation2 + $0xee8] ss:$112 sps:$4 sm:$0xff]  }
  0xd1   :  { %8577 = vmatprep.subr.bf16.mxu0 %v16995_v31  ;;  %v17069_v21 = vld [vmem:[#allocation2 + $0x10a4] ss:$112 sps:$4 sm:$0xff]   ;;  %v17072_v22 = vld [vmem:[#allocation2 + $0xfcc] ss:$112 sps:$4 sm:$0xff]   ;;  %v17067_v23 = vld [vmem:[#allocation2 + $0x10a0] ss:$112 sps:$4 sm:$0xff]  }
  0xd2   :  { %8738 = vmatpush1.bf16.msra.mxu1 %v16991_v29  ;;  %v17070_v24 = vld [vmem:[#allocation2 + $0xfc8] ss:$112 sps:$4 sm:$0xff]   ;;  %v17075_v25 = vld [vmem:[#allocation2 + $0x1184] ss:$112 sps:$4 sm:$0xff]   ;;  %v17078_v26 = vld [vmem:[#allocation2 + $0x10ac] ss:$112 sps:$4 sm:$0xff]  }
  0xd3   :  { %8739 = vmatprep.subr.bf16.mxu1 %v16999_v32  ;;  %v17073_v27 = vld [vmem:[#allocation2 + $0x1180] ss:$112 sps:$4 sm:$0xff]   ;;  %v17076_v28 = vld [vmem:[#allocation2 + $0x10a8] ss:$112 sps:$4 sm:$0xff]   ;;  %v17081_v29 = vld [vmem:[#allocation2 + $0x1264] ss:$112 sps:$4 sm:$0xff]  }
  0xd4   :  { %8578 = vmatpush1.bf16.msra.mxu0 %v17000_v33  ;;  %v17084_v30 = vld [vmem:[#allocation2 + $0x118c] ss:$112 sps:$4 sm:$0xff]   ;;  %v17079_v31 = vld [vmem:[#allocation2 + $0x1260] ss:$112 sps:$4 sm:$0xff]   ;;  %v17082_v32 = vld [vmem:[#allocation2 + $0x1188] ss:$112 sps:$4 sm:$0xff]  }
  0xd5   :  { %8579 = vmatprep.subr.bf16.mxu0 %v17001_v35  ;;  %v17087_v33 = vld [vmem:[#allocation2 + $0x1344] ss:$112 sps:$4 sm:$0xff]   ;;  %v168_v35 = vld [vmem:[%s19939_s0 + $0x18] sm:$0xff]  ;;  %v17103_v49 = vld [vmem:[#allocation2 + $0x15e0] ss:$112 sps:$4 sm:$0xff]  }
  0xd6   :  { %8740 = vmatpush1.bf16.msra.mxu1 %v16997_v34  ;;  %v17090_v34 = vld [vmem:[#allocation2 + $0x126c] ss:$112 sps:$4 sm:$0xff]  }
  0xd7   :  { %8741 = vmatprep.subr.bf16.mxu1 %v17005_v36  ;;  %v19520_v36 = vpack.c.bf16 %v168_v35, %v168_v35  ;;  %v17138_v6 = vld [vmem:[#allocation2 + $0x196c] ss:$112 sps:$4 sm:$0xff]   ;;  %v17171_v35 = vld [vmem:[#allocation2 + $0x1f84] ss:$112 sps:$4 sm:$0xff]  }
  0xd8   :  { %8580 = vmatpush1.bf16.msra.mxu0 %v17006_v38  ;;  %v17088_v38 = vld [vmem:[#allocation2 + $0x1268] ss:$112 sps:$4 sm:$0xff]  }
  0xd9   :  { %8581 = vmatprep.subr.bf16.mxu0 %v17007_v39  ;;  %v17093_v39 = vld [vmem:[#allocation2 + $0x1424] ss:$112 sps:$4 sm:$0xff]  }
  0xda   :  { %8742 = vmatpush1.bf16.msra.mxu1 %v17003_v37  ;;  %v17085_v37 = vld [vmem:[#allocation2 + $0x1340] ss:$112 sps:$4 sm:$0xff]  }
  0xdb   :  { %8743 = vmatprep.subr.bf16.mxu1 %v17011_v40  ;;  %v17096_v40 = vld [vmem:[#allocation2 + $0x134c] ss:$112 sps:$4 sm:$0xff]  }
  0xdc   :  { %8582 = vmatpush1.bf16.msra.mxu0 %v17012_v41  ;;  %v17091_v41 = vld [vmem:[#allocation2 + $0x1420] ss:$112 sps:$4 sm:$0xff]  }
  0xdd   :  { %8583 = vmatprep.subr.bf16.mxu0 %v17013_v43  ;;  %v17099_v43 = vld [vmem:[#allocation2 + $0x1504] ss:$112 sps:$4 sm:$0xff]  }
  0xde   :  { %8744 = vmatpush1.bf16.msra.mxu1 %v17009_v42  ;;  %v17094_v42 = vld [vmem:[#allocation2 + $0x1348] ss:$112 sps:$4 sm:$0xff]  }
  0xdf   :  { %8745 = vmatprep.subr.bf16.mxu1 %v17017_v44  ;;  %v17102_v44 = vld [vmem:[#allocation2 + $0x142c] ss:$112 sps:$4 sm:$0xff]  }
  0xe0   :  { %8584 = vmatpush1.bf16.msra.mxu0 %v17018_v46  ;;  %v17100_v46 = vld [vmem:[#allocation2 + $0x1428] ss:$112 sps:$4 sm:$0xff]  }
  0xe1   :  { %8585 = vmatprep.subr.bf16.mxu0 %v17019_v47  ;;  %v17105_v47 = vld [vmem:[#allocation2 + $0x15e4] ss:$112 sps:$4 sm:$0xff]  }
  0xe2   :  { %8746 = vmatpush1.bf16.msra.mxu1 %v17015_v45  ;;  %v17097_v45 = vld [vmem:[#allocation2 + $0x1500] ss:$112 sps:$4 sm:$0xff]  }
  0xe3   :  { %8747 = vmatprep.subr.bf16.mxu1 %v17023_v48  ;;  %v17108_v48 = vld [vmem:[#allocation2 + $0x150c] ss:$112 sps:$4 sm:$0xff]  }
  0xe4   :  { %8586 = vmatpush1.bf16.msra.mxu0 %v17024_v50  ;;  %v17106_v50 = vld [vmem:[#allocation2 + $0x1508] ss:$112 sps:$4 sm:$0xff]  }
  0xe5   :  { %8587 = vmatprep.subr.bf16.mxu0 %v17025_v53  ;;  %v17114_v53 = vld [vmem:[#allocation2 + $0x15ec] ss:$112 sps:$4 sm:$0xff]  }
  0xe6   :  { %8748 = vmatpush1.bf16.msra.mxu1 %v17021_v52  ;;  %v17111_v52 = vld [vmem:[#allocation2 + $0x16c4] ss:$112 sps:$4 sm:$0xff]  }
  0xe7   :  { %8749 = vmatprep.subr.bf16.mxu1 %v17029_v54  ;;  %v17109_v54 = vld [vmem:[#allocation2 + $0x16c0] ss:$112 sps:$4 sm:$0xff]  }
  0xe8   :  { %8588 = vmatpush1.bf16.msra.mxu0 %v17030_v56  ;;  %v17117_v56 = vld [vmem:[#allocation2 + $0x17a4] ss:$112 sps:$4 sm:$0xff]  }
  0xe9   :  { %8589 = vmatprep.subr.bf16.mxu0 %v17031_v57  ;;  %v17120_v57 = vld [vmem:[#allocation2 + $0x16cc] ss:$112 sps:$4 sm:$0xff]  }
  0xea   :  { %8750 = vmatpush1.bf16.msra.mxu1 %v17027_v55  ;;  %v17112_v55 = vld [vmem:[#allocation2 + $0x15e8] ss:$112 sps:$4 sm:$0xff]  }
  0xeb   :  { %8751 = vmatprep.subr.bf16.mxu1 %v17035_v58  ;;  %v17115_v58 = vld [vmem:[#allocation2 + $0x17a0] ss:$112 sps:$4 sm:$0xff]  }
  0xec   :  { %8590 = vmatpush1.bf16.msra.mxu0 %v17036_v60  ;;  %v17123_v60 = vld [vmem:[#allocation2 + $0x1884] ss:$112 sps:$4 sm:$0xff]  }
  0xed   :  { %8591 = vmatprep.subr.bf16.mxu0 %v17037_v61  ;;  %v17126_v61 = vld [vmem:[#allocation2 + $0x17ac] ss:$112 sps:$4 sm:$0xff]  }
  0xee   :  { %8752 = vmatpush1.bf16.msra.mxu1 %v17033_v59  ;;  %v17118_v59 = vld [vmem:[#allocation2 + $0x16c8] ss:$112 sps:$4 sm:$0xff]  }
  0xef   :  { %8753 = vmatprep.subr.bf16.mxu1 %v17041_v62  ;;  %v17121_v62 = vld [vmem:[#allocation2 + $0x1880] ss:$112 sps:$4 sm:$0xff]  }
  0xf0   :  { %8592 = vmatpush1.bf16.msra.mxu0 %v17042_v1  ;;  %v17129_v1 = vld [vmem:[#allocation2 + $0x1964] ss:$112 sps:$4 sm:$0xff]  }
  0xf1   :  { %8593 = vmatprep.subr.bf16.mxu0 %v17043_v2  ;;  %v17132_v2 = vld [vmem:[#allocation2 + $0x188c] ss:$112 sps:$4 sm:$0xff]  }
  0xf2   :  { %8754 = vmatpush1.bf16.msra.mxu1 %v17039_v63  ;;  %v17124_v63 = vld [vmem:[#allocation2 + $0x17a8] ss:$112 sps:$4 sm:$0xff]  }
  0xf3   :  { %8755 = vmatprep.subr.bf16.mxu1 %v17047_v3  ;;  %v17127_v3 = vld [vmem:[#allocation2 + $0x1960] ss:$112 sps:$4 sm:$0xff]  }
  0xf4   :  { %8594 = vmatpush1.bf16.msra.mxu0 %v17048_v5  ;;  %v17135_v5 = vld [vmem:[#allocation2 + $0x1a44] ss:$112 sps:$4 sm:$0xff]  }
  0xf5   :  { %8604 = vmatprep.subr.bf16.mxu0 %v17051_v7  ;;  %v17133_v7 = vld [vmem:[#allocation2 + $0x1a40] ss:$112 sps:$4 sm:$0xff]  }
  0xf6   :  { %8756 = vmatpush1.bf16.msra.mxu1 %v17045_v4  ;;  %v17130_v4 = vld [vmem:[#allocation2 + $0x1888] ss:$112 sps:$4 sm:$0xff]  }
  0xf7   :  { %8757 = vmatprep.subr.bf16.mxu1 %v17054_v8  ;;  %8596 = vmatmul.mubr.bf16.vlgmr.msra.gmra.mrb[0].mxu0 %v19513_v9  ;;  %v17136_v8 = vld [vmem:[#allocation2 + $0x1968] ss:$112 sps:$4 sm:$0xff]  }
  0xf8   :  { %8605 = vmatpush1.bf16.msra.mxu0 %v17049_v11  ;;  %8636 = vmatprep.mubr.bf16.mxu0 %v19520_v36  ;;  %v17141_v11 = vld [vmem:[#allocation2 + $0x1b24] ss:$112 sps:$4 sm:$0xff]  }
  0xf9   :  { %8606 = vmatprep.subr.bf16.mxu0 %v17057_v13  ;;  %v17139_v13 = vld [vmem:[#allocation2 + $0x1b20] ss:$112 sps:$4 sm:$0xff]  }
  0xfa   :  { %8758 = vmatpush1.bf16.msra.mxu1 %v17052_v12  ;;  %v17144_v12 = vld [vmem:[#allocation2 + $0x1a4c] ss:$112 sps:$4 sm:$0xff]  }
  0xfb   :  { %8768 = vmatprep.subr.bf16.mxu1 %v17060_v14  ;;  %v167_v14 = vld [vmem:[%s19939_s0 + $0x10] sm:$0xff] }
  0xfc   :  { %8607 = vmatpush1.bf16.msra.mxu0 %v17055_v15  ;;  %v17142_v15 = vld [vmem:[#allocation2 + $0x1a48] ss:$112 sps:$4 sm:$0xff]  }
  0xfd   :  { %8760 = vmatmul.mubr.bf16.vlgmr.msra.gmra.mrb[4].mxu1 %v19513_v9  ;;  %8608 = vmatprep.subr.bf16.mxu0 %v17063_v17  ;;  %v17150_v17 = vld [vmem:[#allocation2 + $0x1b2c] ss:$112 sps:$4 sm:$0xff]  }
  0xfe   :  { %8769 = vmatpush1.bf16.msra.mxu1 %v17058_v16  ;;  %8800 = vmatprep.mubr.bf16.mxu1 %v19520_v36  ;;  %v17147_v16 = vld [vmem:[#allocation2 + $0x1c04] ss:$112 sps:$4 sm:$0xff]  }
  0xff   :  { %8770 = vmatprep.subr.bf16.mxu1 %v17066_v18  ;;  %v19527_v18 = vpack.c.bf16 %v167_v14, %v167_v14  ;;  %v17223_v14 = vld [vmem:[#allocation2 + $0x2760] ss:$112 sps:$4 sm:$0xff]  }
 0x100   :  { %8609 = vmatpush1.bf16.msra.mxu0 %v17061_v19  ;;  %v17145_v19 = vld [vmem:[#allocation2 + $0x1c00] ss:$112 sps:$4 sm:$0xff]  }
 0x101   :  { %8610 = vmatprep.subr.bf16.mxu0 %v17069_v21  ;;  %v17153_v21 = vld [vmem:[#allocation2 + $0x1ce4] ss:$112 sps:$4 sm:$0xff]  }
 0x102   :  { %8771 = vmatpush1.bf16.msra.mxu1 %v17064_v20  ;;  %v17148_v20 = vld [vmem:[#allocation2 + $0x1b28] ss:$112 sps:$4 sm:$0xff]  }
 0x103   :  { %8772 = vmatprep.subr.bf16.mxu1 %v17072_v22  ;;  %v170_v22 = vld [vmem:[%s19939_s0 + $0x28] sm:$0xff] }
 0x104   :  { %8611 = vmatpush1.bf16.msra.mxu0 %v17067_v23  ;;  %v17156_v23 = vld [vmem:[#allocation2 + $0x1c0c] ss:$112 sps:$4 sm:$0xff]  }
 0x105   :  { %8612 = vmatprep.subr.bf16.mxu0 %v17075_v25  ;;  %v17151_v25 = vld [vmem:[#allocation2 + $0x1ce0] ss:$112 sps:$4 sm:$0xff]  }
 0x106   :  { %8773 = vmatpush1.bf16.msra.mxu1 %v17070_v24  ;;  %v19532_v24 = vpack.c.bf16 %v170_v22, %v170_v22  ;;  %v17240_v22 = vld [vmem:[#allocation2 + $0x284c] ss:$112 sps:$4 sm:$0xff]  }
 0x107   :  { %8774 = vmatprep.subr.bf16.mxu1 %v17078_v26  ;;  %v17154_v26 = vld [vmem:[#allocation2 + $0x1c08] ss:$112 sps:$4 sm:$0xff]  }
 0x108   :  { %8613 = vmatpush1.bf16.msra.mxu0 %v17073_v27  ;;  %v17159_v27 = vld [vmem:[#allocation2 + $0x1dc4] ss:$112 sps:$4 sm:$0xff]  }
 0x109   :  { %8614 = vmatprep.subr.bf16.mxu0 %v17081_v29  ;;  %v17157_v29 = vld [vmem:[#allocation2 + $0x1dc0] ss:$112 sps:$4 sm:$0xff]  }
 0x10a   :  { %8775 = vmatpush1.bf16.msra.mxu1 %v17076_v28  ;;  %v17162_v28 = vld [vmem:[#allocation2 + $0x1cec] ss:$112 sps:$4 sm:$0xff]  }
 0x10b   :  { %8776 = vmatprep.subr.bf16.mxu1 %v17084_v30  ;;  %v17160_v30 = vld [vmem:[#allocation2 + $0x1ce8] ss:$112 sps:$4 sm:$0xff]  }
 0x10c   :  { %8615 = vmatpush1.bf16.msra.mxu0 %v17079_v31  ;;  %v17165_v31 = vld [vmem:[#allocation2 + $0x1ea4] ss:$112 sps:$4 sm:$0xff]  }
 0x10d   :  { %8616 = vmatprep.subr.bf16.mxu0 %v17087_v33  ;;  %v17163_v33 = vld [vmem:[#allocation2 + $0x1ea0] ss:$112 sps:$4 sm:$0xff]  }
 0x10e   :  { %8777 = vmatpush1.bf16.msra.mxu1 %v17082_v32  ;;  %v17168_v32 = vld [vmem:[#allocation2 + $0x1dcc] ss:$112 sps:$4 sm:$0xff]  }
 0x10f   :  { %8778 = vmatprep.subr.bf16.mxu1 %v17090_v34  ;;  %v17166_v34 = vld [vmem:[#allocation2 + $0x1dc8] ss:$112 sps:$4 sm:$0xff]  }
 0x110   :  { %8617 = vmatpush1.bf16.msra.mxu0 %v17085_v37  ;;  %v17174_v37 = vld [vmem:[#allocation2 + $0x1eac] ss:$112 sps:$4 sm:$0xff]  }
 0x111   :  { %8618 = vmatprep.subr.bf16.mxu0 %v17093_v39  ;;  %v17172_v39 = vld [vmem:[#allocation2 + $0x1ea8] ss:$112 sps:$4 sm:$0xff]  }
 0x112   :  { %8779 = vmatpush1.bf16.msra.mxu1 %v17088_v38  ;;  %v17169_v38 = vld [vmem:[#allocation2 + $0x1f80] ss:$112 sps:$4 sm:$0xff]  }
 0x113   :  { %8780 = vmatprep.subr.bf16.mxu1 %v17096_v40  ;;  %v17177_v40 = vld [vmem:[#allocation2 + $0x2064] ss:$112 sps:$4 sm:$0xff]  }
 0x114   :  { %8619 = vmatpush1.bf16.msra.mxu0 %v17091_v41  ;;  %v17180_v41 = vld [vmem:[#allocation2 + $0x1f8c] ss:$112 sps:$4 sm:$0xff]  }
 0x115   :  { %8620 = vmatprep.subr.bf16.mxu0 %v17099_v43  ;;  %v17178_v43 = vld [vmem:[#allocation2 + $0x1f88] ss:$112 sps:$4 sm:$0xff]  }
 0x116   :  { %8781 = vmatpush1.bf16.msra.mxu1 %v17094_v42  ;;  %v17175_v42 = vld [vmem:[#allocation2 + $0x2060] ss:$112 sps:$4 sm:$0xff]  }
 0x117   :  { %8782 = vmatprep.subr.bf16.mxu1 %v17102_v44  ;;  %v17183_v44 = vld [vmem:[#allocation2 + $0x2144] ss:$112 sps:$4 sm:$0xff]  }
 0x118   :  { %8621 = vmatpush1.bf16.msra.mxu0 %v17097_v45  ;;  %v17186_v45 = vld [vmem:[#allocation2 + $0x206c] ss:$112 sps:$4 sm:$0xff]  }
 0x119   :  { %8622 = vmatprep.subr.bf16.mxu0 %v17105_v47  ;;  %v17184_v47 = vld [vmem:[#allocation2 + $0x2068] ss:$112 sps:$4 sm:$0xff]  }
 0x11a   :  { %8783 = vmatpush1.bf16.msra.mxu1 %v17100_v46  ;;  %v17181_v46 = vld [vmem:[#allocation2 + $0x2140] ss:$112 sps:$4 sm:$0xff]  }
 0x11b   :  { %8784 = vmatprep.subr.bf16.mxu1 %v17108_v48  ;;  %v17189_v48 = vld [vmem:[#allocation2 + $0x2224] ss:$112 sps:$4 sm:$0xff]  }
 0x11c   :  { %8623 = vmatpush1.bf16.msra.mxu0 %v17103_v49  ;;  %v17192_v49 = vld [vmem:[#allocation2 + $0x214c] ss:$112 sps:$4 sm:$0xff]  }
 0x11d   :  { %8624 = vmatprep.subr.bf16.mxu0 %v17111_v52  ;;  %v17190_v52 = vld [vmem:[#allocation2 + $0x2148] ss:$112 sps:$4 sm:$0xff]  }
 0x11e   :  { %8785 = vmatpush1.bf16.msra.mxu1 %v17106_v50  ;;  %v17187_v50 = vld [vmem:[#allocation2 + $0x2220] ss:$112 sps:$4 sm:$0xff]  }
 0x11f   :  { %8786 = vmatprep.subr.bf16.mxu1 %v17114_v53  ;;  %v17195_v53 = vld [vmem:[#allocation2 + $0x2304] ss:$112 sps:$4 sm:$0xff]  }
 0x120   :  { %8625 = vmatpush1.bf16.msra.mxu0 %v17109_v54  ;;  %v17198_v54 = vld [vmem:[#allocation2 + $0x222c] ss:$112 sps:$4 sm:$0xff]  }
 0x121   :  { %8626 = vmatprep.subr.bf16.mxu0 %v17117_v56  ;;  %v17196_v56 = vld [vmem:[#allocation2 + $0x2228] ss:$112 sps:$4 sm:$0xff]  }
 0x122   :  { %8787 = vmatpush1.bf16.msra.mxu1 %v17112_v55  ;;  %v17193_v55 = vld [vmem:[#allocation2 + $0x2300] ss:$112 sps:$4 sm:$0xff]  }
 0x123   :  { %8788 = vmatprep.subr.bf16.mxu1 %v17120_v57  ;;  %v17201_v57 = vld [vmem:[#allocation2 + $0x23e4] ss:$112 sps:$4 sm:$0xff]  }
 0x124   :  { %8627 = vmatpush1.bf16.msra.mxu0 %v17115_v58  ;;  %v17204_v58 = vld [vmem:[#allocation2 + $0x230c] ss:$112 sps:$4 sm:$0xff]  }
 0x125   :  { %8628 = vmatprep.subr.bf16.mxu0 %v17123_v60  ;;  %v17202_v60 = vld [vmem:[#allocation2 + $0x2308] ss:$112 sps:$4 sm:$0xff]  }
 0x126   :  { %8789 = vmatpush1.bf16.msra.mxu1 %v17118_v59  ;;  %v17199_v59 = vld [vmem:[#allocation2 + $0x23e0] ss:$112 sps:$4 sm:$0xff]  }
 0x127   :  { %8790 = vmatprep.subr.bf16.mxu1 %v17126_v61  ;;  %v17207_v61 = vld [vmem:[#allocation2 + $0x24c4] ss:$112 sps:$4 sm:$0xff]  }
 0x128   :  { %8629 = vmatpush1.bf16.msra.mxu0 %v17121_v62  ;;  %v17210_v62 = vld [vmem:[#allocation2 + $0x23ec] ss:$112 sps:$4 sm:$0xff]  }
 0x129   :  { %8630 = vmatprep.subr.bf16.mxu0 %v17129_v1  ;;  %v17208_v1 = vld [vmem:[#allocation2 + $0x23e8] ss:$112 sps:$4 sm:$0xff]  }
 0x12a   :  { %8791 = vmatpush1.bf16.msra.mxu1 %v17124_v63  ;;  %v17205_v63 = vld [vmem:[#allocation2 + $0x24c0] ss:$112 sps:$4 sm:$0xff]  }
 0x12b   :  { %8792 = vmatprep.subr.bf16.mxu1 %v17132_v2  ;;  %v17213_v2 = vld [vmem:[#allocation2 + $0x25a4] ss:$112 sps:$4 sm:$0xff]  }
 0x12c   :  { %8631 = vmatpush1.bf16.msra.mxu0 %v17127_v3  ;;  %v17216_v3 = vld [vmem:[#allocation2 + $0x24cc] ss:$112 sps:$4 sm:$0xff]  }
 0x12d   :  { %8632 = vmatprep.subr.bf16.mxu0 %v17135_v5  ;;  %v17214_v5 = vld [vmem:[#allocation2 + $0x24c8] ss:$112 sps:$4 sm:$0xff]  }
 0x12e   :  { %8793 = vmatpush1.bf16.msra.mxu1 %v17130_v4  ;;  %v17211_v4 = vld [vmem:[#allocation2 + $0x25a0] ss:$112 sps:$4 sm:$0xff]  }
 0x12f   :  { %8794 = vmatprep.subr.bf16.mxu1 %v17138_v6  ;;  %v17219_v6 = vld [vmem:[#allocation2 + $0x2684] ss:$112 sps:$4 sm:$0xff]  }
 0x130   :  { %8633 = vmatpush1.bf16.msra.mxu0 %v17133_v7  ;;  %v17222_v7 = vld [vmem:[#allocation2 + $0x25ac] ss:$112 sps:$4 sm:$0xff]  }
 0x131   :  { %8634 = vmatprep.subr.bf16.mxu0 %v17141_v11  ;;  %v17220_v11 = vld [vmem:[#allocation2 + $0x25a8] ss:$112 sps:$4 sm:$0xff]  }
 0x132   :  { %8795 = vmatpush1.bf16.msra.mxu1 %v17136_v8  ;;  %v17217_v8 = vld [vmem:[#allocation2 + $0x2680] ss:$112 sps:$4 sm:$0xff]  }
 0x133   :  { %8796 = vmatprep.subr.bf16.mxu1 %v17144_v12  ;;  %v17225_v12 = vld [vmem:[#allocation2 + $0x2764] ss:$112 sps:$4 sm:$0xff]  }
 0x134   :  { %8635 = vmatpush1.bf16.msra.mxu0 %v17139_v13  ;;  %v17228_v13 = vld [vmem:[#allocation2 + $0x268c] ss:$112 sps:$4 sm:$0xff]  }
 0x135   :  { %8645 = vmatprep.subr.bf16.mxu0 %v17147_v16  ;;  %v17231_v16 = vld [vmem:[#allocation2 + $0x2844] ss:$112 sps:$4 sm:$0xff]  }
 0x136   :  { %8797 = vmatpush1.bf16.msra.mxu1 %v17142_v15  ;;  %v17226_v15 = vld [vmem:[#allocation2 + $0x2688] ss:$112 sps:$4 sm:$0xff]  }
 0x137   :  { %8798 = vmatprep.subr.bf16.mxu1 %v17150_v17  ;;  %8637 = vmatmul.mubr.bf16.vlgmr.msra.gmra.mrb[0].mxu0 %v19527_v18  ;;  %v17234_v17 = vld [vmem:[#allocation2 + $0x276c] ss:$112 sps:$4 sm:$0xff]  }
 0x138   :  { %8646 = vmatpush1.bf16.msra.mxu0 %v17145_v19  ;;  %8677 = vmatprep.mubr.bf16.mxu0 %v19532_v24  ;;  %v17229_v19 = vld [vmem:[#allocation2 + $0x2840] ss:$112 sps:$4 sm:$0xff]  }
 0x139   :  { %8647 = vmatprep.subr.bf16.mxu0 %v17153_v21  ;;  %v17237_v21 = vld [vmem:[#allocation2 + $0x2924] ss:$112 sps:$4 sm:$0xff]  }
 0x13a   :  { %8799 = vmatpush1.bf16.msra.mxu1 %v17148_v20  ;;  %v17232_v20 = vld [vmem:[#allocation2 + $0x2768] ss:$112 sps:$4 sm:$0xff]  }
 0x13b   :  { %8809 = vmatprep.subr.bf16.mxu1 %v17156_v23  ;;  %v17235_v23 = vld [vmem:[#allocation2 + $0x2920] ss:$112 sps:$4 sm:$0xff]  }
 0x13c   :  { %8648 = vmatpush1.bf16.msra.mxu0 %v17151_v25  ;;  %v17238_v25 = vld [vmem:[#allocation2 + $0x2848] ss:$112 sps:$4 sm:$0xff]  }
 0x13d   :  { %8801 = vmatmul.mubr.bf16.vlgmr.msra.gmra.mrb[4].mxu1 %v19527_v18  ;;  %8649 = vmatprep.subr.bf16.mxu0 %v17159_v27  ;;  %v17246_v27 = vld [vmem:[#allocation2 + $0x14] ss:$112 sps:$4 sm:$0xff]  }
 0x13e   :  { %8810 = vmatpush1.bf16.msra.mxu1 %v17154_v26  ;;  %8841 = vmatprep.mubr.bf16.mxu1 %v19532_v24  ;;  %v169_v26 = vld [vmem:[%s19939_s0 + $0x20] sm:$0xff] }
 0x13f   :  { %8811 = vmatprep.subr.bf16.mxu1 %v17162_v28  ;;  %v17243_v28 = vld [vmem:[#allocation2 + $0x292c] ss:$112 sps:$4 sm:$0xff]  }
 0x140   :  { %8650 = vmatpush1.bf16.msra.mxu0 %v17157_v29  ;;  %v19541_v29 = vpack.c.bf16 %v169_v26, %v169_v26  ;;  %v17318_v26 = vld [vmem:[#allocation2 + $0x71c] ss:$112 sps:$4 sm:$0xff]  }
 0x141   :  { %8651 = vmatprep.subr.bf16.mxu0 %v17165_v31  ;;  %v17244_v31 = vld [vmem:[#allocation2 + $0x10] ss:$112 sps:$4 sm:$0xff]  }
 0x142   :  { %8812 = vmatpush1.bf16.msra.mxu1 %v17160_v30  ;;  %v17241_v30 = vld [vmem:[#allocation2 + $0x2928] ss:$112 sps:$4 sm:$0xff]  }
 0x143   :  { %8813 = vmatprep.subr.bf16.mxu1 %v17168_v32  ;;  %v17249_v32 = vld [vmem:[#allocation2 + $0xf4] ss:$112 sps:$4 sm:$0xff]  }
 0x144   :  { %8652 = vmatpush1.bf16.msra.mxu0 %v17163_v33  ;;  %v17255_v33 = vld [vmem:[#allocation2 + $0x2a0c] ss:$112 sps:$4 sm:$0xff]  }
 0x145   :  { %8653 = vmatprep.subr.bf16.mxu0 %v17171_v35  ;;  %v17252_v35 = vld [vmem:[#allocation2 + $0x1d4] ss:$112 sps:$4 sm:$0xff]  }
 0x146   :  { %8814 = vmatpush1.bf16.msra.mxu1 %v17166_v34  ;;  %v17247_v34 = vld [vmem:[#allocation2 + $0xf0] ss:$112 sps:$4 sm:$0xff]  }
 0x147   :  { %8815 = vmatprep.subr.bf16.mxu1 %v17174_v37  ;;  %v17253_v37 = vld [vmem:[#allocation2 + $0x2a08] ss:$112 sps:$4 sm:$0xff]  }
 0x148   :  { %8654 = vmatpush1.bf16.msra.mxu0 %v17169_v38  ;;  %v17264_v38 = vld [vmem:[#allocation2 + $0x2a14] ss:$112 sps:$4 sm:$0xff]  }
 0x149   :  { %8655 = vmatprep.subr.bf16.mxu0 %v17177_v40  ;;  %v17258_v40 = vld [vmem:[#allocation2 + $0x2b4] ss:$112 sps:$4 sm:$0xff]  }
 0x14a   :  { %8816 = vmatpush1.bf16.msra.mxu1 %v17172_v39  ;;  %v17250_v39 = vld [vmem:[#allocation2 + $0x1d0] ss:$112 sps:$4 sm:$0xff]  }
 0x14b   :  { %8817 = vmatprep.subr.bf16.mxu1 %v17180_v41  ;;  %v17256_v41 = vld [vmem:[#allocation2 + $0x2b0] ss:$112 sps:$4 sm:$0xff]  }
 0x14c   :  { %8656 = vmatpush1.bf16.msra.mxu0 %v17175_v42  ;;  %v17261_v42 = vld [vmem:[#allocation2 + $0x394] ss:$112 sps:$4 sm:$0xff]  }
 0x14d   :  { %8657 = vmatprep.subr.bf16.mxu0 %v17183_v44  ;;  %v17262_v44 = vld [vmem:[#allocation2 + $0x2a10] ss:$112 sps:$4 sm:$0xff]  }
 0x14e   :  { %8818 = vmatpush1.bf16.msra.mxu1 %v17178_v43  ;;  %v17259_v43 = vld [vmem:[#allocation2 + $0x390] ss:$112 sps:$4 sm:$0xff]  }
 0x14f   :  { %8819 = vmatprep.subr.bf16.mxu1 %v17186_v45  ;;  %v17267_v45 = vld [vmem:[#allocation2 + $0x474] ss:$112 sps:$4 sm:$0xff]  }
 0x150   :  { %8658 = vmatpush1.bf16.msra.mxu0 %v17181_v46  ;;  %v17270_v46 = vld [vmem:[#allocation2 + $0x1c] ss:$112 sps:$4 sm:$0xff]  }
 0x151   :  { %8659 = vmatprep.subr.bf16.mxu0 %v17189_v48  ;;  %v17273_v48 = vld [vmem:[#allocation2 + $0x554] ss:$112 sps:$4 sm:$0xff]  }
 0x152   :  { %8820 = vmatpush1.bf16.msra.mxu1 %v17184_v47  ;;  %v17265_v47 = vld [vmem:[#allocation2 + $0x470] ss:$112 sps:$4 sm:$0xff]  }
 0x153   :  { %8821 = vmatprep.subr.bf16.mxu1 %v17192_v49  ;;  %v17268_v49 = vld [vmem:[#allocation2 + $0x18] ss:$112 sps:$4 sm:$0xff]  }
 0x154   :  { %8660 = vmatpush1.bf16.msra.mxu0 %v17187_v50  ;;  %v17271_v50 = vld [vmem:[#allocation2 + $0x550] ss:$112 sps:$4 sm:$0xff]  }
 0x155   :  { %8661 = vmatprep.subr.bf16.mxu0 %v17195_v53  ;;  %v17276_v53 = vld [vmem:[#allocation2 + $0xfc] ss:$112 sps:$4 sm:$0xff]  }
 0x156   :  { %8822 = vmatpush1.bf16.msra.mxu1 %v17190_v52  ;;  %v17279_v52 = vld [vmem:[#allocation2 + $0x634] ss:$112 sps:$4 sm:$0xff]  }
 0x157   :  { %8823 = vmatprep.subr.bf16.mxu1 %v17198_v54 }
 0x158   :  { %8662 = vmatpush1.bf16.msra.mxu0 %v17193_v55  ;;  %v17274_v55 = vld [vmem:[#allocation2 + $0xf8] ss:$112 sps:$4 sm:$0xff]  }
 0x159   :  { %8663 = vmatprep.subr.bf16.mxu0 %v17201_v57 }
 0x15a   :  { %8824 = vmatpush1.bf16.msra.mxu1 %v17196_v56  ;;  %v17277_v56 = vld [vmem:[#allocation2 + $0x630] ss:$112 sps:$4 sm:$0xff]  }
 0x15b   :  { %8825 = vmatprep.subr.bf16.mxu1 %v17204_v58  ;;  %v17285_v58 = vld [vmem:[#allocation2 + $0x714] ss:$112 sps:$4 sm:$0xff]  }
 0x15c   :  { %8664 = vmatpush1.bf16.msra.mxu0 %v17199_v59 }
 0x15d   :  { %8665 = vmatprep.subr.bf16.mxu0 %v17207_v61 }
 0x15e   :  { %8826 = vmatpush1.bf16.msra.mxu1 %v17202_v60  ;;  %v17282_v60 = vld [vmem:[#allocation2 + $0x1dc] ss:$112 sps:$4 sm:$0xff]  }
 0x15f   :  { %8827 = vmatprep.subr.bf16.mxu1 %v17210_v62  ;;  %v17280_v62 = vld [vmem:[#allocation2 + $0x1d8] ss:$112 sps:$4 sm:$0xff]  }
 0x160   :  { %8666 = vmatpush1.bf16.msra.mxu0 %v17205_v63  ;;  %v17283_v63 = vld [vmem:[#allocation2 + $0x710] ss:$112 sps:$4 sm:$0xff]  }
 0x161   :  { %8667 = vmatprep.subr.bf16.mxu0 %v17213_v2  ;;  %v17288_v2 = vld [vmem:[#allocation2 + $0x2bc] ss:$112 sps:$4 sm:$0xff]  }
 0x162   :  { %8828 = vmatpush1.bf16.msra.mxu1 %v17208_v1  ;;  %v17291_v1 = vld [vmem:[#allocation2 + $0x7f4] ss:$112 sps:$4 sm:$0xff]  }
 0x163   :  { %8829 = vmatprep.subr.bf16.mxu1 %v17216_v3  ;;  %v17286_v3 = vld [vmem:[#allocation2 + $0x2b8] ss:$112 sps:$4 sm:$0xff]  }
 0x164   :  { %8668 = vmatpush1.bf16.msra.mxu0 %v17211_v4  ;;  %v17289_v4 = vld [vmem:[#allocation2 + $0x7f0] ss:$112 sps:$4 sm:$0xff]  }
 0x165   :  { %8669 = vmatprep.subr.bf16.mxu0 %v17219_v6  ;;  %v17294_v6 = vld [vmem:[#allocation2 + $0x39c] ss:$112 sps:$4 sm:$0xff]  }
 0x166   :  { %8830 = vmatpush1.bf16.msra.mxu1 %v17214_v5  ;;  %v17297_v5 = vld [vmem:[#allocation2 + $0x8d4] ss:$112 sps:$4 sm:$0xff]  }
 0x167   :  { %8831 = vmatprep.subr.bf16.mxu1 %v17222_v7  ;;  %v17292_v7 = vld [vmem:[#allocation2 + $0x398] ss:$112 sps:$4 sm:$0xff]  }
 0x168   :  { %8670 = vmatpush1.bf16.msra.mxu0 %v17217_v8  ;;  %v17295_v8 = vld [vmem:[#allocation2 + $0x8d0] ss:$112 sps:$4 sm:$0xff]  }
 0x169   :  { %8671 = vmatprep.subr.bf16.mxu0 %v17225_v12  ;;  %v17300_v12 = vld [vmem:[#allocation2 + $0x47c] ss:$112 sps:$4 sm:$0xff]  }
 0x16a   :  { %8832 = vmatpush1.bf16.msra.mxu1 %v17220_v11  ;;  %v17303_v11 = vld [vmem:[#allocation2 + $0x9b4] ss:$112 sps:$4 sm:$0xff]  }
 0x16b   :  { %8833 = vmatprep.subr.bf16.mxu1 %v17228_v13  ;;  %v17298_v13 = vld [vmem:[#allocation2 + $0x478] ss:$112 sps:$4 sm:$0xff]  }
 0x16c   :  { %8672 = vmatpush1.bf16.msra.mxu0 %v17223_v14  ;;  %v17301_v14 = vld [vmem:[#allocation2 + $0x9b0] ss:$112 sps:$4 sm:$0xff]  }
 0x16d   :  { %8673 = vmatprep.subr.bf16.mxu0 %v17231_v16  ;;  %v17306_v16 = vld [vmem:[#allocation2 + $0x55c] ss:$112 sps:$4 sm:$0xff]  }
 0x16e   :  { %8834 = vmatpush1.bf16.msra.mxu1 %v17226_v15  ;;  %v17309_v15 = vld [vmem:[#allocation2 + $0xa94] ss:$112 sps:$4 sm:$0xff]  }
 0x16f   :  { %8835 = vmatprep.subr.bf16.mxu1 %v17234_v17  ;;  %v17304_v17 = vld [vmem:[#allocation2 + $0x558] ss:$112 sps:$4 sm:$0xff]  }
 0x170   :  { %8674 = vmatpush1.bf16.msra.mxu0 %v17229_v19  ;;  %v17307_v19 = vld [vmem:[#allocation2 + $0xa90] ss:$112 sps:$4 sm:$0xff]  }
 0x171   :  { %8675 = vmatprep.subr.bf16.mxu0 %v17237_v21  ;;  %v17312_v21 = vld [vmem:[#allocation2 + $0x63c] ss:$112 sps:$4 sm:$0xff]  }
 0x172   :  { %8836 = vmatpush1.bf16.msra.mxu1 %v17232_v20  ;;  %v17315_v20 = vld [vmem:[#allocation2 + $0xb74] ss:$112 sps:$4 sm:$0xff]  }
 0x173   :  { %8837 = vmatprep.subr.bf16.mxu1 %v17240_v22  ;;  %v17310_v22 = vld [vmem:[#allocation2 + $0x638] ss:$112 sps:$4 sm:$0xff]  }
 0x174   :  { %8676 = vmatpush1.bf16.msra.mxu0 %v17235_v23  ;;  %v17313_v23 = vld [vmem:[#allocation2 + $0xb70] ss:$112 sps:$4 sm:$0xff]  }
 0x175   :  { %8891 = vmatprep.subr.bf16.mxu0 %v17246_v27  ;;  %v17316_v27 = vld [vmem:[#allocation2 + $0x718] ss:$112 sps:$4 sm:$0xff]  }
 0x176   :  { %8838 = vmatpush1.bf16.msra.mxu1 %v17238_v25  ;;  %v17321_v25 = vld [vmem:[#allocation2 + $0xc54] ss:$112 sps:$4 sm:$0xff]  }
 0x177   :  { %8839 = vmatprep.subr.bf16.mxu1 %v17243_v28  ;;  %8678 = vmatmul.mubr.bf16.vlgmr.msra.gmra.mrb[0].mxu0 %v19541_v29  ;;  %v17319_v28 = vld [vmem:[#allocation2 + $0xc50] ss:$112 sps:$4 sm:$0xff]  }
 0x178   :  { %8892 = vmatpush1.bf16.msra.mxu0 %v17244_v31  ;;  %8923 = vmatprep.mubr.bf16.mxu0 %v19506_v51  ;;  %v17324_v31 = vld [vmem:[#allocation2 + $0x7fc] ss:$112 sps:$4 sm:$0xff]  }
 0x179   :  { %8893 = vmatprep.subr.bf16.mxu0 %v17249_v32  ;;  %v17325_v32 = vld [vmem:[#allocation2 + $0xd30] ss:$112 sps:$4 sm:$0xff]  }
 0x17a   :  { %8840 = vmatpush1.bf16.msra.mxu1 %v17241_v30  ;;  %v17327_v30 = vld [vmem:[#allocation2 + $0xd34] ss:$112 sps:$4 sm:$0xff]  }
 0x17b   :  { %8850 = vmatprep.subr.bf16.mxu1 %v17255_v33  ;;  %v17322_v33 = vld [vmem:[#allocation2 + $0x7f8] ss:$112 sps:$4 sm:$0xff]  }
 0x17c   :  { %8894 = vmatpush1.bf16.msra.mxu0 %v17247_v34  ;;  %v17333_v34 = vld [vmem:[#allocation2 + $0xe14] ss:$112 sps:$4 sm:$0xff]  }
 0x17d   :  { %8842 = vmatmul.mubr.bf16.vlgmr.msra.gmra.mrb[4].mxu1 %v19541_v29  ;;  %8895 = vmatprep.subr.bf16.mxu0 %v17252_v35  ;;  %v17330_v35 = vld [vmem:[#allocation2 + $0x8dc] ss:$112 sps:$4 sm:$0xff]  }
 0x17e   :  { %8851 = vmatpush1.bf16.msra.mxu1 %v17253_v37  ;;  %8882 = vmatprep.mubr.bf16.mxu1 %v19303_v0  ;;  %v17331_v37 = vld [vmem:[#allocation2 + $0xe10] ss:$112 sps:$4 sm:$0xff]  }
 0x17f   :  { %9014 = vmatprep.subr.bf16.mxu1 %v17264_v38  ;;  %v17328_v38 = vld [vmem:[#allocation2 + $0x8d8] ss:$112 sps:$4 sm:$0xff]  }
 0x180   :  { %8896 = vmatpush1.bf16.msra.mxu0 %v17250_v39  ;;  %v17336_v39 = vld [vmem:[#allocation2 + $0x9bc] ss:$112 sps:$4 sm:$0xff]  }
 0x181   :  { %8897 = vmatprep.subr.bf16.mxu0 %v17258_v40  ;;  %v17339_v40 = vld [vmem:[#allocation2 + $0xef4] ss:$112 sps:$4 sm:$0xff]  }
 0x184   :  { %8898 = vmatpush1.bf16.msra.mxu0 %v17256_v41  ;;  %v17334_v41 = vld [vmem:[#allocation2 + $0x9b8] ss:$112 sps:$4 sm:$0xff]  }
 0x185   :  { %8899 = vmatprep.subr.bf16.mxu0 %v17261_v42  ;;  %v17337_v42 = vld [vmem:[#allocation2 + $0xef0] ss:$112 sps:$4 sm:$0xff]  }
 0x188   :  { %8900 = vmatpush1.bf16.msra.mxu0 %v17259_v43  ;;  %v17342_v43 = vld [vmem:[#allocation2 + $0xa9c] ss:$112 sps:$4 sm:$0xff]  }
 0x189   :  { %16110 = vmatmul.mubr.msk.bf16.vlgmr.msra.gmra.mrb[4].mxu1 %vm8559_vm0, %v19499_v10  ;;  %8901 = vmatprep.subr.bf16.mxu0 %v17267_v45  ;;  %v17340_v45 = vld [vmem:[#allocation2 + $0xa98] ss:$112 sps:$4 sm:$0xff]  }
 0x18a   :  { %9015 = vmatpush1.bf16.msra.mxu1 %v17262_v44  ;;  %9046 = vmatprep.mubr.bf16.mxu1 %v19303_v0  ;;  %v17345_v44 = vld [vmem:[#allocation2 + $0xfd4] ss:$112 sps:$4 sm:$0xff]  }
 0x18b   :  { %9055 = vmatprep.subr.bf16.mxu1 %v17270_v46  ;;  %v17343_v46 = vld [vmem:[#allocation2 + $0xfd0] ss:$112 sps:$4 sm:$0xff]  }
 0x18c   :  { %8902 = vmatpush1.bf16.msra.mxu0 %v17265_v47  ;;  %v17348_v47 = vld [vmem:[#allocation2 + $0xb7c] ss:$112 sps:$4 sm:$0xff]  }
 0x18d   :  { %8903 = vmatprep.subr.bf16.mxu0 %v17273_v48  ;;  %v17351_v48 = vld [vmem:[#allocation2 + $0x10b4] ss:$112 sps:$4 sm:$0xff]  }
 0x190   :  { %v19550_v54 = vpop.f32.mrb[0].mxu1  ;;  %8904 = vmatpush1.bf16.msra.mxu0 %v17271_v50  ;;  %v17349_v50 = vld [vmem:[#allocation2 + $0x10b0] ss:$112 sps:$4 sm:$0xff]  }
 0x191   :  { %16111 = vmatmul.mubr.msk.bf16.vlgmr.msra.gmra.mrb[8].mxu1 %vm8559_vm0, %v19499_v10  ;;  %v19554_v57 = vpop.f32.mrb[1].mxu1  ;;  %8905 = vmatprep.subr.bf16.mxu0 %v17279_v52  ;;  %v17354_v52 = vld [vmem:[#allocation2 + $0xc5c] ss:$112 sps:$4 sm:$0xff]  }
 0x192   :  { %9056 = vmatpush1.bf16.msra.mxu1 %v17268_v49  ;;  %v8724_v59 = vpop.f32.mrb[2].mxu1  ;;  %9087 = vmatprep.mubr.bf16.mxu1 %v19506_v51  ;;  %v17346_v49 = vld [vmem:[#allocation2 + $0xb78] ss:$112 sps:$4 sm:$0xff]  }
 0x193   :  { %9057 = vmatprep.subr.bf16.mxu1 %v17276_v53  ;;  %v8725_v61 = vpop.f32.mrb[3].mxu1  ;;  %v17357_v53 = vld [vmem:[#allocation2 + $0x1194] ss:$112 sps:$4 sm:$0xff]  }
 0x194   :  { %8906 = vmatpush1.bf16.msra.mxu0 %v17277_v56  ;;  %v17355_v56 = vld [vmem:[#allocation2 + $0x1190] ss:$112 sps:$4 sm:$0xff]   ;;  %v17363_v59 = vld [vmem:[#allocation2 + $0x1274] ss:$112 sps:$4 sm:$0xff]  }
 0x195   :  { %8907 = vmatprep.subr.bf16.mxu0 %v17285_v58  ;;  %v17360_v58 = vld [vmem:[#allocation2 + $0xd3c] ss:$112 sps:$4 sm:$0xff]   ;;  %v17361_v61 = vld [vmem:[#allocation2 + $0x1270] ss:$112 sps:$4 sm:$0xff]  }
 0x196   :  { %9058 = vmatpush1.bf16.msra.mxu1 %v17274_v55  ;;  %v17352_v55 = vld [vmem:[#allocation2 + $0xc58] ss:$112 sps:$4 sm:$0xff]  }
 0x197   :  { %9059 = vmatprep.subr.bf16.mxu1 %v17282_v60  ;;  %v17358_v60 = vld [vmem:[#allocation2 + $0xd38] ss:$112 sps:$4 sm:$0xff]  }
 0x198   :  { %8908 = vmatpush1.bf16.msra.mxu0 %v17283_v63  ;;  %v17366_v63 = vld [vmem:[#allocation2 + $0xe1c] ss:$112 sps:$4 sm:$0xff]  }
 0x199   :  { %8909 = vmatprep.subr.bf16.mxu0 %v17291_v1  ;;  %v17364_v1 = vld [vmem:[#allocation2 + $0xe18] ss:$112 sps:$4 sm:$0xff]  }
 0x19a   :  { %9060 = vmatpush1.bf16.msra.mxu1 %v17280_v62  ;;  %v17369_v62 = vld [vmem:[#allocation2 + $0x1354] ss:$112 sps:$4 sm:$0xff]  }
 0x19b   :  { %9061 = vmatprep.subr.bf16.mxu1 %v17288_v2  ;;  %v17367_v2 = vld [vmem:[#allocation2 + $0x1350] ss:$112 sps:$4 sm:$0xff]  }
 0x19c   :  { %8910 = vmatpush1.bf16.msra.mxu0 %v17289_v4  ;;  %v17375_v4 = vld [vmem:[#allocation2 + $0x1434] ss:$112 sps:$4 sm:$0xff]  }
 0x19d   :  { %8911 = vmatprep.subr.bf16.mxu0 %v17297_v5  ;;  %v17370_v5 = vld [vmem:[#allocation2 + $0xef8] ss:$112 sps:$4 sm:$0xff]  }
 0x19e   :  { %9062 = vmatpush1.bf16.msra.mxu1 %v17286_v3  ;;  %v17372_v3 = vld [vmem:[#allocation2 + $0xefc] ss:$112 sps:$4 sm:$0xff]  }
 0x19f   :  { %9063 = vmatprep.subr.bf16.mxu1 %v17294_v6  ;;  %v17373_v6 = vld [vmem:[#allocation2 + $0x1430] ss:$112 sps:$4 sm:$0xff]  }
 0x1a0   :  { %8912 = vmatpush1.bf16.msra.mxu0 %v17295_v8  ;;  %v17381_v8 = vld [vmem:[#allocation2 + $0x1514] ss:$112 sps:$4 sm:$0xff]  }
 0x1a1   :  { %8913 = vmatprep.subr.bf16.mxu0 %v17303_v11  ;;  %v17376_v11 = vld [vmem:[#allocation2 + $0xfd8] ss:$112 sps:$4 sm:$0xff]  }
 0x1a2   :  { %9064 = vmatpush1.bf16.msra.mxu1 %v17292_v7  ;;  %v17378_v7 = vld [vmem:[#allocation2 + $0xfdc] ss:$112 sps:$4 sm:$0xff]  }
 0x1a3   :  { %9065 = vmatprep.subr.bf16.mxu1 %v17300_v12  ;;  %v17379_v12 = vld [vmem:[#allocation2 + $0x1510] ss:$112 sps:$4 sm:$0xff]  }
 0x1a4   :  { %8914 = vmatpush1.bf16.msra.mxu0 %v17301_v14  ;;  %v17387_v14 = vld [vmem:[#allocation2 + $0x15f4] ss:$112 sps:$4 sm:$0xff]  }
 0x1a5   :  { %8915 = vmatprep.subr.bf16.mxu0 %v17309_v15  ;;  %v17385_v15 = vld [vmem:[#allocation2 + $0x15f0] ss:$112 sps:$4 sm:$0xff]  }
 0x1a6   :  { %9066 = vmatpush1.bf16.msra.mxu1 %v17298_v13  ;;  %v17384_v13 = vld [vmem:[#allocation2 + $0x10bc] ss:$112 sps:$4 sm:$0xff]  }
 0x1a7   :  { %9067 = vmatprep.subr.bf16.mxu1 %v17306_v16  ;;  %v17382_v16 = vld [vmem:[#allocation2 + $0x10b8] ss:$112 sps:$4 sm:$0xff]  }
 0x1a8   :  { %8916 = vmatpush1.bf16.msra.mxu0 %v17307_v19  ;;  %v17393_v19 = vld [vmem:[#allocation2 + $0x16d4] ss:$112 sps:$4 sm:$0xff]  }
 0x1a9   :  { %8917 = vmatprep.subr.bf16.mxu0 %v17315_v20  ;;  %v17388_v20 = vld [vmem:[#allocation2 + $0x1198] ss:$112 sps:$4 sm:$0xff]  }
 0x1aa   :  { %9068 = vmatpush1.bf16.msra.mxu1 %v17304_v17  ;;  %v17390_v17 = vld [vmem:[#allocation2 + $0x119c] ss:$112 sps:$4 sm:$0xff]  }
 0x1ab   :  { %9069 = vmatprep.subr.bf16.mxu1 %v17312_v21  ;;  %v17391_v21 = vld [vmem:[#allocation2 + $0x16d0] ss:$112 sps:$4 sm:$0xff]  }
 0x1ac   :  { %8918 = vmatpush1.bf16.msra.mxu0 %v17313_v23  ;;  %v17396_v23 = vld [vmem:[#allocation2 + $0x127c] ss:$112 sps:$4 sm:$0xff]  }
 0x1ad   :  { %8919 = vmatprep.subr.bf16.mxu0 %v17321_v25  ;;  %v17397_v25 = vld [vmem:[#allocation2 + $0x17b0] ss:$112 sps:$4 sm:$0xff]  }
 0x1ae   :  { %9070 = vmatpush1.bf16.msra.mxu1 %v17310_v22  ;;  %v17399_v22 = vld [vmem:[#allocation2 + $0x17b4] ss:$112 sps:$4 sm:$0xff]  }
 0x1af   :  { %9071 = vmatprep.subr.bf16.mxu1 %v17318_v26  ;;  %v17394_v26 = vld [vmem:[#allocation2 + $0x1278] ss:$112 sps:$4 sm:$0xff]  }
 0x1b0   :  { %8920 = vmatpush1.bf16.msra.mxu0 %v17319_v28  ;;  %v17405_v28 = vld [vmem:[#allocation2 + $0x1894] ss:$112 sps:$4 sm:$0xff]  }
 0x1b1   :  { %8921 = vmatprep.subr.bf16.mxu0 %v17327_v30  ;;  %v17403_v30 = vld [vmem:[#allocation2 + $0x1890] ss:$112 sps:$4 sm:$0xff]  }
 0x1b2   :  { %9072 = vmatpush1.bf16.msra.mxu1 %v17316_v27  ;;  %v17402_v27 = vld [vmem:[#allocation2 + $0x135c] ss:$112 sps:$4 sm:$0xff]  }
 0x1b3   :  { %9073 = vmatprep.subr.bf16.mxu1 %v17324_v31  ;;  %v17400_v31 = vld [vmem:[#allocation2 + $0x1358] ss:$112 sps:$4 sm:$0xff]  }
 0x1b4   :  { %8922 = vmatpush1.bf16.msra.mxu0 %v17325_v32  ;;  %v17408_v32 = vld [vmem:[#allocation2 + $0x143c] ss:$112 sps:$4 sm:$0xff]  }
 0x1b5   :  { %8932 = vmatprep.subr.bf16.mxu0 %v17333_v34  ;;  %v17409_v34 = vld [vmem:[#allocation2 + $0x1970] ss:$112 sps:$4 sm:$0xff]  }
 0x1b6   :  { %9074 = vmatpush1.bf16.msra.mxu1 %v17322_v33  ;;  %v17411_v33 = vld [vmem:[#allocation2 + $0x1974] ss:$112 sps:$4 sm:$0xff]  }
 0x1b7   :  { %9075 = vmatprep.subr.bf16.mxu1 %v17330_v35  ;;  %8924 = vmatmul.mubr.bf16.vlgmr.msra.gmra.mrb[4].mxu0 %v19513_v9  ;;  %v17406_v35 = vld [vmem:[#allocation2 + $0x1438] ss:$112 sps:$4 sm:$0xff]  }
 0x1b8   :  { %8933 = vmatpush1.bf16.msra.mxu0 %v17331_v37  ;;  %8964 = vmatprep.mubr.bf16.mxu0 %v19520_v36  ;;  %v17414_v37 = vld [vmem:[#allocation2 + $0x151c] ss:$112 sps:$4 sm:$0xff]  }
 0x1b9   :  { %8934 = vmatprep.subr.bf16.mxu0 %v17339_v40  ;;  %v17412_v40 = vld [vmem:[#allocation2 + $0x1518] ss:$112 sps:$4 sm:$0xff]  }
 0x1ba   :  { %9076 = vmatpush1.bf16.msra.mxu1 %v17328_v38  ;;  %v17417_v38 = vld [vmem:[#allocation2 + $0x1a54] ss:$112 sps:$4 sm:$0xff]  }
 0x1bb   :  { %9077 = vmatprep.subr.bf16.mxu1 %v17336_v39  ;;  %v17415_v39 = vld [vmem:[#allocation2 + $0x1a50] ss:$112 sps:$4 sm:$0xff]  }
 0x1bc   :  { %8935 = vmatpush1.bf16.msra.mxu0 %v17337_v42  ;;  %v17423_v42 = vld [vmem:[#allocation2 + $0x1b34] ss:$112 sps:$4 sm:$0xff]  }
 0x1bd   :  { %8936 = vmatprep.subr.bf16.mxu0 %v17345_v44  ;;  %v17418_v44 = vld [vmem:[#allocation2 + $0x15f8] ss:$112 sps:$4 sm:$0xff]  }
 0x1be   :  { %9078 = vmatpush1.bf16.msra.mxu1 %v17334_v41  ;;  %v17420_v41 = vld [vmem:[#allocation2 + $0x15fc] ss:$112 sps:$4 sm:$0xff]  }
 0x1bf   :  { %9079 = vmatprep.subr.bf16.mxu1 %v17342_v43  ;;  %v17421_v43 = vld [vmem:[#allocation2 + $0x1b30] ss:$112 sps:$4 sm:$0xff]  }
 0x1c0   :  { %8937 = vmatpush1.bf16.msra.mxu0 %v17343_v46  ;;  %v17429_v46 = vld [vmem:[#allocation2 + $0x1c14] ss:$112 sps:$4 sm:$0xff]  }
 0x1c1   :  { %8938 = vmatprep.subr.bf16.mxu0 %v17351_v48  ;;  %v17424_v48 = vld [vmem:[#allocation2 + $0x16d8] ss:$112 sps:$4 sm:$0xff]  }
 0x1c2   :  { %9080 = vmatpush1.bf16.msra.mxu1 %v17340_v45  ;;  %v17426_v45 = vld [vmem:[#allocation2 + $0x16dc] ss:$112 sps:$4 sm:$0xff]  }
 0x1c3   :  { %9081 = vmatprep.subr.bf16.mxu1 %v17348_v47  ;;  %v17427_v47 = vld [vmem:[#allocation2 + $0x1c10] ss:$112 sps:$4 sm:$0xff]  }
 0x1c4   :  { %8939 = vmatpush1.bf16.msra.mxu0 %v17349_v50  ;;  %v17435_v50 = vld [vmem:[#allocation2 + $0x1cf4] ss:$112 sps:$4 sm:$0xff]  }
 0x1c5   :  { %8940 = vmatprep.subr.bf16.mxu0 %v17357_v53  ;;  %v17430_v53 = vld [vmem:[#allocation2 + $0x17b8] ss:$112 sps:$4 sm:$0xff]  }
 0x1c6   :  { %9082 = vmatpush1.bf16.msra.mxu1 %v17346_v49  ;;  %v17432_v49 = vld [vmem:[#allocation2 + $0x17bc] ss:$112 sps:$4 sm:$0xff]  }
 0x1c7   :  { %9083 = vmatprep.subr.bf16.mxu1 %v17354_v52  ;;  %v17433_v52 = vld [vmem:[#allocation2 + $0x1cf0] ss:$112 sps:$4 sm:$0xff]  }
 0x1c8   :  { %8941 = vmatpush1.bf16.msra.mxu0 %v17355_v56  ;;  %v17441_v56 = vld [vmem:[#allocation2 + $0x1dd4] ss:$112 sps:$4 sm:$0xff]  }
 0x1c9   :  { %8942 = vmatprep.subr.bf16.mxu0 %v17363_v59  ;;  %v17436_v59 = vld [vmem:[#allocation2 + $0x1898] ss:$112 sps:$4 sm:$0xff]  }
 0x1ca   :  { %9084 = vmatpush1.bf16.msra.mxu1 %v17352_v55  ;;  %v17438_v55 = vld [vmem:[#allocation2 + $0x189c] ss:$112 sps:$4 sm:$0xff]  }
 0x1cb   :  { %9085 = vmatprep.subr.bf16.mxu1 %v17360_v58  ;;  %v17439_v58 = vld [vmem:[#allocation2 + $0x1dd0] ss:$112 sps:$4 sm:$0xff]  }
 0x1cc   :  { %8943 = vmatpush1.bf16.msra.mxu0 %v17361_v61  ;;  %v17447_v61 = vld [vmem:[#allocation2 + $0x1eb4] ss:$112 sps:$4 sm:$0xff]  }
 0x1cd   :  { %8944 = vmatprep.subr.bf16.mxu0 %v17369_v62  ;;  %v17445_v62 = vld [vmem:[#allocation2 + $0x1eb0] ss:$112 sps:$4 sm:$0xff]  }
 0x1ce   :  { %9086 = vmatpush1.bf16.msra.mxu1 %v17358_v60  ;;  %v17444_v60 = vld [vmem:[#allocation2 + $0x197c] ss:$112 sps:$4 sm:$0xff]  }
 0x1cf   :  { %9096 = vmatprep.subr.bf16.mxu1 %v17366_v63  ;;  %v17442_v63 = vld [vmem:[#allocation2 + $0x1978] ss:$112 sps:$4 sm:$0xff]  }
 0x1d0   :  { %8945 = vmatpush1.bf16.msra.mxu0 %v17367_v2  ;;  %v17453_v2 = vld [vmem:[#allocation2 + $0x1f94] ss:$112 sps:$4 sm:$0xff]  }
 0x1d1   :  { %9088 = vmatmul.mubr.bf16.vlgmr.msra.gmra.mrb[12].mxu1 %v19513_v9  ;;  %8946 = vmatprep.subr.bf16.mxu0 %v17375_v4  ;;  %v17448_v4 = vld [vmem:[#allocation2 + $0x1a58] ss:$112 sps:$4 sm:$0xff]  }
 0x1d2   :  { %9097 = vmatpush1.bf16.msra.mxu1 %v17364_v1  ;;  %9128 = vmatprep.mubr.bf16.mxu1 %v19520_v36  ;;  %v17450_v1 = vld [vmem:[#allocation2 + $0x1a5c] ss:$112 sps:$4 sm:$0xff]  }
 0x1d3   :  { %9098 = vmatprep.subr.bf16.mxu1 %v17372_v3  ;;  %v17451_v3 = vld [vmem:[#allocation2 + $0x1f90] ss:$112 sps:$4 sm:$0xff]  }
 0x1d4   :  { %8947 = vmatpush1.bf16.msra.mxu0 %v17373_v6  ;;  %v17459_v6 = vld [vmem:[#allocation2 + $0x2074] ss:$112 sps:$4 sm:$0xff]  }
 0x1d5   :  { %8948 = vmatprep.subr.bf16.mxu0 %v17381_v8  ;;  %v17454_v8 = vld [vmem:[#allocation2 + $0x1b38] ss:$112 sps:$4 sm:$0xff]  }
 0x1d6   :  { %9099 = vmatpush1.bf16.msra.mxu1 %v17370_v5  ;;  %v17456_v5 = vld [vmem:[#allocation2 + $0x1b3c] ss:$112 sps:$4 sm:$0xff]  }
 0x1d7   :  { %9100 = vmatprep.subr.bf16.mxu1 %v17378_v7  ;;  %v17457_v7 = vld [vmem:[#allocation2 + $0x2070] ss:$112 sps:$4 sm:$0xff]  }
 0x1d8   :  { %8949 = vmatpush1.bf16.msra.mxu0 %v17379_v12  ;;  %v17465_v12 = vld [vmem:[#allocation2 + $0x2154] ss:$112 sps:$4 sm:$0xff]  }
 0x1d9   :  { %8950 = vmatprep.subr.bf16.mxu0 %v17387_v14  ;;  %v17460_v14 = vld [vmem:[#allocation2 + $0x1c18] ss:$112 sps:$4 sm:$0xff]  }
 0x1da   :  { %9101 = vmatpush1.bf16.msra.mxu1 %v17376_v11  ;;  %v17462_v11 = vld [vmem:[#allocation2 + $0x1c1c] ss:$112 sps:$4 sm:$0xff]  }
 0x1db   :  { %9102 = vmatprep.subr.bf16.mxu1 %v17384_v13  ;;  %v17463_v13 = vld [vmem:[#allocation2 + $0x2150] ss:$112 sps:$4 sm:$0xff]  }
 0x1dc   :  { %8951 = vmatpush1.bf16.msra.mxu0 %v17385_v15  ;;  %v17468_v15 = vld [vmem:[#allocation2 + $0x1cfc] ss:$112 sps:$4 sm:$0xff]  }
 0x1dd   :  { %8952 = vmatprep.subr.bf16.mxu0 %v17393_v19  ;;  %v17466_v19 = vld [vmem:[#allocation2 + $0x1cf8] ss:$112 sps:$4 sm:$0xff]  }
 0x1de   :  { %9103 = vmatpush1.bf16.msra.mxu1 %v17382_v16  ;;  %v17471_v16 = vld [vmem:[#allocation2 + $0x2234] ss:$112 sps:$4 sm:$0xff]  }
 0x1df   :  { %9104 = vmatprep.subr.bf16.mxu1 %v17390_v17  ;;  %v17469_v17 = vld [vmem:[#allocation2 + $0x2230] ss:$112 sps:$4 sm:$0xff]  }
 0x1e0   :  { %8953 = vmatpush1.bf16.msra.mxu0 %v17391_v21  ;;  %v17477_v21 = vld [vmem:[#allocation2 + $0x2314] ss:$112 sps:$4 sm:$0xff]  }
 0x1e1   :  { %8954 = vmatprep.subr.bf16.mxu0 %v17399_v22  ;;  %v17475_v22 = vld [vmem:[#allocation2 + $0x2310] ss:$112 sps:$4 sm:$0xff]  }
 0x1e2   :  { %9105 = vmatpush1.bf16.msra.mxu1 %v17388_v20  ;;  %v17474_v20 = vld [vmem:[#allocation2 + $0x1ddc] ss:$112 sps:$4 sm:$0xff]  }
 0x1e3   :  { %9106 = vmatprep.subr.bf16.mxu1 %v17396_v23  ;;  %v17472_v23 = vld [vmem:[#allocation2 + $0x1dd8] ss:$112 sps:$4 sm:$0xff]  }
 0x1e4   :  { %8955 = vmatpush1.bf16.msra.mxu0 %v17397_v25  ;;  %v17480_v25 = vld [vmem:[#allocation2 + $0x1ebc] ss:$112 sps:$4 sm:$0xff]  }
 0x1e5   :  { %8956 = vmatprep.subr.bf16.mxu0 %v17405_v28  ;;  %v17478_v28 = vld [vmem:[#allocation2 + $0x1eb8] ss:$112 sps:$4 sm:$0xff]  }
 0x1e6   :  { %9107 = vmatpush1.bf16.msra.mxu1 %v17394_v26  ;;  %v17483_v26 = vld [vmem:[#allocation2 + $0x23f4] ss:$112 sps:$4 sm:$0xff]  }
 0x1e7   :  { %9108 = vmatprep.subr.bf16.mxu1 %v17402_v27  ;;  %v17481_v27 = vld [vmem:[#allocation2 + $0x23f0] ss:$112 sps:$4 sm:$0xff]  }
 0x1e8   :  { %8957 = vmatpush1.bf16.msra.mxu0 %v17403_v30  ;;  %v17486_v30 = vld [vmem:[#allocation2 + $0x1f9c] ss:$112 sps:$4 sm:$0xff]  }
 0x1e9   :  { %8958 = vmatprep.subr.bf16.mxu0 %v17411_v33  ;;  %v17484_v33 = vld [vmem:[#allocation2 + $0x1f98] ss:$112 sps:$4 sm:$0xff]  }
 0x1ea   :  { %9109 = vmatpush1.bf16.msra.mxu1 %v17400_v31  ;;  %v17489_v31 = vld [vmem:[#allocation2 + $0x24d4] ss:$112 sps:$4 sm:$0xff]  }
 0x1eb   :  { %9110 = vmatprep.subr.bf16.mxu1 %v17408_v32  ;;  %v17487_v32 = vld [vmem:[#allocation2 + $0x24d0] ss:$112 sps:$4 sm:$0xff]  }
 0x1ec   :  { %8959 = vmatpush1.bf16.msra.mxu0 %v17409_v34  ;;  %v17492_v34 = vld [vmem:[#allocation2 + $0x207c] ss:$112 sps:$4 sm:$0xff]  }
 0x1ed   :  { %8960 = vmatprep.subr.bf16.mxu0 %v17417_v38  ;;  %v17490_v38 = vld [vmem:[#allocation2 + $0x2078] ss:$112 sps:$4 sm:$0xff]  }
 0x1ee   :  { %9111 = vmatpush1.bf16.msra.mxu1 %v17406_v35  ;;  %v17495_v35 = vld [vmem:[#allocation2 + $0x25b4] ss:$112 sps:$4 sm:$0xff]  }
 0x1ef   :  { %9112 = vmatprep.subr.bf16.mxu1 %v17414_v37  ;;  %v17493_v37 = vld [vmem:[#allocation2 + $0x25b0] ss:$112 sps:$4 sm:$0xff]  }
 0x1f0   :  { %8961 = vmatpush1.bf16.msra.mxu0 %v17415_v39  ;;  %v17498_v39 = vld [vmem:[#allocation2 + $0x215c] ss:$112 sps:$4 sm:$0xff]  }
 0x1f1   :  { %8962 = vmatprep.subr.bf16.mxu0 %v17423_v42  ;;  %v17496_v42 = vld [vmem:[#allocation2 + $0x2158] ss:$112 sps:$4 sm:$0xff]  }
 0x1f2   :  { %9113 = vmatpush1.bf16.msra.mxu1 %v17412_v40  ;;  %v17501_v40 = vld [vmem:[#allocation2 + $0x2694] ss:$112 sps:$4 sm:$0xff]  }
 0x1f3   :  { %9114 = vmatprep.subr.bf16.mxu1 %v17420_v41  ;;  %v17499_v41 = vld [vmem:[#allocation2 + $0x2690] ss:$112 sps:$4 sm:$0xff]  }
 0x1f4   :  { %8963 = vmatpush1.bf16.msra.mxu0 %v17421_v43  ;;  %v17504_v43 = vld [vmem:[#allocation2 + $0x223c] ss:$112 sps:$4 sm:$0xff]  }
 0x1f5   :  { %8973 = vmatprep.subr.bf16.mxu0 %v17429_v46  ;;  %v17502_v46 = vld [vmem:[#allocation2 + $0x2238] ss:$112 sps:$4 sm:$0xff]  }
 0x1f6   :  { %9115 = vmatpush1.bf16.msra.mxu1 %v17418_v44  ;;  %v17507_v44 = vld [vmem:[#allocation2 + $0x2774] ss:$112 sps:$4 sm:$0xff]  }
 0x1f7   :  { %9116 = vmatprep.subr.bf16.mxu1 %v17426_v45  ;;  %8965 = vmatmul.mubr.bf16.vlgmr.msra.gmra.mrb[4].mxu0 %v19527_v18  ;;  %v17505_v45 = vld [vmem:[#allocation2 + $0x2770] ss:$112 sps:$4 sm:$0xff]  }
 0x1f8   :  { %8974 = vmatpush1.bf16.msra.mxu0 %v17427_v47  ;;  %9005 = vmatprep.mubr.bf16.mxu0 %v19532_v24  ;;  %v17510_v47 = vld [vmem:[#allocation2 + $0x231c] ss:$112 sps:$4 sm:$0xff]  }
 0x1f9   :  { %8975 = vmatprep.subr.bf16.mxu0 %v17435_v50  ;;  %v17508_v50 = vld [vmem:[#allocation2 + $0x2318] ss:$112 sps:$4 sm:$0xff]  }
 0x1fa   :  { %9117 = vmatpush1.bf16.msra.mxu1 %v17424_v48  ;;  %v17513_v48 = vld [vmem:[#allocation2 + $0x2854] ss:$112 sps:$4 sm:$0xff]  }
 0x1fb   :  { %9118 = vmatprep.subr.bf16.mxu1 %v17432_v49  ;;  %v17511_v49 = vld [vmem:[#allocation2 + $0x2850] ss:$112 sps:$4 sm:$0xff]  }
 0x1fc   :  { %8976 = vmatpush1.bf16.msra.mxu0 %v17433_v52  ;;  %v17516_v52 = vld [vmem:[#allocation2 + $0x23fc] ss:$112 sps:$4 sm:$0xff]  }
 0x1fd   :  { %8977 = vmatprep.subr.bf16.mxu0 %v17441_v56  ;;  %v17514_v56 = vld [vmem:[#allocation2 + $0x23f8] ss:$112 sps:$4 sm:$0xff]  }
 0x1fe   :  { %9119 = vmatpush1.bf16.msra.mxu1 %v17430_v53  ;;  %v17519_v53 = vld [vmem:[#allocation2 + $0x2934] ss:$112 sps:$4 sm:$0xff]  }
 0x1ff   :  { %9120 = vmatprep.subr.bf16.mxu1 %v17438_v55  ;;  %v17517_v55 = vld [vmem:[#allocation2 + $0x2930] ss:$112 sps:$4 sm:$0xff]  }
 0x200   :  { %8978 = vmatpush1.bf16.msra.mxu0 %v17439_v58  ;;  %v17522_v58 = vld [vmem:[#allocation2 + $0x24dc] ss:$112 sps:$4 sm:$0xff]  }
 0x201   :  { %8979 = vmatprep.subr.bf16.mxu0 %v17447_v61  ;;  %v17520_v61 = vld [vmem:[#allocation2 + $0x24d8] ss:$112 sps:$4 sm:$0xff]  }
 0x202   :  { %9121 = vmatpush1.bf16.msra.mxu1 %v17436_v59  ;;  %v17525_v59 = vld [vmem:[#allocation2 + $0x24] ss:$112 sps:$4 sm:$0xff]  }
 0x203   :  { %9122 = vmatprep.subr.bf16.mxu1 %v17444_v60  ;;  %v17523_v60 = vld [vmem:[#allocation2 + $0x20] ss:$112 sps:$4 sm:$0xff]  }
 0x204   :  { %8980 = vmatpush1.bf16.msra.mxu0 %v17445_v62  ;;  %v17528_v62 = vld [vmem:[#allocation2 + $0x25bc] ss:$112 sps:$4 sm:$0xff]  }
 0x205   :  { %8981 = vmatprep.subr.bf16.mxu0 %v17453_v2  ;;  %v17526_v2 = vld [vmem:[#allocation2 + $0x25b8] ss:$112 sps:$4 sm:$0xff]  }
 0x206   :  { %9123 = vmatpush1.bf16.msra.mxu1 %v17442_v63  ;;  %v17531_v63 = vld [vmem:[#allocation2 + $0x104] ss:$112 sps:$4 sm:$0xff]  }
 0x207   :  { %9124 = vmatprep.subr.bf16.mxu1 %v17450_v1  ;;  %v17529_v1 = vld [vmem:[#allocation2 + $0x100] ss:$112 sps:$4 sm:$0xff]  }
 0x208   :  { %8982 = vmatpush1.bf16.msra.mxu0 %v17451_v3  ;;  %v17534_v3 = vld [vmem:[#allocation2 + $0x269c] ss:$112 sps:$4 sm:$0xff]  }
 0x209   :  { %8983 = vmatprep.subr.bf16.mxu0 %v17459_v6  ;;  %v17535_v6 = vld [vmem:[#allocation2 + $0x1e0] ss:$112 sps:$4 sm:$0xff]  }
 0x20a   :  { %9125 = vmatpush1.bf16.msra.mxu1 %v17448_v4  ;;  %v17537_v4 = vld [vmem:[#allocation2 + $0x1e4] ss:$112 sps:$4 sm:$0xff]  }
 0x20b   :  { %9126 = vmatprep.subr.bf16.mxu1 %v17456_v5  ;;  %v1559_v5 = vlaneseq }
 0x20c   :  { %8984 = vmatpush1.bf16.msra.mxu0 %v17457_v7  ;;  %v17532_v7 = vld [vmem:[#allocation2 + $0x2698] ss:$112 sps:$4 sm:$0xff]  }
 0x20d   :  { %8985 = vmatprep.subr.bf16.mxu0 %v17465_v12  ;;  %v19567_v12 = vshrl.u32 %v1559_v5, 7  ;;  %v17589_v5 = vld [vmem:[#allocation2 + $0xaa0] ss:$112 sps:$4 sm:$0xff]  }
 0x20e   :  { %9127 = vmatpush1.bf16.msra.mxu1 %v17454_v8  ;;  %v17540_v8 = vld [vmem:[#allocation2 + $0x277c] ss:$112 sps:$4 sm:$0xff]  }
 0x20f   :  { %9137 = vmatprep.subr.bf16.mxu1 %v17462_v11  ;;  %v17543_v11 = vld [vmem:[#allocation2 + $0x2c4] ss:$112 sps:$4 sm:$0xff]  }
 0x210   :  { %8986 = vmatpush1.bf16.msra.mxu0 %v17463_v13  ;;  %v17541_v13 = vld [vmem:[#allocation2 + $0x2c0] ss:$112 sps:$4 sm:$0xff]  }
 0x211   :  { %9129 = vmatmul.mubr.bf16.vlgmr.msra.gmra.mrb[12].mxu1 %v19527_v18  ;;  %8987 = vmatprep.subr.bf16.mxu0 %v17471_v16  ;;  %v17549_v16 = vld [vmem:[#allocation2 + $0x3a4] ss:$112 sps:$4 sm:$0xff]  }
 0x212   :  { %9138 = vmatpush1.bf16.msra.mxu1 %v17460_v14  ;;  %9169 = vmatprep.mubr.bf16.mxu1 %v19532_v24  ;;  %v17538_v14 = vld [vmem:[#allocation2 + $0x2778] ss:$112 sps:$4 sm:$0xff]  }
 0x213   :  { %9139 = vmatprep.subr.bf16.mxu1 %v17468_v15  ;;  %v17546_v15 = vld [vmem:[#allocation2 + $0x285c] ss:$112 sps:$4 sm:$0xff]  }
 0x214   :  { %8988 = vmatpush1.bf16.msra.mxu0 %v17469_v17  ;;  %v17547_v17 = vld [vmem:[#allocation2 + $0x3a0] ss:$112 sps:$4 sm:$0xff]  }
 0x215   :  { %8989 = vmatprep.subr.bf16.mxu0 %v17477_v21  ;;  %v19573_v21 = vsub.s32 1, %v19567_v12 }
 0x216   :  { %9140 = vmatpush1.bf16.msra.mxu1 %v17466_v19  ;;  %v19570_v19 = vsub.s32 0, %v19567_v12 }
 0x217   :  { %9141 = vmatprep.subr.bf16.mxu1 %v17474_v20  ;;  %v1551_v20 = vld [vmem:[#allocation4] sm:$0xff] }
 0x218   :  { %8990 = vmatpush1.bf16.msra.mxu0 %v17475_v22  ;;  %v17544_v22 = vld [vmem:[#allocation2 + $0x2858] ss:$112 sps:$4 sm:$0xff]  }
 0x219   :  { %8991 = vmatprep.subr.bf16.mxu0 %v17483_v26  ;;  %v1562_v26 = vrot.slane %v1551_v20, %v19570_v19 }
 0x21a   :  { %9142 = vmatpush1.bf16.msra.mxu1 %v17472_v23  ;;  %v17552_v23 = vld [vmem:[#allocation2 + $0x293c] ss:$112 sps:$4 sm:$0xff]  }
 0x21b   :  { %9143 = vmatprep.subr.bf16.mxu1 %v17480_v25  ;;  %v17555_v25 = vld [vmem:[#allocation2 + $0x484] ss:$112 sps:$4 sm:$0xff]  }
 0x21c   :  { %8992 = vmatpush1.bf16.msra.mxu0 %v17481_v27  ;;  %v1566_v27 = vrot.slane %v1551_v20, %v19573_v21  ;;  %v17603_v20 = vld [vmem:[#allocation2 + $0xc64] ss:$112 sps:$4 sm:$0xff]  }
 0x21d   :  { %8993 = vmatprep.subr.bf16.mxu0 %v17489_v31  ;;  %v17558_v31 = vld [vmem:[#allocation2 + $0x564] ss:$112 sps:$4 sm:$0xff]  }
 0x21e   :  { %9144 = vmatpush1.bf16.msra.mxu1 %v17478_v28  ;;  %v17553_v28 = vld [vmem:[#allocation2 + $0x480] ss:$112 sps:$4 sm:$0xff]  }
 0x21f   :  { %9145 = vmatprep.subr.bf16.mxu1 %v17486_v30  ;;  %v17550_v30 = vld [vmem:[#allocation2 + $0x2938] ss:$112 sps:$4 sm:$0xff]  }
 0x220   :  { %8994 = vmatpush1.bf16.msra.mxu0 %v17487_v32  ;;  %v17564_v32 = vld [vmem:[#allocation2 + $0x2a1c] ss:$112 sps:$4 sm:$0xff]  }
 0x221   :  { %8995 = vmatprep.subr.bf16.mxu0 %v17495_v35 }
 0x222   :  { %9146 = vmatpush1.bf16.msra.mxu1 %v17484_v33 }
 0x223   :  { %9147 = vmatprep.subr.bf16.mxu1 %v17492_v34 }
 0x224   :  { %8996 = vmatpush1.bf16.msra.mxu0 %v17493_v37 }
 0x225   :  { %8997 = vmatprep.subr.bf16.mxu0 %v17501_v40 }
 0x226   :  { %9148 = vmatpush1.bf16.msra.mxu1 %v17490_v38 }
 0x227   :  { %9149 = vmatprep.subr.bf16.mxu1 %v17498_v39  ;;  %v17556_v39 = vld [vmem:[#allocation2 + $0x560] ss:$112 sps:$4 sm:$0xff]  }
 0x228   :  { %8998 = vmatpush1.bf16.msra.mxu0 %v17499_v41 }
 0x229   :  { %8999 = vmatprep.subr.bf16.mxu0 %v17507_v44 }
 0x22a   :  { %9150 = vmatpush1.bf16.msra.mxu1 %v17496_v42  ;;  %v17561_v42 = vld [vmem:[#allocation2 + $0x644] ss:$112 sps:$4 sm:$0xff]  }
 0x22b   :  { %9151 = vmatprep.subr.bf16.mxu1 %v17504_v43  ;;  %v17562_v43 = vld [vmem:[#allocation2 + $0x2a18] ss:$112 sps:$4 sm:$0xff]  }
 0x22c   :  { %9000 = vmatpush1.bf16.msra.mxu0 %v17505_v45  ;;  %v17570_v45 = vld [vmem:[#allocation2 + $0x2c] ss:$112 sps:$4 sm:$0xff]  }
 0x22d   :  { %9001 = vmatprep.subr.bf16.mxu0 %v17513_v48  ;;  %v17573_v48 = vld [vmem:[#allocation2 + $0x804] ss:$112 sps:$4 sm:$0xff]  }
 0x22e   :  { %9152 = vmatpush1.bf16.msra.mxu1 %v17502_v46  ;;  %v17559_v46 = vld [vmem:[#allocation2 + $0x640] ss:$112 sps:$4 sm:$0xff]  }
 0x22f   :  { %9153 = vmatprep.subr.bf16.mxu1 %v17510_v47  ;;  %v17567_v47 = vld [vmem:[#allocation2 + $0x724] ss:$112 sps:$4 sm:$0xff]  }
 0x230   :  { %9002 = vmatpush1.bf16.msra.mxu0 %v17511_v49  ;;  %v17571_v49 = vld [vmem:[#allocation2 + $0x800] ss:$112 sps:$4 sm:$0xff]  }
 0x231   :  { %9003 = vmatprep.subr.bf16.mxu0 %v17519_v53 }
 0x232   :  { %9154 = vmatpush1.bf16.msra.mxu1 %v17508_v50  ;;  %v17576_v50 = vld [vmem:[#allocation2 + $0x10c] ss:$112 sps:$4 sm:$0xff]  }
 0x233   :  { %9155 = vmatprep.subr.bf16.mxu1 %v17516_v52  ;;  %v17579_v52 = vld [vmem:[#allocation2 + $0x8e4] ss:$112 sps:$4 sm:$0xff]  }
 0x234   :  { %9004 = vmatpush1.bf16.msra.mxu0 %v17517_v55 }
 0x235   :  { %9219 = vmatprep.subr.bf16.mxu0 %v17525_v59  ;;  %v17574_v59 = vld [vmem:[#allocation2 + $0x108] ss:$112 sps:$4 sm:$0xff]  }
 0x236   :  { %9156 = vmatpush1.bf16.msra.mxu1 %v17514_v56  ;;  %v17577_v56 = vld [vmem:[#allocation2 + $0x8e0] ss:$112 sps:$4 sm:$0xff]  }
 0x237   :  { %9157 = vmatprep.subr.bf16.mxu1 %v17522_v58  ;;  %9006 = vmatmul.mubr.bf16.vlgmr.msra.gmra.mrb[4].mxu0 %v19541_v29 }
 0x238   :  { %9220 = vmatpush1.bf16.msra.mxu0 %v17523_v60  ;;  %9251 = vmatprep.mubr.bf16.mxu0 %v19506_v51  ;;  %v17585_v60 = vld [vmem:[#allocation2 + $0x9c4] ss:$112 sps:$4 sm:$0xff]  }
 0x239   :  { %9221 = vmatprep.subr.bf16.mxu0 %v17531_v63  ;;  %v17583_v63 = vld [vmem:[#allocation2 + $0x9c0] ss:$112 sps:$4 sm:$0xff]  }
 0x23a   :  { %9158 = vmatpush1.bf16.msra.mxu1 %v17520_v61 }
 0x23b   :  { %9159 = vmatprep.subr.bf16.mxu1 %v17528_v62  ;;  %v17582_v62 = vld [vmem:[#allocation2 + $0x1ec] ss:$112 sps:$4 sm:$0xff]  }
 0x23c   :  { %9222 = vmatpush1.bf16.msra.mxu0 %v17529_v1  ;;  %v17580_v1 = vld [vmem:[#allocation2 + $0x1e8] ss:$112 sps:$4 sm:$0xff]  }
 0x23d   :  { %9223 = vmatprep.subr.bf16.mxu0 %v17537_v4 }
 0x23e   :  { %9160 = vmatpush1.bf16.msra.mxu1 %v17526_v2  ;;  %v17588_v2 = vld [vmem:[#allocation2 + $0x2cc] ss:$112 sps:$4 sm:$0xff]  }
 0x23f   :  { %9161 = vmatprep.subr.bf16.mxu1 %v17534_v3  ;;  %v17591_v3 = vld [vmem:[#allocation2 + $0xaa4] ss:$112 sps:$4 sm:$0xff]  }
 0x240   :  { %9224 = vmatpush1.bf16.msra.mxu0 %v17535_v6 }
 0x241   :  { %9225 = vmatprep.subr.bf16.mxu0 %v17543_v11 }
 0x242   :  { %9162 = vmatpush1.bf16.msra.mxu1 %v17532_v7  ;;  %v17586_v7 = vld [vmem:[#allocation2 + $0x2c8] ss:$112 sps:$4 sm:$0xff]  }
 0x243   :  { %9163 = vmatprep.subr.bf16.mxu1 %v17540_v8  ;;  %v17597_v8 = vld [vmem:[#allocation2 + $0xb84] ss:$112 sps:$4 sm:$0xff]  }
 0x244   :  { %9226 = vmatpush1.bf16.msra.mxu0 %v17541_v13  ;;  %v17594_v13 = vld [vmem:[#allocation2 + $0x3ac] ss:$112 sps:$4 sm:$0xff]  }
 0x245   :  { %9227 = vmatprep.subr.bf16.mxu0 %v17549_v16  ;;  %v17592_v16 = vld [vmem:[#allocation2 + $0x3a8] ss:$112 sps:$4 sm:$0xff]  }
 0x246   :  { %9164 = vmatpush1.bf16.msra.mxu1 %v17538_v14 }
 0x247   :  { %9165 = vmatprep.subr.bf16.mxu1 %v17546_v15  ;;  %v17595_v15 = vld [vmem:[#allocation2 + $0xb80] ss:$112 sps:$4 sm:$0xff]  }
 0x248   :  { %9228 = vmatpush1.bf16.msra.mxu0 %v17547_v17  ;;  %v17600_v17 = vld [vmem:[#allocation2 + $0x48c] ss:$112 sps:$4 sm:$0xff]  }
 0x249   :  { %9229 = vmatprep.subr.bf16.mxu0 %v17555_v25  ;;  %v17606_v25 = vld [vmem:[#allocation2 + $0x56c] ss:$112 sps:$4 sm:$0xff]  }
 0x24a   :  { %9166 = vmatpush1.bf16.msra.mxu1 %v17544_v22  ;;  %v8679_v33 = vpop.f32.mrb[0].mxu0  ;;  %v17601_v22 = vld [vmem:[#allocation2 + $0xc60] ss:$112 sps:$4 sm:$0xff]  }
 0x24b   :  { %9167 = vmatprep.subr.bf16.mxu1 %v17552_v23  ;;  %v16686_v34 = vadd.f32 %v8679_v33, %v1562_v26  ;;  %v8681_v35 = vpop.f32.mrb[1].mxu0  ;;  %v17598_v23 = vld [vmem:[#allocation2 + $0x488] ss:$112 sps:$4 sm:$0xff]   ;;  %v17609_v26 = vld [vmem:[#allocation2 + $0xd44] ss:$112 sps:$4 sm:$0xff]  }
 0x24c   :  { %v16688_v37 = vadd.f32 %v8681_v35, %v1566_v27  ;;  %v8683_v38 = vpop.f32.mrb[2].mxu0  ;;  %9230 = vmatpush1.bf16.msra.mxu0 %v17553_v28  ;;  %v17607_v27 = vld [vmem:[#allocation2 + $0xd40] ss:$112 sps:$4 sm:$0xff]   ;;  %v17604_v28 = vld [vmem:[#allocation2 + $0x568] ss:$112 sps:$4 sm:$0xff]  }
 0x24d   :  { %v19578_v40 = vadd.f32 %v16686_v34, %v19550_v54  ;;  %v8684_v41 = vpop.f32.mrb[3].mxu0  ;;  %9231 = vmatprep.subr.bf16.mxu0 %v17558_v31  ;;  %v17565_v54 = vld [vmem:[#allocation2 + $0x720] ss:$112 sps:$4 sm:$0xff]   ;;  %v17615_v31 = vld [vmem:[#allocation2 + $0xe24] ss:$112 sps:$4 sm:$0xff]  }
 0x24e   :  { %9168 = vmatpush1.bf16.msra.mxu1 %v17550_v30  ;;  %v19581_v44 = vadd.f32 %v16688_v37, %v19554_v57  ;;  %v17568_v57 = vld [vmem:[#allocation2 + $0x28] ss:$112 sps:$4 sm:$0xff]   ;;  %v17612_v30 = vld [vmem:[#allocation2 + $0x64c] ss:$112 sps:$4 sm:$0xff]   ;;  %v17621_v35 = vld [vmem:[#allocation2 + $0xf04] ss:$112 sps:$4 sm:$0xff]  }
 0x24f   :  { %9178 = vmatprep.subr.bf16.mxu1 %v17564_v32  ;;  %v17613_v32 = vld [vmem:[#allocation2 + $0xe20] ss:$112 sps:$4 sm:$0xff]   ;;  %v17610_v33 = vld [vmem:[#allocation2 + $0x648] ss:$112 sps:$4 sm:$0xff]   ;;  %v17618_v34 = vld [vmem:[#allocation2 + $0x72c] ss:$112 sps:$4 sm:$0xff]  }
 0x250   :  { %9232 = vmatpush1.bf16.msra.mxu0 %v17556_v39  ;;  %v17619_v37 = vld [vmem:[#allocation2 + $0xf00] ss:$112 sps:$4 sm:$0xff]   ;;  %v17616_v38 = vld [vmem:[#allocation2 + $0x728] ss:$112 sps:$4 sm:$0xff]   ;;  %v17624_v39 = vld [vmem:[#allocation2 + $0x80c] ss:$112 sps:$4 sm:$0xff]  }
 0x251   :  { %9170 = vmatmul.mubr.bf16.vlgmr.msra.gmra.mrb[12].mxu1 %v19541_v29  ;;  %9233 = vmatprep.subr.bf16.mxu0 %v17561_v42  ;;  %v17627_v41 = vld [vmem:[#allocation2 + $0xfe4] ss:$112 sps:$4 sm:$0xff]   ;;  %v17625_v42 = vld [vmem:[#allocation2 + $0xfe0] ss:$112 sps:$4 sm:$0xff]  }
 0x252   :  { %9179 = vmatpush1.bf16.msra.mxu1 %v17562_v43  ;;  %9210 = vmatprep.mubr.bf16.mxu1 %v19303_v0  ;;  %v17622_v43 = vld [vmem:[#allocation2 + $0x808] ss:$112 sps:$4 sm:$0xff]  }
 0x253   :  { %9383 = vmatprep.subr.bf16.mxu1 %v17570_v45  ;;  %v17630_v45 = vld [vmem:[#allocation2 + $0x8ec] ss:$112 sps:$4 sm:$0xff]  }
 0x254   :  { %9234 = vmatpush1.bf16.msra.mxu0 %v17559_v46  ;;  %v17633_v46 = vld [vmem:[#allocation2 + $0x10c4] ss:$112 sps:$4 sm:$0xff]  }
 0x255   :  { %9235 = vmatprep.subr.bf16.mxu0 %v17567_v47  ;;  %v17631_v47 = vld [vmem:[#allocation2 + $0x10c0] ss:$112 sps:$4 sm:$0xff]  }
 0x258   :  { %9236 = vmatpush1.bf16.msra.mxu0 %v17565_v54  ;;  %v17628_v54 = vld [vmem:[#allocation2 + $0x8e8] ss:$112 sps:$4 sm:$0xff]  }
 0x259   :  { %9237 = vmatprep.subr.bf16.mxu0 %v17573_v48  ;;  %v17636_v48 = vld [vmem:[#allocation2 + $0x9cc] ss:$112 sps:$4 sm:$0xff]  }
 0x25c   :  { %v19585_v53 = vpop.f32.mrb[4].mxu1  ;;  %9238 = vmatpush1.bf16.msra.mxu0 %v17571_v49  ;;  %v17639_v49 = vld [vmem:[#allocation2 + $0x11a4] ss:$112 sps:$4 sm:$0xff]  }
 0x25d   :  { %16112 = vmatmul.mubr.msk.bf16.vlgmr.msra.gmra.mrb[12].mxu1 %vm8559_vm0, %v19499_v10  ;;  %v19589_v55 = vpop.f32.mrb[5].mxu1  ;;  %9239 = vmatprep.subr.bf16.mxu0 %v17579_v52  ;;  %v17642_v52 = vld [vmem:[#allocation2 + $0xaac] ss:$112 sps:$4 sm:$0xff]  }
 0x25e   :  { %9384 = vmatpush1.bf16.msra.mxu1 %v17568_v57  ;;  %v8888_v58 = vpop.f32.mrb[6].mxu1  ;;  %9415 = vmatprep.mubr.bf16.mxu1 %v19506_v51  ;;  %v17634_v57 = vld [vmem:[#allocation2 + $0x9c8] ss:$112 sps:$4 sm:$0xff]  }
 0x25f   :  { %v8889_v61 = vpop.f32.mrb[7].mxu1  ;;  %9385 = vmatprep.subr.bf16.mxu1 %v17576_v50  ;;  %v17637_v50 = vld [vmem:[#allocation2 + $0x11a0] ss:$112 sps:$4 sm:$0xff]   ;;  %v17640_v58 = vld [vmem:[#allocation2 + $0xaa8] ss:$112 sps:$4 sm:$0xff]  }
 0x260   :  { %9240 = vmatpush1.bf16.msra.mxu0 %v17577_v56  ;;  %v17645_v56 = vld [vmem:[#allocation2 + $0x1284] ss:$112 sps:$4 sm:$0xff]  }
 0x261   :  { %9241 = vmatprep.subr.bf16.mxu0 %v17585_v60  ;;  %v17648_v60 = vld [vmem:[#allocation2 + $0xb8c] ss:$112 sps:$4 sm:$0xff]   ;;  %v17651_v61 = vld [vmem:[#allocation2 + $0x1364] ss:$112 sps:$4 sm:$0xff]  }
 0x262   :  { %9386 = vmatpush1.bf16.msra.mxu1 %v17574_v59  ;;  %v17643_v59 = vld [vmem:[#allocation2 + $0x1280] ss:$112 sps:$4 sm:$0xff]  }
 0x263   :  { %9387 = vmatprep.subr.bf16.mxu1 %v17582_v62  ;;  %v17646_v62 = vld [vmem:[#allocation2 + $0xb88] ss:$112 sps:$4 sm:$0xff]  }
 0x264   :  { %v19592_v4 = vpop.f32.mrb[8].mxu1  ;;  %9242 = vmatpush1.bf16.msra.mxu0 %v17583_v63  ;;  %v17649_v63 = vld [vmem:[#allocation2 + $0x1360] ss:$112 sps:$4 sm:$0xff]  }
 0x265   :  { %v19594_v6 = vpop.f32.mrb[9].mxu1  ;;  %9243 = vmatprep.subr.bf16.mxu0 %v17591_v3  ;;  %v17652_v3 = vld [vmem:[#allocation2 + $0xc68] ss:$112 sps:$4 sm:$0xff]  }
 0x266   :  { %9388 = vmatpush1.bf16.msra.mxu1 %v17580_v1  ;;  %v9052_v11 = vpop.f32.mrb[10].mxu1  ;;  %v17657_v1 = vld [vmem:[#allocation2 + $0x1444] ss:$112 sps:$4 sm:$0xff]  }
 0x267   :  { %9389 = vmatprep.subr.bf16.mxu1 %v17588_v2  ;;  %v9053_v14 = vpop.f32.mrb[11].mxu1  ;;  %v17654_v2 = vld [vmem:[#allocation2 + $0xc6c] ss:$112 sps:$4 sm:$0xff]   ;;  %v17658_v11 = vld [vmem:[#allocation2 + $0xd48] ss:$112 sps:$4 sm:$0xff]  }
 0x268   :  { %9244 = vmatpush1.bf16.msra.mxu0 %v17589_v5  ;;  %v17655_v5 = vld [vmem:[#allocation2 + $0x1440] ss:$112 sps:$4 sm:$0xff]   ;;  %v17666_v14 = vld [vmem:[#allocation2 + $0xe2c] ss:$112 sps:$4 sm:$0xff]  }
 0x269   :  { %9245 = vmatprep.subr.bf16.mxu0 %v17597_v8  ;;  %v17663_v8 = vld [vmem:[#allocation2 + $0x1524] ss:$112 sps:$4 sm:$0xff]  }
 0x26a   :  { %9390 = vmatpush1.bf16.msra.mxu1 %v17586_v7  ;;  %v17660_v7 = vld [vmem:[#allocation2 + $0xd4c] ss:$112 sps:$4 sm:$0xff]  }
 0x26b   :  { %9391 = vmatprep.subr.bf16.mxu1 %v17594_v13  ;;  %v17661_v13 = vld [vmem:[#allocation2 + $0x1520] ss:$112 sps:$4 sm:$0xff]  }
 0x26c   :  { %9246 = vmatpush1.bf16.msra.mxu0 %v17595_v15  ;;  %v17669_v15 = vld [vmem:[#allocation2 + $0x1604] ss:$112 sps:$4 sm:$0xff]  }
 0x26d   :  { %9247 = vmatprep.subr.bf16.mxu0 %v17603_v20  ;;  %v17672_v20 = vld [vmem:[#allocation2 + $0xf0c] ss:$112 sps:$4 sm:$0xff]  }
 0x26e   :  { %9392 = vmatpush1.bf16.msra.mxu1 %v17592_v16  ;;  %v17664_v16 = vld [vmem:[#allocation2 + $0xe28] ss:$112 sps:$4 sm:$0xff]  }
 0x26f   :  { %9393 = vmatprep.subr.bf16.mxu1 %v17600_v17  ;;  %v17667_v17 = vld [vmem:[#allocation2 + $0x1600] ss:$112 sps:$4 sm:$0xff]  }
 0x270   :  { %9248 = vmatpush1.bf16.msra.mxu0 %v17601_v22  ;;  %v17675_v22 = vld [vmem:[#allocation2 + $0x16e4] ss:$112 sps:$4 sm:$0xff]  }
 0x271   :  { %9249 = vmatprep.subr.bf16.mxu0 %v17609_v26  ;;  %v17678_v26 = vld [vmem:[#allocation2 + $0xfec] ss:$112 sps:$4 sm:$0xff]  }
 0x272   :  { %9394 = vmatpush1.bf16.msra.mxu1 %v17598_v23  ;;  %v17670_v23 = vld [vmem:[#allocation2 + $0xf08] ss:$112 sps:$4 sm:$0xff]  }
 0x273   :  { %9395 = vmatprep.subr.bf16.mxu1 %v17606_v25  ;;  %v17673_v25 = vld [vmem:[#allocation2 + $0x16e0] ss:$112 sps:$4 sm:$0xff]  }
 0x274   :  { %9250 = vmatpush1.bf16.msra.mxu0 %v17607_v27  ;;  %v17681_v27 = vld [vmem:[#allocation2 + $0x17c4] ss:$112 sps:$4 sm:$0xff]  }
 0x275   :  { %9260 = vmatprep.subr.bf16.mxu0 %v17615_v31  ;;  %v17684_v31 = vld [vmem:[#allocation2 + $0x10cc] ss:$112 sps:$4 sm:$0xff]  }
 0x276   :  { %9396 = vmatpush1.bf16.msra.mxu1 %v17604_v28  ;;  %v17676_v28 = vld [vmem:[#allocation2 + $0xfe8] ss:$112 sps:$4 sm:$0xff]  }
 0x277   :  { %9397 = vmatprep.subr.bf16.mxu1 %v17612_v30  ;;  %9252 = vmatmul.mubr.bf16.vlgmr.msra.gmra.mrb[8].mxu0 %v19513_v9  ;;  %v17679_v30 = vld [vmem:[#allocation2 + $0x17c0] ss:$112 sps:$4 sm:$0xff]  }
 0x278   :  { %9261 = vmatpush1.bf16.msra.mxu0 %v17613_v32  ;;  %9292 = vmatprep.mubr.bf16.mxu0 %v19520_v36  ;;  %v17687_v32 = vld [vmem:[#allocation2 + $0x18a4] ss:$112 sps:$4 sm:$0xff]  }
 0x279   :  { %9262 = vmatprep.subr.bf16.mxu0 %v17621_v35  ;;  %v17690_v35 = vld [vmem:[#allocation2 + $0x11ac] ss:$112 sps:$4 sm:$0xff]  }
 0x27a   :  { %9398 = vmatpush1.bf16.msra.mxu1 %v17610_v33  ;;  %v17685_v33 = vld [vmem:[#allocation2 + $0x18a0] ss:$112 sps:$4 sm:$0xff]  }
 0x27b   :  { %9399 = vmatprep.subr.bf16.mxu1 %v17618_v34  ;;  %v17682_v34 = vld [vmem:[#allocation2 + $0x10c8] ss:$112 sps:$4 sm:$0xff]  }
 0x27c   :  { %9263 = vmatpush1.bf16.msra.mxu0 %v17619_v37  ;;  %v17693_v37 = vld [vmem:[#allocation2 + $0x1984] ss:$112 sps:$4 sm:$0xff]  }
 0x27d   :  { %9264 = vmatprep.subr.bf16.mxu0 %v17627_v41  ;;  %v17696_v41 = vld [vmem:[#allocation2 + $0x128c] ss:$112 sps:$4 sm:$0xff]  }
 0x27e   :  { %9400 = vmatpush1.bf16.msra.mxu1 %v17616_v38  ;;  %v17691_v38 = vld [vmem:[#allocation2 + $0x1980] ss:$112 sps:$4 sm:$0xff]  }
 0x27f   :  { %9401 = vmatprep.subr.bf16.mxu1 %v17624_v39  ;;  %v17688_v39 = vld [vmem:[#allocation2 + $0x11a8] ss:$112 sps:$4 sm:$0xff]  }
 0x280   :  { %9265 = vmatpush1.bf16.msra.mxu0 %v17625_v42  ;;  %v17699_v42 = vld [vmem:[#allocation2 + $0x1a64] ss:$112 sps:$4 sm:$0xff]  }
 0x281   :  { %9266 = vmatprep.subr.bf16.mxu0 %v17633_v46  ;;  %v17702_v46 = vld [vmem:[#allocation2 + $0x136c] ss:$112 sps:$4 sm:$0xff]  }
 0x282   :  { %9402 = vmatpush1.bf16.msra.mxu1 %v17622_v43  ;;  %v17697_v43 = vld [vmem:[#allocation2 + $0x1a60] ss:$112 sps:$4 sm:$0xff]  }
 0x283   :  { %9403 = vmatprep.subr.bf16.mxu1 %v17630_v45  ;;  %v17694_v45 = vld [vmem:[#allocation2 + $0x1288] ss:$112 sps:$4 sm:$0xff]  }
 0x284   :  { %9267 = vmatpush1.bf16.msra.mxu0 %v17631_v47  ;;  %v17705_v47 = vld [vmem:[#allocation2 + $0x1b44] ss:$112 sps:$4 sm:$0xff]  }
 0x285   :  { %9268 = vmatprep.subr.bf16.mxu0 %v17639_v49  ;;  %v17711_v49 = vld [vmem:[#allocation2 + $0x1c24] ss:$112 sps:$4 sm:$0xff]  }
 0x286   :  { %9404 = vmatpush1.bf16.msra.mxu1 %v17628_v54  ;;  %v17700_v54 = vld [vmem:[#allocation2 + $0x1368] ss:$112 sps:$4 sm:$0xff]  }
 0x287   :  { %9405 = vmatprep.subr.bf16.mxu1 %v17636_v48  ;;  %v17703_v48 = vld [vmem:[#allocation2 + $0x1b40] ss:$112 sps:$4 sm:$0xff]  }
 0x288   :  { %9269 = vmatpush1.bf16.msra.mxu0 %v17637_v50  ;;  %v17709_v50 = vld [vmem:[#allocation2 + $0x1c20] ss:$112 sps:$4 sm:$0xff]  }
 0x289   :  { %9270 = vmatprep.subr.bf16.mxu0 %v17645_v56  ;;  %v17714_v56 = vld [vmem:[#allocation2 + $0x152c] ss:$112 sps:$4 sm:$0xff]  }
 0x28a   :  { %9406 = vmatpush1.bf16.msra.mxu1 %v17634_v57  ;;  %v17708_v57 = vld [vmem:[#allocation2 + $0x144c] ss:$112 sps:$4 sm:$0xff]  }
 0x28b   :  { %9407 = vmatprep.subr.bf16.mxu1 %v17642_v52  ;;  %v17706_v52 = vld [vmem:[#allocation2 + $0x1448] ss:$112 sps:$4 sm:$0xff]  }
 0x28c   :  { %9271 = vmatpush1.bf16.msra.mxu0 %v17643_v59  ;;  %v17715_v59 = vld [vmem:[#allocation2 + $0x1d00] ss:$112 sps:$4 sm:$0xff]  }
 0x28d   :  { %9272 = vmatprep.subr.bf16.mxu0 %v17651_v61  ;;  %v17720_v61 = vld [vmem:[#allocation2 + $0x160c] ss:$112 sps:$4 sm:$0xff]  }
 0x28e   :  { %9408 = vmatpush1.bf16.msra.mxu1 %v17640_v58  ;;  %v17717_v58 = vld [vmem:[#allocation2 + $0x1d04] ss:$112 sps:$4 sm:$0xff]  }
 0x28f   :  { %9409 = vmatprep.subr.bf16.mxu1 %v17648_v60  ;;  %v17712_v60 = vld [vmem:[#allocation2 + $0x1528] ss:$112 sps:$4 sm:$0xff]  }
 0x290   :  { %9273 = vmatpush1.bf16.msra.mxu0 %v17649_v63  ;;  %v17721_v63 = vld [vmem:[#allocation2 + $0x1de0] ss:$112 sps:$4 sm:$0xff]  }
 0x291   :  { %9274 = vmatprep.subr.bf16.mxu0 %v17657_v1  ;;  %v17718_v1 = vld [vmem:[#allocation2 + $0x1608] ss:$112 sps:$4 sm:$0xff]  }
 0x292   :  { %9410 = vmatpush1.bf16.msra.mxu1 %v17646_v62  ;;  %v17723_v62 = vld [vmem:[#allocation2 + $0x1de4] ss:$112 sps:$4 sm:$0xff]  }
 0x293   :  { %9411 = vmatprep.subr.bf16.mxu1 %v17654_v2  ;;  %v17726_v2 = vld [vmem:[#allocation2 + $0x16ec] ss:$112 sps:$4 sm:$0xff]  }
 0x294   :  { %9275 = vmatpush1.bf16.msra.mxu0 %v17655_v5  ;;  %v17727_v5 = vld [vmem:[#allocation2 + $0x1ec0] ss:$112 sps:$4 sm:$0xff]  }
 0x295   :  { %9276 = vmatprep.subr.bf16.mxu0 %v17663_v8  ;;  %v17732_v8 = vld [vmem:[#allocation2 + $0x17cc] ss:$112 sps:$4 sm:$0xff]  }
 0x296   :  { %9412 = vmatpush1.bf16.msra.mxu1 %v17652_v3  ;;  %v17729_v3 = vld [vmem:[#allocation2 + $0x1ec4] ss:$112 sps:$4 sm:$0xff]  }
 0x297   :  { %9413 = vmatprep.subr.bf16.mxu1 %v17660_v7  ;;  %v17724_v7 = vld [vmem:[#allocation2 + $0x16e8] ss:$112 sps:$4 sm:$0xff]  }
 0x298   :  { %9277 = vmatpush1.bf16.msra.mxu0 %v17661_v13  ;;  %v17733_v13 = vld [vmem:[#allocation2 + $0x1fa0] ss:$112 sps:$4 sm:$0xff]  }
 0x299   :  { %9278 = vmatprep.subr.bf16.mxu0 %v17669_v15  ;;  %v17738_v15 = vld [vmem:[#allocation2 + $0x18ac] ss:$112 sps:$4 sm:$0xff]  }
 0x29a   :  { %9414 = vmatpush1.bf16.msra.mxu1 %v17658_v11  ;;  %v17735_v11 = vld [vmem:[#allocation2 + $0x1fa4] ss:$112 sps:$4 sm:$0xff]  }
 0x29b   :  { %9424 = vmatprep.subr.bf16.mxu1 %v17666_v14  ;;  %v17730_v14 = vld [vmem:[#allocation2 + $0x17c8] ss:$112 sps:$4 sm:$0xff]  }
 0x29c   :  { %9279 = vmatpush1.bf16.msra.mxu0 %v17667_v17  ;;  %v17739_v17 = vld [vmem:[#allocation2 + $0x2080] ss:$112 sps:$4 sm:$0xff]  }
 0x29d   :  { %9416 = vmatmul.mubr.bf16.vlgmr.msra.gmra.mrb[16].mxu1 %v19513_v9  ;;  %9280 = vmatprep.subr.bf16.mxu0 %v17675_v22  ;;  %v17744_v22 = vld [vmem:[#allocation2 + $0x198c] ss:$112 sps:$4 sm:$0xff]  }
 0x29e   :  { %9425 = vmatpush1.bf16.msra.mxu1 %v17664_v16  ;;  %9456 = vmatprep.mubr.bf16.mxu1 %v19520_v36  ;;  %v17741_v16 = vld [vmem:[#allocation2 + $0x2084] ss:$112 sps:$4 sm:$0xff]  }
 0x29f   :  { %9426 = vmatprep.subr.bf16.mxu1 %v17672_v20  ;;  %v17736_v20 = vld [vmem:[#allocation2 + $0x18a8] ss:$112 sps:$4 sm:$0xff]  }
 0x2a0   :  { %9281 = vmatpush1.bf16.msra.mxu0 %v17673_v25  ;;  %v17745_v25 = vld [vmem:[#allocation2 + $0x2160] ss:$112 sps:$4 sm:$0xff]  }
 0x2a1   :  { %9282 = vmatprep.subr.bf16.mxu0 %v17681_v27  ;;  %v17750_v27 = vld [vmem:[#allocation2 + $0x1a6c] ss:$112 sps:$4 sm:$0xff]  }
 0x2a2   :  { %9427 = vmatpush1.bf16.msra.mxu1 %v17670_v23  ;;  %v17747_v23 = vld [vmem:[#allocation2 + $0x2164] ss:$112 sps:$4 sm:$0xff]  }
 0x2a3   :  { %9428 = vmatprep.subr.bf16.mxu1 %v17678_v26  ;;  %v17742_v26 = vld [vmem:[#allocation2 + $0x1988] ss:$112 sps:$4 sm:$0xff]  }
 0x2a4   :  { %9283 = vmatpush1.bf16.msra.mxu0 %v17679_v30  ;;  %v17751_v30 = vld [vmem:[#allocation2 + $0x2240] ss:$112 sps:$4 sm:$0xff]  }
 0x2a5   :  { %9284 = vmatprep.subr.bf16.mxu0 %v17687_v32  ;;  %v17756_v32 = vld [vmem:[#allocation2 + $0x1b4c] ss:$112 sps:$4 sm:$0xff]  }
 0x2a6   :  { %9429 = vmatpush1.bf16.msra.mxu1 %v17676_v28  ;;  %v17753_v28 = vld [vmem:[#allocation2 + $0x2244] ss:$112 sps:$4 sm:$0xff]  }
 0x2a7   :  { %9430 = vmatprep.subr.bf16.mxu1 %v17684_v31  ;;  %v17748_v31 = vld [vmem:[#allocation2 + $0x1a68] ss:$112 sps:$4 sm:$0xff]  }
 0x2a8   :  { %9285 = vmatpush1.bf16.msra.mxu0 %v17685_v33  ;;  %v17759_v33 = vld [vmem:[#allocation2 + $0x2324] ss:$112 sps:$4 sm:$0xff]  }
 0x2a9   :  { %9286 = vmatprep.subr.bf16.mxu0 %v17693_v37  ;;  %v17762_v37 = vld [vmem:[#allocation2 + $0x1c2c] ss:$112 sps:$4 sm:$0xff]  }
 0x2aa   :  { %9431 = vmatpush1.bf16.msra.mxu1 %v17682_v34  ;;  %v17757_v34 = vld [vmem:[#allocation2 + $0x2320] ss:$112 sps:$4 sm:$0xff]  }
 0x2ab   :  { %9432 = vmatprep.subr.bf16.mxu1 %v17690_v35  ;;  %v17754_v35 = vld [vmem:[#allocation2 + $0x1b48] ss:$112 sps:$4 sm:$0xff]  }
 0x2ac   :  { %9287 = vmatpush1.bf16.msra.mxu0 %v17691_v38  ;;  %v17765_v38 = vld [vmem:[#allocation2 + $0x2404] ss:$112 sps:$4 sm:$0xff]  }
 0x2ad   :  { %9288 = vmatprep.subr.bf16.mxu0 %v17699_v42  ;;  %v17768_v42 = vld [vmem:[#allocation2 + $0x1d0c] ss:$112 sps:$4 sm:$0xff]  }
 0x2ae   :  { %9433 = vmatpush1.bf16.msra.mxu1 %v17688_v39  ;;  %v17763_v39 = vld [vmem:[#allocation2 + $0x2400] ss:$112 sps:$4 sm:$0xff]  }
 0x2af   :  { %9434 = vmatprep.subr.bf16.mxu1 %v17696_v41  ;;  %v17760_v41 = vld [vmem:[#allocation2 + $0x1c28] ss:$112 sps:$4 sm:$0xff]  }
 0x2b0   :  { %9289 = vmatpush1.bf16.msra.mxu0 %v17697_v43  ;;  %v17771_v43 = vld [vmem:[#allocation2 + $0x24e4] ss:$112 sps:$4 sm:$0xff]  }
 0x2b1   :  { %9290 = vmatprep.subr.bf16.mxu0 %v17705_v47  ;;  %v17774_v47 = vld [vmem:[#allocation2 + $0x1dec] ss:$112 sps:$4 sm:$0xff]  }
 0x2b2   :  { %9435 = vmatpush1.bf16.msra.mxu1 %v17694_v45  ;;  %v17769_v45 = vld [vmem:[#allocation2 + $0x24e0] ss:$112 sps:$4 sm:$0xff]  }
 0x2b3   :  { %9436 = vmatprep.subr.bf16.mxu1 %v17702_v46  ;;  %v17766_v46 = vld [vmem:[#allocation2 + $0x1d08] ss:$112 sps:$4 sm:$0xff]  }
 0x2b4   :  { %9291 = vmatpush1.bf16.msra.mxu0 %v17703_v48  ;;  %v17775_v48 = vld [vmem:[#allocation2 + $0x25c0] ss:$112 sps:$4 sm:$0xff]  }
 0x2b5   :  { %9301 = vmatprep.subr.bf16.mxu0 %v17711_v49  ;;  %v17772_v49 = vld [vmem:[#allocation2 + $0x1de8] ss:$112 sps:$4 sm:$0xff]  }
 0x2b6   :  { %9437 = vmatpush1.bf16.msra.mxu1 %v17700_v54  ;;  %v17777_v54 = vld [vmem:[#allocation2 + $0x25c4] ss:$112 sps:$4 sm:$0xff]  }
 0x2b7   :  { %9438 = vmatprep.subr.bf16.mxu1 %v17708_v57  ;;  %9293 = vmatmul.mubr.bf16.vlgmr.msra.gmra.mrb[8].mxu0 %v19527_v18  ;;  %v17780_v57 = vld [vmem:[#allocation2 + $0x1ecc] ss:$112 sps:$4 sm:$0xff]  }
 0x2b8   :  { %9302 = vmatpush1.bf16.msra.mxu0 %v17709_v50  ;;  %9333 = vmatprep.mubr.bf16.mxu0 %v19532_v24  ;;  %v17783_v50 = vld [vmem:[#allocation2 + $0x26a4] ss:$112 sps:$4 sm:$0xff]  }
 0x2b9   :  { %9303 = vmatprep.subr.bf16.mxu0 %v17717_v58  ;;  %v17786_v58 = vld [vmem:[#allocation2 + $0x1fac] ss:$112 sps:$4 sm:$0xff]  }
 0x2ba   :  { %9439 = vmatpush1.bf16.msra.mxu1 %v17706_v52  ;;  %v17781_v52 = vld [vmem:[#allocation2 + $0x26a0] ss:$112 sps:$4 sm:$0xff]  }
 0x2bb   :  { %9440 = vmatprep.subr.bf16.mxu1 %v17714_v56  ;;  %v17778_v56 = vld [vmem:[#allocation2 + $0x1ec8] ss:$112 sps:$4 sm:$0xff]  }
 0x2bc   :  { %9304 = vmatpush1.bf16.msra.mxu0 %v17715_v59  ;;  %v17789_v59 = vld [vmem:[#allocation2 + $0x2784] ss:$112 sps:$4 sm:$0xff]  }
 0x2bd   :  { %9305 = vmatprep.subr.bf16.mxu0 %v17723_v62  ;;  %v17792_v62 = vld [vmem:[#allocation2 + $0x208c] ss:$112 sps:$4 sm:$0xff]  }
 0x2be   :  { %9441 = vmatpush1.bf16.msra.mxu1 %v17712_v60  ;;  %v17787_v60 = vld [vmem:[#allocation2 + $0x2780] ss:$112 sps:$4 sm:$0xff]  }
 0x2bf   :  { %9442 = vmatprep.subr.bf16.mxu1 %v17720_v61  ;;  %v17784_v61 = vld [vmem:[#allocation2 + $0x1fa8] ss:$112 sps:$4 sm:$0xff]  }
 0x2c0   :  { %9306 = vmatpush1.bf16.msra.mxu0 %v17721_v63  ;;  %v17795_v63 = vld [vmem:[#allocation2 + $0x2864] ss:$112 sps:$4 sm:$0xff]  }
 0x2c1   :  { %9307 = vmatprep.subr.bf16.mxu0 %v17729_v3  ;;  %v17798_v3 = vld [vmem:[#allocation2 + $0x216c] ss:$112 sps:$4 sm:$0xff]  }
 0x2c2   :  { %9443 = vmatpush1.bf16.msra.mxu1 %v17718_v1  ;;  %v17793_v1 = vld [vmem:[#allocation2 + $0x2860] ss:$112 sps:$4 sm:$0xff]  }
 0x2c3   :  { %9444 = vmatprep.subr.bf16.mxu1 %v17726_v2  ;;  %v17790_v2 = vld [vmem:[#allocation2 + $0x2088] ss:$112 sps:$4 sm:$0xff]  }
 0x2c4   :  { %9308 = vmatpush1.bf16.msra.mxu0 %v17727_v5  ;;  %v17801_v5 = vld [vmem:[#allocation2 + $0x2944] ss:$112 sps:$4 sm:$0xff]  }
 0x2c5   :  { %9309 = vmatprep.subr.bf16.mxu0 %v17735_v11  ;;  %v17804_v11 = vld [vmem:[#allocation2 + $0x224c] ss:$112 sps:$4 sm:$0xff]  }
 0x2c6   :  { %9445 = vmatpush1.bf16.msra.mxu1 %v17724_v7  ;;  %v17799_v7 = vld [vmem:[#allocation2 + $0x2940] ss:$112 sps:$4 sm:$0xff]  }
 0x2c7   :  { %9446 = vmatprep.subr.bf16.mxu1 %v17732_v8  ;;  %v17796_v8 = vld [vmem:[#allocation2 + $0x2168] ss:$112 sps:$4 sm:$0xff]  }
 0x2c8   :  { %9310 = vmatpush1.bf16.msra.mxu0 %v17733_v13  ;;  %v17807_v13 = vld [vmem:[#allocation2 + $0x2a24] ss:$112 sps:$4 sm:$0xff]  }
 0x2c9   :  { %9311 = vmatprep.subr.bf16.mxu0 %v17741_v16  ;;  %v17810_v16 = vld [vmem:[#allocation2 + $0x232c] ss:$112 sps:$4 sm:$0xff]  }
 0x2ca   :  { %9447 = vmatpush1.bf16.msra.mxu1 %v17730_v14  ;;  %v17805_v14 = vld [vmem:[#allocation2 + $0x2a20] ss:$112 sps:$4 sm:$0xff]  }
 0x2cb   :  { %9448 = vmatprep.subr.bf16.mxu1 %v17738_v15  ;;  %v17802_v15 = vld [vmem:[#allocation2 + $0x2248] ss:$112 sps:$4 sm:$0xff]  }
 0x2cc   :  { %9312 = vmatpush1.bf16.msra.mxu0 %v17739_v17  ;;  %v17819_v17 = vld [vmem:[#allocation2 + $0x34] ss:$112 sps:$4 sm:$0xff]  }
 0x2cd   :  { %9313 = vmatprep.subr.bf16.mxu0 %v17747_v23  ;;  %v17811_v23 = vld [vmem:[#allocation2 + $0x2408] ss:$112 sps:$4 sm:$0xff]  }
 0x2ce   :  { %9449 = vmatpush1.bf16.msra.mxu1 %v17736_v20  ;;  %v17808_v20 = vld [vmem:[#allocation2 + $0x2328] ss:$112 sps:$4 sm:$0xff]  }
 0x2cf   :  { %9450 = vmatprep.subr.bf16.mxu1 %v17744_v22  ;;  %v17813_v22 = vld [vmem:[#allocation2 + $0x240c] ss:$112 sps:$4 sm:$0xff]  }
 0x2d0   :  { %9314 = vmatpush1.bf16.msra.mxu0 %v17745_v25  ;;  %v17816_v25 = vld [vmem:[#allocation2 + $0x24ec] ss:$112 sps:$4 sm:$0xff]  }
 0x2d1   :  { %9315 = vmatprep.subr.bf16.mxu0 %v17753_v28  ;;  %v17822_v28 = vld [vmem:[#allocation2 + $0x25cc] ss:$112 sps:$4 sm:$0xff]  }
 0x2d2   :  { %9451 = vmatpush1.bf16.msra.mxu1 %v17742_v26  ;;  %v17817_v26 = vld [vmem:[#allocation2 + $0x30] ss:$112 sps:$4 sm:$0xff]  }
 0x2d3   :  { %9452 = vmatprep.subr.bf16.mxu1 %v17750_v27  ;;  %v17814_v27 = vld [vmem:[#allocation2 + $0x24e8] ss:$112 sps:$4 sm:$0xff]  }
 0x2d4   :  { %9316 = vmatpush1.bf16.msra.mxu0 %v17751_v30  ;;  %v17825_v30 = vld [vmem:[#allocation2 + $0x114] ss:$112 sps:$4 sm:$0xff]  }
 0x2d5   :  { %9317 = vmatprep.subr.bf16.mxu0 %v17759_v33  ;;  %v19612_v33 = vsub.s32 5, %v19567_v12 }
 0x2d6   :  { %9453 = vmatpush1.bf16.msra.mxu1 %v17748_v31  ;;  %v19609_v31 = vsub.s32 4, %v19567_v12 }
 0x2d7   :  { %9454 = vmatprep.subr.bf16.mxu1 %v17756_v32  ;;  %v17823_v32 = vld [vmem:[#allocation2 + $0x110] ss:$112 sps:$4 sm:$0xff]  }
 0x2d8   :  { %9318 = vmatpush1.bf16.msra.mxu0 %v17757_v34  ;;  %v17820_v34 = vld [vmem:[#allocation2 + $0x25c8] ss:$112 sps:$4 sm:$0xff]  }
 0x2d9   :  { %9319 = vmatprep.subr.bf16.mxu0 %v17765_v38  ;;  %v19615_v38 = vld [vmem:[#allocation4] sm:$0xff] }
 0x2da   :  { %9455 = vmatpush1.bf16.msra.mxu1 %v17754_v35  ;;  %v17828_v35 = vld [vmem:[#allocation2 + $0x26ac] ss:$112 sps:$4 sm:$0xff]  }
 0x2db   :  { %9465 = vmatprep.subr.bf16.mxu1 %v17762_v37  ;;  %v17831_v37 = vld [vmem:[#allocation2 + $0x1f4] ss:$112 sps:$4 sm:$0xff]  }
 0x2dc   :  { %9320 = vmatpush1.bf16.msra.mxu0 %v17763_v39  ;;  %v1578_v39 = vrot.slane %v19615_v38, %v19609_v31 }
 0x2dd   :  { %9457 = vmatmul.mubr.bf16.vlgmr.msra.gmra.mrb[16].mxu1 %v19527_v18  ;;  %9321 = vmatprep.subr.bf16.mxu0 %v17771_v43  ;;  %v17826_v43 = vld [vmem:[#allocation2 + $0x26a8] ss:$112 sps:$4 sm:$0xff]  }
 0x2de   :  { %9466 = vmatpush1.bf16.msra.mxu1 %v17760_v41  ;;  %9497 = vmatprep.mubr.bf16.mxu1 %v19532_v24  ;;  %v17829_v41 = vld [vmem:[#allocation2 + $0x1f0] ss:$112 sps:$4 sm:$0xff]  }
 0x2df   :  { %9467 = vmatprep.subr.bf16.mxu1 %v17768_v42  ;;  %v1582_v42 = vrot.slane %v19615_v38, %v19612_v33 }
 0x2e0   :  { %9322 = vmatpush1.bf16.msra.mxu0 %v17769_v45  ;;  %v17834_v45 = vld [vmem:[#allocation2 + $0x278c] ss:$112 sps:$4 sm:$0xff]  }
 0x2e1   :  { %9323 = vmatprep.subr.bf16.mxu0 %v17777_v54 }
 0x2e2   :  { %9468 = vmatpush1.bf16.msra.mxu1 %v17766_v46  ;;  %v17837_v46 = vld [vmem:[#allocation2 + $0x2d4] ss:$112 sps:$4 sm:$0xff]  }
 0x2e3   :  { %9469 = vmatprep.subr.bf16.mxu1 %v17774_v47 }
 0x2e4   :  { %9324 = vmatpush1.bf16.msra.mxu0 %v17775_v48 }
 0x2e5   :  { %9325 = vmatprep.subr.bf16.mxu0 %v17783_v50  ;;  %v17835_v50 = vld [vmem:[#allocation2 + $0x2d0] ss:$112 sps:$4 sm:$0xff]  }
 0x2e6   :  { %9470 = vmatpush1.bf16.msra.mxu1 %v17772_v49 }
 0x2e7   :  { %9471 = vmatprep.subr.bf16.mxu1 %v17780_v57 }
 0x2e8   :  { %9326 = vmatpush1.bf16.msra.mxu0 %v17781_v52 }
 0x2e9   :  { %9327 = vmatprep.subr.bf16.mxu0 %v17789_v59  ;;  %v17843_v59 = vld [vmem:[#allocation2 + $0x3b4] ss:$112 sps:$4 sm:$0xff]  }
 0x2ea   :  { %9472 = vmatpush1.bf16.msra.mxu1 %v17778_v56 }
 0x2eb   :  { %9473 = vmatprep.subr.bf16.mxu1 %v17786_v58  ;;  %v17832_v58 = vld [vmem:[#allocation2 + $0x2788] ss:$112 sps:$4 sm:$0xff]  }
 0x2ec   :  { %9328 = vmatpush1.bf16.msra.mxu0 %v17787_v60 }
 0x2ed   :  { %9329 = vmatprep.subr.bf16.mxu0 %v17795_v63  ;;  %v17838_v63 = vld [vmem:[#allocation2 + $0x2868] ss:$112 sps:$4 sm:$0xff]  }
 0x2ee   :  { %9474 = vmatpush1.bf16.msra.mxu1 %v17784_v61  ;;  %v17840_v61 = vld [vmem:[#allocation2 + $0x286c] ss:$112 sps:$4 sm:$0xff]  }
 0x2ef   :  { %9475 = vmatprep.subr.bf16.mxu1 %v17792_v62  ;;  %v17841_v62 = vld [vmem:[#allocation2 + $0x3b0] ss:$112 sps:$4 sm:$0xff]  }
 0x2f0   :  { %9330 = vmatpush1.bf16.msra.mxu0 %v17793_v1  ;;  %v17846_v1 = vld [vmem:[#allocation2 + $0x294c] ss:$112 sps:$4 sm:$0xff]  }
 0x2f1   :  { %9331 = vmatprep.subr.bf16.mxu0 %v17801_v5  ;;  %v17852_v5 = vld [vmem:[#allocation2 + $0x574] ss:$112 sps:$4 sm:$0xff]  }
 0x2f2   :  { %9476 = vmatpush1.bf16.msra.mxu1 %v17790_v2  ;;  %v17849_v2 = vld [vmem:[#allocation2 + $0x494] ss:$112 sps:$4 sm:$0xff]  }
 0x2f3   :  { %9477 = vmatprep.subr.bf16.mxu1 %v17798_v3  ;;  %v17844_v3 = vld [vmem:[#allocation2 + $0x2948] ss:$112 sps:$4 sm:$0xff]  }
 0x2f4   :  { %9332 = vmatpush1.bf16.msra.mxu0 %v17799_v7  ;;  %v17858_v7 = vld [vmem:[#allocation2 + $0x2a2c] ss:$112 sps:$4 sm:$0xff]  }
 0x2f5   :  { %9342 = vmatprep.subr.bf16.mxu0 %v17807_v13  ;;  %v17864_v13 = vld [vmem:[#allocation2 + $0x3c] ss:$112 sps:$4 sm:$0xff]  }
 0x2f6   :  { %9478 = vmatpush1.bf16.msra.mxu1 %v17796_v8  ;;  %v17855_v8 = vld [vmem:[#allocation2 + $0x654] ss:$112 sps:$4 sm:$0xff]  }
 0x2f7   :  { %9479 = vmatprep.subr.bf16.mxu1 %v17804_v11  ;;  %9334 = vmatmul.mubr.bf16.vlgmr.msra.gmra.mrb[8].mxu0 %v19541_v29  ;;  %v17856_v11 = vld [vmem:[#allocation2 + $0x2a28] ss:$112 sps:$4 sm:$0xff]  }
 0x2f8   :  { %9343 = vmatpush1.bf16.msra.mxu0 %v17805_v14  ;;  %9374 = vmatprep.mubr.bf16.mxu0 %v19303_v0  ;;  %v17853_v14 = vld [vmem:[#allocation2 + $0x650] ss:$112 sps:$4 sm:$0xff]  }
 0x2f9   :  { %9547 = vmatprep.subr.bf16.mxu0 %v17819_v17  ;;  %v17867_v17 = vld [vmem:[#allocation2 + $0x814] ss:$112 sps:$4 sm:$0xff]  }
 0x2fa   :  { %9480 = vmatpush1.bf16.msra.mxu1 %v17802_v15  ;;  %v17861_v15 = vld [vmem:[#allocation2 + $0x734] ss:$112 sps:$4 sm:$0xff]  }
 0x2fb   :  { %9481 = vmatprep.subr.bf16.mxu1 %v17810_v16  ;;  %v17859_v16 = vld [vmem:[#allocation2 + $0x730] ss:$112 sps:$4 sm:$0xff]  }
 0x2fe   :  { %9482 = vmatpush1.bf16.msra.mxu1 %v17808_v20  ;;  %v17865_v20 = vld [vmem:[#allocation2 + $0x810] ss:$112 sps:$4 sm:$0xff]  }
 0x2ff   :  { %9483 = vmatprep.subr.bf16.mxu1 %v17813_v22  ;;  %v17862_v22 = vld [vmem:[#allocation2 + $0x38] ss:$112 sps:$4 sm:$0xff]  }
 0x302   :  { %9484 = vmatpush1.bf16.msra.mxu1 %v17811_v23  ;;  %v17870_v23 = vld [vmem:[#allocation2 + $0x11c] ss:$112 sps:$4 sm:$0xff]  }
 0x303   :  { %9485 = vmatprep.subr.bf16.mxu1 %v17816_v25  ;;  %16113 = vmatmul.mubr.msk.bf16.vlgmr.msra.gmra.mrb[8].mxu0 %vm8559_vm0, %v19499_v10  ;;  %v17873_v25 = vld [vmem:[#allocation2 + $0x8f4] ss:$112 sps:$4 sm:$0xff]  }
 0x304   :  { %9548 = vmatpush1.bf16.msra.mxu0 %v17817_v26  ;;  %9579 = vmatprep.mubr.bf16.mxu0 %v19506_v51  ;;  %v17868_v26 = vld [vmem:[#allocation2 + $0x118] ss:$112 sps:$4 sm:$0xff]  }
 0x305   :  { %9549 = vmatprep.subr.bf16.mxu0 %v17825_v30  ;;  %v19632_v30 = vsub.s32 7, %v19567_v12 }
 0x306   :  { %9486 = vmatpush1.bf16.msra.mxu1 %v17814_v27  ;;  %v17871_v27 = vld [vmem:[#allocation2 + $0x8f0] ss:$112 sps:$4 sm:$0xff]  }
 0x307   :  { %9487 = vmatprep.subr.bf16.mxu1 %v17822_v28  ;;  %v17876_v28 = vld [vmem:[#allocation2 + $0x1fc] ss:$112 sps:$4 sm:$0xff]  }
 0x308   :  { %9550 = vmatpush1.bf16.msra.mxu0 %v17823_v32  ;;  %v17879_v32 = vld [vmem:[#allocation2 + $0x9d4] ss:$112 sps:$4 sm:$0xff]  }
 0x309   :  { %9551 = vmatprep.subr.bf16.mxu0 %v17831_v37  ;;  %v1590_v37 = vrot.slane %v19615_v38, %v19632_v30  ;;  %v10859_v38 = vmax.f32 %v19578_v40, 0.0  ;;  %v17901_v40 = vld [vmem:[#allocation2 + $0xd50] ss:$112 sps:$4 sm:$0xff]  }
 0x30a   :  { %9488 = vmatpush1.bf16.msra.mxu1 %v17820_v34  ;;  %v9007_v47 = vpop.f32.mrb[4].mxu0  ;;  %v17877_v34 = vld [vmem:[#allocation2 + $0x9d0] ss:$112 sps:$4 sm:$0xff]  }
 0x30b   :  { %9489 = vmatprep.subr.bf16.mxu1 %v17828_v35  ;;  %v16692_v54 = vadd.f32 %v9007_v47, %v1578_v39  ;;  %v9009_v48 = vpop.f32.mrb[5].mxu0  ;;  %v17874_v35 = vld [vmem:[#allocation2 + $0x1f8] ss:$112 sps:$4 sm:$0xff]   ;;  %v17882_v39 = vld [vmem:[#allocation2 + $0x2dc] ss:$112 sps:$4 sm:$0xff]  }
 0x30c   :  { %v16694_v49 = vadd.f32 %v9009_v48, %v1582_v42  ;;  %9552 = vmatpush1.bf16.msra.mxu0 %v17829_v41  ;;  %v9011_v57 = vpop.f32.mrb[6].mxu0  ;;  %v17885_v41 = vld [vmem:[#allocation2 + $0xab4] ss:$112 sps:$4 sm:$0xff]  }
 0x30d   :  { %v19622_v52 = vadd.f32 %v16692_v54, %v19592_v4  ;;  %v9012_v56 = vpop.f32.mrb[7].mxu0  ;;  %9553 = vmatprep.subr.bf16.mxu0 %v17837_v46  ;;  %v17847_v4 = vld [vmem:[#allocation2 + $0x490] ss:$112 sps:$4 sm:$0xff]   ;;  %v17880_v54 = vld [vmem:[#allocation2 + $0x2d8] ss:$112 sps:$4 sm:$0xff]  }
 0x30e   :  { %9490 = vmatpush1.bf16.msra.mxu1 %v17826_v43  ;;  %v19625_v60 = vadd.f32 %v16694_v49, %v19594_v6  ;;  %v17850_v6 = vld [vmem:[#allocation2 + $0x570] ss:$112 sps:$4 sm:$0xff]   ;;  %v17891_v48 = vld [vmem:[#allocation2 + $0xb94] ss:$112 sps:$4 sm:$0xff]   ;;  %v17888_v57 = vld [vmem:[#allocation2 + $0x3bc] ss:$112 sps:$4 sm:$0xff]  }
 0x30f   :  { %9491 = vmatprep.subr.bf16.mxu1 %v17834_v45  ;;  %v17883_v45 = vld [vmem:[#allocation2 + $0xab0] ss:$112 sps:$4 sm:$0xff]  }
 0x310   :  { %9554 = vmatpush1.bf16.msra.mxu0 %v17835_v50  ;;  %v17889_v56 = vld [vmem:[#allocation2 + $0xb90] ss:$112 sps:$4 sm:$0xff]  }
 0x311   :  { %9555 = vmatprep.subr.bf16.mxu0 %v17843_v59  ;;  %v17886_v59 = vld [vmem:[#allocation2 + $0x3b8] ss:$112 sps:$4 sm:$0xff]  }
 0x312   :  { %9492 = vmatpush1.bf16.msra.mxu1 %v17832_v58 }
 0x313   :  { %9493 = vmatprep.subr.bf16.mxu1 %v17840_v61  ;;  %v17894_v61 = vld [vmem:[#allocation2 + $0x49c] ss:$112 sps:$4 sm:$0xff]  }
 0x314   :  { %9556 = vmatpush1.bf16.msra.mxu0 %v17841_v62  ;;  %v17897_v62 = vld [vmem:[#allocation2 + $0xc74] ss:$112 sps:$4 sm:$0xff]  }
 0x315   :  { %9557 = vmatprep.subr.bf16.mxu0 %v17849_v2  ;;  %v17900_v2 = vld [vmem:[#allocation2 + $0x57c] ss:$112 sps:$4 sm:$0xff]  }
 0x316   :  { %9494 = vmatpush1.bf16.msra.mxu1 %v17838_v63  ;;  %v17895_v63 = vld [vmem:[#allocation2 + $0xc70] ss:$112 sps:$4 sm:$0xff]  }
 0x317   :  { %9495 = vmatprep.subr.bf16.mxu1 %v17846_v1  ;;  %v17892_v1 = vld [vmem:[#allocation2 + $0x498] ss:$112 sps:$4 sm:$0xff]  }
 0x318   :  { %9558 = vmatpush1.bf16.msra.mxu0 %v17847_v4  ;;  %v17903_v4 = vld [vmem:[#allocation2 + $0xd54] ss:$112 sps:$4 sm:$0xff]  }
 0x319   :  { %9559 = vmatprep.subr.bf16.mxu0 %v17852_v5  ;;  %v17906_v5 = vld [vmem:[#allocation2 + $0x65c] ss:$112 sps:$4 sm:$0xff]  }
 0x31a   :  { %9496 = vmatpush1.bf16.msra.mxu1 %v17844_v3  ;;  %v17898_v3 = vld [vmem:[#allocation2 + $0x578] ss:$112 sps:$4 sm:$0xff]  }
 0x31b   :  { %9506 = vmatprep.subr.bf16.mxu1 %v17858_v7  ;;  %v17909_v7 = vld [vmem:[#allocation2 + $0xe34] ss:$112 sps:$4 sm:$0xff]  }
 0x31c   :  { %9560 = vmatpush1.bf16.msra.mxu0 %v17850_v6  ;;  %v17907_v6 = vld [vmem:[#allocation2 + $0xe30] ss:$112 sps:$4 sm:$0xff]  }
 0x31d   :  { %9498 = vmatmul.mubr.bf16.vlgmr.msra.gmra.mrb[16].mxu1 %v19541_v29  ;;  %9561 = vmatprep.subr.bf16.mxu0 %v17855_v8  ;;  %v17904_v8 = vld [vmem:[#allocation2 + $0x658] ss:$112 sps:$4 sm:$0xff]  }
 0x31e   :  { %9507 = vmatpush1.bf16.msra.mxu1 %v17856_v11  ;;  %9538 = vmatprep.mubr.bf16.mxu1 %v19303_v0  ;;  %v17912_v11 = vld [vmem:[#allocation2 + $0x73c] ss:$112 sps:$4 sm:$0xff]  }
 0x31f   :  { %9711 = vmatprep.subr.bf16.mxu1 %v17864_v13  ;;  %v17915_v13 = vld [vmem:[#allocation2 + $0xf14] ss:$112 sps:$4 sm:$0xff]  }
 0x320   :  { %9562 = vmatpush1.bf16.msra.mxu0 %v17853_v14  ;;  %v17913_v14 = vld [vmem:[#allocation2 + $0xf10] ss:$112 sps:$4 sm:$0xff]  }
 0x321   :  { %9563 = vmatprep.subr.bf16.mxu0 %v17861_v15  ;;  %v17910_v15 = vld [vmem:[#allocation2 + $0x738] ss:$112 sps:$4 sm:$0xff]  }
 0x324   :  { %9564 = vmatpush1.bf16.msra.mxu0 %v17859_v16  ;;  %v17918_v16 = vld [vmem:[#allocation2 + $0x81c] ss:$112 sps:$4 sm:$0xff]  }
 0x325   :  { %9565 = vmatprep.subr.bf16.mxu0 %v17867_v17  ;;  %v17921_v17 = vld [vmem:[#allocation2 + $0xff4] ss:$112 sps:$4 sm:$0xff]  }
 0x328   :  { %9566 = vmatpush1.bf16.msra.mxu0 %v17865_v20  ;;  %v17919_v20 = vld [vmem:[#allocation2 + $0xff0] ss:$112 sps:$4 sm:$0xff]  }
 0x329   :  { %16114 = vmatmul.mubr.msk.bf16.vlgmr.msra.gmra.mrb[16].mxu1 %vm8559_vm0, %v19499_v10  ;;  %9567 = vmatprep.subr.bf16.mxu0 %v17873_v25  ;;  %v17927_v25 = vld [vmem:[#allocation2 + $0x10d4] ss:$112 sps:$4 sm:$0xff]  }
 0x32a   :  { %9712 = vmatpush1.bf16.msra.mxu1 %v17862_v22  ;;  %9743 = vmatprep.mubr.bf16.mxu1 %v19506_v51  ;;  %v17916_v22 = vld [vmem:[#allocation2 + $0x818] ss:$112 sps:$4 sm:$0xff]  }
 0x32b   :  { %9713 = vmatprep.subr.bf16.mxu1 %v17870_v23  ;;  %v17924_v23 = vld [vmem:[#allocation2 + $0x8fc] ss:$112 sps:$4 sm:$0xff]  }
 0x32c   :  { %9568 = vmatpush1.bf16.msra.mxu0 %v17871_v27  ;;  %v17922_v27 = vld [vmem:[#allocation2 + $0x8f8] ss:$112 sps:$4 sm:$0xff]  }
 0x32d   :  { %9569 = vmatprep.subr.bf16.mxu0 %v17879_v32  ;;  %v17933_v32 = vld [vmem:[#allocation2 + $0x11b4] ss:$112 sps:$4 sm:$0xff]  }
 0x32e   :  { %9714 = vmatpush1.bf16.msra.mxu1 %v17868_v26  ;;  %v17925_v26 = vld [vmem:[#allocation2 + $0x10d0] ss:$112 sps:$4 sm:$0xff]  }
 0x32f   :  { %9715 = vmatprep.subr.bf16.mxu1 %v17876_v28  ;;  %v17930_v28 = vld [vmem:[#allocation2 + $0x9dc] ss:$112 sps:$4 sm:$0xff]  }
 0x330   :  { %v19637_v42 = vpop.f32.mrb[12].mxu1  ;;  %9570 = vmatpush1.bf16.msra.mxu0 %v17877_v34  ;;  %v17928_v34 = vld [vmem:[#allocation2 + $0x9d8] ss:$112 sps:$4 sm:$0xff]  }
 0x331   :  { %v9214_v43 = vpop.f32.mrb[13].mxu1  ;;  %9571 = vmatprep.subr.bf16.mxu0 %v17885_v41  ;;  %v17934_v41 = vld [vmem:[#allocation2 + $0xab8] ss:$112 sps:$4 sm:$0xff]  }
 0x332   :  { %9716 = vmatpush1.bf16.msra.mxu1 %v17874_v35  ;;  %v16697_v46 = vadd.f32 %v9214_v43, %v1590_v37  ;;  %v9216_v47 = vpop.f32.mrb[14].mxu1  ;;  %v17931_v35 = vld [vmem:[#allocation2 + $0x11b0] ss:$112 sps:$4 sm:$0xff]   ;;  %v17936_v37 = vld [vmem:[#allocation2 + $0xabc] ss:$112 sps:$4 sm:$0xff]  }
 0x333   :  { %v9217_v49 = vpop.f32.mrb[15].mxu1  ;;  %9717 = vmatprep.subr.bf16.mxu1 %v17882_v39  ;;  %v17939_v39 = vld [vmem:[#allocation2 + $0x1294] ss:$112 sps:$4 sm:$0xff]   ;;  %v17937_v43 = vld [vmem:[#allocation2 + $0x1290] ss:$112 sps:$4 sm:$0xff]  }
 0x334   :  { %v10866_v50 = vmax.f32 %v16697_v46, 0.0  ;;  %9572 = vmatpush1.bf16.msra.mxu0 %v17883_v45  ;;  %v17942_v45 = vld [vmem:[#allocation2 + $0xb9c] ss:$112 sps:$4 sm:$0xff]   ;;  %v17945_v46 = vld [vmem:[#allocation2 + $0x1374] ss:$112 sps:$4 sm:$0xff]  }
 0x335   :  { %9573 = vmatprep.subr.bf16.mxu0 %v17891_v48  ;;  %v17940_v47 = vld [vmem:[#allocation2 + $0xb98] ss:$112 sps:$4 sm:$0xff]   ;;  %v17951_v48 = vld [vmem:[#allocation2 + $0x1454] ss:$112 sps:$4 sm:$0xff]   ;;  %v17948_v49 = vld [vmem:[#allocation2 + $0xc7c] ss:$112 sps:$4 sm:$0xff]  }
 0x336   :  { %v19640_v58 = vmax.f32 %v10859_v38, %v10866_v50  ;;  %9718 = vmatpush1.bf16.msra.mxu1 %v17880_v54  ;;  %v17943_v54 = vld [vmem:[#allocation2 + $0x1370] ss:$112 sps:$4 sm:$0xff]   ;;  %v17954_v50 = vld [vmem:[#allocation2 + $0xd5c] ss:$112 sps:$4 sm:$0xff]  }
 0x337   :  { %9719 = vmatprep.subr.bf16.mxu1 %v17888_v57  ;;  %v17946_v57 = vld [vmem:[#allocation2 + $0xc78] ss:$112 sps:$4 sm:$0xff]   ;;  %v17949_v38 = vld [vmem:[#allocation2 + $0x1450] ss:$112 sps:$4 sm:$0xff]  }
 0x338   :  { %9574 = vmatpush1.bf16.msra.mxu0 %v17889_v56  ;;  %v17957_v56 = vld [vmem:[#allocation2 + $0x1534] ss:$112 sps:$4 sm:$0xff]  }
 0x339   :  { %9575 = vmatprep.subr.bf16.mxu0 %v17897_v62  ;;  %v17960_v62 = vld [vmem:[#allocation2 + $0xe3c] ss:$112 sps:$4 sm:$0xff]  }
 0x33a   :  { %9720 = vmatpush1.bf16.msra.mxu1 %v17886_v59  ;;  %v17952_v59 = vld [vmem:[#allocation2 + $0xd58] ss:$112 sps:$4 sm:$0xff]  }
 0x33b   :  { %9721 = vmatprep.subr.bf16.mxu1 %v17894_v61  ;;  %v17955_v61 = vld [vmem:[#allocation2 + $0x1530] ss:$112 sps:$4 sm:$0xff]  }
 0x33c   :  { %9576 = vmatpush1.bf16.msra.mxu0 %v17895_v63  ;;  %v17963_v63 = vld [vmem:[#allocation2 + $0x1614] ss:$112 sps:$4 sm:$0xff]  }
 0x33d   :  { %9577 = vmatprep.subr.bf16.mxu0 %v17903_v4  ;;  %v17966_v4 = vld [vmem:[#allocation2 + $0xf1c] ss:$112 sps:$4 sm:$0xff]  }
 0x33e   :  { %9722 = vmatpush1.bf16.msra.mxu1 %v17892_v1  ;;  %v17958_v1 = vld [vmem:[#allocation2 + $0xe38] ss:$112 sps:$4 sm:$0xff]  }
 0x33f   :  { %9723 = vmatprep.subr.bf16.mxu1 %v17900_v2  ;;  %v17961_v2 = vld [vmem:[#allocation2 + $0x1610] ss:$112 sps:$4 sm:$0xff]  }
 0x340   :  { %9578 = vmatpush1.bf16.msra.mxu0 %v17901_v40  ;;  %v17969_v40 = vld [vmem:[#allocation2 + $0x16f4] ss:$112 sps:$4 sm:$0xff]  }
 0x341   :  { %9588 = vmatprep.subr.bf16.mxu0 %v17909_v7  ;;  %v17972_v7 = vld [vmem:[#allocation2 + $0xffc] ss:$112 sps:$4 sm:$0xff]  }
 0x342   :  { %9724 = vmatpush1.bf16.msra.mxu1 %v17898_v3  ;;  %v17964_v3 = vld [vmem:[#allocation2 + $0xf18] ss:$112 sps:$4 sm:$0xff]  }
 0x343   :  { %9725 = vmatprep.subr.bf16.mxu1 %v17906_v5  ;;  %9580 = vmatmul.mubr.bf16.vlgmr.msra.gmra.mrb[12].mxu0 %v19513_v9  ;;  %v17967_v5 = vld [vmem:[#allocation2 + $0x16f0] ss:$112 sps:$4 sm:$0xff]  }
 0x344   :  { %9589 = vmatpush1.bf16.msra.mxu0 %v17907_v6  ;;  %9620 = vmatprep.mubr.bf16.mxu0 %v19520_v36  ;;  %v17975_v6 = vld [vmem:[#allocation2 + $0x17d4] ss:$112 sps:$4 sm:$0xff]  }
 0x345   :  { %9590 = vmatprep.subr.bf16.mxu0 %v17915_v13  ;;  %v17978_v13 = vld [vmem:[#allocation2 + $0x10dc] ss:$112 sps:$4 sm:$0xff]  }
 0x346   :  { %9726 = vmatpush1.bf16.msra.mxu1 %v17904_v8  ;;  %v17970_v8 = vld [vmem:[#allocation2 + $0xff8] ss:$112 sps:$4 sm:$0xff]  }
 0x347   :  { %9727 = vmatprep.subr.bf16.mxu1 %v17912_v11  ;;  %v17973_v11 = vld [vmem:[#allocation2 + $0x17d0] ss:$112 sps:$4 sm:$0xff]  }
 0x348   :  { %9591 = vmatpush1.bf16.msra.mxu0 %v17913_v14  ;;  %v17981_v14 = vld [vmem:[#allocation2 + $0x18b4] ss:$112 sps:$4 sm:$0xff]  }
 0x349   :  { %9592 = vmatprep.subr.bf16.mxu0 %v17921_v17  ;;  %v17984_v17 = vld [vmem:[#allocation2 + $0x11bc] ss:$112 sps:$4 sm:$0xff]  }
 0x34a   :  { %9728 = vmatpush1.bf16.msra.mxu1 %v17910_v15  ;;  %v17979_v15 = vld [vmem:[#allocation2 + $0x18b0] ss:$112 sps:$4 sm:$0xff]  }
 0x34b   :  { %9729 = vmatprep.subr.bf16.mxu1 %v17918_v16  ;;  %v17976_v16 = vld [vmem:[#allocation2 + $0x10d8] ss:$112 sps:$4 sm:$0xff]  }
 0x34c   :  { %9593 = vmatpush1.bf16.msra.mxu0 %v17919_v20  ;;  %v17987_v20 = vld [vmem:[#allocation2 + $0x1994] ss:$112 sps:$4 sm:$0xff]  }
 0x34d   :  { %9594 = vmatprep.subr.bf16.mxu0 %v17927_v25  ;;  %v17990_v25 = vld [vmem:[#allocation2 + $0x129c] ss:$112 sps:$4 sm:$0xff]  }
 0x34e   :  { %9730 = vmatpush1.bf16.msra.mxu1 %v17916_v22  ;;  %v17985_v22 = vld [vmem:[#allocation2 + $0x1990] ss:$112 sps:$4 sm:$0xff]  }
 0x34f   :  { %9731 = vmatprep.subr.bf16.mxu1 %v17924_v23  ;;  %v17982_v23 = vld [vmem:[#allocation2 + $0x11b8] ss:$112 sps:$4 sm:$0xff]  }
 0x350   :  { %9595 = vmatpush1.bf16.msra.mxu0 %v17925_v26  ;;  %v17993_v26 = vld [vmem:[#allocation2 + $0x1a74] ss:$112 sps:$4 sm:$0xff]  }
 0x351   :  { %9596 = vmatprep.subr.bf16.mxu0 %v17933_v32  ;;  %v17996_v32 = vld [vmem:[#allocation2 + $0x137c] ss:$112 sps:$4 sm:$0xff]  }
 0x352   :  { %9732 = vmatpush1.bf16.msra.mxu1 %v17922_v27  ;;  %v17991_v27 = vld [vmem:[#allocation2 + $0x1a70] ss:$112 sps:$4 sm:$0xff]  }
 0x353   :  { %9733 = vmatprep.subr.bf16.mxu1 %v17930_v28  ;;  %v17988_v28 = vld [vmem:[#allocation2 + $0x1298] ss:$112 sps:$4 sm:$0xff]  }
 0x354   :  { %9597 = vmatpush1.bf16.msra.mxu0 %v17931_v35  ;;  %v17994_v35 = vld [vmem:[#allocation2 + $0x1378] ss:$112 sps:$4 sm:$0xff]  }
 0x355   :  { %9598 = vmatprep.subr.bf16.mxu0 %v17939_v39  ;;  %v18005_v39 = vld [vmem:[#allocation2 + $0x1c34] ss:$112 sps:$4 sm:$0xff]  }
 0x356   :  { %9734 = vmatpush1.bf16.msra.mxu1 %v17928_v34  ;;  %v17999_v34 = vld [vmem:[#allocation2 + $0x1b54] ss:$112 sps:$4 sm:$0xff]  }
 0x357   :  { %9735 = vmatprep.subr.bf16.mxu1 %v17936_v37  ;;  %v17997_v37 = vld [vmem:[#allocation2 + $0x1b50] ss:$112 sps:$4 sm:$0xff]  }
 0x358   :  { %9599 = vmatpush1.bf16.msra.mxu0 %v17937_v43  ;;  %v18003_v43 = vld [vmem:[#allocation2 + $0x1c30] ss:$112 sps:$4 sm:$0xff]  }
 0x359   :  { %9600 = vmatprep.subr.bf16.mxu0 %v17945_v46  ;;  %v18008_v46 = vld [vmem:[#allocation2 + $0x153c] ss:$112 sps:$4 sm:$0xff]  }
 0x35a   :  { %9736 = vmatpush1.bf16.msra.mxu1 %v17934_v41  ;;  %v18002_v41 = vld [vmem:[#allocation2 + $0x145c] ss:$112 sps:$4 sm:$0xff]  }
 0x35b   :  { %9737 = vmatprep.subr.bf16.mxu1 %v17942_v45  ;;  %v18000_v45 = vld [vmem:[#allocation2 + $0x1458] ss:$112 sps:$4 sm:$0xff]  }
 0x35c   :  { %9601 = vmatpush1.bf16.msra.mxu0 %v17943_v54  ;;  %v18009_v54 = vld [vmem:[#allocation2 + $0x1d10] ss:$112 sps:$4 sm:$0xff]  }
 0x35d   :  { %9602 = vmatprep.subr.bf16.mxu0 %v17951_v48  ;;  %v18006_v48 = vld [vmem:[#allocation2 + $0x1538] ss:$112 sps:$4 sm:$0xff]  }
 0x35e   :  { %9738 = vmatpush1.bf16.msra.mxu1 %v17940_v47  ;;  %v18011_v47 = vld [vmem:[#allocation2 + $0x1d14] ss:$112 sps:$4 sm:$0xff]  }
 0x35f   :  { %9739 = vmatprep.subr.bf16.mxu1 %v17948_v49  ;;  %v18014_v49 = vld [vmem:[#allocation2 + $0x161c] ss:$112 sps:$4 sm:$0xff]  }
 0x360   :  { %9603 = vmatpush1.bf16.msra.mxu0 %v17949_v38  ;;  %v18015_v38 = vld [vmem:[#allocation2 + $0x1df0] ss:$112 sps:$4 sm:$0xff]  }
 0x361   :  { %9604 = vmatprep.subr.bf16.mxu0 %v17957_v56  ;;  %v18020_v56 = vld [vmem:[#allocation2 + $0x16fc] ss:$112 sps:$4 sm:$0xff]  }
 0x362   :  { %9740 = vmatpush1.bf16.msra.mxu1 %v17946_v57  ;;  %v18017_v57 = vld [vmem:[#allocation2 + $0x1df4] ss:$112 sps:$4 sm:$0xff]  }
 0x363   :  { %9741 = vmatprep.subr.bf16.mxu1 %v17954_v50  ;;  %v18012_v50 = vld [vmem:[#allocation2 + $0x1618] ss:$112 sps:$4 sm:$0xff]  }
 0x364   :  { %9605 = vmatpush1.bf16.msra.mxu0 %v17955_v61  ;;  %v18021_v61 = vld [vmem:[#allocation2 + $0x1ed0] ss:$112 sps:$4 sm:$0xff]  }
 0x365   :  { %9606 = vmatprep.subr.bf16.mxu0 %v17963_v63  ;;  %v18026_v63 = vld [vmem:[#allocation2 + $0x17dc] ss:$112 sps:$4 sm:$0xff]  }
 0x366   :  { %9742 = vmatpush1.bf16.msra.mxu1 %v17952_v59  ;;  %v18023_v59 = vld [vmem:[#allocation2 + $0x1ed4] ss:$112 sps:$4 sm:$0xff]  }
 0x367   :  { %9752 = vmatprep.subr.bf16.mxu1 %v17960_v62  ;;  %v18018_v62 = vld [vmem:[#allocation2 + $0x16f8] ss:$112 sps:$4 sm:$0xff]  }
 0x368   :  { %9607 = vmatpush1.bf16.msra.mxu0 %v17961_v2  ;;  %v18027_v2 = vld [vmem:[#allocation2 + $0x1fb0] ss:$112 sps:$4 sm:$0xff]  }
 0x369   :  { %9744 = vmatmul.mubr.bf16.vlgmr.msra.gmra.mrb[20].mxu1 %v19513_v9  ;;  %9608 = vmatprep.subr.bf16.mxu0 %v17969_v40  ;;  %v18032_v40 = vld [vmem:[#allocation2 + $0x18bc] ss:$112 sps:$4 sm:$0xff]  }
 0x36a   :  { %9753 = vmatpush1.bf16.msra.mxu1 %v17958_v1  ;;  %9784 = vmatprep.mubr.bf16.mxu1 %v19520_v36  ;;  %v18029_v1 = vld [vmem:[#allocation2 + $0x1fb4] ss:$112 sps:$4 sm:$0xff]  }
 0x36b   :  { %9754 = vmatprep.subr.bf16.mxu1 %v17966_v4  ;;  %v18024_v4 = vld [vmem:[#allocation2 + $0x17d8] ss:$112 sps:$4 sm:$0xff]  }
 0x36c   :  { %9609 = vmatpush1.bf16.msra.mxu0 %v17967_v5  ;;  %v18033_v5 = vld [vmem:[#allocation2 + $0x2090] ss:$112 sps:$4 sm:$0xff]  }
 0x36d   :  { %9610 = vmatprep.subr.bf16.mxu0 %v17975_v6  ;;  %v18038_v6 = vld [vmem:[#allocation2 + $0x199c] ss:$112 sps:$4 sm:$0xff]  }
 0x36e   :  { %9755 = vmatpush1.bf16.msra.mxu1 %v17964_v3  ;;  %v18035_v3 = vld [vmem:[#allocation2 + $0x2094] ss:$112 sps:$4 sm:$0xff]  }
 0x36f   :  { %9756 = vmatprep.subr.bf16.mxu1 %v17972_v7  ;;  %v18030_v7 = vld [vmem:[#allocation2 + $0x18b8] ss:$112 sps:$4 sm:$0xff]  }
 0x370   :  { %9611 = vmatpush1.bf16.msra.mxu0 %v17973_v11  ;;  %v18039_v11 = vld [vmem:[#allocation2 + $0x2170] ss:$112 sps:$4 sm:$0xff]  }
 0x371   :  { %9612 = vmatprep.subr.bf16.mxu0 %v17981_v14  ;;  %v18044_v14 = vld [vmem:[#allocation2 + $0x1a7c] ss:$112 sps:$4 sm:$0xff]  }
 0x372   :  { %9757 = vmatpush1.bf16.msra.mxu1 %v17970_v8  ;;  %v18041_v8 = vld [vmem:[#allocation2 + $0x2174] ss:$112 sps:$4 sm:$0xff]  }
 0x373   :  { %9758 = vmatprep.subr.bf16.mxu1 %v17978_v13  ;;  %v18036_v13 = vld [vmem:[#allocation2 + $0x1998] ss:$112 sps:$4 sm:$0xff]  }
 0x374   :  { %9613 = vmatpush1.bf16.msra.mxu0 %v17979_v15  ;;  %v18047_v15 = vld [vmem:[#allocation2 + $0x2254] ss:$112 sps:$4 sm:$0xff]  }
 0x375   :  { %9614 = vmatprep.subr.bf16.mxu0 %v17987_v20  ;;  %v18050_v20 = vld [vmem:[#allocation2 + $0x1b5c] ss:$112 sps:$4 sm:$0xff]  }
 0x376   :  { %9759 = vmatpush1.bf16.msra.mxu1 %v17976_v16  ;;  %v18045_v16 = vld [vmem:[#allocation2 + $0x2250] ss:$112 sps:$4 sm:$0xff]  }
 0x377   :  { %9760 = vmatprep.subr.bf16.mxu1 %v17984_v17  ;;  %v18042_v17 = vld [vmem:[#allocation2 + $0x1a78] ss:$112 sps:$4 sm:$0xff]  }
 0x378   :  { %9615 = vmatpush1.bf16.msra.mxu0 %v17985_v22  ;;  %v18053_v22 = vld [vmem:[#allocation2 + $0x2334] ss:$112 sps:$4 sm:$0xff]  }
 0x379   :  { %9616 = vmatprep.subr.bf16.mxu0 %v17993_v26  ;;  %v18056_v26 = vld [vmem:[#allocation2 + $0x1c3c] ss:$112 sps:$4 sm:$0xff]  }
 0x37a   :  { %9761 = vmatpush1.bf16.msra.mxu1 %v17982_v23  ;;  %v18051_v23 = vld [vmem:[#allocation2 + $0x2330] ss:$112 sps:$4 sm:$0xff]  }
 0x37b   :  { %9762 = vmatprep.subr.bf16.mxu1 %v17990_v25  ;;  %v18048_v25 = vld [vmem:[#allocation2 + $0x1b58] ss:$112 sps:$4 sm:$0xff]  }
 0x37c   :  { %9617 = vmatpush1.bf16.msra.mxu0 %v17991_v27  ;;  %v18059_v27 = vld [vmem:[#allocation2 + $0x2414] ss:$112 sps:$4 sm:$0xff]  }
 0x37d   :  { %9618 = vmatprep.subr.bf16.mxu0 %v17999_v34  ;;  %v18062_v34 = vld [vmem:[#allocation2 + $0x1d1c] ss:$112 sps:$4 sm:$0xff]  }
 0x37e   :  { %9763 = vmatpush1.bf16.msra.mxu1 %v17988_v28  ;;  %v18057_v28 = vld [vmem:[#allocation2 + $0x2410] ss:$112 sps:$4 sm:$0xff]  }
 0x37f   :  { %9764 = vmatprep.subr.bf16.mxu1 %v17996_v32  ;;  %v18054_v32 = vld [vmem:[#allocation2 + $0x1c38] ss:$112 sps:$4 sm:$0xff]  }
 0x380   :  { %9619 = vmatpush1.bf16.msra.mxu0 %v17997_v37  ;;  %v18063_v37 = vld [vmem:[#allocation2 + $0x24f0] ss:$112 sps:$4 sm:$0xff]  }
 0x381   :  { %9629 = vmatprep.subr.bf16.mxu0 %v18005_v39  ;;  %v18060_v39 = vld [vmem:[#allocation2 + $0x1d18] ss:$112 sps:$4 sm:$0xff]  }
 0x382   :  { %9765 = vmatpush1.bf16.msra.mxu1 %v17994_v35  ;;  %v18065_v35 = vld [vmem:[#allocation2 + $0x24f4] ss:$112 sps:$4 sm:$0xff]  }
 0x383   :  { %9766 = vmatprep.subr.bf16.mxu1 %v18002_v41  ;;  %9621 = vmatmul.mubr.bf16.vlgmr.msra.gmra.mrb[12].mxu0 %v19527_v18  ;;  %v18068_v41 = vld [vmem:[#allocation2 + $0x1dfc] ss:$112 sps:$4 sm:$0xff]  }
 0x384   :  { %9630 = vmatpush1.bf16.msra.mxu0 %v18003_v43  ;;  %9661 = vmatprep.mubr.bf16.mxu0 %v19532_v24  ;;  %v18071_v43 = vld [vmem:[#allocation2 + $0x25d4] ss:$112 sps:$4 sm:$0xff]  }
 0x385   :  { %9631 = vmatprep.subr.bf16.mxu0 %v18011_v47  ;;  %v18074_v47 = vld [vmem:[#allocation2 + $0x1edc] ss:$112 sps:$4 sm:$0xff]  }
 0x386   :  { %9767 = vmatpush1.bf16.msra.mxu1 %v18000_v45  ;;  %v18069_v45 = vld [vmem:[#allocation2 + $0x25d0] ss:$112 sps:$4 sm:$0xff]  }
 0x387   :  { %9768 = vmatprep.subr.bf16.mxu1 %v18008_v46  ;;  %v18066_v46 = vld [vmem:[#allocation2 + $0x1df8] ss:$112 sps:$4 sm:$0xff]  }
 0x388   :  { %9632 = vmatpush1.bf16.msra.mxu0 %v18009_v54  ;;  %v18077_v54 = vld [vmem:[#allocation2 + $0x26b4] ss:$112 sps:$4 sm:$0xff]  }
 0x389   :  { %9633 = vmatprep.subr.bf16.mxu0 %v18017_v57  ;;  %v18080_v57 = vld [vmem:[#allocation2 + $0x1fbc] ss:$112 sps:$4 sm:$0xff]  }
 0x38a   :  { %9769 = vmatpush1.bf16.msra.mxu1 %v18006_v48  ;;  %v18075_v48 = vld [vmem:[#allocation2 + $0x26b0] ss:$112 sps:$4 sm:$0xff]  }
 0x38b   :  { %9770 = vmatprep.subr.bf16.mxu1 %v18014_v49  ;;  %v18072_v49 = vld [vmem:[#allocation2 + $0x1ed8] ss:$112 sps:$4 sm:$0xff]  }
 0x38c   :  { %9634 = vmatpush1.bf16.msra.mxu0 %v18015_v38  ;;  %v18083_v38 = vld [vmem:[#allocation2 + $0x2794] ss:$112 sps:$4 sm:$0xff]  }
 0x38d   :  { %9635 = vmatprep.subr.bf16.mxu0 %v18023_v59  ;;  %v18086_v59 = vld [vmem:[#allocation2 + $0x209c] ss:$112 sps:$4 sm:$0xff]  }
 0x38e   :  { %9771 = vmatpush1.bf16.msra.mxu1 %v18012_v50  ;;  %v18081_v50 = vld [vmem:[#allocation2 + $0x2790] ss:$112 sps:$4 sm:$0xff]  }
 0x38f   :  { %9772 = vmatprep.subr.bf16.mxu1 %v18020_v56  ;;  %v18078_v56 = vld [vmem:[#allocation2 + $0x1fb8] ss:$112 sps:$4 sm:$0xff]  }
 0x390   :  { %9636 = vmatpush1.bf16.msra.mxu0 %v18021_v61  ;;  %v18089_v61 = vld [vmem:[#allocation2 + $0x2874] ss:$112 sps:$4 sm:$0xff]  }
 0x391   :  { %9637 = vmatprep.subr.bf16.mxu0 %v18029_v1  ;;  %v18095_v1 = vld [vmem:[#allocation2 + $0x2954] ss:$112 sps:$4 sm:$0xff]  }
 0x392   :  { %9773 = vmatpush1.bf16.msra.mxu1 %v18018_v62  ;;  %v18087_v62 = vld [vmem:[#allocation2 + $0x2870] ss:$112 sps:$4 sm:$0xff]  }
 0x393   :  { %9774 = vmatprep.subr.bf16.mxu1 %v18026_v63  ;;  %v18084_v63 = vld [vmem:[#allocation2 + $0x2098] ss:$112 sps:$4 sm:$0xff]  }
 0x394   :  { %9638 = vmatpush1.bf16.msra.mxu0 %v18027_v2  ;;  %v18092_v2 = vld [vmem:[#allocation2 + $0x217c] ss:$112 sps:$4 sm:$0xff]  }
 0x395   :  { %9639 = vmatprep.subr.bf16.mxu0 %v18035_v3  ;;  %v18101_v3 = vld [vmem:[#allocation2 + $0x2a34] ss:$112 sps:$4 sm:$0xff]  }
 0x396   :  { %9775 = vmatpush1.bf16.msra.mxu1 %v18024_v4  ;;  %v18093_v4 = vld [vmem:[#allocation2 + $0x2950] ss:$112 sps:$4 sm:$0xff]  }
 0x397   :  { %9776 = vmatprep.subr.bf16.mxu1 %v18032_v40  ;;  %v18090_v40 = vld [vmem:[#allocation2 + $0x2178] ss:$112 sps:$4 sm:$0xff]  }
 0x398   :  { %9640 = vmatpush1.bf16.msra.mxu0 %v18033_v5  ;;  %v18098_v5 = vld [vmem:[#allocation2 + $0x225c] ss:$112 sps:$4 sm:$0xff]  }
 0x399   :  { %9641 = vmatprep.subr.bf16.mxu0 %v18041_v8  ;;  %v18113_v8 = vld [vmem:[#allocation2 + $0x44] ss:$112 sps:$4 sm:$0xff]  }
 0x39a   :  { %9777 = vmatpush1.bf16.msra.mxu1 %v18030_v7  ;;  %v18099_v7 = vld [vmem:[#allocation2 + $0x2a30] ss:$112 sps:$4 sm:$0xff]  }
 0x39b   :  { %9778 = vmatprep.subr.bf16.mxu1 %v18038_v6  ;;  %v18096_v6 = vld [vmem:[#allocation2 + $0x2258] ss:$112 sps:$4 sm:$0xff]  }
 0x39c   :  { %9642 = vmatpush1.bf16.msra.mxu0 %v18039_v11  ;;  %v18104_v11 = vld [vmem:[#allocation2 + $0x233c] ss:$112 sps:$4 sm:$0xff]  }
 0x39d   :  { %9643 = vmatprep.subr.bf16.mxu0 %v18047_v15  ;;  %v18105_v15 = vld [vmem:[#allocation2 + $0x2418] ss:$112 sps:$4 sm:$0xff]  }
 0x39e   :  { %9779 = vmatpush1.bf16.msra.mxu1 %v18036_v13  ;;  %v18102_v13 = vld [vmem:[#allocation2 + $0x2338] ss:$112 sps:$4 sm:$0xff]  }
 0x39f   :  { %9780 = vmatprep.subr.bf16.mxu1 %v18044_v14  ;;  %v18107_v14 = vld [vmem:[#allocation2 + $0x241c] ss:$112 sps:$4 sm:$0xff]  }
 0x3a0   :  { %9644 = vmatpush1.bf16.msra.mxu0 %v18045_v16  ;;  %v18110_v16 = vld [vmem:[#allocation2 + $0x24fc] ss:$112 sps:$4 sm:$0xff]  }
 0x3a1   :  { %9645 = vmatprep.subr.bf16.mxu0 %v18053_v22  ;;  %v18119_v22 = vld [vmem:[#allocation2 + $0x124] ss:$112 sps:$4 sm:$0xff]  }
 0x3a2   :  { %9781 = vmatpush1.bf16.msra.mxu1 %v18042_v17  ;;  %v18111_v17 = vld [vmem:[#allocation2 + $0x40] ss:$112 sps:$4 sm:$0xff]  }
 0x3a3   :  { %9782 = vmatprep.subr.bf16.mxu1 %v18050_v20  ;;  %v18108_v20 = vld [vmem:[#allocation2 + $0x24f8] ss:$112 sps:$4 sm:$0xff]  }
 0x3a4   :  { %9646 = vmatpush1.bf16.msra.mxu0 %v18051_v23  ;;  %v19653_v23 = vsub.s32 2, %v19567_v12 }
 0x3a5   :  { %9647 = vmatprep.subr.bf16.mxu0 %v18059_v27  ;;  %v19657_v27 = vld [vmem:[#allocation4 + $0x8] sm:$0xff] }
 0x3a6   :  { %9783 = vmatpush1.bf16.msra.mxu1 %v18048_v25  ;;  %v18116_v25 = vld [vmem:[#allocation2 + $0x25dc] ss:$112 sps:$4 sm:$0xff]  }
 0x3a7   :  { %9793 = vmatprep.subr.bf16.mxu1 %v18056_v26  ;;  %v18117_v26 = vld [vmem:[#allocation2 + $0x120] ss:$112 sps:$4 sm:$0xff]  }
 0x3a8   :  { %9648 = vmatpush1.bf16.msra.mxu0 %v18057_v28  ;;  %v18114_v28 = vld [vmem:[#allocation2 + $0x25d8] ss:$112 sps:$4 sm:$0xff]  }
 0x3a9   :  { %9785 = vmatmul.mubr.bf16.vlgmr.msra.gmra.mrb[20].mxu1 %v19527_v18  ;;  %9649 = vmatprep.subr.bf16.mxu0 %v18065_v35 }
 0x3aa   :  { %9794 = vmatpush1.bf16.msra.mxu1 %v18054_v32  ;;  %9825 = vmatprep.mubr.bf16.mxu1 %v19532_v24  ;;  %v18125_v32 = vld [vmem:[#allocation2 + $0x204] ss:$112 sps:$4 sm:$0xff]  }
 0x3ab   :  { %9795 = vmatprep.subr.bf16.mxu1 %v18062_v34  ;;  %v19660_v34 = vld [vmem:[#allocation4] sm:$0xff] }
 0x3ac   :  { %9650 = vmatpush1.bf16.msra.mxu0 %v18063_v37  ;;  %v1570_v35 = vrot.slane %v19660_v34, %v19653_v23  ;;  %v18122_v37 = vld [vmem:[#allocation2 + $0x26bc] ss:$112 sps:$4 sm:$0xff]  }
 0x3ad   :  { %9651 = vmatprep.subr.bf16.mxu0 %v18071_v43  ;;  %v1598_v43 = vrot.slane %v19657_v27, %v19573_v21 }
 0x3ae   :  { %9796 = vmatpush1.bf16.msra.mxu1 %v18060_v39  ;;  %v1594_v39 = vrot.slane %v19657_v27, %v19570_v19 }
 0x3af   :  { %9797 = vmatprep.subr.bf16.mxu1 %v18068_v41  ;;  %v18123_v41 = vld [vmem:[#allocation2 + $0x200] ss:$112 sps:$4 sm:$0xff]  }
 0x3b0   :  { %9652 = vmatpush1.bf16.msra.mxu0 %v18069_v45  ;;  %v18120_v45 = vld [vmem:[#allocation2 + $0x26b8] ss:$112 sps:$4 sm:$0xff]  }
 0x3b1   :  { %9653 = vmatprep.subr.bf16.mxu0 %v18077_v54 }
 0x3b2   :  { %9798 = vmatpush1.bf16.msra.mxu1 %v18066_v46  ;;  %v18131_v46 = vld [vmem:[#allocation2 + $0x2e4] ss:$112 sps:$4 sm:$0xff]  }
 0x3b3   :  { %9799 = vmatprep.subr.bf16.mxu1 %v18074_v47  ;;  %v16690_v47 = vadd.f32 %v19585_v53, %v1570_v35  ;;  %v18134_v53 = vld [vmem:[#allocation2 + $0x287c] ss:$112 sps:$4 sm:$0xff]   ;;  %v18156_v35 = vld [vmem:[#allocation2 + $0x48] ss:$112 sps:$4 sm:$0xff]  }
 0x3b4   :  { %9654 = vmatpush1.bf16.msra.mxu0 %v18075_v48  ;;  %v18128_v48 = vld [vmem:[#allocation2 + $0x279c] ss:$112 sps:$4 sm:$0xff]  }
 0x3b5   :  { %9655 = vmatprep.subr.bf16.mxu0 %v18083_v38  ;;  %v10860_v38 = vmax.f32 %v19581_v44, 0.0  ;;  %v18135_v44 = vld [vmem:[#allocation2 + $0x3c0] ss:$112 sps:$4 sm:$0xff]  }
 0x3b6   :  { %9800 = vmatpush1.bf16.msra.mxu1 %v18072_v49 }
 0x3b7   :  { %9801 = vmatprep.subr.bf16.mxu1 %v18080_v57 }
 0x3b8   :  { %9656 = vmatpush1.bf16.msra.mxu0 %v18081_v50 }
 0x3b9   :  { %9657 = vmatprep.subr.bf16.mxu0 %v18089_v61 }
 0x3ba   :  { %9802 = vmatpush1.bf16.msra.mxu1 %v18078_v56 }
 0x3bb   :  { %9803 = vmatprep.subr.bf16.mxu1 %v18086_v59  ;;  %v18129_v59 = vld [vmem:[#allocation2 + $0x2e0] ss:$112 sps:$4 sm:$0xff]  }
 0x3bc   :  { %9658 = vmatpush1.bf16.msra.mxu0 %v18087_v62  ;;  %v18126_v62 = vld [vmem:[#allocation2 + $0x2798] ss:$112 sps:$4 sm:$0xff]  }
 0x3bd   :  { %9659 = vmatprep.subr.bf16.mxu0 %v18095_v1  ;;  %v18137_v1 = vld [vmem:[#allocation2 + $0x3c4] ss:$112 sps:$4 sm:$0xff]  }
 0x3be   :  { %9804 = vmatpush1.bf16.msra.mxu1 %v18084_v63 }
 0x3bf   :  { %9805 = vmatprep.subr.bf16.mxu1 %v18092_v2  ;;  %v10861_v2 = vmax.f32 %v16690_v47, 0.0 }
 0x3c0   :  { %9660 = vmatpush1.bf16.msra.mxu0 %v18093_v4 }
 0x3c1   :  { %9670 = vmatprep.subr.bf16.mxu0 %v18101_v3 }
 0x3c2   :  { %9806 = vmatpush1.bf16.msra.mxu1 %v18090_v40 }
 0x3c3   :  { %9807 = vmatprep.subr.bf16.mxu1 %v18098_v5  ;;  %9662 = vmatmul.mubr.bf16.vlgmr.msra.gmra.mrb[12].mxu0 %v19541_v29  ;;  %v18132_v5 = vld [vmem:[#allocation2 + $0x2878] ss:$112 sps:$4 sm:$0xff]  }
 0x3c4   :  { %9671 = vmatpush1.bf16.msra.mxu0 %v18099_v7  ;;  %9702 = vmatprep.mubr.bf16.mxu0 %v19303_v0  ;;  %v18143_v7 = vld [vmem:[#allocation2 + $0x4a4] ss:$112 sps:$4 sm:$0xff]  }
 0x3c5   :  { %9875 = vmatprep.subr.bf16.mxu0 %v18113_v8  ;;  %v18141_v8 = vld [vmem:[#allocation2 + $0x4a0] ss:$112 sps:$4 sm:$0xff]  }
 0x3c6   :  { %9808 = vmatpush1.bf16.msra.mxu1 %v18096_v6  ;;  %v18140_v6 = vld [vmem:[#allocation2 + $0x295c] ss:$112 sps:$4 sm:$0xff]  }
 0x3c7   :  { %9809 = vmatprep.subr.bf16.mxu1 %v18104_v11  ;;  %v18138_v11 = vld [vmem:[#allocation2 + $0x2958] ss:$112 sps:$4 sm:$0xff]  }
 0x3ca   :  { %9810 = vmatpush1.bf16.msra.mxu1 %v18102_v13  ;;  %v18146_v13 = vld [vmem:[#allocation2 + $0x584] ss:$112 sps:$4 sm:$0xff]  }
 0x3cb   :  { %9811 = vmatprep.subr.bf16.mxu1 %v18107_v14  ;;  %v18152_v14 = vld [vmem:[#allocation2 + $0x2a3c] ss:$112 sps:$4 sm:$0xff]  }
 0x3ce   :  { %9812 = vmatpush1.bf16.msra.mxu1 %v18105_v15  ;;  %v18144_v15 = vld [vmem:[#allocation2 + $0x580] ss:$112 sps:$4 sm:$0xff]  }
 0x3cf   :  { %9813 = vmatprep.subr.bf16.mxu1 %v18110_v16  ;;  %16115 = vmatmul.mubr.msk.bf16.vlgmr.msra.gmra.mrb[12].mxu0 %vm8559_vm0, %v19499_v10  ;;  %v18149_v16 = vld [vmem:[#allocation2 + $0x664] ss:$112 sps:$4 sm:$0xff]  }
 0x3d0   :  { %9876 = vmatpush1.bf16.msra.mxu0 %v18111_v17  ;;  %9907 = vmatprep.mubr.bf16.mxu0 %v19506_v51  ;;  %v18150_v17 = vld [vmem:[#allocation2 + $0x2a38] ss:$112 sps:$4 sm:$0xff]  }
 0x3d1   :  { %9877 = vmatprep.subr.bf16.mxu0 %v18119_v22  ;;  %v18147_v22 = vld [vmem:[#allocation2 + $0x660] ss:$112 sps:$4 sm:$0xff]  }
 0x3d2   :  { %9814 = vmatpush1.bf16.msra.mxu1 %v18108_v20  ;;  %v18158_v20 = vld [vmem:[#allocation2 + $0x4c] ss:$112 sps:$4 sm:$0xff]  }
 0x3d3   :  { %9815 = vmatprep.subr.bf16.mxu1 %v18116_v25  ;;  %v18155_v25 = vld [vmem:[#allocation2 + $0x744] ss:$112 sps:$4 sm:$0xff]  }
 0x3d4   :  { %9878 = vmatpush1.bf16.msra.mxu0 %v18117_v26  ;;  %v18153_v26 = vld [vmem:[#allocation2 + $0x740] ss:$112 sps:$4 sm:$0xff]  }
 0x3d5   :  { %9879 = vmatprep.subr.bf16.mxu0 %v18125_v32  ;;  %v18159_v32 = vld [vmem:[#allocation2 + $0x820] ss:$112 sps:$4 sm:$0xff]  }
 0x3d6   :  { %9816 = vmatpush1.bf16.msra.mxu1 %v18114_v28  ;;  %v9376_v54 = vpop.f32.mrb[8].mxu0  ;;  %v18161_v28 = vld [vmem:[#allocation2 + $0x824] ss:$112 sps:$4 sm:$0xff]  }
 0x3d7   :  { %9817 = vmatprep.subr.bf16.mxu1 %v18122_v37  ;;  %v16698_v49 = vadd.f32 %v9376_v54, %v1594_v39  ;;  %v9378_v57 = vpop.f32.mrb[9].mxu0  ;;  %v18167_v37 = vld [vmem:[#allocation2 + $0x904] ss:$112 sps:$4 sm:$0xff]   ;;  %v19677_v39 = vsub.s32 3, %v19567_v12  ;;  %v18170_v54 = vld [vmem:[#allocation2 + $0x20c] ss:$112 sps:$4 sm:$0xff]  }
 0x3d8   :  { %9880 = vmatpush1.bf16.msra.mxu0 %v18123_v41  ;;  %v16699_v50 = vadd.f32 %v9378_v57, %v1598_v43  ;;  %v9380_v56 = vpop.f32.mrb[10].mxu0  ;;  %v18164_v41 = vld [vmem:[#allocation2 + $0x12c] ss:$112 sps:$4 sm:$0xff]   ;;  %v18165_v43 = vld [vmem:[#allocation2 + $0x900] ss:$112 sps:$4 sm:$0xff]  }
 0x3d9   :  { %v10867_v61 = vmax.f32 %v16698_v49, 0.0  ;;  %v9381_v63 = vpop.f32.mrb[11].mxu0  ;;  %9881 = vmatprep.subr.bf16.mxu0 %v18131_v46  ;;  %v18173_v46 = vld [vmem:[#allocation2 + $0x9e4] ss:$112 sps:$4 sm:$0xff]   ;;  %v1574_v47 = vrot.slane %v19660_v34, %v19677_v39  ;;  %v18171_v49 = vld [vmem:[#allocation2 + $0x9e0] ss:$112 sps:$4 sm:$0xff]  }
 0x3da   :  { %9818 = vmatpush1.bf16.msra.mxu1 %v18120_v45  ;;  %v10868_v4 = vmax.f32 %v16699_v50, 0.0  ;;  %v18162_v45 = vld [vmem:[#allocation2 + $0x128] ss:$112 sps:$4 sm:$0xff]   ;;  %v18179_v50 = vld [vmem:[#allocation2 + $0xac4] ss:$112 sps:$4 sm:$0xff]  }
 0x3db   :  { %9819 = vmatprep.subr.bf16.mxu1 %v18128_v48  ;;  %v19670_v40 = vmax.f32 %v10860_v38, %v10867_v61  ;;  %v1602_v48 = vrot.slane %v19657_v27, %v19653_v23  ;;  %v18168_v57 = vld [vmem:[#allocation2 + $0x208] ss:$112 sps:$4 sm:$0xff]   ;;  %v1606_v38 = vrot.slane %v19657_v27, %v19677_v39  ;;  %v16691_v56 = vadd.f32 %v19589_v55, %v1574_v47  ;;  %v18207_v47 = vld [vmem:[#allocation2 + $0xf20] ss:$112 sps:$4 sm:$0xff]  }
 0x3dc   :  { %v19672_v3 = vmax.f32 %v10861_v2, %v10868_v4  ;;  %9882 = vmatpush1.bf16.msra.mxu0 %v18129_v59  ;;  %v18176_v59 = vld [vmem:[#allocation2 + $0x2ec] ss:$112 sps:$4 sm:$0xff]   ;;  %v10863_v55 = vmax.f32 %v19622_v52, 0.0 }
 0x3dd   :  { %9883 = vmatprep.subr.bf16.mxu0 %v18137_v1  ;;  %v18177_v1 = vld [vmem:[#allocation2 + $0xac0] ss:$112 sps:$4 sm:$0xff]   ;;  %v18194_v52 = vld [vmem:[#allocation2 + $0x58c] ss:$112 sps:$4 sm:$0xff]  }
 0x3de   :  { %9820 = vmatpush1.bf16.msra.mxu1 %v18126_v62 }
 0x3df   :  { %9821 = vmatprep.subr.bf16.mxu1 %v18134_v53  ;;  %v18174_v53 = vld [vmem:[#allocation2 + $0x2e8] ss:$112 sps:$4 sm:$0xff]  }
 0x3e0   :  { %9884 = vmatpush1.bf16.msra.mxu0 %v18135_v44  ;;  %v18185_v44 = vld [vmem:[#allocation2 + $0xba4] ss:$112 sps:$4 sm:$0xff]  }
 0x3e1   :  { %9885 = vmatprep.subr.bf16.mxu0 %v18143_v7 }
 0x3e2   :  { %9822 = vmatpush1.bf16.msra.mxu1 %v18132_v5  ;;  %v10862_v5 = vmax.f32 %v16691_v56, 0.0  ;;  %v18218_v56 = vld [vmem:[#allocation2 + $0x90c] ss:$112 sps:$4 sm:$0xff]  }
 0x3e3   :  { %9823 = vmatprep.subr.bf16.mxu1 %v18140_v6 }
 0x3e4   :  { %9886 = vmatpush1.bf16.msra.mxu0 %v18141_v8  ;;  %v18182_v8 = vld [vmem:[#allocation2 + $0x3cc] ss:$112 sps:$4 sm:$0xff]  }
 0x3e5   :  { %9887 = vmatprep.subr.bf16.mxu0 %v18146_v13 }
 0x3e6   :  { %9824 = vmatpush1.bf16.msra.mxu1 %v18138_v11 }
 0x3e7   :  { %9834 = vmatprep.subr.bf16.mxu1 %v18152_v14  ;;  %v18183_v14 = vld [vmem:[#allocation2 + $0xba0] ss:$112 sps:$4 sm:$0xff]  }
 0x3e8   :  { %9888 = vmatpush1.bf16.msra.mxu0 %v18144_v15 }
 0x3e9   :  { %9826 = vmatmul.mubr.bf16.vlgmr.msra.gmra.mrb[20].mxu1 %v19541_v29  ;;  %9889 = vmatprep.subr.bf16.mxu0 %v18149_v16  ;;  %v18180_v16 = vld [vmem:[#allocation2 + $0x3c8] ss:$112 sps:$4 sm:$0xff]  }
 0x3ea   :  { %9835 = vmatpush1.bf16.msra.mxu1 %v18150_v17  ;;  %9866 = vmatprep.mubr.bf16.mxu1 %v19303_v0  ;;  %v18191_v17 = vld [vmem:[#allocation2 + $0xc84] ss:$112 sps:$4 sm:$0xff]  }
 0x3eb   :  { %10039 = vmatprep.subr.bf16.mxu1 %v18158_v20  ;;  %v18188_v20 = vld [vmem:[#allocation2 + $0x4ac] ss:$112 sps:$4 sm:$0xff]  }
 0x3ec   :  { %9890 = vmatpush1.bf16.msra.mxu0 %v18147_v22  ;;  %v18189_v22 = vld [vmem:[#allocation2 + $0xc80] ss:$112 sps:$4 sm:$0xff]  }
 0x3ed   :  { %9891 = vmatprep.subr.bf16.mxu0 %v18155_v25  ;;  %v18186_v25 = vld [vmem:[#allocation2 + $0x4a8] ss:$112 sps:$4 sm:$0xff]  }
 0x3f0   :  { %9892 = vmatpush1.bf16.msra.mxu0 %v18153_v26  ;;  %v18197_v26 = vld [vmem:[#allocation2 + $0xd64] ss:$112 sps:$4 sm:$0xff]  }
 0x3f1   :  { %9893 = vmatprep.subr.bf16.mxu0 %v18161_v28  ;;  %v18195_v28 = vld [vmem:[#allocation2 + $0xd60] ss:$112 sps:$4 sm:$0xff]  }
 0x3f4   :  { %9894 = vmatpush1.bf16.msra.mxu0 %v18159_v32  ;;  %v18192_v32 = vld [vmem:[#allocation2 + $0x588] ss:$112 sps:$4 sm:$0xff]  }
 0x3f5   :  { %16116 = vmatmul.mubr.msk.bf16.vlgmr.msra.gmra.mrb[20].mxu1 %vm8559_vm0, %v19499_v10  ;;  %9895 = vmatprep.subr.bf16.mxu0 %v18167_v37  ;;  %v18200_v37 = vld [vmem:[#allocation2 + $0x66c] ss:$112 sps:$4 sm:$0xff]  }
 0x3f6   :  { %10040 = vmatpush1.bf16.msra.mxu1 %v18156_v35  ;;  %10071 = vmatprep.mubr.bf16.mxu1 %v19506_v51  ;;  %v18203_v35 = vld [vmem:[#allocation2 + $0xe44] ss:$112 sps:$4 sm:$0xff]  }
 0x3f7   :  { %10041 = vmatprep.subr.bf16.mxu1 %v18164_v41  ;;  %v18201_v41 = vld [vmem:[#allocation2 + $0xe40] ss:$112 sps:$4 sm:$0xff]  }
 0x3f8   :  { %9896 = vmatpush1.bf16.msra.mxu0 %v18165_v43  ;;  %v18198_v43 = vld [vmem:[#allocation2 + $0x668] ss:$112 sps:$4 sm:$0xff]  }
 0x3f9   :  { %9897 = vmatprep.subr.bf16.mxu0 %v18173_v46  ;;  %v18206_v46 = vld [vmem:[#allocation2 + $0x74c] ss:$112 sps:$4 sm:$0xff]  }
 0x3fa   :  { %10042 = vmatpush1.bf16.msra.mxu1 %v18162_v45  ;;  %v18209_v45 = vld [vmem:[#allocation2 + $0xf24] ss:$112 sps:$4 sm:$0xff]  }
 0x3fb   :  { %10043 = vmatprep.subr.bf16.mxu1 %v18170_v54  ;;  %v18204_v54 = vld [vmem:[#allocation2 + $0x748] ss:$112 sps:$4 sm:$0xff]  }
 0x3fc   :  { %v9540_v61 = vpop.f32.mrb[16].mxu1  ;;  %9898 = vmatpush1.bf16.msra.mxu0 %v18171_v49  ;;  %v18212_v49 = vld [vmem:[#allocation2 + $0x82c] ss:$112 sps:$4 sm:$0xff]  }
 0x3fd   :  { %v16700_v62 = vadd.f32 %v9540_v61, %v1602_v48  ;;  %v9542_v63 = vpop.f32.mrb[17].mxu1  ;;  %9899 = vmatprep.subr.bf16.mxu0 %v18179_v50  ;;  %v18215_v48 = vld [vmem:[#allocation2 + $0x1004] ss:$112 sps:$4 sm:$0xff]   ;;  %v18216_v61 = vld [vmem:[#allocation2 + $0x908] ss:$112 sps:$4 sm:$0xff]  }
 0x3fe   :  { %10044 = vmatpush1.bf16.msra.mxu1 %v18168_v57  ;;  %v16701_v2 = vadd.f32 %v9542_v63, %v1606_v38  ;;  %v9544_v4 = vpop.f32.mrb[18].mxu1  ;;  %v18213_v57 = vld [vmem:[#allocation2 + $0x1000] ss:$112 sps:$4 sm:$0xff]   ;;  %v18210_v38 = vld [vmem:[#allocation2 + $0x828] ss:$112 sps:$4 sm:$0xff]  }
 0x3ff   :  { %v10869_v7 = vmax.f32 %v16700_v62, 0.0  ;;  %v9545_v6 = vpop.f32.mrb[19].mxu1  ;;  %10045 = vmatprep.subr.bf16.mxu1 %v18176_v59  ;;  %v18221_v50 = vld [vmem:[#allocation2 + $0x10e4] ss:$112 sps:$4 sm:$0xff]   ;;  %v18219_v59 = vld [vmem:[#allocation2 + $0x10e0] ss:$112 sps:$4 sm:$0xff]  }
 0x400   :  { %v10870_v11 = vmax.f32 %v16701_v2, 0.0  ;;  %9900 = vmatpush1.bf16.msra.mxu0 %v18177_v1  ;;  %v18227_v62 = vld [vmem:[#allocation2 + $0x11c4] ss:$112 sps:$4 sm:$0xff]   ;;  %v18224_v63 = vld [vmem:[#allocation2 + $0x9ec] ss:$112 sps:$4 sm:$0xff]  }
 0x401   :  { %v19690_v13 = vmax.f32 %v10862_v5, %v10869_v7  ;;  %9901 = vmatprep.subr.bf16.mxu0 %v18185_v44  ;;  %v18225_v1 = vld [vmem:[#allocation2 + $0x11c0] ss:$112 sps:$4 sm:$0xff]   ;;  %v18222_v2 = vld [vmem:[#allocation2 + $0x9e8] ss:$112 sps:$4 sm:$0xff]   ;;  %v18233_v4 = vld [vmem:[#allocation2 + $0x12a4] ss:$112 sps:$4 sm:$0xff]  }
 0x402   :  { %v19692_v15 = vmax.f32 %v10863_v55, %v10870_v11  ;;  %10046 = vmatpush1.bf16.msra.mxu1 %v18174_v53  ;;  %v18230_v53 = vld [vmem:[#allocation2 + $0xacc] ss:$112 sps:$4 sm:$0xff]   ;;  %v18231_v44 = vld [vmem:[#allocation2 + $0x12a0] ss:$112 sps:$4 sm:$0xff]   ;;  %v18228_v5 = vld [vmem:[#allocation2 + $0xac8] ss:$112 sps:$4 sm:$0xff]  }
 0x403   :  { %10047 = vmatprep.subr.bf16.mxu1 %v18182_v8  ;;  %v18239_v7 = vld [vmem:[#allocation2 + $0x1384] ss:$112 sps:$4 sm:$0xff]   ;;  %v18236_v6 = vld [vmem:[#allocation2 + $0xbac] ss:$112 sps:$4 sm:$0xff]   ;;  %v18237_v8 = vld [vmem:[#allocation2 + $0x1380] ss:$112 sps:$4 sm:$0xff]  }
 0x404   :  { %9902 = vmatpush1.bf16.msra.mxu0 %v18183_v14  ;;  %v18234_v55 = vld [vmem:[#allocation2 + $0xba8] ss:$112 sps:$4 sm:$0xff]   ;;  %v18245_v11 = vld [vmem:[#allocation2 + $0x1464] ss:$112 sps:$4 sm:$0xff]   ;;  %v18242_v14 = vld [vmem:[#allocation2 + $0xc8c] ss:$112 sps:$4 sm:$0xff]  }
 0x405   :  { %9903 = vmatprep.subr.bf16.mxu0 %v18191_v17  ;;  %v18240_v17 = vld [vmem:[#allocation2 + $0xc88] ss:$112 sps:$4 sm:$0xff]  }
 0x406   :  { %10048 = vmatpush1.bf16.msra.mxu1 %v18180_v16  ;;  %v18243_v16 = vld [vmem:[#allocation2 + $0x1460] ss:$112 sps:$4 sm:$0xff]  }
 0x407   :  { %10049 = vmatprep.subr.bf16.mxu1 %v18188_v20  ;;  %v18251_v20 = vld [vmem:[#allocation2 + $0x1544] ss:$112 sps:$4 sm:$0xff]  }
 0x408   :  { %9904 = vmatpush1.bf16.msra.mxu0 %v18189_v22  ;;  %v18248_v22 = vld [vmem:[#allocation2 + $0xd6c] ss:$112 sps:$4 sm:$0xff]  }
 0x409   :  { %9905 = vmatprep.subr.bf16.mxu0 %v18197_v26  ;;  %v18246_v26 = vld [vmem:[#allocation2 + $0xd68] ss:$112 sps:$4 sm:$0xff]  }
 0x40a   :  { %10050 = vmatpush1.bf16.msra.mxu1 %v18186_v25  ;;  %v18249_v25 = vld [vmem:[#allocation2 + $0x1540] ss:$112 sps:$4 sm:$0xff]  }
 0x40b   :  { %10051 = vmatprep.subr.bf16.mxu1 %v18194_v52  ;;  %v18257_v52 = vld [vmem:[#allocation2 + $0x1624] ss:$112 sps:$4 sm:$0xff]  }
 0x40c   :  { %9906 = vmatpush1.bf16.msra.mxu0 %v18195_v28  ;;  %v18254_v28 = vld [vmem:[#allocation2 + $0xe4c] ss:$112 sps:$4 sm:$0xff]  }
 0x40d   :  { %9916 = vmatprep.subr.bf16.mxu0 %v18203_v35  ;;  %v18252_v35 = vld [vmem:[#allocation2 + $0xe48] ss:$112 sps:$4 sm:$0xff]  }
 0x40e   :  { %10052 = vmatpush1.bf16.msra.mxu1 %v18192_v32  ;;  %v18255_v32 = vld [vmem:[#allocation2 + $0x1620] ss:$112 sps:$4 sm:$0xff]  }
 0x40f   :  { %10053 = vmatprep.subr.bf16.mxu1 %v18200_v37  ;;  %9908 = vmatmul.mubr.bf16.vlgmr.msra.gmra.mrb[16].mxu0 %v19513_v9  ;;  %v18263_v37 = vld [vmem:[#allocation2 + $0x1704] ss:$112 sps:$4 sm:$0xff]  }
 0x410   :  { %9917 = vmatpush1.bf16.msra.mxu0 %v18201_v41  ;;  %9948 = vmatprep.mubr.bf16.mxu0 %v19520_v36  ;;  %v18260_v41 = vld [vmem:[#allocation2 + $0xf2c] ss:$112 sps:$4 sm:$0xff]  }
 0x411   :  { %9918 = vmatprep.subr.bf16.mxu0 %v18209_v45  ;;  %v18258_v45 = vld [vmem:[#allocation2 + $0xf28] ss:$112 sps:$4 sm:$0xff]  }
 0x412   :  { %10054 = vmatpush1.bf16.msra.mxu1 %v18198_v43  ;;  %v18261_v43 = vld [vmem:[#allocation2 + $0x1700] ss:$112 sps:$4 sm:$0xff]  }
 0x413   :  { %10055 = vmatprep.subr.bf16.mxu1 %v18206_v46  ;;  %v18269_v46 = vld [vmem:[#allocation2 + $0x17e4] ss:$112 sps:$4 sm:$0xff]  }
 0x414   :  { %9919 = vmatpush1.bf16.msra.mxu0 %v18207_v47  ;;  %v18266_v47 = vld [vmem:[#allocation2 + $0x100c] ss:$112 sps:$4 sm:$0xff]  }
 0x415   :  { %9920 = vmatprep.subr.bf16.mxu0 %v18215_v48  ;;  %v18264_v48 = vld [vmem:[#allocation2 + $0x1008] ss:$112 sps:$4 sm:$0xff]  }
 0x416   :  { %10056 = vmatpush1.bf16.msra.mxu1 %v18204_v54  ;;  %v18267_v54 = vld [vmem:[#allocation2 + $0x17e0] ss:$112 sps:$4 sm:$0xff]  }
 0x417   :  { %10057 = vmatprep.subr.bf16.mxu1 %v18212_v49  ;;  %v18275_v49 = vld [vmem:[#allocation2 + $0x18c4] ss:$112 sps:$4 sm:$0xff]  }
 0x418   :  { %9921 = vmatpush1.bf16.msra.mxu0 %v18213_v57  ;;  %v18272_v57 = vld [vmem:[#allocation2 + $0x10ec] ss:$112 sps:$4 sm:$0xff]  }
 0x419   :  { %9922 = vmatprep.subr.bf16.mxu0 %v18221_v50  ;;  %v18270_v50 = vld [vmem:[#allocation2 + $0x10e8] ss:$112 sps:$4 sm:$0xff]  }
 0x41a   :  { %10058 = vmatpush1.bf16.msra.mxu1 %v18210_v38  ;;  %v18273_v38 = vld [vmem:[#allocation2 + $0x18c0] ss:$112 sps:$4 sm:$0xff]  }
 0x41b   :  { %10059 = vmatprep.subr.bf16.mxu1 %v18218_v56  ;;  %v18281_v56 = vld [vmem:[#allocation2 + $0x19a4] ss:$112 sps:$4 sm:$0xff]  }
 0x41c   :  { %9923 = vmatpush1.bf16.msra.mxu0 %v18219_v59  ;;  %v18278_v59 = vld [vmem:[#allocation2 + $0x11cc] ss:$112 sps:$4 sm:$0xff]  }
 0x41d   :  { %9924 = vmatprep.subr.bf16.mxu0 %v18227_v62  ;;  %v18276_v62 = vld [vmem:[#allocation2 + $0x11c8] ss:$112 sps:$4 sm:$0xff]  }
 0x41e   :  { %10060 = vmatpush1.bf16.msra.mxu1 %v18216_v61  ;;  %v18279_v61 = vld [vmem:[#allocation2 + $0x19a0] ss:$112 sps:$4 sm:$0xff]  }
 0x41f   :  { %10061 = vmatprep.subr.bf16.mxu1 %v18224_v63  ;;  %v18287_v63 = vld [vmem:[#allocation2 + $0x1a84] ss:$112 sps:$4 sm:$0xff]  }
 0x420   :  { %9925 = vmatpush1.bf16.msra.mxu0 %v18225_v1  ;;  %v18284_v1 = vld [vmem:[#allocation2 + $0x12ac] ss:$112 sps:$4 sm:$0xff]  }
 0x421   :  { %9926 = vmatprep.subr.bf16.mxu0 %v18233_v4  ;;  %v18282_v4 = vld [vmem:[#allocation2 + $0x12a8] ss:$112 sps:$4 sm:$0xff]  }
 0x422   :  { %10062 = vmatpush1.bf16.msra.mxu1 %v18222_v2  ;;  %v18285_v2 = vld [vmem:[#allocation2 + $0x1a80] ss:$112 sps:$4 sm:$0xff]  }
 0x423   :  { %10063 = vmatprep.subr.bf16.mxu1 %v18230_v53  ;;  %v18293_v53 = vld [vmem:[#allocation2 + $0x1b64] ss:$112 sps:$4 sm:$0xff]  }
 0x424   :  { %9927 = vmatpush1.bf16.msra.mxu0 %v18231_v44  ;;  %v18290_v44 = vld [vmem:[#allocation2 + $0x138c] ss:$112 sps:$4 sm:$0xff]  }
 0x425   :  { %9928 = vmatprep.subr.bf16.mxu0 %v18239_v7  ;;  %v18288_v7 = vld [vmem:[#allocation2 + $0x1388] ss:$112 sps:$4 sm:$0xff]  }
 0x426   :  { %10064 = vmatpush1.bf16.msra.mxu1 %v18228_v5  ;;  %v18291_v5 = vld [vmem:[#allocation2 + $0x1b60] ss:$112 sps:$4 sm:$0xff]  }
 0x427   :  { %10065 = vmatprep.subr.bf16.mxu1 %v18236_v6  ;;  %v18299_v6 = vld [vmem:[#allocation2 + $0x1c44] ss:$112 sps:$4 sm:$0xff]  }
 0x428   :  { %9929 = vmatpush1.bf16.msra.mxu0 %v18237_v8  ;;  %v18296_v8 = vld [vmem:[#allocation2 + $0x146c] ss:$112 sps:$4 sm:$0xff]  }
 0x429   :  { %9930 = vmatprep.subr.bf16.mxu0 %v18245_v11  ;;  %v18294_v11 = vld [vmem:[#allocation2 + $0x1468] ss:$112 sps:$4 sm:$0xff]  }
 0x42a   :  { %10066 = vmatpush1.bf16.msra.mxu1 %v18234_v55  ;;  %v18297_v55 = vld [vmem:[#allocation2 + $0x1c40] ss:$112 sps:$4 sm:$0xff]  }
 0x42b   :  { %10067 = vmatprep.subr.bf16.mxu1 %v18242_v14  ;;  %v18305_v14 = vld [vmem:[#allocation2 + $0x1d24] ss:$112 sps:$4 sm:$0xff]  }
 0x42c   :  { %9931 = vmatpush1.bf16.msra.mxu0 %v18243_v16  ;;  %v18302_v16 = vld [vmem:[#allocation2 + $0x154c] ss:$112 sps:$4 sm:$0xff]  }
 0x42d   :  { %9932 = vmatprep.subr.bf16.mxu0 %v18251_v20  ;;  %v18300_v20 = vld [vmem:[#allocation2 + $0x1548] ss:$112 sps:$4 sm:$0xff]  }
 0x42e   :  { %10068 = vmatpush1.bf16.msra.mxu1 %v18240_v17  ;;  %v18303_v17 = vld [vmem:[#allocation2 + $0x1d20] ss:$112 sps:$4 sm:$0xff]  }
 0x42f   :  { %10069 = vmatprep.subr.bf16.mxu1 %v18248_v22  ;;  %v18311_v22 = vld [vmem:[#allocation2 + $0x1e04] ss:$112 sps:$4 sm:$0xff]  }
 0x430   :  { %9933 = vmatpush1.bf16.msra.mxu0 %v18249_v25  ;;  %v18308_v25 = vld [vmem:[#allocation2 + $0x162c] ss:$112 sps:$4 sm:$0xff]  }
 0x431   :  { %9934 = vmatprep.subr.bf16.mxu0 %v18257_v52  ;;  %v18306_v52 = vld [vmem:[#allocation2 + $0x1628] ss:$112 sps:$4 sm:$0xff]  }
 0x432   :  { %10070 = vmatpush1.bf16.msra.mxu1 %v18246_v26  ;;  %v18309_v26 = vld [vmem:[#allocation2 + $0x1e00] ss:$112 sps:$4 sm:$0xff]  }
 0x433   :  { %10080 = vmatprep.subr.bf16.mxu1 %v18254_v28  ;;  %v18317_v28 = vld [vmem:[#allocation2 + $0x1ee4] ss:$112 sps:$4 sm:$0xff]  }
 0x434   :  { %9935 = vmatpush1.bf16.msra.mxu0 %v18255_v32  ;;  %v18314_v32 = vld [vmem:[#allocation2 + $0x170c] ss:$112 sps:$4 sm:$0xff]  }
 0x435   :  { %10072 = vmatmul.mubr.bf16.vlgmr.msra.gmra.mrb[24].mxu1 %v19513_v9  ;;  %9936 = vmatprep.subr.bf16.mxu0 %v18263_v37  ;;  %v18312_v37 = vld [vmem:[#allocation2 + $0x1708] ss:$112 sps:$4 sm:$0xff]  }
 0x436   :  { %10081 = vmatpush1.bf16.msra.mxu1 %v18252_v35  ;;  %10112 = vmatprep.mubr.bf16.mxu1 %v19520_v36  ;;  %v18315_v35 = vld [vmem:[#allocation2 + $0x1ee0] ss:$112 sps:$4 sm:$0xff]  }
 0x437   :  { %10082 = vmatprep.subr.bf16.mxu1 %v18260_v41  ;;  %v18323_v41 = vld [vmem:[#allocation2 + $0x1fc4] ss:$112 sps:$4 sm:$0xff]  }
 0x438   :  { %9937 = vmatpush1.bf16.msra.mxu0 %v18261_v43  ;;  %v18320_v43 = vld [vmem:[#allocation2 + $0x17ec] ss:$112 sps:$4 sm:$0xff]  }
 0x439   :  { %9938 = vmatprep.subr.bf16.mxu0 %v18269_v46  ;;  %v18318_v46 = vld [vmem:[#allocation2 + $0x17e8] ss:$112 sps:$4 sm:$0xff]  }
 0x43a   :  { %10083 = vmatpush1.bf16.msra.mxu1 %v18258_v45  ;;  %v18321_v45 = vld [vmem:[#allocation2 + $0x1fc0] ss:$112 sps:$4 sm:$0xff]  }
 0x43b   :  { %10084 = vmatprep.subr.bf16.mxu1 %v18266_v47  ;;  %v18329_v47 = vld [vmem:[#allocation2 + $0x20a4] ss:$112 sps:$4 sm:$0xff]  }
 0x43c   :  { %9939 = vmatpush1.bf16.msra.mxu0 %v18267_v54  ;;  %v18326_v54 = vld [vmem:[#allocation2 + $0x18cc] ss:$112 sps:$4 sm:$0xff]  }
 0x43d   :  { %9940 = vmatprep.subr.bf16.mxu0 %v18275_v49  ;;  %v18324_v49 = vld [vmem:[#allocation2 + $0x18c8] ss:$112 sps:$4 sm:$0xff]  }
 0x43e   :  { %10085 = vmatpush1.bf16.msra.mxu1 %v18264_v48  ;;  %v18327_v48 = vld [vmem:[#allocation2 + $0x20a0] ss:$112 sps:$4 sm:$0xff]  }
 0x43f   :  { %10086 = vmatprep.subr.bf16.mxu1 %v18272_v57  ;;  %v18335_v57 = vld [vmem:[#allocation2 + $0x2184] ss:$112 sps:$4 sm:$0xff]  }
 0x440   :  { %9941 = vmatpush1.bf16.msra.mxu0 %v18273_v38  ;;  %v18332_v38 = vld [vmem:[#allocation2 + $0x19ac] ss:$112 sps:$4 sm:$0xff]  }
 0x441   :  { %9942 = vmatprep.subr.bf16.mxu0 %v18281_v56  ;;  %v18330_v56 = vld [vmem:[#allocation2 + $0x19a8] ss:$112 sps:$4 sm:$0xff]  }
 0x442   :  { %10087 = vmatpush1.bf16.msra.mxu1 %v18270_v50  ;;  %v18333_v50 = vld [vmem:[#allocation2 + $0x2180] ss:$112 sps:$4 sm:$0xff]  }
 0x443   :  { %10088 = vmatprep.subr.bf16.mxu1 %v18278_v59  ;;  %v18341_v59 = vld [vmem:[#allocation2 + $0x2264] ss:$112 sps:$4 sm:$0xff]  }
 0x444   :  { %9943 = vmatpush1.bf16.msra.mxu0 %v18279_v61  ;;  %v18338_v61 = vld [vmem:[#allocation2 + $0x1a8c] ss:$112 sps:$4 sm:$0xff]  }
 0x445   :  { %9944 = vmatprep.subr.bf16.mxu0 %v18287_v63  ;;  %v18336_v63 = vld [vmem:[#allocation2 + $0x1a88] ss:$112 sps:$4 sm:$0xff]  }
 0x446   :  { %10089 = vmatpush1.bf16.msra.mxu1 %v18276_v62  ;;  %v18339_v62 = vld [vmem:[#allocation2 + $0x2260] ss:$112 sps:$4 sm:$0xff]  }
 0x447   :  { %10090 = vmatprep.subr.bf16.mxu1 %v18284_v1  ;;  %v18347_v1 = vld [vmem:[#allocation2 + $0x2344] ss:$112 sps:$4 sm:$0xff]  }
 0x448   :  { %9945 = vmatpush1.bf16.msra.mxu0 %v18285_v2  ;;  %v18344_v2 = vld [vmem:[#allocation2 + $0x1b6c] ss:$112 sps:$4 sm:$0xff]  }
 0x449   :  { %9946 = vmatprep.subr.bf16.mxu0 %v18293_v53  ;;  %v18342_v53 = vld [vmem:[#allocation2 + $0x1b68] ss:$112 sps:$4 sm:$0xff]  }
 0x44a   :  { %10091 = vmatpush1.bf16.msra.mxu1 %v18282_v4  ;;  %v18345_v4 = vld [vmem:[#allocation2 + $0x2340] ss:$112 sps:$4 sm:$0xff]  }
 0x44b   :  { %10092 = vmatprep.subr.bf16.mxu1 %v18290_v44  ;;  %v18353_v44 = vld [vmem:[#allocation2 + $0x2424] ss:$112 sps:$4 sm:$0xff]  }
 0x44c   :  { %9947 = vmatpush1.bf16.msra.mxu0 %v18291_v5  ;;  %v18350_v5 = vld [vmem:[#allocation2 + $0x1c4c] ss:$112 sps:$4 sm:$0xff]  }
 0x44d   :  { %9957 = vmatprep.subr.bf16.mxu0 %v18299_v6  ;;  %v18348_v6 = vld [vmem:[#allocation2 + $0x1c48] ss:$112 sps:$4 sm:$0xff]  }
 0x44e   :  { %10093 = vmatpush1.bf16.msra.mxu1 %v18288_v7  ;;  %v18351_v7 = vld [vmem:[#allocation2 + $0x2420] ss:$112 sps:$4 sm:$0xff]  }
 0x44f   :  { %10094 = vmatprep.subr.bf16.mxu1 %v18296_v8  ;;  %9949 = vmatmul.mubr.bf16.vlgmr.msra.gmra.mrb[16].mxu0 %v19527_v18  ;;  %v18359_v8 = vld [vmem:[#allocation2 + $0x2504] ss:$112 sps:$4 sm:$0xff]  }
 0x450   :  { %9958 = vmatpush1.bf16.msra.mxu0 %v18297_v55  ;;  %9989 = vmatprep.mubr.bf16.mxu0 %v19532_v24  ;;  %v18356_v55 = vld [vmem:[#allocation2 + $0x1d2c] ss:$112 sps:$4 sm:$0xff]  }
 0x451   :  { %9959 = vmatprep.subr.bf16.mxu0 %v18305_v14  ;;  %v18354_v14 = vld [vmem:[#allocation2 + $0x1d28] ss:$112 sps:$4 sm:$0xff]  }
 0x452   :  { %10095 = vmatpush1.bf16.msra.mxu1 %v18294_v11  ;;  %v18357_v11 = vld [vmem:[#allocation2 + $0x2500] ss:$112 sps:$4 sm:$0xff]  }
 0x453   :  { %10096 = vmatprep.subr.bf16.mxu1 %v18302_v16  ;;  %v18365_v16 = vld [vmem:[#allocation2 + $0x25e4] ss:$112 sps:$4 sm:$0xff]  }
 0x454   :  { %9960 = vmatpush1.bf16.msra.mxu0 %v18303_v17  ;;  %v18362_v17 = vld [vmem:[#allocation2 + $0x1e0c] ss:$112 sps:$4 sm:$0xff]  }
 0x455   :  { %9961 = vmatprep.subr.bf16.mxu0 %v18311_v22  ;;  %v18360_v22 = vld [vmem:[#allocation2 + $0x1e08] ss:$112 sps:$4 sm:$0xff]  }
 0x456   :  { %10097 = vmatpush1.bf16.msra.mxu1 %v18300_v20  ;;  %v18363_v20 = vld [vmem:[#allocation2 + $0x25e0] ss:$112 sps:$4 sm:$0xff]  }
 0x457   :  { %10098 = vmatprep.subr.bf16.mxu1 %v18308_v25  ;;  %v18371_v25 = vld [vmem:[#allocation2 + $0x26c4] ss:$112 sps:$4 sm:$0xff]  }
 0x458   :  { %9962 = vmatpush1.bf16.msra.mxu0 %v18309_v26  ;;  %v18368_v26 = vld [vmem:[#allocation2 + $0x1eec] ss:$112 sps:$4 sm:$0xff]  }
 0x459   :  { %9963 = vmatprep.subr.bf16.mxu0 %v18317_v28  ;;  %v18366_v28 = vld [vmem:[#allocation2 + $0x1ee8] ss:$112 sps:$4 sm:$0xff]  }
 0x45a   :  { %10099 = vmatpush1.bf16.msra.mxu1 %v18306_v52  ;;  %v18369_v52 = vld [vmem:[#allocation2 + $0x26c0] ss:$112 sps:$4 sm:$0xff]  }
 0x45b   :  { %10100 = vmatprep.subr.bf16.mxu1 %v18314_v32  ;;  %v18377_v32 = vld [vmem:[#allocation2 + $0x27a4] ss:$112 sps:$4 sm:$0xff]  }
 0x45c   :  { %9964 = vmatpush1.bf16.msra.mxu0 %v18315_v35  ;;  %v18374_v35 = vld [vmem:[#allocation2 + $0x1fcc] ss:$112 sps:$4 sm:$0xff]  }
 0x45d   :  { %9965 = vmatprep.subr.bf16.mxu0 %v18323_v41  ;;  %v18372_v41 = vld [vmem:[#allocation2 + $0x1fc8] ss:$112 sps:$4 sm:$0xff]  }
 0x45e   :  { %10101 = vmatpush1.bf16.msra.mxu1 %v18312_v37  ;;  %v18375_v37 = vld [vmem:[#allocation2 + $0x27a0] ss:$112 sps:$4 sm:$0xff]  }
 0x45f   :  { %10102 = vmatprep.subr.bf16.mxu1 %v18320_v43  ;;  %v18383_v43 = vld [vmem:[#allocation2 + $0x2884] ss:$112 sps:$4 sm:$0xff]  }
 0x460   :  { %9966 = vmatpush1.bf16.msra.mxu0 %v18321_v45  ;;  %v18380_v45 = vld [vmem:[#allocation2 + $0x20ac] ss:$112 sps:$4 sm:$0xff]  }
 0x461   :  { %9967 = vmatprep.subr.bf16.mxu0 %v18329_v47  ;;  %v18378_v47 = vld [vmem:[#allocation2 + $0x20a8] ss:$112 sps:$4 sm:$0xff]  }
 0x462   :  { %10103 = vmatpush1.bf16.msra.mxu1 %v18318_v46  ;;  %v18381_v46 = vld [vmem:[#allocation2 + $0x2880] ss:$112 sps:$4 sm:$0xff]  }
 0x463   :  { %10104 = vmatprep.subr.bf16.mxu1 %v18326_v54  ;;  %v18389_v54 = vld [vmem:[#allocation2 + $0x2964] ss:$112 sps:$4 sm:$0xff]  }
 0x464   :  { %9968 = vmatpush1.bf16.msra.mxu0 %v18327_v48  ;;  %v18386_v48 = vld [vmem:[#allocation2 + $0x218c] ss:$112 sps:$4 sm:$0xff]  }
 0x465   :  { %9969 = vmatprep.subr.bf16.mxu0 %v18335_v57  ;;  %v18384_v57 = vld [vmem:[#allocation2 + $0x2188] ss:$112 sps:$4 sm:$0xff]  }
 0x466   :  { %10105 = vmatpush1.bf16.msra.mxu1 %v18324_v49  ;;  %v18387_v49 = vld [vmem:[#allocation2 + $0x2960] ss:$112 sps:$4 sm:$0xff]  }
 0x467   :  { %10106 = vmatprep.subr.bf16.mxu1 %v18332_v38  ;;  %v18395_v38 = vld [vmem:[#allocation2 + $0x2a44] ss:$112 sps:$4 sm:$0xff]  }
 0x468   :  { %9970 = vmatpush1.bf16.msra.mxu0 %v18333_v50  ;;  %v18392_v50 = vld [vmem:[#allocation2 + $0x226c] ss:$112 sps:$4 sm:$0xff]  }
 0x469   :  { %9971 = vmatprep.subr.bf16.mxu0 %v18341_v59  ;;  %v18390_v59 = vld [vmem:[#allocation2 + $0x2268] ss:$112 sps:$4 sm:$0xff]  }
 0x46a   :  { %10107 = vmatpush1.bf16.msra.mxu1 %v18330_v56  ;;  %v18393_v56 = vld [vmem:[#allocation2 + $0x2a40] ss:$112 sps:$4 sm:$0xff]  }
 0x46b   :  { %10108 = vmatprep.subr.bf16.mxu1 %v18338_v61  ;;  %v18407_v61 = vld [vmem:[#allocation2 + $0x54] ss:$112 sps:$4 sm:$0xff]  }
 0x46c   :  { %9972 = vmatpush1.bf16.msra.mxu0 %v18339_v62  ;;  %v18398_v62 = vld [vmem:[#allocation2 + $0x234c] ss:$112 sps:$4 sm:$0xff]  }
 0x46d   :  { %9973 = vmatprep.subr.bf16.mxu0 %v18347_v1  ;;  %v18401_v1 = vld [vmem:[#allocation2 + $0x242c] ss:$112 sps:$4 sm:$0xff]  }
 0x46e   :  { %10109 = vmatpush1.bf16.msra.mxu1 %v18336_v63  ;;  %v18396_v63 = vld [vmem:[#allocation2 + $0x2348] ss:$112 sps:$4 sm:$0xff]  }
 0x46f   :  { %10110 = vmatprep.subr.bf16.mxu1 %v18344_v2  ;;  %v18399_v2 = vld [vmem:[#allocation2 + $0x2428] ss:$112 sps:$4 sm:$0xff]  }
 0x470   :  { %9974 = vmatpush1.bf16.msra.mxu0 %v18345_v4  ;;  %v18404_v4 = vld [vmem:[#allocation2 + $0x250c] ss:$112 sps:$4 sm:$0xff]  }
 0x471   :  { %9975 = vmatprep.subr.bf16.mxu0 %v18353_v44  ;;  %v18402_v44 = vld [vmem:[#allocation2 + $0x2508] ss:$112 sps:$4 sm:$0xff]  }
 0x472   :  { %10111 = vmatpush1.bf16.msra.mxu1 %v18342_v53  ;;  %v18405_v53 = vld [vmem:[#allocation2 + $0x50] ss:$112 sps:$4 sm:$0xff]  }
 0x473   :  { %10121 = vmatprep.subr.bf16.mxu1 %v18350_v5  ;;  %v18413_v5 = vld [vmem:[#allocation2 + $0x134] ss:$112 sps:$4 sm:$0xff]  }
 0x474   :  { %9976 = vmatpush1.bf16.msra.mxu0 %v18351_v7  ;;  %v19705_v7 = vsub.s32 6, %v19567_v12  ;;  %v1610_v12 = vrot.slane %v19657_v27, %v19609_v31 }
 0x475   :  { %10113 = vmatmul.mubr.bf16.vlgmr.msra.gmra.mrb[24].mxu1 %v19527_v18  ;;  %9977 = vmatprep.subr.bf16.mxu0 %v18359_v8  ;;  %v18411_v8 = vld [vmem:[#allocation2 + $0x130] ss:$112 sps:$4 sm:$0xff]  }
 0x476   :  { %10122 = vmatpush1.bf16.msra.mxu1 %v18348_v6  ;;  %10153 = vmatprep.mubr.bf16.mxu1 %v19532_v24  ;;  %v18410_v6 = vld [vmem:[#allocation2 + $0x25ec] ss:$112 sps:$4 sm:$0xff]  }
 0x477   :  { %10123 = vmatprep.subr.bf16.mxu1 %v18356_v55  ;;  %v18408_v55 = vld [vmem:[#allocation2 + $0x25e8] ss:$112 sps:$4 sm:$0xff]  }
 0x478   :  { %9978 = vmatpush1.bf16.msra.mxu0 %v18357_v11  ;;  %v18419_v11 = vld [vmem:[#allocation2 + $0x214] ss:$112 sps:$4 sm:$0xff]  }
 0x479   :  { %9979 = vmatprep.subr.bf16.mxu0 %v18365_v16  ;;  %v18416_v16 = vld [vmem:[#allocation2 + $0x26cc] ss:$112 sps:$4 sm:$0xff]  }
 0x47a   :  { %10124 = vmatpush1.bf16.msra.mxu1 %v18354_v14  ;;  %v1586_v14 = vrot.slane %v19660_v34, %v19705_v7 }
 0x47b   :  { %10125 = vmatprep.subr.bf16.mxu1 %v18362_v17  ;;  %v18417_v17 = vld [vmem:[#allocation2 + $0x210] ss:$112 sps:$4 sm:$0xff]  }
 0x47c   :  { %9980 = vmatpush1.bf16.msra.mxu0 %v18363_v20  ;;  %v1614_v20 = vrot.slane %v19657_v27, %v19612_v33  ;;  %v18420_v27 = vld [vmem:[#allocation2 + $0x27a8] ss:$112 sps:$4 sm:$0xff]  }
 0x47d   :  { %9981 = vmatprep.subr.bf16.mxu0 %v18371_v25  ;;  %v18425_v25 = vld [vmem:[#allocation2 + $0x2f4] ss:$112 sps:$4 sm:$0xff]  }
 0x47e   :  { %10126 = vmatpush1.bf16.msra.mxu1 %v18360_v22  ;;  %v18414_v22 = vld [vmem:[#allocation2 + $0x26c8] ss:$112 sps:$4 sm:$0xff]  }
 0x47f   :  { %10127 = vmatprep.subr.bf16.mxu1 %v18368_v26  ;;  %v16696_v26 = vadd.f32 %v19637_v42, %v1586_v14  ;;  %v18428_v42 = vld [vmem:[#allocation2 + $0x288c] ss:$112 sps:$4 sm:$0xff]   ;;  %v18461_v14 = vld [vmem:[#allocation2 + $0x914] ss:$112 sps:$4 sm:$0xff]  }
 0x480   :  { %9982 = vmatpush1.bf16.msra.mxu0 %v18369_v52 }
 0x481   :  { %9983 = vmatprep.subr.bf16.mxu0 %v18377_v32 }
 0x482   :  { %10128 = vmatpush1.bf16.msra.mxu1 %v18366_v28  ;;  %v18422_v28 = vld [vmem:[#allocation2 + $0x27ac] ss:$112 sps:$4 sm:$0xff]  }
 0x483   :  { %10129 = vmatprep.subr.bf16.mxu1 %v18374_v35  ;;  %v10864_v35 = vmax.f32 %v19625_v60, 0.0  ;;  %v18429_v60 = vld [vmem:[#allocation2 + $0x3d0] ss:$112 sps:$4 sm:$0xff]  }
 0x484   :  { %9984 = vmatpush1.bf16.msra.mxu0 %v18375_v37 }
 0x485   :  { %9985 = vmatprep.subr.bf16.mxu0 %v18383_v43  ;;  %v18423_v43 = vld [vmem:[#allocation2 + $0x2f0] ss:$112 sps:$4 sm:$0xff]  }
 0x486   :  { %10130 = vmatpush1.bf16.msra.mxu1 %v18372_v41 }
 0x487   :  { %10131 = vmatprep.subr.bf16.mxu1 %v18380_v45 }
 0x488   :  { %9986 = vmatpush1.bf16.msra.mxu0 %v18381_v46 }
 0x489   :  { %9987 = vmatprep.subr.bf16.mxu0 %v18389_v54  ;;  %v10865_v54 = vmax.f32 %v16696_v26, 0.0  ;;  %v18462_v26 = vld [vmem:[#allocation2 + $0x218] ss:$112 sps:$4 sm:$0xff]  }
 0x48a   :  { %10132 = vmatpush1.bf16.msra.mxu1 %v18378_v47  ;;  %v18431_v47 = vld [vmem:[#allocation2 + $0x3d4] ss:$112 sps:$4 sm:$0xff]  }
 0x48b   :  { %10133 = vmatprep.subr.bf16.mxu1 %v18386_v48 }
 0x48c   :  { %9988 = vmatpush1.bf16.msra.mxu0 %v18387_v49 }
 0x48d   :  { %9998 = vmatprep.subr.bf16.mxu0 %v18395_v38  ;;  %v18426_v38 = vld [vmem:[#allocation2 + $0x2888] ss:$112 sps:$4 sm:$0xff]  }
 0x48e   :  { %10134 = vmatpush1.bf16.msra.mxu1 %v18384_v57 }
 0x48f   :  { %10135 = vmatprep.subr.bf16.mxu1 %v18392_v50  ;;  %9990 = vmatmul.mubr.bf16.vlgmr.msra.gmra.mrb[16].mxu0 %v19541_v29  ;;  %v18437_v50 = vld [vmem:[#allocation2 + $0x4b4] ss:$112 sps:$4 sm:$0xff]  }
 0x490   :  { %9999 = vmatpush1.bf16.msra.mxu0 %v18393_v56  ;;  %10030 = vmatprep.mubr.bf16.mxu0 %v19303_v0  ;;  %v18434_v56 = vld [vmem:[#allocation2 + $0x296c] ss:$112 sps:$4 sm:$0xff]  }
 0x491   :  { %10203 = vmatprep.subr.bf16.mxu0 %v18407_v61  ;;  %v18432_v61 = vld [vmem:[#allocation2 + $0x2968] ss:$112 sps:$4 sm:$0xff]  }
 0x492   :  { %10136 = vmatpush1.bf16.msra.mxu1 %v18390_v59  ;;  %v18435_v59 = vld [vmem:[#allocation2 + $0x4b0] ss:$112 sps:$4 sm:$0xff]  }
 0x493   :  { %10137 = vmatprep.subr.bf16.mxu1 %v18398_v62  ;;  %v18440_v62 = vld [vmem:[#allocation2 + $0x594] ss:$112 sps:$4 sm:$0xff]  }
 0x496   :  { %10138 = vmatpush1.bf16.msra.mxu1 %v18396_v63  ;;  %v18446_v63 = vld [vmem:[#allocation2 + $0x2a4c] ss:$112 sps:$4 sm:$0xff]  }
 0x497   :  { %10139 = vmatprep.subr.bf16.mxu1 %v18401_v1  ;;  %v18438_v1 = vld [vmem:[#allocation2 + $0x590] ss:$112 sps:$4 sm:$0xff]  }
 0x49a   :  { %10140 = vmatpush1.bf16.msra.mxu1 %v18399_v2  ;;  %v18443_v2 = vld [vmem:[#allocation2 + $0x674] ss:$112 sps:$4 sm:$0xff]  }
 0x49b   :  { %10141 = vmatprep.subr.bf16.mxu1 %v18404_v4  ;;  %16117 = vmatmul.mubr.msk.bf16.vlgmr.msra.gmra.mrb[16].mxu0 %vm8559_vm0, %v19499_v10  ;;  %v18444_v4 = vld [vmem:[#allocation2 + $0x2a48] ss:$112 sps:$4 sm:$0xff]  }
 0x49c   :  { %10204 = vmatpush1.bf16.msra.mxu0 %v18405_v53  ;;  %10235 = vmatprep.mubr.bf16.mxu0 %v19506_v51  ;;  %v18452_v53 = vld [vmem:[#allocation2 + $0x5c] ss:$112 sps:$4 sm:$0xff]  }
 0x49d   :  { %10205 = vmatprep.subr.bf16.mxu0 %v18413_v5  ;;  %v18449_v5 = vld [vmem:[#allocation2 + $0x754] ss:$112 sps:$4 sm:$0xff]  }
 0x49e   :  { %10142 = vmatpush1.bf16.msra.mxu1 %v18402_v44  ;;  %v18441_v44 = vld [vmem:[#allocation2 + $0x670] ss:$112 sps:$4 sm:$0xff]  }
 0x49f   :  { %10143 = vmatprep.subr.bf16.mxu1 %v18410_v6  ;;  %v18447_v6 = vld [vmem:[#allocation2 + $0x750] ss:$112 sps:$4 sm:$0xff]  }
 0x4a0   :  { %10206 = vmatpush1.bf16.msra.mxu0 %v18411_v8  ;;  %v18455_v8 = vld [vmem:[#allocation2 + $0x834] ss:$112 sps:$4 sm:$0xff]  }
 0x4a1   :  { %10207 = vmatprep.subr.bf16.mxu0 %v18419_v11  ;;  %v18450_v11 = vld [vmem:[#allocation2 + $0x58] ss:$112 sps:$4 sm:$0xff]  }
 0x4a2   :  { %10144 = vmatpush1.bf16.msra.mxu1 %v18408_v55  ;;  %v9704_v52 = vpop.f32.mrb[12].mxu0  ;;  %v18453_v55 = vld [vmem:[#allocation2 + $0x830] ss:$112 sps:$4 sm:$0xff]  }
 0x4a3   :  { %10145 = vmatprep.subr.bf16.mxu1 %v18416_v16  ;;  %v16702_v34 = vadd.f32 %v9704_v52, %v1610_v12  ;;  %v9706_v32 = vpop.f32.mrb[13].mxu0  ;;  %v18458_v16 = vld [vmem:[#allocation2 + $0x13c] ss:$112 sps:$4 sm:$0xff]   ;;  %v18459_v12 = vld [vmem:[#allocation2 + $0x910] ss:$112 sps:$4 sm:$0xff]  }
 0x4a4   :  { %10208 = vmatpush1.bf16.msra.mxu0 %v18417_v17  ;;  %v16703_v37 = vadd.f32 %v9706_v32, %v1614_v20  ;;  %v9708_v41 = vpop.f32.mrb[14].mxu0  ;;  %v18456_v17 = vld [vmem:[#allocation2 + $0x138] ss:$112 sps:$4 sm:$0xff]   ;;  %v18467_v20 = vld [vmem:[#allocation2 + $0x9f4] ss:$112 sps:$4 sm:$0xff]  }
 0x4a5   :  { %v10871_v45 = vmax.f32 %v16702_v34, 0.0  ;;  %v9709_v46 = vpop.f32.mrb[15].mxu0  ;;  %10209 = vmatprep.subr.bf16.mxu0 %v18425_v25  ;;  %v18465_v25 = vld [vmem:[#allocation2 + $0x9f0] ss:$112 sps:$4 sm:$0xff]   ;;  %v18473_v52 = vld [vmem:[#allocation2 + $0xad4] ss:$112 sps:$4 sm:$0xff]  }
 0x4a6   :  { %10146 = vmatpush1.bf16.msra.mxu1 %v18414_v22  ;;  %v10872_v48 = vmax.f32 %v16703_v37, 0.0  ;;  %v18464_v22 = vld [vmem:[#allocation2 + $0x21c] ss:$112 sps:$4 sm:$0xff]   ;;  %v18468_v41 = vld [vmem:[#allocation2 + $0x2f8] ss:$112 sps:$4 sm:$0xff]  }
 0x4a7   :  { %10147 = vmatprep.subr.bf16.mxu1 %v18422_v28  ;;  %v19718_v49 = vmax.f32 %v10864_v35, %v10871_v45  ;;  %v18470_v28 = vld [vmem:[#allocation2 + $0x2fc] ss:$112 sps:$4 sm:$0xff]   ;;  %v18471_v35 = vld [vmem:[#allocation2 + $0xad0] ss:$112 sps:$4 sm:$0xff]  }
 0x4a8   :  { %v19720_v57 = vmax.f32 %v10865_v54, %v10872_v48  ;;  %10210 = vmatpush1.bf16.msra.mxu0 %v18423_v43  ;;  %v18479_v43 = vld [vmem:[#allocation2 + $0xbb4] ss:$112 sps:$4 sm:$0xff]   ;;  %v18477_v46 = vld [vmem:[#allocation2 + $0xbb0] ss:$112 sps:$4 sm:$0xff]   ;;  %v18482_v48 = vld [vmem:[#allocation2 + $0x4bc] ss:$112 sps:$4 sm:$0xff]  }
 0x4a9   :  { %10211 = vmatprep.subr.bf16.mxu0 %v18431_v47  ;;  %v18474_v47 = vld [vmem:[#allocation2 + $0x3d8] ss:$112 sps:$4 sm:$0xff]   ;;  %v18485_v54 = vld [vmem:[#allocation2 + $0xc94] ss:$112 sps:$4 sm:$0xff]  }
 0x4aa   :  { %10148 = vmatpush1.bf16.msra.mxu1 %v18420_v27  ;;  %v18476_v27 = vld [vmem:[#allocation2 + $0x3dc] ss:$112 sps:$4 sm:$0xff]  }
 0x4ab   :  { %10149 = vmatprep.subr.bf16.mxu1 %v18428_v42  ;;  %v18483_v42 = vld [vmem:[#allocation2 + $0xc90] ss:$112 sps:$4 sm:$0xff]  }
 0x4ac   :  { %10212 = vmatpush1.bf16.msra.mxu0 %v18429_v60  ;;  %v18480_v60 = vld [vmem:[#allocation2 + $0x4b8] ss:$112 sps:$4 sm:$0xff]  }
 0x4ad   :  { %10213 = vmatprep.subr.bf16.mxu0 %v18437_v50  ;;  %v18488_v50 = vld [vmem:[#allocation2 + $0x59c] ss:$112 sps:$4 sm:$0xff]  }
 0x4ae   :  { %10150 = vmatpush1.bf16.msra.mxu1 %v18426_v38  ;;  %v18491_v38 = vld [vmem:[#allocation2 + $0xd74] ss:$112 sps:$4 sm:$0xff]  }
 0x4af   :  { %10151 = vmatprep.subr.bf16.mxu1 %v18434_v56  ;;  %v18489_v56 = vld [vmem:[#allocation2 + $0xd70] ss:$112 sps:$4 sm:$0xff]  }
 0x4b0   :  { %10214 = vmatpush1.bf16.msra.mxu0 %v18435_v59  ;;  %v18486_v59 = vld [vmem:[#allocation2 + $0x598] ss:$112 sps:$4 sm:$0xff]  }
 0x4b1   :  { %10215 = vmatprep.subr.bf16.mxu0 %v18440_v62  ;;  %v18494_v62 = vld [vmem:[#allocation2 + $0x67c] ss:$112 sps:$4 sm:$0xff]  }
 0x4b2   :  { %10152 = vmatpush1.bf16.msra.mxu1 %v18432_v61  ;;  %v18497_v61 = vld [vmem:[#allocation2 + $0xe54] ss:$112 sps:$4 sm:$0xff]  }
 0x4b3   :  { %10162 = vmatprep.subr.bf16.mxu1 %v18446_v63  ;;  %v18495_v63 = vld [vmem:[#allocation2 + $0xe50] ss:$112 sps:$4 sm:$0xff]  }
 0x4b4   :  { %10216 = vmatpush1.bf16.msra.mxu0 %v18438_v1  ;;  %v18492_v1 = vld [vmem:[#allocation2 + $0x678] ss:$112 sps:$4 sm:$0xff]  }
 0x4b5   :  { %10154 = vmatmul.mubr.bf16.vlgmr.msra.gmra.mrb[24].mxu1 %v19541_v29  ;;  %10217 = vmatprep.subr.bf16.mxu0 %v18443_v2  ;;  %v18503_v2 = vld [vmem:[#allocation2 + $0xf34] ss:$112 sps:$4 sm:$0xff]  }
 0x4b6   :  { %10163 = vmatpush1.bf16.msra.mxu1 %v18444_v4  ;;  %10194 = vmatprep.mubr.bf16.mxu1 %v19303_v0  ;;  %v18500_v4 = vld [vmem:[#allocation2 + $0x75c] ss:$112 sps:$4 sm:$0xff]  }
 0x4b7   :  { %10367 = vmatprep.subr.bf16.mxu1 %v18452_v53  ;;  %v18501_v53 = vld [vmem:[#allocation2 + $0xf30] ss:$112 sps:$4 sm:$0xff]  }
 0x4b8   :  { %10218 = vmatpush1.bf16.msra.mxu0 %v18441_v44  ;;  %v18498_v44 = vld [vmem:[#allocation2 + $0x758] ss:$112 sps:$4 sm:$0xff]  }
 0x4b9   :  { %10219 = vmatprep.subr.bf16.mxu0 %v18449_v5  ;;  %v18509_v5 = vld [vmem:[#allocation2 + $0x1014] ss:$112 sps:$4 sm:$0xff]  }
 0x4bc   :  { %10220 = vmatpush1.bf16.msra.mxu0 %v18447_v6  ;;  %v18506_v6 = vld [vmem:[#allocation2 + $0x83c] ss:$112 sps:$4 sm:$0xff]  }
 0x4bd   :  { %10221 = vmatprep.subr.bf16.mxu0 %v18455_v8  ;;  %v18507_v8 = vld [vmem:[#allocation2 + $0x1010] ss:$112 sps:$4 sm:$0xff]  }
 0x4c0   :  { %10222 = vmatpush1.bf16.msra.mxu0 %v18453_v55  ;;  %v18504_v55 = vld [vmem:[#allocation2 + $0x838] ss:$112 sps:$4 sm:$0xff]  }
 0x4c1   :  { %16118 = vmatmul.mubr.msk.bf16.vlgmr.msra.gmra.mrb[24].mxu1 %vm8559_vm0, %v19499_v10  ;;  %10223 = vmatprep.subr.bf16.mxu0 %v18461_v14  ;;  %v18512_v14 = vld [vmem:[#allocation2 + $0x91c] ss:$112 sps:$4 sm:$0xff]  }
 0x4c2   :  { %10368 = vmatpush1.bf16.msra.mxu1 %v18450_v11  ;;  %10399 = vmatprep.mubr.bf16.mxu1 %v19506_v51  ;;  %v18515_v11 = vld [vmem:[#allocation2 + $0x10f4] ss:$112 sps:$4 sm:$0xff]  }
 0x4c3   :  { %10369 = vmatprep.subr.bf16.mxu1 %v18458_v16  ;;  %v18513_v16 = vld [vmem:[#allocation2 + $0x10f0] ss:$112 sps:$4 sm:$0xff]  }
 0x4c4   :  { %10224 = vmatpush1.bf16.msra.mxu0 %v18459_v12  ;;  %v18510_v12 = vld [vmem:[#allocation2 + $0x918] ss:$112 sps:$4 sm:$0xff]  }
 0x4c5   :  { %10225 = vmatprep.subr.bf16.mxu0 %v18467_v20  ;;  %v18518_v20 = vld [vmem:[#allocation2 + $0x9fc] ss:$112 sps:$4 sm:$0xff]  }
 0x4c6   :  { %10370 = vmatpush1.bf16.msra.mxu1 %v18456_v17  ;;  %v18521_v17 = vld [vmem:[#allocation2 + $0x11d4] ss:$112 sps:$4 sm:$0xff]  }
 0x4c7   :  { %10371 = vmatprep.subr.bf16.mxu1 %v18464_v22  ;;  %v18519_v22 = vld [vmem:[#allocation2 + $0x11d0] ss:$112 sps:$4 sm:$0xff]  }
 0x4c8   :  { %v19727_v34 = vpop.f32.mrb[20].mxu1  ;;  %10226 = vmatpush1.bf16.msra.mxu0 %v18465_v25  ;;  %v18516_v25 = vld [vmem:[#allocation2 + $0x9f8] ss:$112 sps:$4 sm:$0xff]  }
 0x4c9   :  { %v19729_v32 = vpop.f32.mrb[21].mxu1  ;;  %10227 = vmatprep.subr.bf16.mxu0 %v18473_v52  ;;  %v18524_v52 = vld [vmem:[#allocation2 + $0xadc] ss:$112 sps:$4 sm:$0xff]  }
 0x4ca   :  { %10372 = vmatpush1.bf16.msra.mxu1 %v18462_v26  ;;  %v9872_v37 = vpop.f32.mrb[22].mxu1  ;;  %v18527_v26 = vld [vmem:[#allocation2 + $0x12b4] ss:$112 sps:$4 sm:$0xff]  }
 0x4cb   :  { %v9873_v45 = vpop.f32.mrb[23].mxu1  ;;  %10373 = vmatprep.subr.bf16.mxu1 %v18470_v28  ;;  %v18525_v28 = vld [vmem:[#allocation2 + $0x12b0] ss:$112 sps:$4 sm:$0xff]   ;;  %v18533_v37 = vld [vmem:[#allocation2 + $0x1394] ss:$112 sps:$4 sm:$0xff]  }
 0x4cc   :  { %10228 = vmatpush1.bf16.msra.mxu0 %v18471_v35  ;;  %v18522_v35 = vld [vmem:[#allocation2 + $0xad8] ss:$112 sps:$4 sm:$0xff]  }
 0x4cd   :  { %10229 = vmatprep.subr.bf16.mxu0 %v18479_v43  ;;  %v18531_v43 = vld [vmem:[#allocation2 + $0x1390] ss:$112 sps:$4 sm:$0xff]   ;;  %v18528_v45 = vld [vmem:[#allocation2 + $0xbb8] ss:$112 sps:$4 sm:$0xff]  }
 0x4ce   :  { %10374 = vmatpush1.bf16.msra.mxu1 %v18468_v41  ;;  %v18530_v41 = vld [vmem:[#allocation2 + $0xbbc] ss:$112 sps:$4 sm:$0xff]  }
 0x4cf   :  { %10375 = vmatprep.subr.bf16.mxu1 %v18476_v27  ;;  %v18539_v27 = vld [vmem:[#allocation2 + $0x1474] ss:$112 sps:$4 sm:$0xff]  }
 0x4d0   :  { %10230 = vmatpush1.bf16.msra.mxu0 %v18477_v46  ;;  %v18536_v46 = vld [vmem:[#allocation2 + $0xc9c] ss:$112 sps:$4 sm:$0xff]  }
 0x4d1   :  { %10231 = vmatprep.subr.bf16.mxu0 %v18485_v54  ;;  %v18534_v54 = vld [vmem:[#allocation2 + $0xc98] ss:$112 sps:$4 sm:$0xff]  }
 0x4d2   :  { %10376 = vmatpush1.bf16.msra.mxu1 %v18474_v47  ;;  %v18537_v47 = vld [vmem:[#allocation2 + $0x1470] ss:$112 sps:$4 sm:$0xff]  }
 0x4d3   :  { %10377 = vmatprep.subr.bf16.mxu1 %v18482_v48  ;;  %v18545_v48 = vld [vmem:[#allocation2 + $0x1554] ss:$112 sps:$4 sm:$0xff]  }
 0x4d4   :  { %10232 = vmatpush1.bf16.msra.mxu0 %v18483_v42  ;;  %v18542_v42 = vld [vmem:[#allocation2 + $0xd7c] ss:$112 sps:$4 sm:$0xff]  }
 0x4d5   :  { %10233 = vmatprep.subr.bf16.mxu0 %v18491_v38  ;;  %v18540_v38 = vld [vmem:[#allocation2 + $0xd78] ss:$112 sps:$4 sm:$0xff]  }
 0x4d6   :  { %10378 = vmatpush1.bf16.msra.mxu1 %v18480_v60  ;;  %v18543_v60 = vld [vmem:[#allocation2 + $0x1550] ss:$112 sps:$4 sm:$0xff]  }
 0x4d7   :  { %10379 = vmatprep.subr.bf16.mxu1 %v18488_v50  ;;  %v18551_v50 = vld [vmem:[#allocation2 + $0x1634] ss:$112 sps:$4 sm:$0xff]  }
 0x4d8   :  { %10234 = vmatpush1.bf16.msra.mxu0 %v18489_v56  ;;  %v18548_v56 = vld [vmem:[#allocation2 + $0xe5c] ss:$112 sps:$4 sm:$0xff]  }
 0x4d9   :  { %10244 = vmatprep.subr.bf16.mxu0 %v18497_v61  ;;  %v18546_v61 = vld [vmem:[#allocation2 + $0xe58] ss:$112 sps:$4 sm:$0xff]  }
 0x4da   :  { %10380 = vmatpush1.bf16.msra.mxu1 %v18486_v59  ;;  %v18549_v59 = vld [vmem:[#allocation2 + $0x1630] ss:$112 sps:$4 sm:$0xff]  }
 0x4db   :  { %10381 = vmatprep.subr.bf16.mxu1 %v18494_v62  ;;  %10236 = vmatmul.mubr.bf16.vlgmr.msra.gmra.mrb[20].mxu0 %v19513_v9  ;;  %v18557_v62 = vld [vmem:[#allocation2 + $0x1714] ss:$112 sps:$4 sm:$0xff]  }
 0x4dc   :  { %10245 = vmatpush1.bf16.msra.mxu0 %v18495_v63  ;;  %10276 = vmatprep.mubr.bf16.mxu0 %v19520_v36  ;;  %v18554_v63 = vld [vmem:[#allocation2 + $0xf3c] ss:$112 sps:$4 sm:$0xff]  }
 0x4dd   :  { %10246 = vmatprep.subr.bf16.mxu0 %v18503_v2  ;;  %v18552_v2 = vld [vmem:[#allocation2 + $0xf38] ss:$112 sps:$4 sm:$0xff]  }
 0x4de   :  { %10382 = vmatpush1.bf16.msra.mxu1 %v18492_v1  ;;  %v18555_v1 = vld [vmem:[#allocation2 + $0x1710] ss:$112 sps:$4 sm:$0xff]  }
 0x4df   :  { %10383 = vmatprep.subr.bf16.mxu1 %v18500_v4  ;;  %v18563_v4 = vld [vmem:[#allocation2 + $0x17f4] ss:$112 sps:$4 sm:$0xff]  }
 0x4e0   :  { %10247 = vmatpush1.bf16.msra.mxu0 %v18501_v53  ;;  %v18560_v53 = vld [vmem:[#allocation2 + $0x101c] ss:$112 sps:$4 sm:$0xff]  }
 0x4e1   :  { %10248 = vmatprep.subr.bf16.mxu0 %v18509_v5  ;;  %v18558_v5 = vld [vmem:[#allocation2 + $0x1018] ss:$112 sps:$4 sm:$0xff]  }
 0x4e2   :  { %10384 = vmatpush1.bf16.msra.mxu1 %v18498_v44  ;;  %v18561_v44 = vld [vmem:[#allocation2 + $0x17f0] ss:$112 sps:$4 sm:$0xff]  }
 0x4e3   :  { %10385 = vmatprep.subr.bf16.mxu1 %v18506_v6  ;;  %v18569_v6 = vld [vmem:[#allocation2 + $0x18d4] ss:$112 sps:$4 sm:$0xff]  }
 0x4e4   :  { %10249 = vmatpush1.bf16.msra.mxu0 %v18507_v8  ;;  %v18566_v8 = vld [vmem:[#allocation2 + $0x10fc] ss:$112 sps:$4 sm:$0xff]  }
 0x4e5   :  { %10250 = vmatprep.subr.bf16.mxu0 %v18515_v11  ;;  %v18564_v11 = vld [vmem:[#allocation2 + $0x10f8] ss:$112 sps:$4 sm:$0xff]  }
 0x4e6   :  { %10386 = vmatpush1.bf16.msra.mxu1 %v18504_v55  ;;  %v18567_v55 = vld [vmem:[#allocation2 + $0x18d0] ss:$112 sps:$4 sm:$0xff]  }
 0x4e7   :  { %10387 = vmatprep.subr.bf16.mxu1 %v18512_v14  ;;  %v18575_v14 = vld [vmem:[#allocation2 + $0x19b4] ss:$112 sps:$4 sm:$0xff]  }
 0x4e8   :  { %10251 = vmatpush1.bf16.msra.mxu0 %v18513_v16  ;;  %v18572_v16 = vld [vmem:[#allocation2 + $0x11dc] ss:$112 sps:$4 sm:$0xff]  }
 0x4e9   :  { %10252 = vmatprep.subr.bf16.mxu0 %v18521_v17  ;;  %v18570_v17 = vld [vmem:[#allocation2 + $0x11d8] ss:$112 sps:$4 sm:$0xff]  }
 0x4ea   :  { %10388 = vmatpush1.bf16.msra.mxu1 %v18510_v12  ;;  %v18573_v12 = vld [vmem:[#allocation2 + $0x19b0] ss:$112 sps:$4 sm:$0xff]  }
 0x4eb   :  { %10389 = vmatprep.subr.bf16.mxu1 %v18518_v20  ;;  %v18581_v20 = vld [vmem:[#allocation2 + $0x1a94] ss:$112 sps:$4 sm:$0xff]  }
 0x4ec   :  { %10253 = vmatpush1.bf16.msra.mxu0 %v18519_v22  ;;  %v18578_v22 = vld [vmem:[#allocation2 + $0x12bc] ss:$112 sps:$4 sm:$0xff]  }
 0x4ed   :  { %10254 = vmatprep.subr.bf16.mxu0 %v18527_v26  ;;  %v18576_v26 = vld [vmem:[#allocation2 + $0x12b8] ss:$112 sps:$4 sm:$0xff]  }
 0x4ee   :  { %10390 = vmatpush1.bf16.msra.mxu1 %v18516_v25  ;;  %v18579_v25 = vld [vmem:[#allocation2 + $0x1a90] ss:$112 sps:$4 sm:$0xff]  }
 0x4ef   :  { %10391 = vmatprep.subr.bf16.mxu1 %v18524_v52  ;;  %v18587_v52 = vld [vmem:[#allocation2 + $0x1b74] ss:$112 sps:$4 sm:$0xff]  }
 0x4f0   :  { %10255 = vmatpush1.bf16.msra.mxu0 %v18525_v28  ;;  %v18584_v28 = vld [vmem:[#allocation2 + $0x139c] ss:$112 sps:$4 sm:$0xff]  }
 0x4f1   :  { %10256 = vmatprep.subr.bf16.mxu0 %v18533_v37  ;;  %v18582_v37 = vld [vmem:[#allocation2 + $0x1398] ss:$112 sps:$4 sm:$0xff]  }
 0x4f2   :  { %10392 = vmatpush1.bf16.msra.mxu1 %v18522_v35  ;;  %v18585_v35 = vld [vmem:[#allocation2 + $0x1b70] ss:$112 sps:$4 sm:$0xff]  }
 0x4f3   :  { %10393 = vmatprep.subr.bf16.mxu1 %v18530_v41  ;;  %v18593_v41 = vld [vmem:[#allocation2 + $0x1c54] ss:$112 sps:$4 sm:$0xff]  }
 0x4f4   :  { %10257 = vmatpush1.bf16.msra.mxu0 %v18531_v43  ;;  %v18590_v43 = vld [vmem:[#allocation2 + $0x147c] ss:$112 sps:$4 sm:$0xff]  }
 0x4f5   :  { %10258 = vmatprep.subr.bf16.mxu0 %v18539_v27  ;;  %v18588_v27 = vld [vmem:[#allocation2 + $0x1478] ss:$112 sps:$4 sm:$0xff]  }
 0x4f6   :  { %10394 = vmatpush1.bf16.msra.mxu1 %v18528_v45  ;;  %v18591_v45 = vld [vmem:[#allocation2 + $0x1c50] ss:$112 sps:$4 sm:$0xff]  }
 0x4f7   :  { %10395 = vmatprep.subr.bf16.mxu1 %v18536_v46  ;;  %v18599_v46 = vld [vmem:[#allocation2 + $0x1d34] ss:$112 sps:$4 sm:$0xff]  }
 0x4f8   :  { %10259 = vmatpush1.bf16.msra.mxu0 %v18537_v47  ;;  %v18596_v47 = vld [vmem:[#allocation2 + $0x155c] ss:$112 sps:$4 sm:$0xff]  }
 0x4f9   :  { %10260 = vmatprep.subr.bf16.mxu0 %v18545_v48  ;;  %v18594_v48 = vld [vmem:[#allocation2 + $0x1558] ss:$112 sps:$4 sm:$0xff]  }
 0x4fa   :  { %10396 = vmatpush1.bf16.msra.mxu1 %v18534_v54  ;;  %v18597_v54 = vld [vmem:[#allocation2 + $0x1d30] ss:$112 sps:$4 sm:$0xff]  }
 0x4fb   :  { %10397 = vmatprep.subr.bf16.mxu1 %v18542_v42  ;;  %v18605_v42 = vld [vmem:[#allocation2 + $0x1e14] ss:$112 sps:$4 sm:$0xff]  }
 0x4fc   :  { %10261 = vmatpush1.bf16.msra.mxu0 %v18543_v60  ;;  %v18602_v60 = vld [vmem:[#allocation2 + $0x163c] ss:$112 sps:$4 sm:$0xff]  }
 0x4fd   :  { %10262 = vmatprep.subr.bf16.mxu0 %v18551_v50  ;;  %v18600_v50 = vld [vmem:[#allocation2 + $0x1638] ss:$112 sps:$4 sm:$0xff]  }
 0x4fe   :  { %10398 = vmatpush1.bf16.msra.mxu1 %v18540_v38  ;;  %v18603_v38 = vld [vmem:[#allocation2 + $0x1e10] ss:$112 sps:$4 sm:$0xff]  }
 0x4ff   :  { %10408 = vmatprep.subr.bf16.mxu1 %v18548_v56  ;;  %v18611_v56 = vld [vmem:[#allocation2 + $0x1ef4] ss:$112 sps:$4 sm:$0xff]  }
 0x500   :  { %10263 = vmatpush1.bf16.msra.mxu0 %v18549_v59  ;;  %v18608_v59 = vld [vmem:[#allocation2 + $0x171c] ss:$112 sps:$4 sm:$0xff]  }
 0x501   :  { %10400 = vmatmul.mubr.bf16.vlgmr.msra.gmra.mrb[28].mxu1 %v19513_v9  ;;  %10264 = vmatprep.subr.bf16.mxu0 %v18557_v62  ;;  %v18606_v62 = vld [vmem:[#allocation2 + $0x1718] ss:$112 sps:$4 sm:$0xff]  }
 0x502   :  { %10409 = vmatpush1.bf16.msra.mxu1 %v18546_v61  ;;  %10440 = vmatprep.mubr.bf16.mxu1 %v19520_v36  ;;  %v18609_v61 = vld [vmem:[#allocation2 + $0x1ef0] ss:$112 sps:$4 sm:$0xff]  }
 0x503   :  { %10410 = vmatprep.subr.bf16.mxu1 %v18554_v63  ;;  %v18617_v63 = vld [vmem:[#allocation2 + $0x1fd4] ss:$112 sps:$4 sm:$0xff]  }
 0x504   :  { %10265 = vmatpush1.bf16.msra.mxu0 %v18555_v1  ;;  %v18614_v1 = vld [vmem:[#allocation2 + $0x17fc] ss:$112 sps:$4 sm:$0xff]  }
 0x505   :  { %10266 = vmatprep.subr.bf16.mxu0 %v18563_v4  ;;  %v18612_v4 = vld [vmem:[#allocation2 + $0x17f8] ss:$112 sps:$4 sm:$0xff]  }
 0x506   :  { %10411 = vmatpush1.bf16.msra.mxu1 %v18552_v2  ;;  %v18615_v2 = vld [vmem:[#allocation2 + $0x1fd0] ss:$112 sps:$4 sm:$0xff]  }
 0x507   :  { %10412 = vmatprep.subr.bf16.mxu1 %v18560_v53  ;;  %v18623_v53 = vld [vmem:[#allocation2 + $0x20b4] ss:$112 sps:$4 sm:$0xff]  }
 0x508   :  { %10267 = vmatpush1.bf16.msra.mxu0 %v18561_v44  ;;  %v18620_v44 = vld [vmem:[#allocation2 + $0x18dc] ss:$112 sps:$4 sm:$0xff]  }
 0x509   :  { %10268 = vmatprep.subr.bf16.mxu0 %v18569_v6  ;;  %v18618_v6 = vld [vmem:[#allocation2 + $0x18d8] ss:$112 sps:$4 sm:$0xff]  }
 0x50a   :  { %10413 = vmatpush1.bf16.msra.mxu1 %v18558_v5  ;;  %v18621_v5 = vld [vmem:[#allocation2 + $0x20b0] ss:$112 sps:$4 sm:$0xff]  }
 0x50b   :  { %10414 = vmatprep.subr.bf16.mxu1 %v18566_v8  ;;  %v18629_v8 = vld [vmem:[#allocation2 + $0x2194] ss:$112 sps:$4 sm:$0xff]  }
 0x50c   :  { %10269 = vmatpush1.bf16.msra.mxu0 %v18567_v55  ;;  %v18626_v55 = vld [vmem:[#allocation2 + $0x19bc] ss:$112 sps:$4 sm:$0xff]  }
 0x50d   :  { %10270 = vmatprep.subr.bf16.mxu0 %v18575_v14  ;;  %v18624_v14 = vld [vmem:[#allocation2 + $0x19b8] ss:$112 sps:$4 sm:$0xff]  }
 0x50e   :  { %10415 = vmatpush1.bf16.msra.mxu1 %v18564_v11  ;;  %v18627_v11 = vld [vmem:[#allocation2 + $0x2190] ss:$112 sps:$4 sm:$0xff]  }
 0x50f   :  { %10416 = vmatprep.subr.bf16.mxu1 %v18572_v16  ;;  %v18635_v16 = vld [vmem:[#allocation2 + $0x2274] ss:$112 sps:$4 sm:$0xff]  }
 0x510   :  { %10271 = vmatpush1.bf16.msra.mxu0 %v18573_v12  ;;  %v18632_v12 = vld [vmem:[#allocation2 + $0x1a9c] ss:$112 sps:$4 sm:$0xff]  }
 0x511   :  { %10272 = vmatprep.subr.bf16.mxu0 %v18581_v20  ;;  %v18630_v20 = vld [vmem:[#allocation2 + $0x1a98] ss:$112 sps:$4 sm:$0xff]  }
 0x512   :  { %10417 = vmatpush1.bf16.msra.mxu1 %v18570_v17  ;;  %v18633_v17 = vld [vmem:[#allocation2 + $0x2270] ss:$112 sps:$4 sm:$0xff]  }
 0x513   :  { %10418 = vmatprep.subr.bf16.mxu1 %v18578_v22  ;;  %v18641_v22 = vld [vmem:[#allocation2 + $0x2354] ss:$112 sps:$4 sm:$0xff]  }
 0x514   :  { %10273 = vmatpush1.bf16.msra.mxu0 %v18579_v25  ;;  %v18638_v25 = vld [vmem:[#allocation2 + $0x1b7c] ss:$112 sps:$4 sm:$0xff]  }
 0x515   :  { %10274 = vmatprep.subr.bf16.mxu0 %v18587_v52  ;;  %v18636_v52 = vld [vmem:[#allocation2 + $0x1b78] ss:$112 sps:$4 sm:$0xff]  }
 0x516   :  { %10419 = vmatpush1.bf16.msra.mxu1 %v18576_v26  ;;  %v18639_v26 = vld [vmem:[#allocation2 + $0x2350] ss:$112 sps:$4 sm:$0xff]  }
 0x517   :  { %10420 = vmatprep.subr.bf16.mxu1 %v18584_v28  ;;  %v18647_v28 = vld [vmem:[#allocation2 + $0x2434] ss:$112 sps:$4 sm:$0xff]  }
 0x518   :  { %10275 = vmatpush1.bf16.msra.mxu0 %v18585_v35  ;;  %v18644_v35 = vld [vmem:[#allocation2 + $0x1c5c] ss:$112 sps:$4 sm:$0xff]  }
 0x519   :  { %10285 = vmatprep.subr.bf16.mxu0 %v18593_v41  ;;  %v18642_v41 = vld [vmem:[#allocation2 + $0x1c58] ss:$112 sps:$4 sm:$0xff]  }
 0x51a   :  { %10421 = vmatpush1.bf16.msra.mxu1 %v18582_v37  ;;  %v18645_v37 = vld [vmem:[#allocation2 + $0x2430] ss:$112 sps:$4 sm:$0xff]  }
 0x51b   :  { %10422 = vmatprep.subr.bf16.mxu1 %v18590_v43  ;;  %10277 = vmatmul.mubr.bf16.vlgmr.msra.gmra.mrb[20].mxu0 %v19527_v18  ;;  %v18653_v43 = vld [vmem:[#allocation2 + $0x2514] ss:$112 sps:$4 sm:$0xff]  }
 0x51c   :  { %10286 = vmatpush1.bf16.msra.mxu0 %v18591_v45  ;;  %10317 = vmatprep.mubr.bf16.mxu0 %v19532_v24  ;;  %v18650_v45 = vld [vmem:[#allocation2 + $0x1d3c] ss:$112 sps:$4 sm:$0xff]  }
 0x51d   :  { %10287 = vmatprep.subr.bf16.mxu0 %v18599_v46  ;;  %v18648_v46 = vld [vmem:[#allocation2 + $0x1d38] ss:$112 sps:$4 sm:$0xff]  }
 0x51e   :  { %10423 = vmatpush1.bf16.msra.mxu1 %v18588_v27  ;;  %v18651_v27 = vld [vmem:[#allocation2 + $0x2510] ss:$112 sps:$4 sm:$0xff]  }
 0x51f   :  { %10424 = vmatprep.subr.bf16.mxu1 %v18596_v47  ;;  %v18659_v47 = vld [vmem:[#allocation2 + $0x25f4] ss:$112 sps:$4 sm:$0xff]  }
 0x520   :  { %10288 = vmatpush1.bf16.msra.mxu0 %v18597_v54  ;;  %v18656_v54 = vld [vmem:[#allocation2 + $0x1e1c] ss:$112 sps:$4 sm:$0xff]  }
 0x521   :  { %10289 = vmatprep.subr.bf16.mxu0 %v18605_v42  ;;  %v18654_v42 = vld [vmem:[#allocation2 + $0x1e18] ss:$112 sps:$4 sm:$0xff]  }
 0x522   :  { %10425 = vmatpush1.bf16.msra.mxu1 %v18594_v48  ;;  %v18657_v48 = vld [vmem:[#allocation2 + $0x25f0] ss:$112 sps:$4 sm:$0xff]  }
 0x523   :  { %10426 = vmatprep.subr.bf16.mxu1 %v18602_v60  ;;  %v18665_v60 = vld [vmem:[#allocation2 + $0x26d4] ss:$112 sps:$4 sm:$0xff]  }
 0x524   :  { %10290 = vmatpush1.bf16.msra.mxu0 %v18603_v38  ;;  %v18662_v38 = vld [vmem:[#allocation2 + $0x1efc] ss:$112 sps:$4 sm:$0xff]  }
 0x525   :  { %10291 = vmatprep.subr.bf16.mxu0 %v18611_v56  ;;  %v18660_v56 = vld [vmem:[#allocation2 + $0x1ef8] ss:$112 sps:$4 sm:$0xff]  }
 0x526   :  { %10427 = vmatpush1.bf16.msra.mxu1 %v18600_v50  ;;  %v18663_v50 = vld [vmem:[#allocation2 + $0x26d0] ss:$112 sps:$4 sm:$0xff]  }
 0x527   :  { %10428 = vmatprep.subr.bf16.mxu1 %v18608_v59  ;;  %v18671_v59 = vld [vmem:[#allocation2 + $0x27b4] ss:$112 sps:$4 sm:$0xff]  }
 0x528   :  { %10292 = vmatpush1.bf16.msra.mxu0 %v18609_v61  ;;  %v18668_v61 = vld [vmem:[#allocation2 + $0x1fdc] ss:$112 sps:$4 sm:$0xff]  }
 0x529   :  { %10293 = vmatprep.subr.bf16.mxu0 %v18617_v63  ;;  %v18666_v63 = vld [vmem:[#allocation2 + $0x1fd8] ss:$112 sps:$4 sm:$0xff]  }
 0x52a   :  { %10429 = vmatpush1.bf16.msra.mxu1 %v18606_v62  ;;  %v18669_v62 = vld [vmem:[#allocation2 + $0x27b0] ss:$112 sps:$4 sm:$0xff]  }
 0x52b   :  { %10430 = vmatprep.subr.bf16.mxu1 %v18614_v1  ;;  %v18677_v1 = vld [vmem:[#allocation2 + $0x2894] ss:$112 sps:$4 sm:$0xff]  }
 0x52c   :  { %10294 = vmatpush1.bf16.msra.mxu0 %v18615_v2  ;;  %v18674_v2 = vld [vmem:[#allocation2 + $0x20bc] ss:$112 sps:$4 sm:$0xff]  }
 0x52d   :  { %10295 = vmatprep.subr.bf16.mxu0 %v18623_v53  ;;  %v18672_v53 = vld [vmem:[#allocation2 + $0x20b8] ss:$112 sps:$4 sm:$0xff]  }
 0x52e   :  { %10431 = vmatpush1.bf16.msra.mxu1 %v18612_v4  ;;  %v18675_v4 = vld [vmem:[#allocation2 + $0x2890] ss:$112 sps:$4 sm:$0xff]  }
 0x52f   :  { %10432 = vmatprep.subr.bf16.mxu1 %v18620_v44  ;;  %v18683_v44 = vld [vmem:[#allocation2 + $0x2974] ss:$112 sps:$4 sm:$0xff]  }
 0x530   :  { %10296 = vmatpush1.bf16.msra.mxu0 %v18621_v5  ;;  %v18680_v5 = vld [vmem:[#allocation2 + $0x219c] ss:$112 sps:$4 sm:$0xff]  }
 0x531   :  { %10297 = vmatprep.subr.bf16.mxu0 %v18629_v8  ;;  %v18678_v8 = vld [vmem:[#allocation2 + $0x2198] ss:$112 sps:$4 sm:$0xff]  }
 0x532   :  { %10433 = vmatpush1.bf16.msra.mxu1 %v18618_v6  ;;  %v18681_v6 = vld [vmem:[#allocation2 + $0x2970] ss:$112 sps:$4 sm:$0xff]  }
 0x533   :  { %10434 = vmatprep.subr.bf16.mxu1 %v18626_v55  ;;  %v18689_v55 = vld [vmem:[#allocation2 + $0x2a54] ss:$112 sps:$4 sm:$0xff]  }
 0x534   :  { %10298 = vmatpush1.bf16.msra.mxu0 %v18627_v11  ;;  %v18686_v11 = vld [vmem:[#allocation2 + $0x227c] ss:$112 sps:$4 sm:$0xff]  }
 0x535   :  { %10299 = vmatprep.subr.bf16.mxu0 %v18635_v16  ;;  %v18684_v16 = vld [vmem:[#allocation2 + $0x2278] ss:$112 sps:$4 sm:$0xff]  }
 0x536   :  { %10435 = vmatpush1.bf16.msra.mxu1 %v18624_v14  ;;  %v18687_v14 = vld [vmem:[#allocation2 + $0x2a50] ss:$112 sps:$4 sm:$0xff]  }
 0x537   :  { %10436 = vmatprep.subr.bf16.mxu1 %v18632_v12  ;;  %v18701_v12 = vld [vmem:[#allocation2 + $0x64] ss:$112 sps:$4 sm:$0xff]  }
 0x538   :  { %10300 = vmatpush1.bf16.msra.mxu0 %v18633_v17  ;;  %v18692_v17 = vld [vmem:[#allocation2 + $0x235c] ss:$112 sps:$4 sm:$0xff]  }
 0x539   :  { %10301 = vmatprep.subr.bf16.mxu0 %v18641_v22  ;;  %v18695_v22 = vld [vmem:[#allocation2 + $0x243c] ss:$112 sps:$4 sm:$0xff]  }
 0x53a   :  { %10437 = vmatpush1.bf16.msra.mxu1 %v18630_v20  ;;  %v18690_v20 = vld [vmem:[#allocation2 + $0x2358] ss:$112 sps:$4 sm:$0xff]  }
 0x53b   :  { %10438 = vmatprep.subr.bf16.mxu1 %v18638_v25  ;;  %v18693_v25 = vld [vmem:[#allocation2 + $0x2438] ss:$112 sps:$4 sm:$0xff]  }
 0x53c   :  { %10302 = vmatpush1.bf16.msra.mxu0 %v18639_v26  ;;  %v18698_v26 = vld [vmem:[#allocation2 + $0x251c] ss:$112 sps:$4 sm:$0xff]  }
 0x53d   :  { %10303 = vmatprep.subr.bf16.mxu0 %v18647_v28  ;;  %v18696_v28 = vld [vmem:[#allocation2 + $0x2518] ss:$112 sps:$4 sm:$0xff]  }
 0x53e   :  { %10439 = vmatpush1.bf16.msra.mxu1 %v18636_v52  ;;  %v18699_v52 = vld [vmem:[#allocation2 + $0x60] ss:$112 sps:$4 sm:$0xff]  }
 0x53f   :  { %10449 = vmatprep.subr.bf16.mxu1 %v18644_v35  ;;  %v18707_v35 = vld [vmem:[#allocation2 + $0x144] ss:$112 sps:$4 sm:$0xff]  }
 0x540   :  { %10304 = vmatpush1.bf16.msra.mxu0 %v18645_v37  ;;  %v18704_v37 = vld [vmem:[#allocation2 + $0x25fc] ss:$112 sps:$4 sm:$0xff]  }
 0x541   :  { %10441 = vmatmul.mubr.bf16.vlgmr.msra.gmra.mrb[28].mxu1 %v19527_v18  ;;  %10305 = vmatprep.subr.bf16.mxu0 %v18653_v43  ;;  %v18702_v43 = vld [vmem:[#allocation2 + $0x25f8] ss:$112 sps:$4 sm:$0xff]  }
 0x542   :  { %10450 = vmatpush1.bf16.msra.mxu1 %v18642_v41  ;;  %10481 = vmatprep.mubr.bf16.mxu1 %v19532_v24  ;;  %v18705_v41 = vld [vmem:[#allocation2 + $0x140] ss:$112 sps:$4 sm:$0xff]  }
 0x543   :  { %10451 = vmatprep.subr.bf16.mxu1 %v18650_v45  ;;  %v18713_v45 = vld [vmem:[#allocation2 + $0x224] ss:$112 sps:$4 sm:$0xff]  }
 0x544   :  { %10306 = vmatpush1.bf16.msra.mxu0 %v18651_v27  ;;  %v18710_v27 = vld [vmem:[#allocation2 + $0x26dc] ss:$112 sps:$4 sm:$0xff]  }
 0x545   :  { %10307 = vmatprep.subr.bf16.mxu0 %v18659_v47  ;;  %v18708_v47 = vld [vmem:[#allocation2 + $0x26d8] ss:$112 sps:$4 sm:$0xff]  }
 0x546   :  { %10452 = vmatpush1.bf16.msra.mxu1 %v18648_v46  ;;  %v18711_v46 = vld [vmem:[#allocation2 + $0x220] ss:$112 sps:$4 sm:$0xff]  }
 0x547   :  { %10453 = vmatprep.subr.bf16.mxu1 %v18656_v54  ;;  %v18719_v54 = vld [vmem:[#allocation2 + $0x304] ss:$112 sps:$4 sm:$0xff]  }
 0x548   :  { %10308 = vmatpush1.bf16.msra.mxu0 %v18657_v48 }
 0x549   :  { %10309 = vmatprep.subr.bf16.mxu0 %v18665_v60 }
 0x54a   :  { %10454 = vmatpush1.bf16.msra.mxu1 %v18654_v42  ;;  %v18716_v42 = vld [vmem:[#allocation2 + $0x27bc] ss:$112 sps:$4 sm:$0xff]  }
 0x54b   :  { %10455 = vmatprep.subr.bf16.mxu1 %v18662_v38 }
 0x54c   :  { %10310 = vmatpush1.bf16.msra.mxu0 %v18663_v50  ;;  %v18717_v50 = vld [vmem:[#allocation2 + $0x300] ss:$112 sps:$4 sm:$0xff]  }
 0x54d   :  { %10311 = vmatprep.subr.bf16.mxu0 %v18671_v59 }
 0x54e   :  { %10456 = vmatpush1.bf16.msra.mxu1 %v18660_v56  ;;  %v18714_v56 = vld [vmem:[#allocation2 + $0x27b8] ss:$112 sps:$4 sm:$0xff]  }
 0x54f   :  { %10457 = vmatprep.subr.bf16.mxu1 %v18668_v61  ;;  %v18725_v61 = vld [vmem:[#allocation2 + $0x3e4] ss:$112 sps:$4 sm:$0xff]  }
 0x550   :  { %10312 = vmatpush1.bf16.msra.mxu0 %v18669_v62  ;;  %v18722_v62 = vld [vmem:[#allocation2 + $0x289c] ss:$112 sps:$4 sm:$0xff]  }
 0x551   :  { %10313 = vmatprep.subr.bf16.mxu0 %v18677_v1  ;;  %v18720_v1 = vld [vmem:[#allocation2 + $0x2898] ss:$112 sps:$4 sm:$0xff]  }
 0x552   :  { %10458 = vmatpush1.bf16.msra.mxu1 %v18666_v63  ;;  %v18723_v63 = vld [vmem:[#allocation2 + $0x3e0] ss:$112 sps:$4 sm:$0xff]  }
 0x553   :  { %10459 = vmatprep.subr.bf16.mxu1 %v18674_v2  ;;  %v18731_v2 = vld [vmem:[#allocation2 + $0x4c4] ss:$112 sps:$4 sm:$0xff]  }
 0x554   :  { %10314 = vmatpush1.bf16.msra.mxu0 %v18675_v4  ;;  %v18728_v4 = vld [vmem:[#allocation2 + $0x297c] ss:$112 sps:$4 sm:$0xff]  }
 0x555   :  { %10315 = vmatprep.subr.bf16.mxu0 %v18683_v44  ;;  %v18726_v44 = vld [vmem:[#allocation2 + $0x2978] ss:$112 sps:$4 sm:$0xff]  }
 0x556   :  { %10460 = vmatpush1.bf16.msra.mxu1 %v18672_v53  ;;  %v18729_v53 = vld [vmem:[#allocation2 + $0x4c0] ss:$112 sps:$4 sm:$0xff]  }
 0x557   :  { %10461 = vmatprep.subr.bf16.mxu1 %v18680_v5  ;;  %v18734_v5 = vld [vmem:[#allocation2 + $0x5a4] ss:$112 sps:$4 sm:$0xff]  }
 0x558   :  { %10316 = vmatpush1.bf16.msra.mxu0 %v18681_v6  ;;  %v18740_v6 = vld [vmem:[#allocation2 + $0x2a5c] ss:$112 sps:$4 sm:$0xff]  }
 0x559   :  { %10326 = vmatprep.subr.bf16.mxu0 %v18689_v55  ;;  %v18737_v55 = vld [vmem:[#allocation2 + $0x684] ss:$112 sps:$4 sm:$0xff]  }
 0x55a   :  { %10462 = vmatpush1.bf16.msra.mxu1 %v18678_v8  ;;  %v18732_v8 = vld [vmem:[#allocation2 + $0x5a0] ss:$112 sps:$4 sm:$0xff]  }
 0x55b   :  { %10463 = vmatprep.subr.bf16.mxu1 %v18686_v11  ;;  %10318 = vmatmul.mubr.bf16.vlgmr.msra.gmra.mrb[20].mxu0 %v19541_v29  ;;  %v18738_v11 = vld [vmem:[#allocation2 + $0x2a58] ss:$112 sps:$4 sm:$0xff]  }
 0x55c   :  { %10327 = vmatpush1.bf16.msra.mxu0 %v18687_v14  ;;  %10358 = vmatprep.mubr.bf16.mxu0 %v19303_v0  ;;  %v18746_v14 = vld [vmem:[#allocation2 + $0x6c] ss:$112 sps:$4 sm:$0xff]  }
 0x55d   :  { %10531 = vmatprep.subr.bf16.mxu0 %v18701_v12  ;;  %v18743_v12 = vld [vmem:[#allocation2 + $0x764] ss:$112 sps:$4 sm:$0xff]  }
 0x55e   :  { %10464 = vmatpush1.bf16.msra.mxu1 %v18684_v16  ;;  %v18735_v16 = vld [vmem:[#allocation2 + $0x680] ss:$112 sps:$4 sm:$0xff]  }
 0x55f   :  { %10465 = vmatprep.subr.bf16.mxu1 %v18692_v17  ;;  %v18741_v17 = vld [vmem:[#allocation2 + $0x760] ss:$112 sps:$4 sm:$0xff]  }
 0x562   :  { %10466 = vmatpush1.bf16.msra.mxu1 %v18690_v20  ;;  %v18749_v20 = vld [vmem:[#allocation2 + $0x844] ss:$112 sps:$4 sm:$0xff]  }
 0x563   :  { %10467 = vmatprep.subr.bf16.mxu1 %v18695_v22  ;;  %v18747_v22 = vld [vmem:[#allocation2 + $0x840] ss:$112 sps:$4 sm:$0xff]  }
 0x566   :  { %10468 = vmatpush1.bf16.msra.mxu1 %v18693_v25  ;;  %v18744_v25 = vld [vmem:[#allocation2 + $0x68] ss:$112 sps:$4 sm:$0xff]  }
 0x567   :  { %10469 = vmatprep.subr.bf16.mxu1 %v18698_v26  ;;  %16119 = vmatmul.mubr.msk.bf16.vlgmr.msra.gmra.mrb[20].mxu0 %vm8559_vm0, %v19499_v10  ;;  %v18755_v26 = vld [vmem:[#allocation2 + $0x924] ss:$112 sps:$4 sm:$0xff]  }
 0x568   :  { %10532 = vmatpush1.bf16.msra.mxu0 %v18699_v52  ;;  %10563 = vmatprep.mubr.bf16.mxu0 %v19506_v51  ;;  %v18752_v52 = vld [vmem:[#allocation2 + $0x14c] ss:$112 sps:$4 sm:$0xff]  }
 0x569   :  { %10533 = vmatprep.subr.bf16.mxu0 %v18707_v35  ;;  %v18750_v35 = vld [vmem:[#allocation2 + $0x148] ss:$112 sps:$4 sm:$0xff]  }
 0x56a   :  { %10470 = vmatpush1.bf16.msra.mxu1 %v18696_v28  ;;  %v18753_v28 = vld [vmem:[#allocation2 + $0x920] ss:$112 sps:$4 sm:$0xff]  }
 0x56b   :  { %10471 = vmatprep.subr.bf16.mxu1 %v18704_v37  ;;  %v18761_v37 = vld [vmem:[#allocation2 + $0xa04] ss:$112 sps:$4 sm:$0xff]  }
 0x56c   :  { %10534 = vmatpush1.bf16.msra.mxu0 %v18705_v41  ;;  %v18758_v41 = vld [vmem:[#allocation2 + $0x22c] ss:$112 sps:$4 sm:$0xff]  }
 0x56d   :  { %10535 = vmatprep.subr.bf16.mxu0 %v18713_v45  ;;  %v18756_v45 = vld [vmem:[#allocation2 + $0x228] ss:$112 sps:$4 sm:$0xff]  }
 0x56e   :  { %10472 = vmatpush1.bf16.msra.mxu1 %v18702_v43  ;;  %v19744_v48 = vpop.f32.mrb[16].mxu0  ;;  %v18759_v43 = vld [vmem:[#allocation2 + $0xa00] ss:$112 sps:$4 sm:$0xff]  }
 0x56f   :  { %10473 = vmatprep.subr.bf16.mxu1 %v18710_v27  ;;  %v19746_v60 = vpop.f32.mrb[17].mxu0  ;;  %v18767_v27 = vld [vmem:[#allocation2 + $0xae4] ss:$112 sps:$4 sm:$0xff]  }
 0x570   :  { %10536 = vmatpush1.bf16.msra.mxu0 %v18711_v46  ;;  %v10036_v38 = vpop.f32.mrb[18].mxu0  ;;  %v18764_v46 = vld [vmem:[#allocation2 + $0x30c] ss:$112 sps:$4 sm:$0xff]  }
 0x571   :  { %v10037_v59 = vpop.f32.mrb[19].mxu0  ;;  %10537 = vmatprep.subr.bf16.mxu0 %v18719_v54 }
 0x572   :  { %10474 = vmatpush1.bf16.msra.mxu1 %v18708_v47  ;;  %v18770_v59 = vld [vmem:[#allocation2 + $0x3ec] ss:$112 sps:$4 sm:$0xff]  }
 0x573   :  { %10475 = vmatprep.subr.bf16.mxu1 %v18716_v42  ;;  %v18765_v42 = vld [vmem:[#allocation2 + $0xae0] ss:$112 sps:$4 sm:$0xff]  }
 0x574   :  { %10538 = vmatpush1.bf16.msra.mxu0 %v18717_v50  ;;  %v18762_v50 = vld [vmem:[#allocation2 + $0x308] ss:$112 sps:$4 sm:$0xff]  }
 0x575   :  { %10539 = vmatprep.subr.bf16.mxu0 %v18725_v61  ;;  %v18771_v61 = vld [vmem:[#allocation2 + $0xbc0] ss:$112 sps:$4 sm:$0xff]  }
 0x576   :  { %10476 = vmatpush1.bf16.msra.mxu1 %v18714_v56  ;;  %v18773_v56 = vld [vmem:[#allocation2 + $0xbc4] ss:$112 sps:$4 sm:$0xff]  }
 0x577   :  { %10477 = vmatprep.subr.bf16.mxu1 %v18722_v62  ;;  %v18768_v62 = vld [vmem:[#allocation2 + $0x3e8] ss:$112 sps:$4 sm:$0xff]  }
 0x578   :  { %10540 = vmatpush1.bf16.msra.mxu0 %v18723_v63  ;;  %v18779_v63 = vld [vmem:[#allocation2 + $0xca4] ss:$112 sps:$4 sm:$0xff]  }
 0x579   :  { %10541 = vmatprep.subr.bf16.mxu0 %v18731_v2  ;;  %v18777_v2 = vld [vmem:[#allocation2 + $0xca0] ss:$112 sps:$4 sm:$0xff]  }
 0x57a   :  { %10478 = vmatpush1.bf16.msra.mxu1 %v18720_v1  ;;  %v18776_v1 = vld [vmem:[#allocation2 + $0x4cc] ss:$112 sps:$4 sm:$0xff]  }
 0x57b   :  { %10479 = vmatprep.subr.bf16.mxu1 %v18728_v4  ;;  %v18774_v4 = vld [vmem:[#allocation2 + $0x4c8] ss:$112 sps:$4 sm:$0xff]  }
 0x57c   :  { %10542 = vmatpush1.bf16.msra.mxu0 %v18729_v53  ;;  %v18785_v53 = vld [vmem:[#allocation2 + $0xd84] ss:$112 sps:$4 sm:$0xff]  }
 0x57d   :  { %10543 = vmatprep.subr.bf16.mxu0 %v18734_v5  ;;  %v18783_v5 = vld [vmem:[#allocation2 + $0xd80] ss:$112 sps:$4 sm:$0xff]  }
 0x57e   :  { %10480 = vmatpush1.bf16.msra.mxu1 %v18726_v44  ;;  %v18782_v44 = vld [vmem:[#allocation2 + $0x5ac] ss:$112 sps:$4 sm:$0xff]  }
 0x57f   :  { %10490 = vmatprep.subr.bf16.mxu1 %v18740_v6  ;;  %v18780_v6 = vld [vmem:[#allocation2 + $0x5a8] ss:$112 sps:$4 sm:$0xff]  }
 0x580   :  { %10544 = vmatpush1.bf16.msra.mxu0 %v18732_v8  ;;  %v18791_v8 = vld [vmem:[#allocation2 + $0xe64] ss:$112 sps:$4 sm:$0xff]  }
 0x581   :  { %10482 = vmatmul.mubr.bf16.vlgmr.msra.gmra.mrb[28].mxu1 %v19541_v29  ;;  %10545 = vmatprep.subr.bf16.mxu0 %v18737_v55  ;;  %v18788_v55 = vld [vmem:[#allocation2 + $0x68c] ss:$112 sps:$4 sm:$0xff]  }
 0x582   :  { %10491 = vmatpush1.bf16.msra.mxu1 %v18738_v11  ;;  %10522 = vmatprep.mubr.bf16.mxu1 %v19303_v0  ;;  %v18789_v11 = vld [vmem:[#allocation2 + $0xe60] ss:$112 sps:$4 sm:$0xff]  }
 0x583   :  { %10695 = vmatprep.subr.bf16.mxu1 %v18746_v14  ;;  %v18786_v14 = vld [vmem:[#allocation2 + $0x688] ss:$112 sps:$4 sm:$0xff]  }
 0x584   :  { %10546 = vmatpush1.bf16.msra.mxu0 %v18735_v16  ;;  %v18797_v16 = vld [vmem:[#allocation2 + $0xf44] ss:$112 sps:$4 sm:$0xff]  }
 0x585   :  { %10547 = vmatprep.subr.bf16.mxu0 %v18743_v12  ;;  %v18794_v12 = vld [vmem:[#allocation2 + $0x76c] ss:$112 sps:$4 sm:$0xff]  }
 0x588   :  { %10548 = vmatpush1.bf16.msra.mxu0 %v18741_v17  ;;  %v18795_v17 = vld [vmem:[#allocation2 + $0xf40] ss:$112 sps:$4 sm:$0xff]  }
 0x589   :  { %10549 = vmatprep.subr.bf16.mxu0 %v18749_v20  ;;  %v18792_v20 = vld [vmem:[#allocation2 + $0x768] ss:$112 sps:$4 sm:$0xff]  }
 0x58c   :  { %10550 = vmatpush1.bf16.msra.mxu0 %v18747_v22  ;;  %v18803_v22 = vld [vmem:[#allocation2 + $0x1024] ss:$112 sps:$4 sm:$0xff]  }
 0x58d   :  { %16120 = vmatmul.mubr.msk.bf16.vlgmr.msra.gmra.mrb[28].mxu1 %vm8559_vm0, %v19499_v10  ;;  %10551 = vmatprep.subr.bf16.mxu0 %v18755_v26  ;;  %v18801_v26 = vld [vmem:[#allocation2 + $0x1020] ss:$112 sps:$4 sm:$0xff]  }
 0x58e   :  { %10696 = vmatpush1.bf16.msra.mxu1 %v18744_v25  ;;  %10727 = vmatprep.mubr.bf16.mxu1 %v19506_v51  ;;  %v18800_v25 = vld [vmem:[#allocation2 + $0x84c] ss:$112 sps:$4 sm:$0xff]  }
 0x58f   :  { %10697 = vmatprep.subr.bf16.mxu1 %v18752_v52  ;;  %v18798_v52 = vld [vmem:[#allocation2 + $0x848] ss:$112 sps:$4 sm:$0xff]  }
 0x590   :  { %10552 = vmatpush1.bf16.msra.mxu0 %v18753_v28  ;;  %v18809_v28 = vld [vmem:[#allocation2 + $0x1104] ss:$112 sps:$4 sm:$0xff]  }
 0x591   :  { %10553 = vmatprep.subr.bf16.mxu0 %v18761_v37  ;;  %v18807_v37 = vld [vmem:[#allocation2 + $0x1100] ss:$112 sps:$4 sm:$0xff]  }
 0x592   :  { %10698 = vmatpush1.bf16.msra.mxu1 %v18750_v35  ;;  %v18806_v35 = vld [vmem:[#allocation2 + $0x92c] ss:$112 sps:$4 sm:$0xff]  }
 0x593   :  { %10699 = vmatprep.subr.bf16.mxu1 %v18758_v41  ;;  %v18804_v41 = vld [vmem:[#allocation2 + $0x928] ss:$112 sps:$4 sm:$0xff]  }
 0x594   :  { %v19753_v47 = vpop.f32.mrb[24].mxu1  ;;  %10554 = vmatpush1.bf16.msra.mxu0 %v18759_v43  ;;  %v18815_v43 = vld [vmem:[#allocation2 + $0x11e4] ss:$112 sps:$4 sm:$0xff]  }
 0x595   :  { %v19755_v54 = vpop.f32.mrb[25].mxu1  ;;  %10555 = vmatprep.subr.bf16.mxu0 %v18767_v27  ;;  %v18813_v27 = vld [vmem:[#allocation2 + $0x11e0] ss:$112 sps:$4 sm:$0xff]  }
 0x596   :  { %10700 = vmatpush1.bf16.msra.mxu1 %v18756_v45  ;;  %v10200_v38 = vpop.f32.mrb[26].mxu1  ;;  %v18812_v45 = vld [vmem:[#allocation2 + $0xa0c] ss:$112 sps:$4 sm:$0xff]  }
 0x597   :  { %v10201_v51 = vpop.f32.mrb[27].mxu1  ;;  %10701 = vmatprep.subr.bf16.mxu1 %v18764_v46  ;;  %v18810_v46 = vld [vmem:[#allocation2 + $0xa08] ss:$112 sps:$4 sm:$0xff]   ;;  %v18818_v38 = vld [vmem:[#allocation2 + $0xaec] ss:$112 sps:$4 sm:$0xff]  }
 0x598   :  { %10556 = vmatpush1.bf16.msra.mxu0 %v18765_v42  ;;  %v18821_v42 = vld [vmem:[#allocation2 + $0x12c4] ss:$112 sps:$4 sm:$0xff]  }
 0x599   :  { %10557 = vmatprep.subr.bf16.mxu0 %v18773_v56  ;;  %v18816_v56 = vld [vmem:[#allocation2 + $0xae8] ss:$112 sps:$4 sm:$0xff]   ;;  %v18827_v51 = vld [vmem:[#allocation2 + $0x13a4] ss:$112 sps:$4 sm:$0xff]  }
 0x59a   :  { %10702 = vmatpush1.bf16.msra.mxu1 %v18762_v50  ;;  %v18819_v50 = vld [vmem:[#allocation2 + $0x12c0] ss:$112 sps:$4 sm:$0xff]  }
 0x59b   :  { %10703 = vmatprep.subr.bf16.mxu1 %v18770_v59  ;;  %v18824_v59 = vld [vmem:[#allocation2 + $0xbcc] ss:$112 sps:$4 sm:$0xff]  }
 0x59c   :  { %10558 = vmatpush1.bf16.msra.mxu0 %v18771_v61  ;;  %v18825_v61 = vld [vmem:[#allocation2 + $0x13a0] ss:$112 sps:$4 sm:$0xff]  }
 0x59d   :  { %10559 = vmatprep.subr.bf16.mxu0 %v18779_v63  ;;  %v18833_v63 = vld [vmem:[#allocation2 + $0x1484] ss:$112 sps:$4 sm:$0xff]  }
 0x59e   :  { %10704 = vmatpush1.bf16.msra.mxu1 %v18768_v62  ;;  %v18822_v62 = vld [vmem:[#allocation2 + $0xbc8] ss:$112 sps:$4 sm:$0xff]  }
 0x59f   :  { %10705 = vmatprep.subr.bf16.mxu1 %v18776_v1  ;;  %v18830_v1 = vld [vmem:[#allocation2 + $0xcac] ss:$112 sps:$4 sm:$0xff]  }
 0x5a0   :  { %10560 = vmatpush1.bf16.msra.mxu0 %v18777_v2  ;;  %v18831_v2 = vld [vmem:[#allocation2 + $0x1480] ss:$112 sps:$4 sm:$0xff]  }
 0x5a1   :  { %10561 = vmatprep.subr.bf16.mxu0 %v18785_v53  ;;  %v18839_v53 = vld [vmem:[#allocation2 + $0x1564] ss:$112 sps:$4 sm:$0xff]  }
 0x5a2   :  { %10706 = vmatpush1.bf16.msra.mxu1 %v18774_v4  ;;  %v18828_v4 = vld [vmem:[#allocation2 + $0xca8] ss:$112 sps:$4 sm:$0xff]  }
 0x5a3   :  { %10707 = vmatprep.subr.bf16.mxu1 %v18782_v44  ;;  %v18836_v44 = vld [vmem:[#allocation2 + $0xd8c] ss:$112 sps:$4 sm:$0xff]  }
 0x5a4   :  { %10562 = vmatpush1.bf16.msra.mxu0 %v18783_v5  ;;  %v18837_v5 = vld [vmem:[#allocation2 + $0x1560] ss:$112 sps:$4 sm:$0xff]  }
 0x5a5   :  { %10572 = vmatprep.subr.bf16.mxu0 %v18791_v8  ;;  %v18845_v8 = vld [vmem:[#allocation2 + $0x1644] ss:$112 sps:$4 sm:$0xff]  }
 0x5a6   :  { %10708 = vmatpush1.bf16.msra.mxu1 %v18780_v6  ;;  %v18834_v6 = vld [vmem:[#allocation2 + $0xd88] ss:$112 sps:$4 sm:$0xff]  }
 0x5a7   :  { %10709 = vmatprep.subr.bf16.mxu1 %v18788_v55  ;;  %10564 = vmatmul.mubr.bf16.vlgmr.msra.gmra.mrb[24].mxu0 %v19513_v9  ;;  %v18842_v55 = vld [vmem:[#allocation2 + $0xe6c] ss:$112 sps:$4 sm:$0xff]  }
 0x5a8   :  { %10573 = vmatpush1.bf16.msra.mxu0 %v18789_v11  ;;  %10604 = vmatprep.mubr.bf16.mxu0 %v19520_v36  ;;  %v18843_v11 = vld [vmem:[#allocation2 + $0x1640] ss:$112 sps:$4 sm:$0xff]  }
 0x5a9   :  { %10574 = vmatprep.subr.bf16.mxu0 %v18797_v16  ;;  %v18851_v16 = vld [vmem:[#allocation2 + $0x1724] ss:$112 sps:$4 sm:$0xff]  }
 0x5aa   :  { %10710 = vmatpush1.bf16.msra.mxu1 %v18786_v14  ;;  %v18840_v14 = vld [vmem:[#allocation2 + $0xe68] ss:$112 sps:$4 sm:$0xff]  }
 0x5ab   :  { %10711 = vmatprep.subr.bf16.mxu1 %v18794_v12  ;;  %v18848_v12 = vld [vmem:[#allocation2 + $0xf4c] ss:$112 sps:$4 sm:$0xff]  }
 0x5ac   :  { %10575 = vmatpush1.bf16.msra.mxu0 %v18795_v17  ;;  %v18849_v17 = vld [vmem:[#allocation2 + $0x1720] ss:$112 sps:$4 sm:$0xff]  }
 0x5ad   :  { %10576 = vmatprep.subr.bf16.mxu0 %v18803_v22  ;;  %v18857_v22 = vld [vmem:[#allocation2 + $0x1804] ss:$112 sps:$4 sm:$0xff]  }
 0x5ae   :  { %10712 = vmatpush1.bf16.msra.mxu1 %v18792_v20  ;;  %v18846_v20 = vld [vmem:[#allocation2 + $0xf48] ss:$112 sps:$4 sm:$0xff]  }
 0x5af   :  { %10713 = vmatprep.subr.bf16.mxu1 %v18800_v25  ;;  %v18854_v25 = vld [vmem:[#allocation2 + $0x102c] ss:$112 sps:$4 sm:$0xff]  }
 0x5b0   :  { %10577 = vmatpush1.bf16.msra.mxu0 %v18801_v26  ;;  %v18855_v26 = vld [vmem:[#allocation2 + $0x1800] ss:$112 sps:$4 sm:$0xff]  }
 0x5b1   :  { %10578 = vmatprep.subr.bf16.mxu0 %v18809_v28  ;;  %v18863_v28 = vld [vmem:[#allocation2 + $0x18e4] ss:$112 sps:$4 sm:$0xff]  }
 0x5b2   :  { %10714 = vmatpush1.bf16.msra.mxu1 %v18798_v52  ;;  %v18852_v52 = vld [vmem:[#allocation2 + $0x1028] ss:$112 sps:$4 sm:$0xff]  }
 0x5b3   :  { %10715 = vmatprep.subr.bf16.mxu1 %v18806_v35  ;;  %v18860_v35 = vld [vmem:[#allocation2 + $0x110c] ss:$112 sps:$4 sm:$0xff]  }
 0x5b4   :  { %10579 = vmatpush1.bf16.msra.mxu0 %v18807_v37  ;;  %v18858_v37 = vld [vmem:[#allocation2 + $0x1108] ss:$112 sps:$4 sm:$0xff]  }
 0x5b5   :  { %10580 = vmatprep.subr.bf16.mxu0 %v18815_v43  ;;  %v18866_v43 = vld [vmem:[#allocation2 + $0x11ec] ss:$112 sps:$4 sm:$0xff]  }
 0x5b6   :  { %10716 = vmatpush1.bf16.msra.mxu1 %v18804_v41  ;;  %v18869_v41 = vld [vmem:[#allocation2 + $0x19c4] ss:$112 sps:$4 sm:$0xff]  }
 0x5b7   :  { %10717 = vmatprep.subr.bf16.mxu1 %v18812_v45  ;;  %v18867_v45 = vld [vmem:[#allocation2 + $0x19c0] ss:$112 sps:$4 sm:$0xff]  }
 0x5b8   :  { %10581 = vmatpush1.bf16.msra.mxu0 %v18813_v27  ;;  %v18875_v27 = vld [vmem:[#allocation2 + $0x1aa4] ss:$112 sps:$4 sm:$0xff]  }
 0x5b9   :  { %10582 = vmatprep.subr.bf16.mxu0 %v18821_v42  ;;  %v18873_v42 = vld [vmem:[#allocation2 + $0x1aa0] ss:$112 sps:$4 sm:$0xff]  }
 0x5ba   :  { %10718 = vmatpush1.bf16.msra.mxu1 %v18810_v46  ;;  %v18872_v46 = vld [vmem:[#allocation2 + $0x12cc] ss:$112 sps:$4 sm:$0xff]  }
 0x5bb   :  { %10719 = vmatprep.subr.bf16.mxu1 %v18818_v38  ;;  %v18870_v38 = vld [vmem:[#allocation2 + $0x12c8] ss:$112 sps:$4 sm:$0xff]  }
 0x5bc   :  { %10583 = vmatpush1.bf16.msra.mxu0 %v18819_v50  ;;  %v18881_v50 = vld [vmem:[#allocation2 + $0x1b84] ss:$112 sps:$4 sm:$0xff]  }
 0x5bd   :  { %10584 = vmatprep.subr.bf16.mxu0 %v18827_v51  ;;  %v18879_v51 = vld [vmem:[#allocation2 + $0x1b80] ss:$112 sps:$4 sm:$0xff]  }
 0x5be   :  { %10720 = vmatpush1.bf16.msra.mxu1 %v18816_v56  ;;  %v18878_v56 = vld [vmem:[#allocation2 + $0x13ac] ss:$112 sps:$4 sm:$0xff]  }
 0x5bf   :  { %10721 = vmatprep.subr.bf16.mxu1 %v18824_v59  ;;  %v18876_v59 = vld [vmem:[#allocation2 + $0x13a8] ss:$112 sps:$4 sm:$0xff]  }
 0x5c0   :  { %10585 = vmatpush1.bf16.msra.mxu0 %v18825_v61  ;;  %v18887_v61 = vld [vmem:[#allocation2 + $0x1c64] ss:$112 sps:$4 sm:$0xff]  }
 0x5c1   :  { %10586 = vmatprep.subr.bf16.mxu0 %v18833_v63  ;;  %v18885_v63 = vld [vmem:[#allocation2 + $0x1c60] ss:$112 sps:$4 sm:$0xff]  }
 0x5c2   :  { %10722 = vmatpush1.bf16.msra.mxu1 %v18822_v62  ;;  %v18884_v62 = vld [vmem:[#allocation2 + $0x148c] ss:$112 sps:$4 sm:$0xff]  }
 0x5c3   :  { %10723 = vmatprep.subr.bf16.mxu1 %v18830_v1  ;;  %v18882_v1 = vld [vmem:[#allocation2 + $0x1488] ss:$112 sps:$4 sm:$0xff]  }
 0x5c4   :  { %10587 = vmatpush1.bf16.msra.mxu0 %v18831_v2  ;;  %v18893_v2 = vld [vmem:[#allocation2 + $0x1d44] ss:$112 sps:$4 sm:$0xff]  }
 0x5c5   :  { %10588 = vmatprep.subr.bf16.mxu0 %v18839_v53  ;;  %v18891_v53 = vld [vmem:[#allocation2 + $0x1d40] ss:$112 sps:$4 sm:$0xff]  }
 0x5c6   :  { %10724 = vmatpush1.bf16.msra.mxu1 %v18828_v4  ;;  %v18890_v4 = vld [vmem:[#allocation2 + $0x156c] ss:$112 sps:$4 sm:$0xff]  }
 0x5c7   :  { %10725 = vmatprep.subr.bf16.mxu1 %v18836_v44  ;;  %v18888_v44 = vld [vmem:[#allocation2 + $0x1568] ss:$112 sps:$4 sm:$0xff]  }
 0x5c8   :  { %10589 = vmatpush1.bf16.msra.mxu0 %v18837_v5  ;;  %v18899_v5 = vld [vmem:[#allocation2 + $0x1e24] ss:$112 sps:$4 sm:$0xff]  }
 0x5c9   :  { %10590 = vmatprep.subr.bf16.mxu0 %v18845_v8  ;;  %v18897_v8 = vld [vmem:[#allocation2 + $0x1e20] ss:$112 sps:$4 sm:$0xff]  }
 0x5ca   :  { %10726 = vmatpush1.bf16.msra.mxu1 %v18834_v6  ;;  %v18896_v6 = vld [vmem:[#allocation2 + $0x164c] ss:$112 sps:$4 sm:$0xff]  }
 0x5cb   :  { %10736 = vmatprep.subr.bf16.mxu1 %v18842_v55  ;;  %v18894_v55 = vld [vmem:[#allocation2 + $0x1648] ss:$112 sps:$4 sm:$0xff]  }
 0x5cc   :  { %10591 = vmatpush1.bf16.msra.mxu0 %v18843_v11  ;;  %v18905_v11 = vld [vmem:[#allocation2 + $0x1f04] ss:$112 sps:$4 sm:$0xff]  }
 0x5cd   :  { %10728 = vmatmul.mubr.bf16.vlgmr.msra.gmra.mrb[32].mxu1 %v19513_v9  ;;  %10592 = vmatprep.subr.bf16.mxu0 %v18851_v16  ;;  %v18861_v9 = vld [vmem:[#allocation2 + $0x18e0] ss:$112 sps:$4 sm:$0xff]  }
 0x5ce   :  { %10737 = vmatpush1.bf16.msra.mxu1 %v18840_v14  ;;  %10768 = vmatprep.mubr.bf16.mxu1 %v19520_v36  ;;  %v18864_v36 = vld [vmem:[#allocation2 + $0x11e8] ss:$112 sps:$4 sm:$0xff]   ;;  %v18902_v14 = vld [vmem:[#allocation2 + $0x172c] ss:$112 sps:$4 sm:$0xff]   ;;  %v18903_v16 = vld [vmem:[#allocation2 + $0x1f00] ss:$112 sps:$4 sm:$0xff]  }
 0x5cf   :  { %10738 = vmatprep.subr.bf16.mxu1 %v18848_v12  ;;  %v18900_v12 = vld [vmem:[#allocation2 + $0x1728] ss:$112 sps:$4 sm:$0xff]  }
 0x5d0   :  { %10593 = vmatpush1.bf16.msra.mxu0 %v18849_v17  ;;  %v18911_v17 = vld [vmem:[#allocation2 + $0x1fe4] ss:$112 sps:$4 sm:$0xff]  }
 0x5d1   :  { %10594 = vmatprep.subr.bf16.mxu0 %v18857_v22  ;;  %v18909_v22 = vld [vmem:[#allocation2 + $0x1fe0] ss:$112 sps:$4 sm:$0xff]  }
 0x5d2   :  { %10739 = vmatpush1.bf16.msra.mxu1 %v18846_v20  ;;  %v18908_v20 = vld [vmem:[#allocation2 + $0x180c] ss:$112 sps:$4 sm:$0xff]  }
 0x5d3   :  { %10740 = vmatprep.subr.bf16.mxu1 %v18854_v25  ;;  %v18906_v25 = vld [vmem:[#allocation2 + $0x1808] ss:$112 sps:$4 sm:$0xff]  }
 0x5d4   :  { %10595 = vmatpush1.bf16.msra.mxu0 %v18855_v26  ;;  %v18917_v26 = vld [vmem:[#allocation2 + $0x20c4] ss:$112 sps:$4 sm:$0xff]  }
 0x5d5   :  { %10596 = vmatprep.subr.bf16.mxu0 %v18863_v28  ;;  %v18915_v28 = vld [vmem:[#allocation2 + $0x20c0] ss:$112 sps:$4 sm:$0xff]  }
 0x5d6   :  { %10741 = vmatpush1.bf16.msra.mxu1 %v18852_v52  ;;  %v18914_v52 = vld [vmem:[#allocation2 + $0x18ec] ss:$112 sps:$4 sm:$0xff]  }
 0x5d7   :  { %10742 = vmatprep.subr.bf16.mxu1 %v18860_v35  ;;  %v18912_v35 = vld [vmem:[#allocation2 + $0x18e8] ss:$112 sps:$4 sm:$0xff]  }
 0x5d8   :  { %10597 = vmatpush1.bf16.msra.mxu0 %v18861_v9  ;;  %v18923_v9 = vld [vmem:[#allocation2 + $0x21a4] ss:$112 sps:$4 sm:$0xff]  }
 0x5d9   :  { %10598 = vmatprep.subr.bf16.mxu0 %v18869_v41  ;;  %v18921_v41 = vld [vmem:[#allocation2 + $0x21a0] ss:$112 sps:$4 sm:$0xff]  }
 0x5da   :  { %10743 = vmatpush1.bf16.msra.mxu1 %v18858_v37  ;;  %v18920_v37 = vld [vmem:[#allocation2 + $0x19cc] ss:$112 sps:$4 sm:$0xff]  }
 0x5db   :  { %10744 = vmatprep.subr.bf16.mxu1 %v18866_v43  ;;  %v18918_v43 = vld [vmem:[#allocation2 + $0x19c8] ss:$112 sps:$4 sm:$0xff]  }
 0x5dc   :  { %10599 = vmatpush1.bf16.msra.mxu0 %v18867_v45  ;;  %v18929_v45 = vld [vmem:[#allocation2 + $0x2284] ss:$112 sps:$4 sm:$0xff]  }
 0x5dd   :  { %10600 = vmatprep.subr.bf16.mxu0 %v18875_v27  ;;  %v18927_v27 = vld [vmem:[#allocation2 + $0x2280] ss:$112 sps:$4 sm:$0xff]  }
 0x5de   :  { %10745 = vmatpush1.bf16.msra.mxu1 %v18864_v36  ;;  %v18926_v36 = vld [vmem:[#allocation2 + $0x1aac] ss:$112 sps:$4 sm:$0xff]  }
 0x5df   :  { %10746 = vmatprep.subr.bf16.mxu1 %v18872_v46  ;;  %v18924_v46 = vld [vmem:[#allocation2 + $0x1aa8] ss:$112 sps:$4 sm:$0xff]  }
 0x5e0   :  { %10601 = vmatpush1.bf16.msra.mxu0 %v18873_v42  ;;  %v18935_v42 = vld [vmem:[#allocation2 + $0x2364] ss:$112 sps:$4 sm:$0xff]  }
 0x5e1   :  { %10602 = vmatprep.subr.bf16.mxu0 %v18881_v50  ;;  %v18933_v50 = vld [vmem:[#allocation2 + $0x2360] ss:$112 sps:$4 sm:$0xff]  }
 0x5e2   :  { %10747 = vmatpush1.bf16.msra.mxu1 %v18870_v38  ;;  %v18932_v38 = vld [vmem:[#allocation2 + $0x1b8c] ss:$112 sps:$4 sm:$0xff]  }
 0x5e3   :  { %10748 = vmatprep.subr.bf16.mxu1 %v18878_v56  ;;  %v18930_v56 = vld [vmem:[#allocation2 + $0x1b88] ss:$112 sps:$4 sm:$0xff]  }
 0x5e4   :  { %10603 = vmatpush1.bf16.msra.mxu0 %v18879_v51  ;;  %v18941_v51 = vld [vmem:[#allocation2 + $0x2444] ss:$112 sps:$4 sm:$0xff]  }
 0x5e5   :  { %10613 = vmatprep.subr.bf16.mxu0 %v18887_v61  ;;  %v18939_v61 = vld [vmem:[#allocation2 + $0x2440] ss:$112 sps:$4 sm:$0xff]  }
 0x5e6   :  { %10749 = vmatpush1.bf16.msra.mxu1 %v18876_v59  ;;  %v18938_v59 = vld [vmem:[#allocation2 + $0x1c6c] ss:$112 sps:$4 sm:$0xff]  }
 0x5e7   :  { %10750 = vmatprep.subr.bf16.mxu1 %v18884_v62  ;;  %10605 = vmatmul.mubr.bf16.vlgmr.msra.gmra.mrb[24].mxu0 %v19527_v18  ;;  %v18936_v62 = vld [vmem:[#allocation2 + $0x1c68] ss:$112 sps:$4 sm:$0xff]  }
 0x5e8   :  { %10614 = vmatpush1.bf16.msra.mxu0 %v18885_v63  ;;  %10645 = vmatprep.mubr.bf16.mxu0 %v19532_v24  ;;  %v18947_v63 = vld [vmem:[#allocation2 + $0x2524] ss:$112 sps:$4 sm:$0xff]  }
 0x5e9   :  { %10615 = vmatprep.subr.bf16.mxu0 %v18893_v2  ;;  %v18945_v2 = vld [vmem:[#allocation2 + $0x2520] ss:$112 sps:$4 sm:$0xff]  }
 0x5ea   :  { %10751 = vmatpush1.bf16.msra.mxu1 %v18882_v1  ;;  %v18944_v1 = vld [vmem:[#allocation2 + $0x1d4c] ss:$112 sps:$4 sm:$0xff]  }
 0x5eb   :  { %10752 = vmatprep.subr.bf16.mxu1 %v18890_v4  ;;  %v18942_v4 = vld [vmem:[#allocation2 + $0x1d48] ss:$112 sps:$4 sm:$0xff]  }
 0x5ec   :  { %10616 = vmatpush1.bf16.msra.mxu0 %v18891_v53  ;;  %v18953_v53 = vld [vmem:[#allocation2 + $0x2604] ss:$112 sps:$4 sm:$0xff]  }
 0x5ed   :  { %10617 = vmatprep.subr.bf16.mxu0 %v18899_v5  ;;  %v18951_v5 = vld [vmem:[#allocation2 + $0x2600] ss:$112 sps:$4 sm:$0xff]  }
 0x5ee   :  { %10753 = vmatpush1.bf16.msra.mxu1 %v18888_v44  ;;  %v18950_v44 = vld [vmem:[#allocation2 + $0x1e2c] ss:$112 sps:$4 sm:$0xff]  }
 0x5ef   :  { %10754 = vmatprep.subr.bf16.mxu1 %v18896_v6  ;;  %v18948_v6 = vld [vmem:[#allocation2 + $0x1e28] ss:$112 sps:$4 sm:$0xff]  }
 0x5f0   :  { %10618 = vmatpush1.bf16.msra.mxu0 %v18897_v8  ;;  %v18959_v8 = vld [vmem:[#allocation2 + $0x26e4] ss:$112 sps:$4 sm:$0xff]  }
 0x5f1   :  { %10619 = vmatprep.subr.bf16.mxu0 %v18905_v11  ;;  %v18954_v11 = vld [vmem:[#allocation2 + $0x1f08] ss:$112 sps:$4 sm:$0xff]  }
 0x5f2   :  { %10755 = vmatpush1.bf16.msra.mxu1 %v18894_v55  ;;  %v18956_v55 = vld [vmem:[#allocation2 + $0x1f0c] ss:$112 sps:$4 sm:$0xff]  }
 0x5f3   :  { %10756 = vmatprep.subr.bf16.mxu1 %v18902_v14  ;;  %v18965_v14 = vld [vmem:[#allocation2 + $0x27c4] ss:$112 sps:$4 sm:$0xff]  }
 0x5f4   :  { %10620 = vmatpush1.bf16.msra.mxu0 %v18903_v16  ;;  %v18962_v16 = vld [vmem:[#allocation2 + $0x1fec] ss:$112 sps:$4 sm:$0xff]  }
 0x5f5   :  { %10621 = vmatprep.subr.bf16.mxu0 %v18911_v17  ;;  %v18971_v17 = vld [vmem:[#allocation2 + $0x28a4] ss:$112 sps:$4 sm:$0xff]  }
 0x5f6   :  { %10757 = vmatpush1.bf16.msra.mxu1 %v18900_v12  ;;  %v18963_v12 = vld [vmem:[#allocation2 + $0x27c0] ss:$112 sps:$4 sm:$0xff]  }
 0x5f7   :  { %10758 = vmatprep.subr.bf16.mxu1 %v18908_v20  ;;  %v18968_v20 = vld [vmem:[#allocation2 + $0x20cc] ss:$112 sps:$4 sm:$0xff]  }
 0x5f8   :  { %10622 = vmatpush1.bf16.msra.mxu0 %v18909_v22  ;;  %v18969_v22 = vld [vmem:[#allocation2 + $0x28a0] ss:$112 sps:$4 sm:$0xff]  }
 0x5f9   :  { %10623 = vmatprep.subr.bf16.mxu0 %v18917_v26  ;;  %v18977_v26 = vld [vmem:[#allocation2 + $0x2984] ss:$112 sps:$4 sm:$0xff]  }
 0x5fa   :  { %10759 = vmatpush1.bf16.msra.mxu1 %v18906_v25  ;;  %v18966_v25 = vld [vmem:[#allocation2 + $0x20c8] ss:$112 sps:$4 sm:$0xff]  }
 0x5fb   :  { %10760 = vmatprep.subr.bf16.mxu1 %v18914_v52  ;;  %v18974_v52 = vld [vmem:[#allocation2 + $0x21ac] ss:$112 sps:$4 sm:$0xff]  }
 0x5fc   :  { %10624 = vmatpush1.bf16.msra.mxu0 %v18915_v28  ;;  %v18975_v28 = vld [vmem:[#allocation2 + $0x2980] ss:$112 sps:$4 sm:$0xff]  }
 0x5fd   :  { %10625 = vmatprep.subr.bf16.mxu0 %v18923_v9  ;;  %v18983_v9 = vld [vmem:[#allocation2 + $0x2a64] ss:$112 sps:$4 sm:$0xff]  }
 0x5fe   :  { %10761 = vmatpush1.bf16.msra.mxu1 %v18912_v35  ;;  %v18972_v35 = vld [vmem:[#allocation2 + $0x21a8] ss:$112 sps:$4 sm:$0xff]  }
 0x5ff   :  { %10762 = vmatprep.subr.bf16.mxu1 %v18920_v37  ;;  %v18980_v37 = vld [vmem:[#allocation2 + $0x228c] ss:$112 sps:$4 sm:$0xff]  }
 0x600   :  { %10626 = vmatpush1.bf16.msra.mxu0 %v18921_v41  ;;  %v10915_v41 = vld [vmem:[#allocation6] sm:$0xff] }
 0x601   :  { %10627 = vmatprep.subr.bf16.mxu0 %v18929_v45  ;;  %v18981_v45 = vld [vmem:[#allocation2 + $0x2a60] ss:$112 sps:$4 sm:$0xff]  }
 0x602   :  { %10763 = vmatpush1.bf16.msra.mxu1 %v18918_v43  ;;  %v10919_v43 = vld [vmem:[#allocation6 + $0x20] sm:$0xff] }
 0x603   :  { %10764 = vmatprep.subr.bf16.mxu1 %v18926_v36  ;;  %v18978_v36 = vld [vmem:[#allocation2 + $0x2288] ss:$112 sps:$4 sm:$0xff]  }
 0x604   :  { %10628 = vmatpush1.bf16.msra.mxu0 %v18927_v27  ;;  %v16124_v27 = vcombine.high %v10915_v41, %v10919_v43 }
 0x605   :  { %10629 = vmatprep.subr.bf16.mxu0 %v18935_v42  ;;  %v18984_v42 = vld [vmem:[#allocation2 + $0x2368] ss:$112 sps:$4 sm:$0xff]  }
 0x606   :  { %10765 = vmatpush1.bf16.msra.mxu1 %v18924_v46  ;;  %v18986_v46 = vld [vmem:[#allocation2 + $0x236c] ss:$112 sps:$4 sm:$0xff]  }
 0x607   :  { %10766 = vmatprep.subr.bf16.mxu1 %v18932_v38  ;;  %v18989_v38 = vld [vmem:[#allocation2 + $0x244c] ss:$112 sps:$4 sm:$0xff]  }
 0x608   :  { %10630 = vmatpush1.bf16.msra.mxu0 %v18933_v50  ;;  %v18987_v50 = vld [vmem:[#allocation2 + $0x2448] ss:$112 sps:$4 sm:$0xff]  }
 0x609   :  { %10631 = vmatprep.subr.bf16.mxu0 %v18941_v51  ;;  %v10923_v51 = vld [vmem:[#allocation6 + $0x40] sm:$0xff] }
 0x60a   :  { %10767 = vmatpush1.bf16.msra.mxu1 %v18930_v56  ;;  %v18992_v56 = vld [vmem:[#allocation2 + $0x252c] ss:$112 sps:$4 sm:$0xff]  }
 0x60b   :  { %10777 = vmatprep.subr.bf16.mxu1 %v18938_v59  ;;  %v10927_v59 = vld [vmem:[#allocation6 + $0x60] sm:$0xff] }
 0x60c   :  { %10632 = vmatpush1.bf16.msra.mxu0 %v18939_v61  ;;  %v16123_v61 = vcombine.low %v10915_v41, %v10919_v43  ;;  %v18999_v41 = vld [vmem:[#allocation2 + $0x27c8] ss:$112 sps:$4 sm:$0xff]  }
 0x60d   :  { %10769 = vmatmul.mubr.bf16.vlgmr.msra.gmra.mrb[32].mxu1 %v19527_v18  ;;  %10633 = vmatprep.subr.bf16.mxu0 %v18947_v63  ;;  %v18957_v18 = vld [vmem:[#allocation2 + $0x26e0] ss:$112 sps:$4 sm:$0xff]   ;;  %v16132_v63 = vcombine.high %v10923_v51, %v10927_v59 }
 0x60e   :  { %10778 = vmatpush1.bf16.msra.mxu1 %v18936_v62  ;;  %10809 = vmatprep.mubr.bf16.mxu1 %v19532_v24  ;;  %v18960_v24 = vld [vmem:[#allocation2 + $0x1fe8] ss:$112 sps:$4 sm:$0xff]  }
 0x60f   :  { %10779 = vmatprep.subr.bf16.mxu1 %v18944_v1  ;;  %v18990_v62 = vld [vmem:[#allocation2 + $0x2528] ss:$112 sps:$4 sm:$0xff]   ;;  %v18995_v1 = vld [vmem:[#allocation2 + $0x260c] ss:$112 sps:$4 sm:$0xff]  }
 0x610   :  { %10634 = vmatpush1.bf16.msra.mxu0 %v18945_v2  ;;  %v10931_v2 = vld [vmem:[#allocation6 + $0x80] sm:$0xff] }
 0x611   :  { %10635 = vmatprep.subr.bf16.mxu0 %v18953_v53  ;;  %v16131_v53 = vcombine.low %v10923_v51, %v10927_v59 }
 0x612   :  { %10780 = vmatpush1.bf16.msra.mxu1 %v18942_v4  ;;  %v10935_v4 = vld [vmem:[#allocation6 + $0xa0] sm:$0xff] }
 0x613   :  { %10781 = vmatprep.subr.bf16.mxu1 %v18950_v44  ;;  %v18993_v44 = vld [vmem:[#allocation2 + $0x2608] ss:$112 sps:$4 sm:$0xff]  }
 0x614   :  { %10636 = vmatpush1.bf16.msra.mxu0 %v18951_v5  ;;  %v16140_v5 = vcombine.high %v10931_v2, %v10935_v4 }
 0x615   :  { %10637 = vmatprep.subr.bf16.mxu0 %v18959_v8 }
 0x616   :  { %10782 = vmatpush1.bf16.msra.mxu1 %v18948_v6  ;;  %v19769_v6 = vld [vmem:[#allocation4 + $0x8] sm:$0xff] }
 0x617   :  { %10783 = vmatprep.subr.bf16.mxu1 %v18956_v55  ;;  %v1618_v8 = vrot.slane %v19769_v6, %v19705_v7  ;;  %v18998_v55 = vld [vmem:[#allocation2 + $0x26ec] ss:$112 sps:$4 sm:$0xff]  }
 0x618   :  { %10638 = vmatpush1.bf16.msra.mxu0 %v18957_v18  ;;  %v10939_v18 = vld [vmem:[#allocation6 + $0xc0] sm:$0xff] }
 0x619   :  { %10639 = vmatprep.subr.bf16.mxu0 %v18965_v14  ;;  %v19773_v14 = vld [vmem:[#allocation4 + $0x10] sm:$0xff] }
 0x61a   :  { %10784 = vmatpush1.bf16.msra.mxu1 %v18954_v11  ;;  %v10943_v11 = vld [vmem:[#allocation6 + $0xe0] sm:$0xff] }
 0x61b   :  { %10785 = vmatprep.subr.bf16.mxu1 %v18962_v16  ;;  %v16139_v16 = vcombine.low %v10931_v2, %v10935_v4  ;;  %v19005_v2 = vld [vmem:[#allocation2 + $0x2988] ss:$112 sps:$4 sm:$0xff]  }
 0x61c   :  { %10640 = vmatpush1.bf16.msra.mxu0 %v18963_v12  ;;  %v1646_v12 = vrot.slane %v19773_v14, %v19612_v33 }
 0x61d   :  { %10641 = vmatprep.subr.bf16.mxu0 %v18971_v17  ;;  %v16148_v17 = vcombine.high %v10939_v18, %v10943_v11 }
 0x61e   :  { %10786 = vmatpush1.bf16.msra.mxu1 %v18960_v24  ;;  %v18996_v24 = vld [vmem:[#allocation2 + $0x26e8] ss:$112 sps:$4 sm:$0xff]  }
 0x61f   :  { %10787 = vmatprep.subr.bf16.mxu1 %v18968_v20  ;;  %v16704_v20 = vadd.f32 %v19727_v34, %v1618_v8  ;;  %v19004_v34 = vld [vmem:[#allocation2 + $0x28ac] ss:$112 sps:$4 sm:$0xff]   ;;  %v10916_v8 = vld [vmem:[#allocation6 + $0x8] sm:$0xff] }
 0x620   :  { %10642 = vmatpush1.bf16.msra.mxu0 %v18969_v22 }
 0x621   :  { %10643 = vmatprep.subr.bf16.mxu0 %v18977_v26  ;;  %v10947_v26 = vld [vmem:[#allocation6 + $0x100] sm:$0xff] }
 0x622   :  { %10788 = vmatpush1.bf16.msra.mxu1 %v18966_v25  ;;  %v19001_v25 = vld [vmem:[#allocation2 + $0x27cc] ss:$112 sps:$4 sm:$0xff]  }
 0x623   :  { %10789 = vmatprep.subr.bf16.mxu1 %v18974_v52  ;;  %v10951_v52 = vld [vmem:[#allocation6 + $0x120] sm:$0xff] }
 0x624   :  { %10644 = vmatpush1.bf16.msra.mxu0 %v18975_v28 }
 0x625   :  { %10654 = vmatprep.subr.bf16.mxu0 %v18983_v9 }
 0x626   :  { %10790 = vmatpush1.bf16.msra.mxu1 %v18972_v35 }
 0x627   :  { %10791 = vmatprep.subr.bf16.mxu1 %v18980_v37  ;;  %10646 = vmatmul.mubr.bf16.vlgmr.msra.gmra.mrb[24].mxu0 %v19541_v29  ;;  %v16147_v37 = vcombine.low %v10939_v18, %v10943_v11  ;;  %v19008_v11 = vld [vmem:[#allocation2 + $0x2a68] ss:$112 sps:$4 sm:$0xff]  }
 0x628   :  { %10655 = vmatpush1.bf16.msra.mxu0 %v18981_v45  ;;  %10686 = vmatprep.mubr.bf16.mxu0 %v19303_v0  ;;  %v16156_v45 = vcombine.high %v10947_v26, %v10951_v52 }
 0x629   :  { %13645 = vmatprep.subr.bf16.mxu0 %v16124_v27 }
 0x62a   :  { %10792 = vmatpush1.bf16.msra.mxu1 %v18978_v36  ;;  %v10873_v36 = vmax.f32 %v16704_v20, 0.0 }
 0x62b   :  { %10793 = vmatprep.subr.bf16.mxu1 %v18986_v46  ;;  %v10955_v46 = vld [vmem:[#allocation6 + $0x140] sm:$0xff] }
 0x62e   :  { %10794 = vmatpush1.bf16.msra.mxu1 %v18984_v42  ;;  %v10959_v42 = vld [vmem:[#allocation6 + $0x160] sm:$0xff] }
 0x62f   :  { %10795 = vmatprep.subr.bf16.mxu1 %v18989_v38  ;;  %v16164_v51 = vcombine.high %v10955_v46, %v10959_v42 }
 0x632   :  { %10796 = vmatpush1.bf16.msra.mxu1 %v18987_v50  ;;  %v16155_v50 = vcombine.low %v10947_v26, %v10951_v52  ;;  %v10991_v26 = vld [vmem:[#allocation6 + $0x260] sm:$0xff] }
 0x633   :  { %10797 = vmatprep.subr.bf16.mxu1 %v18992_v56  ;;  %16121 = vmatmul.mubr.msk.bf16.vlgmr.msra.gmra.mrb[24].mxu0 %vm8559_vm0, %v19499_v10  ;;  %v19002_v56 = vld [vmem:[#allocation2 + $0x28a8] ss:$112 sps:$4 sm:$0xff]  }
 0x634   :  { %13646 = vmatpush1.bf16.msra.mxu0 %v16123_v61  ;;  %v19007_v61 = vld [vmem:[#allocation2 + $0x298c] ss:$112 sps:$4 sm:$0xff]  }
 0x635   :  { %13647 = vmatprep.subr.bf16.mxu0 %v16132_v63  ;;  %v10967_v63 = vld [vmem:[#allocation6 + $0x1a0] sm:$0xff] }
 0x636   :  { %10798 = vmatpush1.bf16.msra.mxu1 %v18990_v62  ;;  %v10963_v62 = vld [vmem:[#allocation6 + $0x180] sm:$0xff] }
 0x637   :  { %10799 = vmatprep.subr.bf16.mxu1 %v18995_v1  ;;  %v16163_v1 = vcombine.low %v10955_v46, %v10959_v42  ;;  %v16172_v4 = vcombine.high %v10963_v62, %v10967_v63  ;;  %v16171_v18 = vcombine.low %v10963_v62, %v10967_v63  ;;  %v10932_v46 = vld [vmem:[#allocation6 + $0x88] sm:$0xff]  ;;  %v11011_v62 = vld [vmem:[#allocation6 + $0x300] sm:$0xff] }
 0x638   :  { %13648 = vmatpush1.bf16.msra.mxu0 %v16131_v53  ;;  %v10971_v53 = vld [vmem:[#allocation6 + $0x1c0] sm:$0xff]  ;;  %v10936_v42 = vld [vmem:[#allocation6 + $0xa8] sm:$0xff] }
 0x639   :  { %13649 = vmatprep.subr.bf16.mxu0 %v16140_v5  ;;  %v19010_v5 = vld [vmem:[#allocation2 + $0x2a6c] ss:$112 sps:$4 sm:$0xff]  }
 0x63a   :  { %10800 = vmatpush1.bf16.msra.mxu1 %v18993_v44  ;;  %v19778_v22 = vpop.f32.mrb[20].mxu0  ;;  %v10975_v44 = vld [vmem:[#allocation6 + $0x1e0] sm:$0xff] }
 0x63b   :  { %10801 = vmatprep.subr.bf16.mxu1 %v18998_v55  ;;  %v10362_v28 = vpop.f32.mrb[21].mxu0  ;;  %v10920_v55 = vld [vmem:[#allocation6 + $0x28] sm:$0xff]  ;;  %v11015_v63 = vld [vmem:[#allocation6 + $0x320] sm:$0xff] }
 0x63c   :  { %13650 = vmatpush1.bf16.msra.mxu0 %v16139_v16  ;;  %v16711_v35 = vadd.f32 %v10362_v28, %v1646_v12  ;;  %v10364_v9 = vpop.f32.mrb[22].mxu0  ;;  %v10979_v16 = vld [vmem:[#allocation6 + $0x200] sm:$0xff] }
 0x63d   :  { %v10365_v43 = vpop.f32.mrb[23].mxu0  ;;  %13651 = vmatprep.subr.bf16.mxu0 %v16148_v17  ;;  %v10983_v12 = vld [vmem:[#allocation6 + $0x220] sm:$0xff]  ;;  %v16179_v17 = vcombine.low %v10971_v53, %v10975_v44 }
 0x63e   :  { %10802 = vmatpush1.bf16.msra.mxu1 %v18996_v24  ;;  %v10880_v27 = vmax.f32 %v16711_v35, 0.0  ;;  %v16126_v24 = vcombine.high %v10916_v8, %v10920_v55  ;;  %v16188_v20 = vcombine.high %v10979_v16, %v10983_v12  ;;  %v16187_v52 = vcombine.low %v10979_v16, %v10983_v12  ;;  %v10995_v35 = vld [vmem:[#allocation6 + $0x280] sm:$0xff]  ;;  %v10948_v12 = vld [vmem:[#allocation6 + $0x108] sm:$0xff] }
 0x63f   :  { %10803 = vmatprep.subr.bf16.mxu1 %v19001_v25  ;;  %v10987_v25 = vld [vmem:[#allocation6 + $0x240] sm:$0xff]  ;;  %v16125_v43 = vcombine.low %v10916_v8, %v10920_v55 }
 0x640   :  { %v10894_v38 = vmax.f32 %v10873_v36, %v10880_v27  ;;  %13652 = vmatpush1.bf16.msra.mxu0 %v16147_v37  ;;  %v16196_v28 = vcombine.high %v10987_v25, %v10991_v26  ;;  %v10999_v9 = vld [vmem:[#allocation6 + $0x2a0] sm:$0xff]  ;;  %v10924_v37 = vld [vmem:[#allocation6 + $0x48] sm:$0xff] }
 0x641   :  { %13653 = vmatprep.subr.bf16.mxu0 %v16156_v45  ;;  %v16204_v45 = vcombine.high %v10995_v35, %v10999_v9  ;;  %v11003_v27 = vld [vmem:[#allocation6 + $0x2c0] sm:$0xff] }
 0x642   :  { %10804 = vmatpush1.bf16.msra.mxu1 %v18999_v41  ;;  %v19781_v59 = vmax.f32 %v19640_v58, %v10894_v38  ;;  %v16180_v58 = vcombine.high %v10971_v53, %v10975_v44  ;;  %v10928_v41 = vld [vmem:[#allocation6 + $0x68] sm:$0xff]  ;;  %v16203_v38 = vcombine.low %v10995_v35, %v10999_v9  ;;  %v16141_v44 = vcombine.low %v10932_v46, %v10936_v42 }
 0x643   :  { %10805 = vmatprep.subr.bf16.mxu1 %v19004_v34  ;;  %v16134_v36 = vcombine.high %v10924_v37, %v10928_v41  ;;  %v11007_v34 = vld [vmem:[#allocation6 + $0x2e0] sm:$0xff] }
 0x644   :  { %13654 = vmatpush1.bf16.msra.mxu0 %v16155_v50  ;;  %v16133_v50 = vcombine.low %v10924_v37, %v10928_v41  ;;  %v16211_v53 = vcombine.low %v11003_v27, %v11007_v34 }
 0x645   :  { %13655 = vmatprep.subr.bf16.mxu0 %v16164_v51  ;;  %v1622_v51 = vrot.slane %v19769_v6, %v19632_v30  ;;  %v16220_v6 = vcombine.high %v11011_v62, %v11015_v63 }
 0x646   :  { %10806 = vmatpush1.bf16.msra.mxu1 %v19002_v56  ;;  %v16212_v56 = vcombine.high %v11003_v27, %v11007_v34  ;;  %v10960_v27 = vld [vmem:[#allocation6 + $0x168] sm:$0xff] }
 0x647   :  { %10807 = vmatprep.subr.bf16.mxu1 %v19007_v61  ;;  %v16142_v61 = vcombine.high %v10932_v46, %v10936_v42  ;;  %v16705_v8 = vadd.f32 %v19729_v32, %v1622_v51 }
 0x648   :  { %13656 = vmatpush1.bf16.msra.mxu0 %v16163_v1  ;;  %v1626_v1 = vrot.slane %v19773_v14, %v19570_v19 }
 0x649   :  { %13657 = vmatprep.subr.bf16.mxu0 %v16172_v4  ;;  %v10944_v4 = vld [vmem:[#allocation6 + $0xe8] sm:$0xff]  ;;  %v10874_v32 = vmax.f32 %v16705_v8, 0.0 }
 0x64a   :  { %10808 = vmatpush1.bf16.msra.mxu1 %v19005_v2  ;;  %v10940_v2 = vld [vmem:[#allocation6 + $0xc8] sm:$0xff] }
 0x64b   :  { %10818 = vmatprep.subr.bf16.mxu1 %v19010_v5  ;;  %v1654_v5 = vrot.slane %v19773_v14, %v19632_v30  ;;  %v16150_v55 = vcombine.high %v10940_v2, %v10944_v4  ;;  %v10976_v8 = vld [vmem:[#allocation6 + $0x1e8] sm:$0xff] }
 0x64c   :  { %13658 = vmatpush1.bf16.msra.mxu0 %v16171_v18  ;;  %v11019_v18 = vld [vmem:[#allocation6 + $0x340] sm:$0xff] }
 0x64d   :  { %10810 = vmatmul.mubr.bf16.vlgmr.msra.gmra.mrb[32].mxu1 %v19541_v29  ;;  %13659 = vmatprep.subr.bf16.mxu0 %v16180_v58  ;;  %v16195_v29 = vcombine.low %v10987_v25, %v10991_v26  ;;  %v11023_v58 = vld [vmem:[#allocation6 + $0x360] sm:$0xff]  ;;  %v16219_v25 = vcombine.low %v11011_v62, %v11015_v63 }
 0x64e   :  { %10819 = vmatpush1.bf16.msra.mxu1 %v19008_v11  ;;  %10850 = vmatprep.mubr.bf16.mxu1 %v19303_v0  ;;  %v16706_v11 = vadd.f32 %v19744_v48, %v1626_v1  ;;  %v16228_v35 = vcombine.high %v11019_v18, %v11023_v58  ;;  %v11031_v48 = vld [vmem:[#allocation6 + $0x3a0] sm:$0xff]  ;;  %v16227_v46 = vcombine.low %v11019_v18, %v11023_v58  ;;  %v10964_v1 = vld [vmem:[#allocation6 + $0x188] sm:$0xff] }
 0x64f   :  { %13809 = vmatprep.subr.bf16.mxu1 %v16126_v24  ;;  %v10952_v24 = vld [vmem:[#allocation6 + $0x128] sm:$0xff]  ;;  %v11039_v62 = vld [vmem:[#allocation6 + $0x3e0] sm:$0xff] }
 0x650   :  { %13660 = vmatpush1.bf16.msra.mxu0 %v16179_v17  ;;  %v16158_v41 = vcombine.high %v10948_v12, %v10952_v24 }
 0x651   :  { %13661 = vmatprep.subr.bf16.mxu0 %v16188_v20 }
 0x654   :  { %13662 = vmatpush1.bf16.msra.mxu0 %v16187_v52 }
 0x655   :  { %13663 = vmatprep.subr.bf16.mxu0 %v16196_v28  ;;  %v16149_v28 = vcombine.low %v10940_v2, %v10944_v4  ;;  %v10968_v2 = vld [vmem:[#allocation6 + $0x1a8] sm:$0xff] }
 0x656   :  { %v16173_v18 = vcombine.low %v10964_v1, %v10968_v2 }
 0x658   :  { %13664 = vmatpush1.bf16.msra.mxu0 %v16195_v29  ;;  %v11027_v29 = vld [vmem:[#allocation6 + $0x380] sm:$0xff] }
 0x659   :  { %16122 = vmatmul.mubr.msk.bf16.vlgmr.msra.gmra.mrb[32].mxu1 %vm8559_vm0, %v19499_v10  ;;  %13665 = vmatprep.subr.bf16.mxu0 %v16204_v45  ;;  %v1650_v10 = vrot.slane %v19773_v14, %v19705_v7 }
 0x65a   :  { %13810 = vmatpush1.bf16.msra.mxu1 %v16125_v43  ;;  %v10875_v43 = vmax.f32 %v16706_v11, 0.0 }
 0x65b   :  { %13811 = vmatprep.subr.bf16.mxu1 %v16134_v36  ;;  %v10956_v36 = vld [vmem:[#allocation6 + $0x148] sm:$0xff] }
 0x65c   :  { %13666 = vmatpush1.bf16.msra.mxu0 %v16203_v38  ;;  %v16157_v38 = vcombine.low %v10948_v12, %v10952_v24  ;;  %v16166_v51 = vcombine.high %v10956_v36, %v10960_v27  ;;  %v11055_v12 = vld [vmem:[#allocation6 + $0x460] sm:$0xff]  ;;  %v10980_v24 = vld [vmem:[#allocation6 + $0x208] sm:$0xff] }
 0x65d   :  { %13667 = vmatprep.subr.bf16.mxu0 %v16212_v56 }
 0x65e   :  { %13812 = vmatpush1.bf16.msra.mxu1 %v16133_v50  ;;  %v16236_v50 = vcombine.high %v11027_v29, %v11031_v48 }
 0x65f   :  { %13813 = vmatprep.subr.bf16.mxu1 %v16142_v61  ;;  %v11035_v61 = vld [vmem:[#allocation6 + $0x3c0] sm:$0xff] }
 0x660   :  { %v10524_v16 = vpop.f32.mrb[28].mxu1  ;;  %13668 = vmatpush1.bf16.msra.mxu0 %v16211_v53  ;;  %v16165_v53 = vcombine.low %v10956_v36, %v10960_v27  ;;  %v10996_v36 = vld [vmem:[#allocation6 + $0x288] sm:$0xff] }
 0x661   :  { %v16712_v17 = vadd.f32 %v10524_v16, %v1650_v10  ;;  %v10526_v20 = vpop.f32.mrb[29].mxu1  ;;  %13669 = vmatprep.subr.bf16.mxu0 %v16220_v6  ;;  %v16235_v10 = vcombine.low %v11027_v29, %v11031_v48  ;;  %v11047_v6 = vld [vmem:[#allocation6 + $0x420] sm:$0xff]  ;;  %v11000_v27 = vld [vmem:[#allocation6 + $0x2a8] sm:$0xff] }
 0x662   :  { %13814 = vmatpush1.bf16.msra.mxu1 %v16141_v44  ;;  %v16713_v26 = vadd.f32 %v10526_v20, %v1654_v5  ;;  %v10528_v52 = vpop.f32.mrb[30].mxu1  ;;  %v16244_v44 = vcombine.high %v11035_v61, %v11039_v62  ;;  %v11043_v5 = vld [vmem:[#allocation6 + $0x400] sm:$0xff] }
 0x663   :  { %v10881_v9 = vmax.f32 %v16712_v17, 0.0  ;;  %v10529_v37 = vpop.f32.mrb[31].mxu1  ;;  %13815 = vmatprep.subr.bf16.mxu1 %v16150_v55  ;;  %v16243_v55 = vcombine.low %v11035_v61, %v11039_v62  ;;  %v16252_v58 = vcombine.high %v11043_v5, %v11047_v6  ;;  %v11051_v16 = vld [vmem:[#allocation6 + $0x440] sm:$0xff]  ;;  %v10984_v17 = vld [vmem:[#allocation6 + $0x228] sm:$0xff]  ;;  %v16251_v20 = vcombine.low %v11043_v5, %v11047_v6 }
 0x664   :  { %v10882_v45 = vmax.f32 %v16713_v26, 0.0  ;;  %13670 = vmatpush1.bf16.msra.mxu0 %v16219_v25  ;;  %v19807_v25 = vpack.c.bf16 %v19781_v59, %v19781_v59  ;;  %v16260_v52 = vcombine.high %v11051_v16, %v11055_v12  ;;  %v10992_v37 = vld [vmem:[#allocation6 + $0x268] sm:$0xff]  ;;  %v16189_v29 = vcombine.low %v10980_v24, %v10984_v17 }
 0x665   :  { %v10895_v34 = vmax.f32 %v10874_v32, %v10881_v9  ;;  %13671 = vmatprep.subr.bf16.mxu0 %v16228_v35  ;;  %v11059_v35 = vld [vmem:[#allocation6 + $0x480] sm:$0xff]  ;;  %v10988_v9 = vld [vmem:[#allocation6 + $0x248] sm:$0xff] }
 0x666   :  { %v10896_v42 = vmax.f32 %v10875_v43, %v10882_v45  ;;  %13816 = vmatpush1.bf16.msra.mxu1 %v16149_v28  ;;  %v16190_v28 = vcombine.high %v10980_v24, %v10984_v17  ;;  %v11063_v32 = vld [vmem:[#allocation6 + $0x4a0] sm:$0xff]  ;;  %v16198_v59 = vcombine.high %v10988_v9, %v10992_v37  ;;  %v11008_v61 = vld [vmem:[#allocation6 + $0x2e8] sm:$0xff] }
 0x667   :  { %v10902_v56 = vmax.f32 %v19670_v40, %v10895_v34  ;;  %13817 = vmatprep.subr.bf16.mxu1 %v16158_v41  ;;  %v16174_v40 = vcombine.high %v10964_v1, %v10968_v2  ;;  %v16259_v41 = vcombine.low %v11051_v16, %v11055_v12  ;;  %v16268_v48 = vcombine.high %v11059_v35, %v11063_v32  ;;  %v11067_v43 = vld [vmem:[#allocation6 + $0x4c0] sm:$0xff]  ;;  %v11016_v5 = vld [vmem:[#allocation6 + $0x328] sm:$0xff] }
 0x668   :  { %v19799_v63 = vmax.f32 %v19672_v3, %v10896_v42  ;;  %13672 = vmatpush1.bf16.msra.mxu0 %v16227_v46  ;;  %v10972_v3 = vld [vmem:[#allocation6 + $0x1c8] sm:$0xff]  ;;  %v11071_v45 = vld [vmem:[#allocation6 + $0x4e0] sm:$0xff]  ;;  %v16267_v34 = vcombine.low %v11059_v35, %v11063_v32  ;;  %v16197_v46 = vcombine.low %v10988_v9, %v10992_v37  ;;  %v16205_v1 = vcombine.low %v10996_v36, %v11000_v27 }
 0x669   :  { %v19801_v4 = vpack.c.bf16 %v10902_v56, %v10902_v56  ;;  %13673 = vmatprep.subr.bf16.mxu0 %v16236_v50  ;;  %v16182_v11 = vcombine.high %v10972_v3, %v10976_v8  ;;  %v16181_v26 = vcombine.low %v10972_v3, %v10976_v8  ;;  %v16276_v42 = vcombine.high %v11067_v43, %v11071_v45  ;;  %v11075_v50 = vld [vmem:[#allocation6 + $0x500] sm:$0xff]  ;;  %v11024_v16 = vld [vmem:[#allocation6 + $0x368] sm:$0xff] }
 0x66a   :  { %13818 = vmatpush1.bf16.msra.mxu1 %v16157_v38  ;;  %v16206_v38 = vcombine.high %v10996_v36, %v11000_v27  ;;  %v11079_v56 = vld [vmem:[#allocation6 + $0x520] sm:$0xff]  ;;  %v16275_v62 = vcombine.low %v11067_v43, %v11071_v45  ;;  %v11032_v35 = vld [vmem:[#allocation6 + $0x3a8] sm:$0xff] }
 0x66b   :  { %13677 = vmatprep.mubr.bf16.mxu0 %v19801_v4  ;;  %13819 = vmatprep.subr.bf16.mxu1 %v16166_v51  ;;  %v11004_v51 = vld [vmem:[#allocation6 + $0x2c8] sm:$0xff]  ;;  %v16284_v2 = vcombine.high %v11075_v50, %v11079_v56  ;;  %v16283_v6 = vcombine.low %v11075_v50, %v11079_v56 }
 0x66c   :  { %13841 = vmatprep.mubr.bf16.mxu1 %v19801_v4  ;;  %13674 = vmatpush1.bf16.msra.mxu0 %v16235_v10  ;;  %v16214_v10 = vcombine.high %v11004_v51, %v11008_v61  ;;  %v16213_v3 = vcombine.low %v11004_v51, %v11008_v61  ;;  %v11040_v43 = vld [vmem:[#allocation6 + $0x3e8] sm:$0xff] }
 0x66d   :  { %13675 = vmatprep.subr.bf16.mxu0 %v16244_v44  ;;  %v11087_v44 = vld [vmem:[#allocation6 + $0x560] sm:$0xff]  ;;  %v11048_v50 = vld [vmem:[#allocation6 + $0x428] sm:$0xff] }
 0x66e   :  { %13820 = vmatpush1.bf16.msra.mxu1 %v16165_v53  ;;  %v11083_v53 = vld [vmem:[#allocation6 + $0x540] sm:$0xff] }
 0x66f   :  { %13821 = vmatprep.subr.bf16.mxu1 %v16174_v40  ;;  %v11012_v40 = vld [vmem:[#allocation6 + $0x308] sm:$0xff]  ;;  %v16292_v8 = vcombine.high %v11083_v53, %v11087_v44  ;;  %v16291_v12 = vcombine.low %v11083_v53, %v11087_v44  ;;  %v11127_v53 = vld [vmem:[#allocation6 + $0x6a0] sm:$0xff] }
 0x670   :  { %13676 = vmatpush1.bf16.msra.mxu0 %v16243_v55  ;;  %v16222_v55 = vcombine.high %v11012_v40, %v11016_v5  ;;  %v16221_v24 = vcombine.low %v11012_v40, %v11016_v5  ;;  %v11052_v40 = vld [vmem:[#allocation6 + $0x448] sm:$0xff] }
 0x671   :  { %13686 = vmatprep.subr.bf16.mxu0 %v16252_v58  ;;  %v11095_v58 = vld [vmem:[#allocation6 + $0x5a0] sm:$0xff]  ;;  %v11056_v5 = vld [vmem:[#allocation6 + $0x468] sm:$0xff] }
 0x672   :  { %13822 = vmatpush1.bf16.msra.mxu1 %v16173_v18  ;;  %v11091_v18 = vld [vmem:[#allocation6 + $0x580] sm:$0xff] }
 0x673   :  { %13823 = vmatprep.subr.bf16.mxu1 %v16182_v11  ;;  %13678 = vmatmul.mubr.bf16.vlgmr.msra.gmra.mrb[28].mxu0 %v19807_v25  ;;  %v11020_v11 = vld [vmem:[#allocation6 + $0x348] sm:$0xff]  ;;  %v16300_v17 = vcombine.high %v11091_v18, %v11095_v58  ;;  %v16299_v32 = vcombine.low %v11091_v18, %v11095_v58  ;;  %v11131_v18 = vld [vmem:[#allocation6 + $0x6c0] sm:$0xff] }
 0x674   :  { %13687 = vmatpush1.bf16.msra.mxu0 %v16251_v20  ;;  %v16230_v20 = vcombine.high %v11020_v11, %v11024_v16  ;;  %v16229_v9 = vcombine.low %v11020_v11, %v11024_v16  ;;  %v11135_v58 = vld [vmem:[#allocation6 + $0x6e0] sm:$0xff]  ;;  %v11060_v11 = vld [vmem:[#allocation6 + $0x488] sm:$0xff] }
 0x675   :  { %13688 = vmatprep.subr.bf16.mxu0 %v16260_v52  ;;  %v11103_v52 = vld [vmem:[#allocation6 + $0x5e0] sm:$0xff]  ;;  %v11064_v16 = vld [vmem:[#allocation6 + $0x4a8] sm:$0xff] }
 0x676   :  { %13824 = vmatpush1.bf16.msra.mxu1 %v16181_v26  ;;  %v11099_v26 = vld [vmem:[#allocation6 + $0x5c0] sm:$0xff] }
 0x677   :  { %13825 = vmatprep.subr.bf16.mxu1 %v16190_v28  ;;  %v11028_v28 = vld [vmem:[#allocation6 + $0x388] sm:$0xff]  ;;  %v16308_v37 = vcombine.high %v11099_v26, %v11103_v52  ;;  %v16307_v45 = vcombine.low %v11099_v26, %v11103_v52  ;;  %v11139_v26 = vld [vmem:[#allocation6 + $0x700] sm:$0xff] }
 0x678   :  { %13689 = vmatpush1.bf16.msra.mxu0 %v16259_v41  ;;  %v16238_v41 = vcombine.high %v11028_v28, %v11032_v35  ;;  %v16237_v36 = vcombine.low %v11028_v28, %v11032_v35  ;;  %v11143_v52 = vld [vmem:[#allocation6 + $0x720] sm:$0xff]  ;;  %v11068_v28 = vld [vmem:[#allocation6 + $0x4c8] sm:$0xff] }
 0x679   :  { %13690 = vmatprep.subr.bf16.mxu0 %v16268_v48  ;;  %v11111_v48 = vld [vmem:[#allocation6 + $0x620] sm:$0xff]  ;;  %v11072_v35 = vld [vmem:[#allocation6 + $0x4e8] sm:$0xff] }
 0x67a   :  { %13826 = vmatpush1.bf16.msra.mxu1 %v16189_v29  ;;  %v11107_v29 = vld [vmem:[#allocation6 + $0x600] sm:$0xff] }
 0x67b   :  { %13827 = vmatprep.subr.bf16.mxu1 %v16198_v59  ;;  %v11036_v59 = vld [vmem:[#allocation6 + $0x3c8] sm:$0xff]  ;;  %v16316_v27 = vcombine.high %v11107_v29, %v11111_v48  ;;  %v16315_v56 = vcombine.low %v11107_v29, %v11111_v48  ;;  %v11147_v29 = vld [vmem:[#allocation6 + $0x740] sm:$0xff] }
 0x67c   :  { %13691 = vmatpush1.bf16.msra.mxu0 %v16267_v34  ;;  %v16246_v34 = vcombine.high %v11036_v59, %v11040_v43  ;;  %v16245_v51 = vcombine.low %v11036_v59, %v11040_v43  ;;  %v11151_v48 = vld [vmem:[#allocation6 + $0x760] sm:$0xff]  ;;  %v11076_v59 = vld [vmem:[#allocation6 + $0x508] sm:$0xff] }
 0x67d   :  { %13692 = vmatprep.subr.bf16.mxu0 %v16276_v42  ;;  %v11119_v42 = vld [vmem:[#allocation6 + $0x660] sm:$0xff]  ;;  %v11080_v43 = vld [vmem:[#allocation6 + $0x528] sm:$0xff] }
 0x67e   :  { %13828 = vmatpush1.bf16.msra.mxu1 %v16197_v46  ;;  %v11115_v46 = vld [vmem:[#allocation6 + $0x640] sm:$0xff] }
 0x67f   :  { %13829 = vmatprep.subr.bf16.mxu1 %v16206_v38  ;;  %v11044_v38 = vld [vmem:[#allocation6 + $0x408] sm:$0xff]  ;;  %v16324_v61 = vcombine.high %v11115_v46, %v11119_v42 }
 0x680   :  { %13693 = vmatpush1.bf16.msra.mxu0 %v16275_v62  ;;  %v19810_v62 = vld [vmem:[#allocation6 + $0x800] sm:$0xff] }
 0x681   :  { %13694 = vmatprep.subr.bf16.mxu0 %v16284_v2  ;;  %v16254_v2 = vcombine.high %v11044_v38, %v11048_v50 }
 0x682   :  { %13830 = vmatpush1.bf16.msra.mxu1 %v16205_v1  ;;  %v19812_v1 = vld [vmem:[#allocation6 + $0x820] sm:$0xff] }
 0x683   :  { %13831 = vmatprep.subr.bf16.mxu1 %v16214_v10  ;;  %v11123_v10 = vld [vmem:[#allocation6 + $0x680] sm:$0xff]  ;;  %v16379_v44 = vcombine.low %v19810_v62, %v19812_v1 }
 0x684   :  { %13695 = vmatpush1.bf16.msra.mxu0 %v16283_v6  ;;  %v16323_v6 = vcombine.low %v11115_v46, %v11119_v42  ;;  %v11155_v46 = vld [vmem:[#allocation6 + $0x780] sm:$0xff] }
 0x685   :  { %13696 = vmatprep.subr.bf16.mxu0 %v16292_v8  ;;  %v16332_v8 = vcombine.high %v11123_v10, %v11127_v53  ;;  %v11159_v42 = vld [vmem:[#allocation6 + $0x7a0] sm:$0xff] }
 0x686   :  { %13832 = vmatpush1.bf16.msra.mxu1 %v16213_v3  ;;  %v16253_v3 = vcombine.low %v11044_v38, %v11048_v50  ;;  %v11084_v38 = vld [vmem:[#allocation6 + $0x548] sm:$0xff] }
 0x687   :  { %13833 = vmatprep.subr.bf16.mxu1 %v16222_v55  ;;  %v16262_v55 = vcombine.high %v11052_v40, %v11056_v5  ;;  %v11088_v50 = vld [vmem:[#allocation6 + $0x568] sm:$0xff] }
 0x688   :  { %13697 = vmatpush1.bf16.msra.mxu0 %v16291_v12  ;;  %v16331_v12 = vcombine.low %v11123_v10, %v11127_v53  ;;  %v11163_v10 = vld [vmem:[#allocation6 + $0x7c0] sm:$0xff] }
 0x689   :  { %13698 = vmatprep.subr.bf16.mxu0 %v16300_v17  ;;  %v16340_v17 = vcombine.high %v11131_v18, %v11135_v58  ;;  %v11167_v53 = vld [vmem:[#allocation6 + $0x7e0] sm:$0xff] }
 0x68a   :  { %13834 = vmatpush1.bf16.msra.mxu1 %v16221_v24  ;;  %v16261_v24 = vcombine.low %v11052_v40, %v11056_v5  ;;  %v11092_v40 = vld [vmem:[#allocation6 + $0x588] sm:$0xff] }
 0x68b   :  { %13835 = vmatprep.subr.bf16.mxu1 %v16230_v20  ;;  %v16270_v20 = vcombine.high %v11060_v11, %v11064_v16  ;;  %v11096_v5 = vld [vmem:[#allocation6 + $0x5a8] sm:$0xff] }
 0x68c   :  { %13699 = vmatpush1.bf16.msra.mxu0 %v16299_v32  ;;  %v16339_v32 = vcombine.low %v11131_v18, %v11135_v58  ;;  %v11100_v18 = vld [vmem:[#allocation6 + $0x5c8] sm:$0xff] }
 0x68d   :  { %13700 = vmatprep.subr.bf16.mxu0 %v16308_v37  ;;  %v16348_v37 = vcombine.high %v11139_v26, %v11143_v52  ;;  %v11104_v58 = vld [vmem:[#allocation6 + $0x5e8] sm:$0xff] }
 0x68e   :  { %13836 = vmatpush1.bf16.msra.mxu1 %v16229_v9  ;;  %v16269_v9 = vcombine.low %v11060_v11, %v11064_v16  ;;  %v16371_v11 = vcombine.low %v11163_v10, %v11167_v53  ;;  %v16301_v16 = vcombine.low %v11092_v40, %v11096_v5 }
 0x68f   :  { %13837 = vmatprep.subr.bf16.mxu1 %v16238_v41  ;;  %v16278_v41 = vcombine.high %v11068_v28, %v11072_v35 }
 0x690   :  { %13701 = vmatpush1.bf16.msra.mxu0 %v16307_v45  ;;  %v16347_v45 = vcombine.low %v11139_v26, %v11143_v52  ;;  %v16309_v26 = vcombine.low %v11100_v18, %v11104_v58 }
 0x691   :  { %13702 = vmatprep.subr.bf16.mxu0 %v16316_v27  ;;  %v16356_v27 = vcombine.high %v11147_v29, %v11151_v48 }
 0x692   :  { %13838 = vmatpush1.bf16.msra.mxu1 %v16237_v36  ;;  %v16277_v36 = vcombine.low %v11068_v28, %v11072_v35  ;;  %v11116_v28 = vld [vmem:[#allocation6 + $0x648] sm:$0xff] }
 0x693   :  { %13839 = vmatprep.subr.bf16.mxu1 %v16246_v34  ;;  %v16286_v34 = vcombine.high %v11076_v59, %v11080_v43  ;;  %v11120_v35 = vld [vmem:[#allocation6 + $0x668] sm:$0xff] }
 0x694   :  { %13703 = vmatpush1.bf16.msra.mxu0 %v16315_v56  ;;  %v16355_v56 = vcombine.low %v11147_v29, %v11151_v48  ;;  %v16325_v29 = vcombine.low %v11116_v28, %v11120_v35 }
 0x695   :  { %13704 = vmatprep.subr.bf16.mxu0 %v16324_v61  ;;  %v16364_v61 = vcombine.high %v11155_v46, %v11159_v42 }
 0x696   :  { %13840 = vmatpush1.bf16.msra.mxu1 %v16245_v51  ;;  %v16285_v51 = vcombine.low %v11076_v59, %v11080_v43  ;;  %v11132_v59 = vld [vmem:[#allocation6 + $0x6c8] sm:$0xff] }
 0x697   :  { %13850 = vmatprep.subr.bf16.mxu1 %v16254_v2  ;;  %v16294_v2 = vcombine.high %v11084_v38, %v11088_v50  ;;  %v11136_v43 = vld [vmem:[#allocation6 + $0x6e8] sm:$0xff] }
 0x698   :  { %13705 = vmatpush1.bf16.msra.mxu0 %v16323_v6  ;;  %v16363_v6 = vcombine.low %v11155_v46, %v11159_v42  ;;  %v16341_v46 = vcombine.low %v11132_v59, %v11136_v43 }
 0x699   :  { %13842 = vmatmul.mubr.bf16.vlgmr.msra.gmra.mrb[36].mxu1 %v19807_v25  ;;  %13706 = vmatprep.subr.bf16.mxu0 %v16332_v8  ;;  %v16372_v8 = vcombine.high %v11163_v10, %v11167_v53 }
 0x69a   :  { %13851 = vmatpush1.bf16.msra.mxu1 %v16253_v3  ;;  %v16293_v3 = vcombine.low %v11084_v38, %v11088_v50  ;;  %v11148_v38 = vld [vmem:[#allocation6 + $0x748] sm:$0xff] }
 0x69b   :  { %13852 = vmatprep.subr.bf16.mxu1 %v16262_v55  ;;  %v16302_v55 = vcombine.high %v11092_v40, %v11096_v5  ;;  %v11152_v50 = vld [vmem:[#allocation6 + $0x768] sm:$0xff] }
 0x69c   :  { %13707 = vmatpush1.bf16.msra.mxu0 %v16331_v12  ;;  %v16380_v12 = vcombine.high %v19810_v62, %v19812_v1  ;;  %v16357_v10 = vcombine.low %v11148_v38, %v11152_v50  ;;  %v11164_v40 = vld [vmem:[#allocation6 + $0x7c8] sm:$0xff]  ;;  %v11203_v1 = vld [vmem:[#allocation6 + $0x900] sm:$0xff] }
 0x69d   :  { %13708 = vmatprep.subr.bf16.mxu0 %v16340_v17  ;;  %v11108_v17 = vld [vmem:[#allocation6 + $0x608] sm:$0xff] }
 0x69e   :  { %13853 = vmatpush1.bf16.msra.mxu1 %v16261_v24  ;;  %v16310_v24 = vcombine.high %v11100_v18, %v11104_v58  ;;  %v11168_v5 = vld [vmem:[#allocation6 + $0x7e8] sm:$0xff] }
 0x69f   :  { %13854 = vmatprep.subr.bf16.mxu1 %v16270_v20  ;;  %v11112_v20 = vld [vmem:[#allocation6 + $0x628] sm:$0xff]  ;;  %v16373_v18 = vcombine.low %v11164_v40, %v11168_v5 }
 0x6a0   :  { %13709 = vmatpush1.bf16.msra.mxu0 %v16339_v32  ;;  %v16318_v52 = vcombine.high %v11108_v17, %v11112_v20  ;;  %v16317_v32 = vcombine.low %v11108_v17, %v11112_v20 }
 0x6a1   :  { %13710 = vmatprep.subr.bf16.mxu0 %v16348_v37  ;;  %v11124_v37 = vld [vmem:[#allocation6 + $0x688] sm:$0xff] }
 0x6a2   :  { %13855 = vmatpush1.bf16.msra.mxu1 %v16269_v9  ;;  %v16326_v9 = vcombine.high %v11116_v28, %v11120_v35 }
 0x6a3   :  { %13856 = vmatprep.subr.bf16.mxu1 %v16278_v41  ;;  %v11128_v41 = vld [vmem:[#allocation6 + $0x6a8] sm:$0xff] }
 0x6a4   :  { %13711 = vmatpush1.bf16.msra.mxu0 %v16347_v45  ;;  %v16334_v48 = vcombine.high %v11124_v37, %v11128_v41  ;;  %v16333_v45 = vcombine.low %v11124_v37, %v11128_v41 }
 0x6a5   :  { %13712 = vmatprep.subr.bf16.mxu0 %v16356_v27  ;;  %v11140_v27 = vld [vmem:[#allocation6 + $0x708] sm:$0xff] }
 0x6a6   :  { %13857 = vmatpush1.bf16.msra.mxu1 %v16277_v36  ;;  %v16342_v36 = vcombine.high %v11132_v59, %v11136_v43 }
 0x6a7   :  { %13858 = vmatprep.subr.bf16.mxu1 %v16286_v34  ;;  %v11144_v34 = vld [vmem:[#allocation6 + $0x728] sm:$0xff] }
 0x6a8   :  { %13713 = vmatpush1.bf16.msra.mxu0 %v16355_v56  ;;  %v16350_v42 = vcombine.high %v11140_v27, %v11144_v34  ;;  %v16349_v56 = vcombine.low %v11140_v27, %v11144_v34  ;;  %v11183_v27 = vld [vmem:[#allocation6 + $0x860] sm:$0xff]  ;;  %v11180_v34 = vld [vmem:[#allocation6 + $0x848] sm:$0xff] }
 0x6a9   :  { %13714 = vmatprep.subr.bf16.mxu0 %v16364_v61  ;;  %v11156_v61 = vld [vmem:[#allocation6 + $0x788] sm:$0xff] }
 0x6aa   :  { %13859 = vmatpush1.bf16.msra.mxu1 %v16285_v51  ;;  %v16358_v51 = vcombine.high %v11148_v38, %v11152_v50  ;;  %v19839_v38 = vpack.c.bf16 %v19799_v63, %v19799_v63 }
 0x6ab   :  { %13860 = vmatprep.subr.bf16.mxu1 %v16294_v2  ;;  %v11160_v2 = vld [vmem:[#allocation6 + $0x7a8] sm:$0xff] }
 0x6ac   :  { %13715 = vmatpush1.bf16.msra.mxu0 %v16363_v6  ;;  %v16366_v53 = vcombine.high %v11156_v61, %v11160_v2  ;;  %v16365_v6 = vcombine.low %v11156_v61, %v11160_v2  ;;  %v11188_v61 = vld [vmem:[#allocation6 + $0x888] sm:$0xff] }
 0x6ad   :  { %13716 = vmatprep.subr.bf16.mxu0 %v16372_v8  ;;  %v11172_v8 = vld [vmem:[#allocation6 + $0x808] sm:$0xff] }
 0x6ae   :  { %13861 = vmatpush1.bf16.msra.mxu1 %v16293_v3  ;;  %v16374_v3 = vcombine.high %v11164_v40, %v11168_v5  ;;  %v11192_v2 = vld [vmem:[#allocation6 + $0x8a8] sm:$0xff]  ;;  %v11195_v40 = vld [vmem:[#allocation6 + $0x8c0] sm:$0xff] }
 0x6af   :  { %13862 = vmatprep.subr.bf16.mxu1 %v16302_v55  ;;  %v11176_v55 = vld [vmem:[#allocation6 + $0x828] sm:$0xff]  ;;  %v11199_v5 = vld [vmem:[#allocation6 + $0x8e0] sm:$0xff] }
 0x6b0   :  { %13717 = vmatpush1.bf16.msra.mxu0 %v16371_v11  ;;  %v16382_v58 = vcombine.high %v11172_v8, %v11176_v55  ;;  %v19819_v11 = vld [vmem:[#allocation4 + $0x18] sm:$0xf] }
 0x6b1   :  { %13727 = vmatprep.subr.bf16.mxu0 %v16380_v12  ;;  %v1634_v12 = vrot.slane %v19773_v14, %v19653_v23  ;;  %v1662_v17 = vrot.slane %v19819_v11, %v19573_v21 }
 0x6b2   :  { %13863 = vmatpush1.bf16.msra.mxu1 %v16301_v16  ;;  %v1630_v16 = vrot.slane %v19773_v14, %v19573_v21 }
 0x6b3   :  { %13864 = vmatprep.subr.bf16.mxu1 %v16310_v24  ;;  %v1658_v24 = vrot.slane %v19819_v11, %v19570_v19 }
 0x6b4   :  { %v16707_v20 = vadd.f32 %v19746_v60, %v1630_v16  ;;  %v11184_v60 = vld [vmem:[#allocation6 + $0x868] sm:$0xff] }
 0x6b5   :  { %v16389_v63 = vcombine.low %v11180_v34, %v11184_v60  ;;  %v11208_v16 = vld [vmem:[#allocation6 + $0x928] sm:$0xff] }
 0x6b6   :  { %13865 = vmatpush1.bf16.msra.mxu1 %v16309_v26  ;;  %v16708_v26 = vadd.f32 %v19753_v47, %v1634_v12  ;;  %v10876_v37 = vmax.f32 %v16707_v20, 0.0  ;;  %v16403_v12 = vcombine.low %v11195_v40, %v11199_v5 }
 0x6b7   :  { %13866 = vmatprep.subr.bf16.mxu1 %v16318_v52 }
 0x6ba   :  { %13867 = vmatpush1.bf16.msra.mxu1 %v16317_v32 }
 0x6bb   :  { %13868 = vmatprep.subr.bf16.mxu1 %v16326_v9 }
 0x6be   :  { %13869 = vmatpush1.bf16.msra.mxu1 %v16325_v29 }
 0x6bf   :  { %13870 = vmatprep.subr.bf16.mxu1 %v16334_v48  ;;  %v10877_v48 = vmax.f32 %v16708_v26, 0.0  ;;  %v11211_v26 = vld [vmem:[#allocation6 + $0x940] sm:$0xff] }
 0x6c2   :  { %13871 = vmatpush1.bf16.msra.mxu1 %v16333_v45  ;;  %v11179_v45 = vld [vmem:[#allocation6 + $0x840] sm:$0xff] }
 0x6c3   :  { %13872 = vmatprep.subr.bf16.mxu1 %v16342_v36  ;;  %v16388_v50 = vcombine.high %v11179_v45, %v11183_v27 }
 0x6c6   :  { %13873 = vmatpush1.bf16.msra.mxu1 %v16341_v46 }
 0x6c7   :  { %13874 = vmatprep.subr.bf16.mxu1 %v16350_v42  ;;  %v16381_v42 = vcombine.low %v11172_v8, %v11176_v55  ;;  %v16397_v55 = vcombine.low %v11188_v61, %v11192_v2 }
 0x6ca   :  { %13875 = vmatpush1.bf16.msra.mxu1 %v16349_v56  ;;  %v16390_v56 = vcombine.high %v11180_v34, %v11184_v60  ;;  %v11227_v34 = vld [vmem:[#allocation6 + $0x9c0] sm:$0xff] }
 0x6cb   :  { %13876 = vmatprep.subr.bf16.mxu1 %v16358_v51  ;;  %v11187_v51 = vld [vmem:[#allocation6 + $0x880] sm:$0xff] }
 0x6cc   :  { %v11231_v60 = vld [vmem:[#allocation6 + $0x9e0] sm:$0xff] }
 0x6ce   :  { %13877 = vmatpush1.bf16.msra.mxu1 %v16357_v10 }
 0x6cf   :  { %13878 = vmatprep.subr.bf16.mxu1 %v16366_v53  ;;  %v16398_v53 = vcombine.high %v11188_v61, %v11192_v2 }
 0x6d2   :  { %13879 = vmatpush1.bf16.msra.mxu1 %v16365_v6  ;;  %v11196_v6 = vld [vmem:[#allocation6 + $0x8c8] sm:$0xff] }
 0x6d3   :  { %13880 = vmatprep.subr.bf16.mxu1 %v16374_v3  ;;  %v11200_v3 = vld [vmem:[#allocation6 + $0x8e8] sm:$0xff] }
 0x6d4   :  { %v16406_v62 = vcombine.high %v11196_v6, %v11200_v3 }
 0x6d6   :  { %13881 = vmatpush1.bf16.msra.mxu1 %v16373_v18  ;;  %v16404_v18 = vcombine.high %v11195_v40, %v11199_v5  ;;  %v1670_v40 = vrot.slane %v19819_v11, %v19677_v39  ;;  %v11239_v5 = vld [vmem:[#allocation6 + $0xa20] sm:$0xff] }
 0x6d7   :  { %13891 = vmatprep.subr.bf16.mxu1 %v16382_v58  ;;  %v11204_v58 = vld [vmem:[#allocation6 + $0x908] sm:$0xff] }
 0x6d8   :  { %v16414_v20 = vcombine.high %v11204_v58, %v11208_v16 }
 0x706   :  { %v10688_v52 = vpop.f32.mrb[24].mxu0 }
 0x707   :  { %v16714_v28 = vadd.f32 %v10688_v52, %v1658_v24  ;;  %v10690_v35 = vpop.f32.mrb[25].mxu0  ;;  %v16405_v24 = vcombine.low %v11196_v6, %v11200_v3  ;;  %v11215_v52 = vld [vmem:[#allocation6 + $0x960] sm:$0xff]  ;;  %v11236_v6 = vld [vmem:[#allocation6 + $0xa08] sm:$0xff] }
 0x708   :  { %v16715_v32 = vadd.f32 %v10690_v35, %v1662_v17  ;;  %v10692_v9 = vpop.f32.mrb[26].mxu0  ;;  %v11216_v35 = vld [vmem:[#allocation6 + $0x968] sm:$0xff] }
 0x709   :  { %v10883_v41 = vmax.f32 %v16714_v28, 0.0  ;;  %v10693_v29 = vpop.f32.mrb[27].mxu0  ;;  %v11212_v28 = vld [vmem:[#allocation6 + $0x948] sm:$0xff]  ;;  %v16413_v9 = vcombine.low %v11204_v58, %v11208_v16 }
 0x70a   :  { %v10884_v14 = vmax.f32 %v16715_v32, 0.0  ;;  %v11219_v29 = vld [vmem:[#allocation6 + $0x980] sm:$0xff]  ;;  %v11240_v3 = vld [vmem:[#allocation6 + $0xa28] sm:$0xff] }
 0x70b   :  { %v10897_v59 = vmax.f32 %v10876_v37, %v10883_v41  ;;  %v16420_v37 = vcombine.high %v11211_v26, %v11215_v52  ;;  %v16422_v41 = vcombine.high %v11212_v28, %v11216_v35 }
 0x70c   :  { %v10898_v43 = vmax.f32 %v10877_v48, %v10884_v14  ;;  %v11223_v48 = vld [vmem:[#allocation6 + $0x9a0] sm:$0xff]  ;;  %v11220_v14 = vld [vmem:[#allocation6 + $0x988] sm:$0xff] }
 0x70d   :  { %v10904_v36 = vmax.f32 %v19690_v13, %v10897_v59  ;;  %v11191_v13 = vld [vmem:[#allocation6 + $0x8a0] sm:$0xff]  ;;  %v11224_v59 = vld [vmem:[#allocation6 + $0x9a8] sm:$0xff]  ;;  %v16427_v61 = vcombine.low %v11219_v29, %v11223_v48 }
 0x70e   :  { %v19833_v47 = vmax.f32 %v19692_v15, %v10898_v43  ;;  %v16387_v15 = vcombine.low %v11179_v45, %v11183_v27  ;;  %v16396_v10 = vcombine.high %v11187_v51, %v11191_v13  ;;  %v16395_v8 = vcombine.low %v11187_v51, %v11191_v13 }
 0x70f   :  { %v19835_v46 = vpack.c.bf16 %v10904_v36, %v10904_v36  ;;  %v16419_v43 = vcombine.low %v11211_v26, %v11215_v52  ;;  %v16421_v45 = vcombine.low %v11212_v28, %v11216_v35  ;;  %v16428_v36 = vcombine.high %v11219_v29, %v11223_v48  ;;  %v11244_v26 = vld [vmem:[#allocation6 + $0xa48] sm:$0xff] }
 0x710   :  { %v16430_v27 = vcombine.high %v11220_v14, %v11224_v59  ;;  %v16429_v2 = vcombine.low %v11220_v14, %v11224_v59  ;;  %v11248_v52 = vld [vmem:[#allocation6 + $0xa68] sm:$0xff]  ;;  %v11251_v14 = vld [vmem:[#allocation6 + $0xa80] sm:$0xff] }
 0x711   :  { %13718 = vmatprep.mubr.bf16.mxu0 %v19835_v46  ;;  %13882 = vmatprep.mubr.bf16.mxu1 %v19835_v46  ;;  %v16454_v48 = vcombine.high %v11244_v26, %v11248_v52 }
 0x712   :  { %13719 = vmatmul.mubr.bf16.vlgmr.msra.gmra.mrb[28].mxu0 %v19839_v38  ;;  %13883 = vmatmul.mubr.bf16.vlgmr.msra.gmra.mrb[36].mxu1 %v19839_v38 }
 0x713   :  { %13728 = vmatpush1.bf16.msra.mxu0 %v16379_v44  ;;  %13892 = vmatpush1.bf16.msra.mxu1 %v16381_v42  ;;  %v11207_v44 = vld [vmem:[#allocation6 + $0x920] sm:$0xff]  ;;  %v11228_v42 = vld [vmem:[#allocation6 + $0x9c8] sm:$0xff] }
 0x714   :  { %13729 = vmatprep.subr.bf16.mxu0 %v16388_v50  ;;  %13893 = vmatprep.subr.bf16.mxu1 %v16390_v56  ;;  %v16412_v17 = vcombine.high %v11203_v1, %v11207_v44  ;;  %v16411_v32 = vcombine.low %v11203_v1, %v11207_v44  ;;  %v11232_v50 = vld [vmem:[#allocation6 + $0x9e8] sm:$0xff]  ;;  %v19054_v56 = vld [vmem:[#allocation4 + $0x10] sm:$0xff] }
 0x715   :  { %v1638_v51 = vrot.slane %v19054_v56, %v19677_v39  ;;  %v1642_v13 = vrot.slane %v19054_v56, %v19609_v31  ;;  %v16437_v1 = vcombine.low %v11228_v42, %v11232_v50 }
 0x717   :  { %13730 = vmatpush1.bf16.msra.mxu0 %v16387_v15  ;;  %13894 = vmatpush1.bf16.msra.mxu1 %v16389_v63  ;;  %v1666_v15 = vrot.slane %v19819_v11, %v19653_v23  ;;  %v16436_v63 = vcombine.high %v11227_v34, %v11231_v60 }
 0x718   :  { %13731 = vmatprep.subr.bf16.mxu0 %v16396_v10  ;;  %13895 = vmatprep.subr.bf16.mxu1 %v16398_v53  ;;  %v16438_v10 = vcombine.high %v11228_v42, %v11232_v50  ;;  %v11235_v53 = vld [vmem:[#allocation6 + $0xa00] sm:$0xff]  ;;  %v16453_v42 = vcombine.low %v11244_v26, %v11248_v52  ;;  %v11284_v26 = vld [vmem:[#allocation6 + $0xb88] sm:$0xff] }
 0x719   :  { %v16444_v16 = vcombine.high %v11235_v53, %v11239_v5  ;;  %v11288_v52 = vld [vmem:[#allocation6 + $0xba8] sm:$0xff] }
 0x71b   :  { %13732 = vmatpush1.bf16.msra.mxu0 %v16395_v8  ;;  %13896 = vmatpush1.bf16.msra.mxu1 %v16397_v55  ;;  %v16709_v8 = vadd.f32 %v19755_v54, %v1638_v51  ;;  %v16710_v55 = vadd.f32 %v19778_v22, %v1642_v13  ;;  %v11259_v13 = vld [vmem:[#allocation6 + $0xac0] sm:$0xff] }
 0x71c   :  { %13733 = vmatprep.subr.bf16.mxu0 %v16404_v18  ;;  %13897 = vmatprep.subr.bf16.mxu1 %v16406_v62  ;;  %v16435_v62 = vcombine.low %v11227_v34, %v11231_v60 }
 0x71d   :  { %v10878_v54 = vmax.f32 %v16709_v8, 0.0  ;;  %v10879_v35 = vmax.f32 %v16710_v55, 0.0 }
 0x71f   :  { %13734 = vmatpush1.bf16.msra.mxu0 %v16403_v12  ;;  %13898 = vmatpush1.bf16.msra.mxu1 %v16405_v24  ;;  %v16446_v12 = vcombine.high %v11236_v6, %v11240_v3  ;;  %v11243_v24 = vld [vmem:[#allocation6 + $0xa40] sm:$0xff] }
 0x720   :  { %13735 = vmatprep.subr.bf16.mxu0 %v16412_v17  ;;  %13899 = vmatprep.subr.bf16.mxu1 %v16414_v20  ;;  %v11247_v20 = vld [vmem:[#allocation6 + $0xa60] sm:$0xff] }
 0x721   :  { %v16452_v29 = vcombine.high %v11243_v24, %v11247_v20  ;;  %v16451_v60 = vcombine.low %v11243_v24, %v11247_v20  ;;  %v11287_v20 = vld [vmem:[#allocation6 + $0xba0] sm:$0xff] }
 0x723   :  { %13736 = vmatpush1.bf16.msra.mxu0 %v16411_v32  ;;  %13900 = vmatpush1.bf16.msra.mxu1 %v16413_v9  ;;  %v16443_v9 = vcombine.low %v11235_v53, %v11239_v5  ;;  %v11267_v53 = vld [vmem:[#allocation6 + $0xb00] sm:$0xff]  ;;  %v11268_v5 = vld [vmem:[#allocation6 + $0xb08] sm:$0xff] }
 0x724   :  { %13737 = vmatprep.subr.bf16.mxu0 %v16420_v37  ;;  %13901 = vmatprep.subr.bf16.mxu1 %v16422_v41  ;;  %v16445_v37 = vcombine.low %v11236_v6, %v11240_v3  ;;  %v11272_v6 = vld [vmem:[#allocation6 + $0xb28] sm:$0xff] }
 0x727   :  { %13738 = vmatpush1.bf16.msra.mxu0 %v16419_v43  ;;  %13902 = vmatpush1.bf16.msra.mxu1 %v16421_v45  ;;  %v11255_v43 = vld [vmem:[#allocation6 + $0xaa0] sm:$0xff]  ;;  %v11252_v45 = vld [vmem:[#allocation6 + $0xa88] sm:$0xff] }
 0x728   :  { %13739 = vmatprep.subr.bf16.mxu0 %v16428_v36  ;;  %13903 = vmatprep.subr.bf16.mxu1 %v16430_v27  ;;  %v11256_v36 = vld [vmem:[#allocation6 + $0xaa8] sm:$0xff]  ;;  %v16460_v56 = vcombine.high %v11251_v14, %v11255_v43 }
 0x729   :  { %v16462_v51 = vcombine.high %v11252_v45, %v11256_v36 }
 0x72b   :  { %13740 = vmatpush1.bf16.msra.mxu0 %v16427_v61  ;;  %13904 = vmatpush1.bf16.msra.mxu1 %v16429_v2  ;;  %v11263_v61 = vld [vmem:[#allocation6 + $0xae0] sm:$0xff]  ;;  %v11260_v2 = vld [vmem:[#allocation6 + $0xac8] sm:$0xff] }
 0x72c   :  { %v10852_v18 = vpop.f32.mrb[32].mxu1  ;;  %13741 = vmatprep.subr.bf16.mxu0 %v16436_v63  ;;  %13905 = vmatprep.subr.bf16.mxu1 %v16438_v10  ;;  %v16468_v63 = vcombine.high %v11259_v13, %v11263_v61  ;;  %v16467_v3 = vcombine.low %v11259_v13, %v11263_v61  ;;  %v11307_v13 = vld [vmem:[#allocation6 + $0xc40] sm:$0xff] }
 0x72d   :  { %v16716_v44 = vadd.f32 %v10852_v18, %v1666_v15  ;;  %v10854_v58 = vpop.f32.mrb[33].mxu1  ;;  %v11264_v15 = vld [vmem:[#allocation6 + $0xae8] sm:$0xff]  ;;  %v16478_v18 = vcombine.high %v11268_v5, %v11272_v6  ;;  %v11311_v61 = vld [vmem:[#allocation6 + $0xc60] sm:$0xff] }
 0x72e   :  { %v16717_v11 = vadd.f32 %v10854_v58, %v1670_v40  ;;  %v10856_v17 = vpop.f32.mrb[34].mxu1  ;;  %v16470_v10 = vcombine.high %v11260_v2, %v11264_v15  ;;  %v11271_v40 = vld [vmem:[#allocation6 + $0xb20] sm:$0xff]  ;;  %v16469_v8 = vcombine.low %v11260_v2, %v11264_v15  ;;  %v11280_v58 = vld [vmem:[#allocation6 + $0xb68] sm:$0xff] }
 0x72f   :  { %v10885_v28 = vmax.f32 %v16716_v44, 0.0  ;;  %v10857_v22 = vpop.f32.mrb[35].mxu1  ;;  %13742 = vmatpush1.bf16.msra.mxu0 %v16435_v62  ;;  %13906 = vmatpush1.bf16.msra.mxu1 %v16437_v1  ;;  %v16476_v55 = vcombine.high %v11267_v53, %v11271_v40  ;;  %v11275_v62 = vld [vmem:[#allocation6 + $0xb40] sm:$0xff]  ;;  %v11276_v44 = vld [vmem:[#allocation6 + $0xb48] sm:$0xff] }
 0x730   :  { %v10886_v32 = vmax.f32 %v16717_v11, 0.0  ;;  %13743 = vmatprep.subr.bf16.mxu0 %v16444_v16  ;;  %13907 = vmatprep.subr.bf16.mxu1 %v16446_v12  ;;  %v11279_v1 = vld [vmem:[#allocation6 + $0xb60] sm:$0xff]  ;;  %v16475_v16 = vcombine.low %v11267_v53, %v11271_v40  ;;  %v16477_v12 = vcombine.low %v11268_v5, %v11272_v6  ;;  %v16486_v11 = vcombine.high %v11276_v44, %v11280_v58  ;;  %v11308_v2 = vld [vmem:[#allocation6 + $0xc48] sm:$0xff] }
 0x731   :  { %v10899_v41 = vmax.f32 %v10878_v54, %v10885_v28  ;;  %v16484_v24 = vcombine.high %v11275_v62, %v11279_v1  ;;  %v11283_v17 = vld [vmem:[#allocation6 + $0xb80] sm:$0xff]  ;;  %v16483_v54 = vcombine.low %v11275_v62, %v11279_v1  ;;  %v16485_v28 = vcombine.low %v11276_v44, %v11280_v58  ;;  %v11312_v15 = vld [vmem:[#allocation6 + $0xc68] sm:$0xff] }
 0x732   :  { %v10900_v59 = vmax.f32 %v10879_v35, %v10886_v32  ;;  %v16492_v22 = vcombine.high %v11283_v17, %v11287_v20  ;;  %v16494_v35 = vcombine.high %v11284_v26, %v11288_v52  ;;  %v11291_v32 = vld [vmem:[#allocation6 + $0xbc0] sm:$0xff]  ;;  %v16518_v53 = vcombine.high %v11308_v2, %v11312_v15  ;;  %v11316_v6 = vld [vmem:[#allocation6 + $0xc88] sm:$0xff] }
 0x733   :  { %v10906_v27 = vmax.f32 %v19718_v49, %v10899_v41  ;;  %13744 = vmatpush1.bf16.msra.mxu0 %v16443_v9  ;;  %13908 = vmatpush1.bf16.msra.mxu1 %v16445_v37  ;;  %v16459_v49 = vcombine.low %v11251_v14, %v11255_v43  ;;  %v11295_v9 = vld [vmem:[#allocation6 + $0xbe0] sm:$0xff]  ;;  %v11292_v37 = vld [vmem:[#allocation6 + $0xbc8] sm:$0xff] }
 0x734   :  { %v19858_v34 = vmax.f32 %v19720_v57, %v10900_v59  ;;  %13745 = vmatprep.subr.bf16.mxu0 %v16452_v29  ;;  %13909 = vmatprep.subr.bf16.mxu1 %v16454_v48  ;;  %v16461_v57 = vcombine.low %v11252_v45, %v11256_v36  ;;  %v11296_v41 = vld [vmem:[#allocation6 + $0xbe8] sm:$0xff]  ;;  %v16491_v29 = vcombine.low %v11283_v17, %v11287_v20  ;;  %v11299_v43 = vld [vmem:[#allocation6 + $0xc00] sm:$0xff] }
 0x735   :  { %v19860_v50 = vpack.c.bf16 %v10906_v27, %v10906_v27  ;;  %v16493_v48 = vcombine.low %v11284_v26, %v11288_v52  ;;  %v16500_v14 = vcombine.high %v11291_v32, %v11295_v9  ;;  %v16502_v59 = vcombine.high %v11292_v37, %v11296_v41  ;;  %v11303_v45 = vld [vmem:[#allocation6 + $0xc20] sm:$0xff]  ;;  %v11300_v36 = vld [vmem:[#allocation6 + $0xc08] sm:$0xff] }
 0x736   :  { %v11304_v27 = vld [vmem:[#allocation6 + $0xc28] sm:$0xff]  ;;  %v11315_v40 = vld [vmem:[#allocation6 + $0xc80] sm:$0xff] }
 0x737   :  { %13759 = vmatprep.mubr.bf16.mxu0 %v19860_v50  ;;  %13923 = vmatprep.mubr.bf16.mxu1 %v19860_v50  ;;  %v11319_v5 = vld [vmem:[#allocation6 + $0xca0] sm:$0xff]  ;;  %v11324_v44 = vld [vmem:[#allocation6 + $0xcc8] sm:$0xff] }
 0x738   :  { %13746 = vmatpush1.bf16.msra.mxu0 %v16451_v60  ;;  %13910 = vmatpush1.bf16.msra.mxu1 %v16453_v42  ;;  %v16499_v60 = vcombine.low %v11291_v32, %v11295_v9  ;;  %v16501_v42 = vcombine.low %v11292_v37, %v11296_v41  ;;  %v11323_v62 = vld [vmem:[#allocation6 + $0xcc0] sm:$0xff]  ;;  %v11328_v58 = vld [vmem:[#allocation6 + $0xce8] sm:$0xff] }
 0x739   :  { %13747 = vmatprep.subr.bf16.mxu0 %v16460_v56  ;;  %13911 = vmatprep.subr.bf16.mxu1 %v16462_v51  ;;  %v16508_v56 = vcombine.high %v11299_v43, %v11303_v45  ;;  %v16510_v51 = vcombine.high %v11300_v36, %v11304_v27  ;;  %v11327_v1 = vld [vmem:[#allocation6 + $0xce0] sm:$0xff]  ;;  %v11332_v26 = vld [vmem:[#allocation6 + $0xd08] sm:$0xff] }
 0x73a   :  { %v11331_v17 = vld [vmem:[#allocation6 + $0xd00] sm:$0xff]  ;;  %v11336_v52 = vld [vmem:[#allocation6 + $0xd28] sm:$0xff] }
 0x73b   :  { %v11335_v20 = vld [vmem:[#allocation6 + $0xd20] sm:$0xff]  ;;  %v11340_v37 = vld [vmem:[#allocation6 + $0xd48] sm:$0xff] }
 0x73c   :  { %13748 = vmatpush1.bf16.msra.mxu0 %v16459_v49  ;;  %13912 = vmatpush1.bf16.msra.mxu1 %v16461_v57  ;;  %v16507_v49 = vcombine.low %v11299_v43, %v11303_v45  ;;  %v16509_v57 = vcombine.low %v11300_v36, %v11304_v27  ;;  %v11339_v32 = vld [vmem:[#allocation6 + $0xd40] sm:$0xff]  ;;  %v11344_v41 = vld [vmem:[#allocation6 + $0xd68] sm:$0xff] }
 0x73d   :  { %13749 = vmatprep.subr.bf16.mxu0 %v16468_v63  ;;  %13913 = vmatprep.subr.bf16.mxu1 %v16470_v10  ;;  %v19866_v63 = vpack.c.bf16 %v19833_v47, %v19833_v47  ;;  %v16516_v10 = vcombine.high %v11307_v13, %v11311_v61  ;;  %v16524_v47 = vcombine.high %v11315_v40, %v11319_v5  ;;  %v11343_v9 = vld [vmem:[#allocation6 + $0xd60] sm:$0xff]  ;;  %v11348_v36 = vld [vmem:[#allocation6 + $0xd88] sm:$0xff] }
 0x73e   :  { %v11347_v43 = vld [vmem:[#allocation6 + $0xd80] sm:$0xff]  ;;  %v11352_v27 = vld [vmem:[#allocation6 + $0xda8] sm:$0xff] }
 0x73f   :  { %v11351_v45 = vld [vmem:[#allocation6 + $0xda0] sm:$0xff] }
 0x740   :  { %13750 = vmatpush1.bf16.msra.mxu0 %v16467_v3  ;;  %13914 = vmatpush1.bf16.msra.mxu1 %v16469_v8  ;;  %v11320_v3 = vld [vmem:[#allocation6 + $0xca8] sm:$0xff]  ;;  %v16515_v8 = vcombine.low %v11307_v13, %v11311_v61  ;;  %v11355_v13 = vld [vmem:[#allocation6 + $0xdc0] sm:$0xff] }
 0x741   :  { %13751 = vmatprep.subr.bf16.mxu0 %v16476_v55  ;;  %13915 = vmatprep.subr.bf16.mxu1 %v16478_v18  ;;  %v16517_v55 = vcombine.low %v11308_v2, %v11312_v15  ;;  %v16526_v18 = vcombine.high %v11316_v6, %v11320_v3  ;;  %v11359_v61 = vld [vmem:[#allocation6 + $0xde0] sm:$0xff]  ;;  %v11356_v2 = vld [vmem:[#allocation6 + $0xdc8] sm:$0xff] }
 0x742   :  { %v11360_v15 = vld [vmem:[#allocation6 + $0xde8] sm:$0xff] }
 0x744   :  { %13752 = vmatpush1.bf16.msra.mxu0 %v16475_v16  ;;  %13916 = vmatpush1.bf16.msra.mxu1 %v16477_v12  ;;  %v16523_v16 = vcombine.low %v11315_v40, %v11319_v5  ;;  %v16525_v12 = vcombine.low %v11316_v6, %v11320_v3  ;;  %v10917_v40 = vld [vmem:[#allocation6 + $0x10] sm:$0xff]  ;;  %v10918_v6 = vld [vmem:[#allocation6 + $0x18] sm:$0xff] }
 0x745   :  { %13753 = vmatprep.subr.bf16.mxu0 %v16484_v24  ;;  %13917 = vmatprep.subr.bf16.mxu1 %v16486_v11  ;;  %v16532_v24 = vcombine.high %v11323_v62, %v11327_v1  ;;  %v16534_v11 = vcombine.high %v11324_v44, %v11328_v58  ;;  %v10921_v5 = vld [vmem:[#allocation6 + $0x30] sm:$0xff]  ;;  %v10922_v3 = vld [vmem:[#allocation6 + $0x38] sm:$0xff] }
 0x748   :  { %13754 = vmatpush1.bf16.msra.mxu0 %v16483_v54  ;;  %13918 = vmatpush1.bf16.msra.mxu1 %v16485_v28  ;;  %v16531_v54 = vcombine.low %v11323_v62, %v11327_v1  ;;  %v16533_v28 = vcombine.low %v11324_v44, %v11328_v58  ;;  %v10925_v62 = vld [vmem:[#allocation6 + $0x50] sm:$0xff]  ;;  %v10926_v44 = vld [vmem:[#allocation6 + $0x58] sm:$0xff] }
 0x749   :  { %13755 = vmatprep.subr.bf16.mxu0 %v16492_v22  ;;  %13919 = vmatprep.subr.bf16.mxu1 %v16494_v35  ;;  %v16540_v22 = vcombine.high %v11331_v17, %v11335_v20  ;;  %v16542_v35 = vcombine.high %v11332_v26, %v11336_v52  ;;  %v10929_v1 = vld [vmem:[#allocation6 + $0x70] sm:$0xff]  ;;  %v10930_v58 = vld [vmem:[#allocation6 + $0x78] sm:$0xff] }
 0x74c   :  { %13756 = vmatpush1.bf16.msra.mxu0 %v16491_v29  ;;  %13920 = vmatpush1.bf16.msra.mxu1 %v16493_v48  ;;  %v16539_v29 = vcombine.low %v11331_v17, %v11335_v20  ;;  %v16541_v48 = vcombine.low %v11332_v26, %v11336_v52  ;;  %v16138_v17 = vcombine.high %v10926_v44, %v10930_v58  ;;  %v10933_v20 = vld [vmem:[#allocation6 + $0x90] sm:$0xff]  ;;  %v10934_v52 = vld [vmem:[#allocation6 + $0x98] sm:$0xff] }
 0x74d   :  { %13757 = vmatprep.subr.bf16.mxu0 %v16500_v14  ;;  %13921 = vmatprep.subr.bf16.mxu1 %v16502_v59  ;;  %v16548_v14 = vcombine.high %v11339_v32, %v11343_v9  ;;  %v16550_v59 = vcombine.high %v11340_v37, %v11344_v41  ;;  %v10937_v26 = vld [vmem:[#allocation6 + $0xb0] sm:$0xff] }
 0x750   :  { %13758 = vmatpush1.bf16.msra.mxu0 %v16499_v60  ;;  %13922 = vmatpush1.bf16.msra.mxu1 %v16501_v42  ;;  %v16547_v60 = vcombine.low %v11339_v32, %v11343_v9  ;;  %v16549_v42 = vcombine.low %v11340_v37, %v11344_v41  ;;  %v10941_v32 = vld [vmem:[#allocation6 + $0xd0] sm:$0xff]  ;;  %v10942_v37 = vld [vmem:[#allocation6 + $0xd8] sm:$0xff] }
 0x751   :  { %13768 = vmatprep.subr.bf16.mxu0 %v16508_v56  ;;  %13932 = vmatprep.subr.bf16.mxu1 %v16510_v51  ;;  %v16556_v56 = vcombine.high %v11347_v43, %v11351_v45  ;;  %v16558_v51 = vcombine.high %v11348_v36, %v11352_v27  ;;  %v10945_v9 = vld [vmem:[#allocation6 + $0xf0] sm:$0xff]  ;;  %v10946_v41 = vld [vmem:[#allocation6 + $0xf8] sm:$0xff] }
 0x753   :  { %13760 = vmatmul.mubr.bf16.vlgmr.msra.gmra.mrb[28].mxu0 %v19866_v63  ;;  %13924 = vmatmul.mubr.bf16.vlgmr.msra.gmra.mrb[36].mxu1 %v19866_v63 }
 0x754   :  { %13769 = vmatpush1.bf16.msra.mxu0 %v16507_v49  ;;  %13933 = vmatpush1.bf16.msra.mxu1 %v16509_v57  ;;  %v16555_v49 = vcombine.low %v11347_v43, %v11351_v45  ;;  %v16557_v57 = vcombine.low %v11348_v36, %v11352_v27  ;;  %v10949_v43 = vld [vmem:[#allocation6 + $0x110] sm:$0xff]  ;;  %v10954_v36 = vld [vmem:[#allocation6 + $0x138] sm:$0xff]  ;;  %v16151_v27 = vcombine.low %v10941_v32, %v10945_v9 }
 0x755   :  { %13770 = vmatprep.subr.bf16.mxu0 %v16516_v10  ;;  %13934 = vmatprep.subr.bf16.mxu1 %v16518_v53  ;;  %v16564_v10 = vcombine.high %v11355_v13, %v11359_v61  ;;  %v16566_v53 = vcombine.high %v11356_v2, %v11360_v15  ;;  %v10953_v45 = vld [vmem:[#allocation6 + $0x130] sm:$0xff] }
 0x756   :  { %13800 = vmatprep.mubr.bf16.mxu0 %v19303_v0  ;;  %13964 = vmatprep.mubr.bf16.mxu1 %v19303_v0 }
 0x758   :  { %13771 = vmatpush1.bf16.msra.mxu0 %v16515_v8  ;;  %13935 = vmatpush1.bf16.msra.mxu1 %v16517_v55  ;;  %v16563_v8 = vcombine.low %v11355_v13, %v11359_v61  ;;  %v16565_v55 = vcombine.low %v11356_v2, %v11360_v15  ;;  %v10961_v13 = vld [vmem:[#allocation6 + $0x170] sm:$0xff]  ;;  %v10958_v61 = vld [vmem:[#allocation6 + $0x158] sm:$0xff]  ;;  %v16159_v15 = vcombine.low %v10949_v43, %v10953_v45 }
 0x759   :  { %13772 = vmatprep.subr.bf16.mxu0 %v16524_v47  ;;  %13936 = vmatprep.subr.bf16.mxu1 %v16526_v18  ;;  %v16128_v47 = vcombine.high %v10917_v40, %v10921_v5  ;;  %v16130_v18 = vcombine.high %v10918_v6, %v10922_v3  ;;  %v10962_v2 = vld [vmem:[#allocation6 + $0x178] sm:$0xff] }
 0x75c   :  { %13773 = vmatpush1.bf16.msra.mxu0 %v16523_v16  ;;  %13937 = vmatpush1.bf16.msra.mxu1 %v16525_v12  ;;  %v16127_v16 = vcombine.low %v10917_v40, %v10921_v5  ;;  %v19874_v12 = vpack.c.bf16 %v19858_v34, %v19858_v34  ;;  %v16137_v34 = vcombine.low %v10926_v44, %v10930_v58  ;;  %v10969_v40 = vld [vmem:[#allocation6 + $0x1b0] sm:$0xff]  ;;  %v10966_v5 = vld [vmem:[#allocation6 + $0x198] sm:$0xff] }
 0x75d   :  { %13774 = vmatprep.subr.bf16.mxu0 %v16532_v24  ;;  %13938 = vmatprep.subr.bf16.mxu1 %v16534_v11  ;;  %v16129_v24 = vcombine.low %v10918_v6, %v10922_v3  ;;  %v16136_v11 = vcombine.high %v10925_v62, %v10929_v1  ;;  %v10970_v6 = vld [vmem:[#allocation6 + $0x1b8] sm:$0xff] }
 0x75e   :  { %v10978_v44 = vld [vmem:[#allocation6 + $0x1f8] sm:$0xff] }
 0x760   :  { %13775 = vmatpush1.bf16.msra.mxu0 %v16531_v54  ;;  %13939 = vmatpush1.bf16.msra.mxu1 %v16533_v28  ;;  %v10938_v54 = vld [vmem:[#allocation6 + $0xb8] sm:$0xff]  ;;  %v16135_v28 = vcombine.low %v10925_v62, %v10929_v1  ;;  %v10977_v62 = vld [vmem:[#allocation6 + $0x1f0] sm:$0xff] }
 0x761   :  { %13776 = vmatprep.subr.bf16.mxu0 %v16540_v22  ;;  %13940 = vmatprep.subr.bf16.mxu1 %v16542_v35  ;;  %v16144_v22 = vcombine.high %v10933_v20, %v10937_v26  ;;  %v16146_v35 = vcombine.high %v10934_v52, %v10938_v54  ;;  %v10974_v1 = vld [vmem:[#allocation6 + $0x1d8] sm:$0xff] }
 0x764   :  { %13777 = vmatpush1.bf16.msra.mxu0 %v16539_v29  ;;  %13941 = vmatpush1.bf16.msra.mxu1 %v16541_v48  ;;  %v16143_v29 = vcombine.low %v10933_v20, %v10937_v26  ;;  %v16145_v48 = vcombine.low %v10934_v52, %v10938_v54  ;;  %v10985_v20 = vld [vmem:[#allocation6 + $0x230] sm:$0xff]  ;;  %v10982_v26 = vld [vmem:[#allocation6 + $0x218] sm:$0xff] }
 0x765   :  { %13778 = vmatprep.subr.bf16.mxu0 %v16548_v14  ;;  %13942 = vmatprep.subr.bf16.mxu1 %v16550_v59  ;;  %v16152_v14 = vcombine.high %v10941_v32, %v10945_v9  ;;  %v16154_v59 = vcombine.high %v10942_v37, %v10946_v41  ;;  %v10986_v52 = vld [vmem:[#allocation6 + $0x238] sm:$0xff]  ;;  %v10993_v32 = vld [vmem:[#allocation6 + $0x270] sm:$0xff] }
 0x766   :  { %v10990_v9 = vld [vmem:[#allocation6 + $0x258] sm:$0xff] }
 0x768   :  { %13779 = vmatpush1.bf16.msra.mxu0 %v16547_v60  ;;  %13943 = vmatpush1.bf16.msra.mxu1 %v16549_v42  ;;  %v16153_v60 = vcombine.low %v10942_v37, %v10946_v41  ;;  %v16160_v42 = vcombine.high %v10949_v43, %v10953_v45  ;;  %v10994_v37 = vld [vmem:[#allocation6 + $0x278] sm:$0xff]  ;;  %v11001_v43 = vld [vmem:[#allocation6 + $0x2b0] sm:$0xff] }
 0x769   :  { %13780 = vmatprep.subr.bf16.mxu0 %v16556_v56  ;;  %13944 = vmatprep.subr.bf16.mxu1 %v16558_v51  ;;  %v10957_v51 = vld [vmem:[#allocation6 + $0x150] sm:$0xff]  ;;  %v10998_v45 = vld [vmem:[#allocation6 + $0x298] sm:$0xff] }
 0x76a   :  { %v16167_v3 = vcombine.low %v10957_v51, %v10961_v13 }
 0x76c   :  { %13781 = vmatpush1.bf16.msra.mxu0 %v16555_v49  ;;  %13945 = vmatpush1.bf16.msra.mxu1 %v16557_v57  ;;  %v16168_v57 = vcombine.high %v10957_v51, %v10961_v13  ;;  %v11009_v51 = vld [vmem:[#allocation6 + $0x2f0] sm:$0xff]  ;;  %v11006_v13 = vld [vmem:[#allocation6 + $0x2d8] sm:$0xff] }
 0x76d   :  { %13782 = vmatprep.subr.bf16.mxu0 %v16564_v10  ;;  %13946 = vmatprep.subr.bf16.mxu1 %v16566_v53  ;;  %v16170_v10 = vcombine.high %v10958_v61, %v10962_v2  ;;  %v10965_v53 = vld [vmem:[#allocation6 + $0x190] sm:$0xff] }
 0x76e   :  { %v16175_v58 = vcombine.low %v10965_v53, %v10969_v40 }
 0x770   :  { %13783 = vmatpush1.bf16.msra.mxu0 %v16563_v8  ;;  %13947 = vmatpush1.bf16.msra.mxu1 %v16565_v55  ;;  %v16169_v8 = vcombine.low %v10958_v61, %v10962_v2  ;;  %v16176_v55 = vcombine.high %v10965_v53, %v10969_v40  ;;  %v11010_v61 = vld [vmem:[#allocation6 + $0x2f8] sm:$0xff]  ;;  %v11017_v53 = vld [vmem:[#allocation6 + $0x330] sm:$0xff] }
 0x771   :  { %13973 = vmatprep.subr.bf16.mxu0 %v16128_v47  ;;  %14137 = vmatprep.subr.bf16.mxu1 %v16130_v18  ;;  %v16178_v47 = vcombine.high %v10966_v5, %v10970_v6  ;;  %v10973_v18 = vld [vmem:[#allocation6 + $0x1d0] sm:$0xff]  ;;  %v11014_v40 = vld [vmem:[#allocation6 + $0x318] sm:$0xff] }
 0x772   :  { %v16183_v54 = vcombine.low %v10973_v18, %v10977_v62 }
 0x773   :  { %13801 = vmatmul.mubr.bf16.vlgmr.msra.gmra.mrb[28].mxu0 %v19874_v12  ;;  %13965 = vmatmul.mubr.bf16.vlgmr.msra.gmra.mrb[36].mxu1 %v19874_v12 }
 0x774   :  { %13974 = vmatpush1.bf16.msra.mxu0 %v16127_v16  ;;  %14005 = vmatprep.mubr.bf16.mxu0 %v19801_v4  ;;  %v16177_v16 = vcombine.low %v10966_v5, %v10970_v6  ;;  %v11018_v5 = vld [vmem:[#allocation6 + $0x338] sm:$0xff] }
 0x775   :  { %14138 = vmatpush1.bf16.msra.mxu1 %v16129_v24  ;;  %14169 = vmatprep.mubr.bf16.mxu1 %v19801_v4  ;;  %v10950_v4 = vld [vmem:[#allocation6 + $0x118] sm:$0xff]  ;;  %v16184_v24 = vcombine.high %v10973_v18, %v10977_v62  ;;  %v11025_v18 = vld [vmem:[#allocation6 + $0x370] sm:$0xff] }
 0x776   :  { %13975 = vmatprep.subr.bf16.mxu0 %v16136_v11  ;;  %14139 = vmatprep.subr.bf16.mxu1 %v16138_v17  ;;  %v16162_v56 = vcombine.high %v10950_v4, %v10954_v36  ;;  %v16161_v49 = vcombine.low %v10950_v4, %v10954_v36  ;;  %v16186_v11 = vcombine.high %v10974_v1, %v10978_v44  ;;  %v10981_v17 = vld [vmem:[#allocation6 + $0x210] sm:$0xff]  ;;  %v11002_v4 = vld [vmem:[#allocation6 + $0x2b8] sm:$0xff] }
 0x777   :  { %v16191_v41 = vcombine.low %v10981_v17, %v10985_v20  ;;  %v11022_v62 = vld [vmem:[#allocation6 + $0x358] sm:$0xff] }
 0x778   :  { %13976 = vmatpush1.bf16.msra.mxu0 %v16135_v28  ;;  %v16185_v28 = vcombine.low %v10974_v1, %v10978_v44  ;;  %v11026_v1 = vld [vmem:[#allocation6 + $0x378] sm:$0xff] }
 0x779   :  { %14140 = vmatpush1.bf16.msra.mxu1 %v16137_v34  ;;  %13977 = vmatprep.subr.bf16.mxu0 %v16144_v22  ;;  %v16192_v34 = vcombine.high %v10981_v17, %v10985_v20  ;;  %v16194_v22 = vcombine.high %v10982_v26, %v10986_v52  ;;  %v11033_v17 = vld [vmem:[#allocation6 + $0x3b0] sm:$0xff]  ;;  %v11030_v20 = vld [vmem:[#allocation6 + $0x398] sm:$0xff] }
 0x77a   :  { %14141 = vmatprep.subr.bf16.mxu1 %v16146_v35  ;;  %v10989_v35 = vld [vmem:[#allocation6 + $0x250] sm:$0xff] }
 0x77b   :  { %v16199_v36 = vcombine.low %v10989_v35, %v10993_v32 }
 0x77c   :  { %13978 = vmatpush1.bf16.msra.mxu0 %v16143_v29  ;;  %v16193_v29 = vcombine.low %v10982_v26, %v10986_v52  ;;  %v11034_v26 = vld [vmem:[#allocation6 + $0x3b8] sm:$0xff] }
 0x77d   :  { %14142 = vmatpush1.bf16.msra.mxu1 %v16145_v48  ;;  %13979 = vmatprep.subr.bf16.mxu0 %v16152_v14  ;;  %v16200_v48 = vcombine.high %v10989_v35, %v10993_v32  ;;  %v16202_v14 = vcombine.high %v10990_v9, %v10994_v37  ;;  %v11041_v35 = vld [vmem:[#allocation6 + $0x3f0] sm:$0xff]  ;;  %v11038_v32 = vld [vmem:[#allocation6 + $0x3d8] sm:$0xff] }
 0x77e   :  { %14143 = vmatprep.subr.bf16.mxu1 %v16154_v59  ;;  %v10997_v59 = vld [vmem:[#allocation6 + $0x290] sm:$0xff] }
 0x77f   :  { %v16207_v2 = vcombine.low %v10997_v59, %v11001_v43 }
 0x780   :  { %13980 = vmatpush1.bf16.msra.mxu0 %v16151_v27  ;;  %v16201_v27 = vcombine.low %v10990_v9, %v10994_v37  ;;  %v11042_v9 = vld [vmem:[#allocation6 + $0x3f8] sm:$0xff] }
 0x781   :  { %14144 = vmatpush1.bf16.msra.mxu1 %v16153_v60  ;;  %13981 = vmatprep.subr.bf16.mxu0 %v16160_v42  ;;  %v16208_v60 = vcombine.high %v10997_v59, %v11001_v43  ;;  %v16210_v42 = vcombine.high %v10998_v45, %v11002_v4  ;;  %v11049_v59 = vld [vmem:[#allocation6 + $0x430] sm:$0xff]  ;;  %v11046_v43 = vld [vmem:[#allocation6 + $0x418] sm:$0xff] }
 0x782   :  { %14145 = vmatprep.subr.bf16.mxu1 %v16162_v56  ;;  %v11005_v56 = vld [vmem:[#allocation6 + $0x2d0] sm:$0xff] }
 0x783   :  { %v16215_v6 = vcombine.low %v11005_v56, %v11009_v51 }
 0x784   :  { %13982 = vmatpush1.bf16.msra.mxu0 %v16159_v15  ;;  %v16209_v15 = vcombine.low %v10998_v45, %v11002_v4  ;;  %v11050_v45 = vld [vmem:[#allocation6 + $0x438] sm:$0xff] }
 0x785   :  { %14146 = vmatpush1.bf16.msra.mxu1 %v16161_v49  ;;  %13983 = vmatprep.subr.bf16.mxu0 %v16168_v57  ;;  %v16216_v49 = vcombine.high %v11005_v56, %v11009_v51  ;;  %v16218_v57 = vcombine.high %v11006_v13, %v11010_v61  ;;  %v11057_v56 = vld [vmem:[#allocation6 + $0x470] sm:$0xff] }
 0x786   :  { %14147 = vmatprep.subr.bf16.mxu1 %v16170_v10  ;;  %v11013_v10 = vld [vmem:[#allocation6 + $0x310] sm:$0xff] }
 0x787   :  { %v16223_v44 = vcombine.low %v11013_v10, %v11017_v53 }
 0x788   :  { %13984 = vmatpush1.bf16.msra.mxu0 %v16167_v3  ;;  %v16217_v3 = vcombine.low %v11006_v13, %v11010_v61  ;;  %v11054_v13 = vld [vmem:[#allocation6 + $0x458] sm:$0xff] }
 0x789   :  { %14148 = vmatpush1.bf16.msra.mxu1 %v16169_v8  ;;  %13985 = vmatprep.subr.bf16.mxu0 %v16176_v55  ;;  %v16224_v8 = vcombine.high %v11013_v10, %v11017_v53  ;;  %v16226_v55 = vcombine.high %v11014_v40, %v11018_v5  ;;  %v11058_v61 = vld [vmem:[#allocation6 + $0x478] sm:$0xff] }
 0x78a   :  { %14149 = vmatprep.subr.bf16.mxu1 %v16178_v47  ;;  %v11021_v47 = vld [vmem:[#allocation6 + $0x350] sm:$0xff]  ;;  %v16266_v10 = vcombine.high %v11054_v13, %v11058_v61  ;;  %v11062_v53 = vld [vmem:[#allocation6 + $0x498] sm:$0xff] }
 0x78b   :  { %v16231_v52 = vcombine.low %v11021_v47, %v11025_v18 }
 0x78c   :  { %13986 = vmatpush1.bf16.msra.mxu0 %v16175_v58  ;;  %v16225_v58 = vcombine.low %v11014_v40, %v11018_v5  ;;  %v11066_v40 = vld [vmem:[#allocation6 + $0x4b8] sm:$0xff] }
 0x78d   :  { %14150 = vmatpush1.bf16.msra.mxu1 %v16177_v16  ;;  %13987 = vmatprep.subr.bf16.mxu0 %v16184_v24  ;;  %v16232_v16 = vcombine.high %v11021_v47, %v11025_v18  ;;  %v16234_v24 = vcombine.high %v11022_v62, %v11026_v1  ;;  %v11073_v47 = vld [vmem:[#allocation6 + $0x4f0] sm:$0xff]  ;;  %v11070_v18 = vld [vmem:[#allocation6 + $0x4d8] sm:$0xff] }
 0x78e   :  { %14151 = vmatprep.subr.bf16.mxu1 %v16186_v11  ;;  %v11029_v11 = vld [vmem:[#allocation6 + $0x390] sm:$0xff] }
 0x78f   :  { %v16239_v37 = vcombine.low %v11029_v11, %v11033_v17 }
 0x790   :  { %13988 = vmatpush1.bf16.msra.mxu0 %v16183_v54  ;;  %v16233_v54 = vcombine.low %v11022_v62, %v11026_v1  ;;  %v11074_v62 = vld [vmem:[#allocation6 + $0x4f8] sm:$0xff] }
 0x791   :  { %14152 = vmatpush1.bf16.msra.mxu1 %v16185_v28  ;;  %13989 = vmatprep.subr.bf16.mxu0 %v16192_v34  ;;  %v16240_v28 = vcombine.high %v11029_v11, %v11033_v17  ;;  %v16242_v34 = vcombine.high %v11030_v20, %v11034_v26  ;;  %v11078_v11 = vld [vmem:[#allocation6 + $0x518] sm:$0xff] }
 0x792   :  { %14153 = vmatprep.subr.bf16.mxu1 %v16194_v22  ;;  %v11037_v22 = vld [vmem:[#allocation6 + $0x3d0] sm:$0xff]  ;;  %v11082_v17 = vld [vmem:[#allocation6 + $0x538] sm:$0xff] }
 0x793   :  { %v16247_v4 = vcombine.low %v11037_v22, %v11041_v35 }
 0x794   :  { %13990 = vmatpush1.bf16.msra.mxu0 %v16191_v41  ;;  %v16241_v41 = vcombine.low %v11030_v20, %v11034_v26  ;;  %v16281_v20 = vcombine.low %v11070_v18, %v11074_v62 }
 0x795   :  { %14154 = vmatpush1.bf16.msra.mxu1 %v16193_v29  ;;  %13991 = vmatprep.subr.bf16.mxu0 %v16200_v48  ;;  %v16248_v29 = vcombine.high %v11037_v22, %v11041_v35  ;;  %v16250_v48 = vcombine.high %v11038_v32, %v11042_v9  ;;  %v11090_v22 = vld [vmem:[#allocation6 + $0x578] sm:$0xff] }
 0x796   :  { %14155 = vmatprep.subr.bf16.mxu1 %v16202_v14  ;;  %v11045_v14 = vld [vmem:[#allocation6 + $0x410] sm:$0xff] }
 0x797   :  { %v16255_v51 = vcombine.low %v11045_v14, %v11049_v59 }
 0x798   :  { %13992 = vmatpush1.bf16.msra.mxu0 %v16199_v36  ;;  %v16249_v36 = vcombine.low %v11038_v32, %v11042_v9  ;;  %v16289_v32 = vcombine.low %v11078_v11, %v11082_v17 }
 0x799   :  { %14156 = vmatpush1.bf16.msra.mxu1 %v16201_v27  ;;  %13993 = vmatprep.subr.bf16.mxu0 %v16208_v60  ;;  %v16256_v27 = vcombine.high %v11045_v14, %v11049_v59  ;;  %v16258_v60 = vcombine.high %v11046_v43, %v11050_v45  ;;  %v11098_v14 = vld [vmem:[#allocation6 + $0x5b8] sm:$0xff] }
 0x79a   :  { %14157 = vmatprep.subr.bf16.mxu1 %v16210_v42  ;;  %v11053_v42 = vld [vmem:[#allocation6 + $0x450] sm:$0xff] }
 0x79b   :  { %v16263_v5 = vcombine.low %v11053_v42, %v11057_v56 }
 0x79c   :  { %13994 = vmatpush1.bf16.msra.mxu0 %v16207_v2  ;;  %v16257_v2 = vcombine.low %v11046_v43, %v11050_v45 }
 0x79d   :  { %14158 = vmatpush1.bf16.msra.mxu1 %v16209_v15  ;;  %13995 = vmatprep.subr.bf16.mxu0 %v16216_v49  ;;  %v16264_v15 = vcombine.high %v11053_v42, %v11057_v56  ;;  %v11061_v49 = vld [vmem:[#allocation6 + $0x490] sm:$0xff]  ;;  %v11106_v42 = vld [vmem:[#allocation6 + $0x5f8] sm:$0xff] }
 0x79e   :  { %14159 = vmatprep.subr.bf16.mxu1 %v16218_v57  ;;  %v11065_v57 = vld [vmem:[#allocation6 + $0x4b0] sm:$0xff] }
 0x79f   :  { %v16271_v1 = vcombine.low %v11061_v49, %v11065_v57 }
 0x7a0   :  { %13996 = vmatpush1.bf16.msra.mxu0 %v16215_v6  ;;  %v16265_v6 = vcombine.low %v11054_v13, %v11058_v61 }
 0x7a1   :  { %14160 = vmatpush1.bf16.msra.mxu1 %v16217_v3  ;;  %13997 = vmatprep.subr.bf16.mxu0 %v16224_v8  ;;  %v16272_v3 = vcombine.high %v11061_v49, %v11065_v57  ;;  %v16274_v8 = vcombine.high %v11062_v53, %v11066_v40  ;;  %v11110_v49 = vld [vmem:[#allocation6 + $0x618] sm:$0xff] }
 0x7a2   :  { %14161 = vmatprep.subr.bf16.mxu1 %v16226_v55  ;;  %v11069_v55 = vld [vmem:[#allocation6 + $0x4d0] sm:$0xff]  ;;  %v11114_v57 = vld [vmem:[#allocation6 + $0x638] sm:$0xff] }
 0x7a4   :  { %13998 = vmatpush1.bf16.msra.mxu0 %v16223_v44  ;;  %v16280_v44 = vcombine.high %v11069_v55, %v11073_v47 }
 0x7a5   :  { %14162 = vmatpush1.bf16.msra.mxu1 %v16225_v58  ;;  %13999 = vmatprep.subr.bf16.mxu0 %v16232_v16  ;;  %v16282_v58 = vcombine.high %v11070_v18, %v11074_v62  ;;  %v11077_v16 = vld [vmem:[#allocation6 + $0x510] sm:$0xff]  ;;  %v16321_v18 = vcombine.low %v11110_v49, %v11114_v57 }
 0x7a6   :  { %14163 = vmatprep.subr.bf16.mxu1 %v16234_v24  ;;  %v11081_v24 = vld [vmem:[#allocation6 + $0x530] sm:$0xff] }
 0x7a7   :  { %v16288_v26 = vcombine.high %v11077_v16, %v11081_v24  ;;  %v16287_v35 = vcombine.low %v11077_v16, %v11081_v24  ;;  %v11130_v16 = vld [vmem:[#allocation6 + $0x6b8] sm:$0xff] }
 0x7a8   :  { %14000 = vmatpush1.bf16.msra.mxu0 %v16231_v52  ;;  %v16290_v52 = vcombine.high %v11078_v11, %v11082_v17 }
 0x7a9   :  { %14164 = vmatpush1.bf16.msra.mxu1 %v16233_v54  ;;  %14001 = vmatprep.subr.bf16.mxu0 %v16240_v28  ;;  %v11085_v54 = vld [vmem:[#allocation6 + $0x550] sm:$0xff] }
 0x7aa   :  { %14165 = vmatprep.subr.bf16.mxu1 %v16242_v34  ;;  %v11089_v28 = vld [vmem:[#allocation6 + $0x570] sm:$0xff]  ;;  %v11086_v34 = vld [vmem:[#allocation6 + $0x558] sm:$0xff] }
 0x7ab   :  { %v16296_v9 = vcombine.high %v11085_v54, %v11089_v28  ;;  %v16295_v59 = vcombine.low %v11085_v54, %v11089_v28  ;;  %v16297_v43 = vcombine.low %v11086_v34, %v11090_v22  ;;  %v11138_v54 = vld [vmem:[#allocation6 + $0x6f8] sm:$0xff] }
 0x7ac   :  { %14002 = vmatpush1.bf16.msra.mxu0 %v16239_v37  ;;  %v16298_v37 = vcombine.high %v11086_v34, %v11090_v22 }
 0x7ad   :  { %14166 = vmatpush1.bf16.msra.mxu1 %v16241_v41  ;;  %14003 = vmatprep.subr.bf16.mxu0 %v16248_v29  ;;  %v11093_v41 = vld [vmem:[#allocation6 + $0x590] sm:$0xff] }
 0x7ae   :  { %14167 = vmatprep.subr.bf16.mxu1 %v16250_v48  ;;  %v11097_v29 = vld [vmem:[#allocation6 + $0x5b0] sm:$0xff]  ;;  %v11094_v48 = vld [vmem:[#allocation6 + $0x598] sm:$0xff] }
 0x7af   :  { %v16304_v45 = vcombine.high %v11093_v41, %v11097_v29  ;;  %v16303_v56 = vcombine.low %v11093_v41, %v11097_v29  ;;  %v11146_v41 = vld [vmem:[#allocation6 + $0x738] sm:$0xff] }
 0x7b0   :  { %14004 = vmatpush1.bf16.msra.mxu0 %v16247_v4  ;;  %v16306_v4 = vcombine.high %v11094_v48, %v11098_v14 }
 0x7b1   :  { %14168 = vmatpush1.bf16.msra.mxu1 %v16249_v36  ;;  %14014 = vmatprep.subr.bf16.mxu0 %v16256_v27  ;;  %v11101_v36 = vld [vmem:[#allocation6 + $0x5d0] sm:$0xff] }
 0x7b2   :  { %14178 = vmatprep.subr.bf16.mxu1 %v16258_v60  ;;  %v11105_v27 = vld [vmem:[#allocation6 + $0x5f0] sm:$0xff]  ;;  %v11102_v60 = vld [vmem:[#allocation6 + $0x5d8] sm:$0xff] }
 0x7b3   :  { %14006 = vmatmul.mubr.bf16.vlgmr.msra.gmra.mrb[32].mxu0 %v19807_v25  ;;  %v16312_v13 = vcombine.high %v11101_v36, %v11105_v27  ;;  %v16314_v61 = vcombine.high %v11102_v60, %v11106_v42 }
 0x7b4   :  { %14170 = vmatmul.mubr.bf16.vlgmr.msra.gmra.mrb[40].mxu1 %v19807_v25  ;;  %14015 = vmatpush1.bf16.msra.mxu0 %v16255_v51  ;;  %v16273_v25 = vcombine.low %v11062_v53, %v11066_v40  ;;  %v16305_v51 = vcombine.low %v11094_v48, %v11098_v14  ;;  %v16313_v53 = vcombine.low %v11102_v60, %v11106_v42 }
 0x7b5   :  { %14046 = vmatprep.mubr.bf16.mxu0 %v19835_v46  ;;  %14179 = vmatpush1.bf16.msra.mxu1 %v16257_v2  ;;  %v11109_v2 = vld [vmem:[#allocation6 + $0x610] sm:$0xff] }
 0x7b6   :  { %14210 = vmatprep.mubr.bf16.mxu1 %v19835_v46  ;;  %14016 = vmatprep.subr.bf16.mxu0 %v16264_v15  ;;  %v16279_v46 = vcombine.low %v11069_v55, %v11073_v47  ;;  %v11113_v15 = vld [vmem:[#allocation6 + $0x630] sm:$0xff]  ;;  %v11122_v55 = vld [vmem:[#allocation6 + $0x678] sm:$0xff] }
 0x7b7   :  { %14180 = vmatprep.subr.bf16.mxu1 %v16266_v10  ;;  %v16311_v10 = vcombine.low %v11101_v36, %v11105_v27  ;;  %v16320_v40 = vcombine.high %v11109_v2, %v11113_v15  ;;  %v16319_v47 = vcombine.low %v11109_v2, %v11113_v15  ;;  %v11154_v36 = vld [vmem:[#allocation6 + $0x778] sm:$0xff] }
 0x7b8   :  { %14017 = vmatpush1.bf16.msra.mxu0 %v16263_v5  ;;  %v16322_v5 = vcombine.high %v11110_v49, %v11114_v57  ;;  %v11162_v2 = vld [vmem:[#allocation6 + $0x7b8] sm:$0xff] }
 0x7b9   :  { %14181 = vmatpush1.bf16.msra.mxu1 %v16265_v6  ;;  %14018 = vmatprep.subr.bf16.mxu0 %v16272_v3  ;;  %v11117_v6 = vld [vmem:[#allocation6 + $0x650] sm:$0xff] }
 0x7ba   :  { %14182 = vmatprep.subr.bf16.mxu1 %v16274_v8  ;;  %v11121_v3 = vld [vmem:[#allocation6 + $0x670] sm:$0xff]  ;;  %v11118_v8 = vld [vmem:[#allocation6 + $0x658] sm:$0xff] }
 0x7bb   :  { %v16328_v62 = vcombine.high %v11117_v6, %v11121_v3  ;;  %v16327_v24 = vcombine.low %v11117_v6, %v11121_v3  ;;  %v16329_v11 = vcombine.low %v11118_v8, %v11122_v55  ;;  %v11170_v6 = vld [vmem:[#allocation6 + $0x7f8] sm:$0xff] }
 0x7bc   :  { %14019 = vmatpush1.bf16.msra.mxu0 %v16271_v1  ;;  %v16330_v1 = vcombine.high %v11118_v8, %v11122_v55 }
 0x7bd   :  { %14183 = vmatpush1.bf16.msra.mxu1 %v16273_v25  ;;  %14020 = vmatprep.subr.bf16.mxu0 %v16280_v44  ;;  %v11125_v25 = vld [vmem:[#allocation6 + $0x690] sm:$0xff] }
 0x7be   :  { %14184 = vmatprep.subr.bf16.mxu1 %v16282_v58  ;;  %v11129_v44 = vld [vmem:[#allocation6 + $0x6b0] sm:$0xff]  ;;  %v11126_v58 = vld [vmem:[#allocation6 + $0x698] sm:$0xff] }
 0x7bf   :  { %v16336_v17 = vcombine.high %v11125_v25, %v11129_v44  ;;  %v16335_v28 = vcombine.low %v11125_v25, %v11129_v44  ;;  %v16337_v34 = vcombine.low %v11126_v58, %v11130_v16  ;;  %v11178_v25 = vld [vmem:[#allocation6 + $0x838] sm:$0xff] }
 0x7c0   :  { %14021 = vmatpush1.bf16.msra.mxu0 %v16279_v46  ;;  %v16338_v46 = vcombine.high %v11126_v58, %v11130_v16 }
 0x7c1   :  { %14185 = vmatpush1.bf16.msra.mxu1 %v16281_v20  ;;  %14022 = vmatprep.subr.bf16.mxu0 %v16288_v26  ;;  %v11133_v20 = vld [vmem:[#allocation6 + $0x6d0] sm:$0xff] }
 0x7c2   :  { %14186 = vmatprep.subr.bf16.mxu1 %v16290_v52  ;;  %v11137_v26 = vld [vmem:[#allocation6 + $0x6f0] sm:$0xff]  ;;  %v11134_v52 = vld [vmem:[#allocation6 + $0x6d8] sm:$0xff] }
 0x7c3   :  { %v16344_v22 = vcombine.high %v11133_v20, %v11137_v26  ;;  %v16343_v29 = vcombine.low %v11133_v20, %v11137_v26  ;;  %v16345_v48 = vcombine.low %v11134_v52, %v11138_v54  ;;  %v11182_v20 = vld [vmem:[#allocation6 + $0x858] sm:$0xff] }
 0x7c4   :  { %14023 = vmatpush1.bf16.msra.mxu0 %v16287_v35  ;;  %v16346_v35 = vcombine.high %v11134_v52, %v11138_v54  ;;  %v11186_v26 = vld [vmem:[#allocation6 + $0x878] sm:$0xff] }
 0x7c5   :  { %14187 = vmatpush1.bf16.msra.mxu1 %v16289_v32  ;;  %14024 = vmatprep.subr.bf16.mxu0 %v16296_v9  ;;  %v11141_v32 = vld [vmem:[#allocation6 + $0x710] sm:$0xff] }
 0x7c6   :  { %14188 = vmatprep.subr.bf16.mxu1 %v16298_v37  ;;  %v11145_v9 = vld [vmem:[#allocation6 + $0x730] sm:$0xff]  ;;  %v11142_v37 = vld [vmem:[#allocation6 + $0x718] sm:$0xff] }
 0x7c7   :  { %v16352_v14 = vcombine.high %v11141_v32, %v11145_v9  ;;  %v16351_v27 = vcombine.low %v11141_v32, %v11145_v9  ;;  %v16353_v60 = vcombine.low %v11142_v37, %v11146_v41  ;;  %v11194_v32 = vld [vmem:[#allocation6 + $0x8b8] sm:$0xff] }
 0x7c8   :  { %14025 = vmatpush1.bf16.msra.mxu0 %v16295_v59  ;;  %v16354_v59 = vcombine.high %v11142_v37, %v11146_v41  ;;  %v16393_v37 = vcombine.low %v11182_v20, %v11186_v26 }
 0x7c9   :  { %14189 = vmatpush1.bf16.msra.mxu1 %v16297_v43  ;;  %14026 = vmatprep.subr.bf16.mxu0 %v16304_v45  ;;  %v11149_v43 = vld [vmem:[#allocation6 + $0x750] sm:$0xff] }
 0x7ca   :  { %14190 = vmatprep.subr.bf16.mxu1 %v16306_v4  ;;  %v11153_v45 = vld [vmem:[#allocation6 + $0x770] sm:$0xff]  ;;  %v11150_v4 = vld [vmem:[#allocation6 + $0x758] sm:$0xff] }
 0x7cb   :  { %v16360_v42 = vcombine.high %v11149_v43, %v11153_v45  ;;  %v16359_v15 = vcombine.low %v11149_v43, %v11153_v45  ;;  %v16361_v49 = vcombine.low %v11150_v4, %v11154_v36  ;;  %v11202_v43 = vld [vmem:[#allocation6 + $0x8f8] sm:$0xff] }
 0x7cc   :  { %14027 = vmatpush1.bf16.msra.mxu0 %v16303_v56  ;;  %v16362_v56 = vcombine.high %v11150_v4, %v11154_v36 }
 0x7cd   :  { %14191 = vmatpush1.bf16.msra.mxu1 %v16305_v51  ;;  %14028 = vmatprep.subr.bf16.mxu0 %v16312_v13  ;;  %v11157_v51 = vld [vmem:[#allocation6 + $0x790] sm:$0xff] }
 0x7ce   :  { %14192 = vmatprep.subr.bf16.mxu1 %v16314_v61  ;;  %v11161_v13 = vld [vmem:[#allocation6 + $0x7b0] sm:$0xff]  ;;  %v11158_v61 = vld [vmem:[#allocation6 + $0x798] sm:$0xff] }
 0x7cf   :  { %v16368_v57 = vcombine.high %v11157_v51, %v11161_v13  ;;  %v16367_v3 = vcombine.low %v11157_v51, %v11161_v13  ;;  %v16369_v8 = vcombine.low %v11158_v61, %v11162_v2 }
 0x7d0   :  { %14029 = vmatpush1.bf16.msra.mxu0 %v16311_v10  ;;  %v16370_v10 = vcombine.high %v11158_v61, %v11162_v2  ;;  %v11213_v2 = vld [vmem:[#allocation6 + $0x950] sm:$0xff] }
 0x7d1   :  { %14193 = vmatpush1.bf16.msra.mxu1 %v16313_v53  ;;  %14030 = vmatprep.subr.bf16.mxu0 %v16320_v40  ;;  %v11165_v53 = vld [vmem:[#allocation6 + $0x7d0] sm:$0xff] }
 0x7d2   :  { %14194 = vmatprep.subr.bf16.mxu1 %v16322_v5  ;;  %v11169_v40 = vld [vmem:[#allocation6 + $0x7f0] sm:$0xff]  ;;  %v11166_v5 = vld [vmem:[#allocation6 + $0x7d8] sm:$0xff] }
 0x7d3   :  { %v16376_v55 = vcombine.high %v11165_v53, %v11169_v40  ;;  %v16375_v44 = vcombine.low %v11165_v53, %v11169_v40  ;;  %v16377_v58 = vcombine.low %v11166_v5, %v11170_v6 }
 0x7d4   :  { %14031 = vmatpush1.bf16.msra.mxu0 %v16319_v47  ;;  %v16378_v47 = vcombine.high %v11166_v5, %v11170_v6  ;;  %v11221_v6 = vld [vmem:[#allocation6 + $0x990] sm:$0xff] }
 0x7d5   :  { %14195 = vmatpush1.bf16.msra.mxu1 %v16321_v18  ;;  %14032 = vmatprep.subr.bf16.mxu0 %v16328_v62  ;;  %v11173_v18 = vld [vmem:[#allocation6 + $0x810] sm:$0xff] }
 0x7d6   :  { %14196 = vmatprep.subr.bf16.mxu1 %v16330_v1  ;;  %v11177_v62 = vld [vmem:[#allocation6 + $0x830] sm:$0xff]  ;;  %v11174_v1 = vld [vmem:[#allocation6 + $0x818] sm:$0xff] }
 0x7d7   :  { %v16384_v16 = vcombine.high %v11173_v18, %v11177_v62  ;;  %v16385_v52 = vcombine.low %v11174_v1, %v11178_v25 }
 0x7d8   :  { %14033 = vmatpush1.bf16.msra.mxu0 %v16327_v24  ;;  %v16386_v24 = vcombine.high %v11174_v1, %v11178_v25  ;;  %v11229_v25 = vld [vmem:[#allocation6 + $0x9d0] sm:$0xff] }
 0x7d9   :  { %14197 = vmatpush1.bf16.msra.mxu1 %v16329_v11  ;;  %14034 = vmatprep.subr.bf16.mxu0 %v16336_v17  ;;  %v11181_v11 = vld [vmem:[#allocation6 + $0x850] sm:$0xff] }
 0x7da   :  { %14198 = vmatprep.subr.bf16.mxu1 %v16338_v46  ;;  %v11185_v17 = vld [vmem:[#allocation6 + $0x870] sm:$0xff]  ;;  %v16383_v46 = vcombine.low %v11173_v18, %v11177_v62 }
 0x7db   :  { %v16392_v54 = vcombine.high %v11181_v11, %v11185_v17  ;;  %v16391_v9 = vcombine.low %v11181_v11, %v11185_v17 }
 0x7dc   :  { %14035 = vmatpush1.bf16.msra.mxu0 %v16335_v28  ;;  %v11189_v28 = vld [vmem:[#allocation6 + $0x890] sm:$0xff] }
 0x7dd   :  { %14199 = vmatpush1.bf16.msra.mxu1 %v16337_v34  ;;  %14036 = vmatprep.subr.bf16.mxu0 %v16344_v22  ;;  %v11193_v34 = vld [vmem:[#allocation6 + $0x8b0] sm:$0xff]  ;;  %v16394_v22 = vcombine.high %v11182_v20, %v11186_v26 }
 0x7de   :  { %14200 = vmatprep.subr.bf16.mxu1 %v16346_v35  ;;  %v11190_v35 = vld [vmem:[#allocation6 + $0x898] sm:$0xff]  ;;  %v16400_v41 = vcombine.high %v11189_v28, %v11193_v34  ;;  %v16399_v45 = vcombine.low %v11189_v28, %v11193_v34  ;;  %v11237_v20 = vld [vmem:[#allocation6 + $0xa10] sm:$0xff] }
 0x7df   :  { %v11241_v26 = vld [vmem:[#allocation6 + $0xa30] sm:$0xff] }
 0x7e0   :  { %14037 = vmatpush1.bf16.msra.mxu0 %v16343_v29  ;;  %v16402_v29 = vcombine.high %v11190_v35, %v11194_v32 }
 0x7e1   :  { %14201 = vmatpush1.bf16.msra.mxu1 %v16345_v48  ;;  %14038 = vmatprep.subr.bf16.mxu0 %v16352_v14  ;;  %v11197_v48 = vld [vmem:[#allocation6 + $0x8d0] sm:$0xff] }
 0x7e2   :  { %14202 = vmatprep.subr.bf16.mxu1 %v16354_v59  ;;  %v11201_v14 = vld [vmem:[#allocation6 + $0x8f0] sm:$0xff]  ;;  %v11198_v59 = vld [vmem:[#allocation6 + $0x8d8] sm:$0xff] }
 0x7e3   :  { %v16408_v4 = vcombine.high %v11197_v48, %v11201_v14  ;;  %v16410_v36 = vcombine.high %v11198_v59, %v11202_v43  ;;  %v16409_v51 = vcombine.low %v11198_v59, %v11202_v43  ;;  %v11253_v43 = vld [vmem:[#allocation6 + $0xa90] sm:$0xff] }
 0x7e4   :  { %14039 = vmatpush1.bf16.msra.mxu0 %v16351_v27  ;;  %v11205_v27 = vld [vmem:[#allocation6 + $0x910] sm:$0xff] }
 0x7e5   :  { %14203 = vmatpush1.bf16.msra.mxu1 %v16353_v60  ;;  %14040 = vmatprep.subr.bf16.mxu0 %v16360_v42  ;;  %v11209_v60 = vld [vmem:[#allocation6 + $0x930] sm:$0xff]  ;;  %v11206_v42 = vld [vmem:[#allocation6 + $0x918] sm:$0xff] }
 0x7e6   :  { %14204 = vmatprep.subr.bf16.mxu1 %v16362_v56  ;;  %v11210_v56 = vld [vmem:[#allocation6 + $0x938] sm:$0xff]  ;;  %v16416_v13 = vcombine.high %v11205_v27, %v11209_v60 }
 0x7e7   :  { %v16418_v61 = vcombine.high %v11206_v42, %v11210_v56  ;;  %v16417_v53 = vcombine.low %v11206_v42, %v11210_v56  ;;  %v11261_v56 = vld [vmem:[#allocation6 + $0xad0] sm:$0xff] }
 0x7e8   :  { %14041 = vmatpush1.bf16.msra.mxu0 %v16359_v15  ;;  %v11217_v15 = vld [vmem:[#allocation6 + $0x970] sm:$0xff] }
 0x7e9   :  { %14205 = vmatpush1.bf16.msra.mxu1 %v16361_v49  ;;  %14042 = vmatprep.subr.bf16.mxu0 %v16368_v57  ;;  %v11214_v49 = vld [vmem:[#allocation6 + $0x958] sm:$0xff]  ;;  %v16424_v40 = vcombine.high %v11213_v2, %v11217_v15 }
 0x7ea   :  { %14206 = vmatprep.subr.bf16.mxu1 %v16370_v10  ;;  %v11218_v57 = vld [vmem:[#allocation6 + $0x978] sm:$0xff]  ;;  %v16415_v10 = vcombine.low %v11205_v27, %v11209_v60 }
 0x7eb   :  { %v16426_v5 = vcombine.high %v11214_v49, %v11218_v57  ;;  %v16425_v18 = vcombine.low %v11214_v49, %v11218_v57  ;;  %v11269_v57 = vld [vmem:[#allocation6 + $0xb10] sm:$0xff] }
 0x7ec   :  { %14043 = vmatpush1.bf16.msra.mxu0 %v16367_v3  ;;  %v11225_v3 = vld [vmem:[#allocation6 + $0x9b0] sm:$0xff] }
 0x7ed   :  { %14207 = vmatpush1.bf16.msra.mxu1 %v16369_v8  ;;  %14044 = vmatprep.subr.bf16.mxu0 %v16376_v55  ;;  %v11222_v8 = vld [vmem:[#allocation6 + $0x998] sm:$0xff]  ;;  %v16432_v62 = vcombine.high %v11221_v6, %v11225_v3 }
 0x7ee   :  { %14208 = vmatprep.subr.bf16.mxu1 %v16378_v47  ;;  %v11226_v55 = vld [vmem:[#allocation6 + $0x9b8] sm:$0xff]  ;;  %v16423_v47 = vcombine.low %v11213_v2, %v11217_v15 }
 0x7ef   :  { %v16434_v1 = vcombine.high %v11222_v8, %v11226_v55  ;;  %v16433_v11 = vcombine.low %v11222_v8, %v11226_v55  ;;  %v11277_v55 = vld [vmem:[#allocation6 + $0xb50] sm:$0xff] }
 0x7f0   :  { %14045 = vmatpush1.bf16.msra.mxu0 %v16375_v44  ;;  %v11233_v44 = vld [vmem:[#allocation6 + $0x9f0] sm:$0xff] }
 0x7f1   :  { %14209 = vmatpush1.bf16.msra.mxu1 %v16377_v58  ;;  %14055 = vmatprep.subr.bf16.mxu0 %v16384_v16  ;;  %v11230_v58 = vld [vmem:[#allocation6 + $0x9d8] sm:$0xff]  ;;  %v16440_v17 = vcombine.high %v11229_v25, %v11233_v44  ;;  %v16439_v28 = vcombine.low %v11229_v25, %v11233_v44 }
 0x7f2   :  { %14219 = vmatprep.subr.bf16.mxu1 %v16386_v24  ;;  %v11234_v16 = vld [vmem:[#allocation6 + $0x9f8] sm:$0xff]  ;;  %v16431_v24 = vcombine.low %v11221_v6, %v11225_v3 }
 0x7f3   :  { %14047 = vmatmul.mubr.bf16.vlgmr.msra.gmra.mrb[32].mxu0 %v19839_v38  ;;  %v16441_v34 = vcombine.low %v11230_v58, %v11234_v16 }
 0x7f4   :  { %14211 = vmatmul.mubr.bf16.vlgmr.msra.gmra.mrb[40].mxu1 %v19839_v38  ;;  %14056 = vmatpush1.bf16.msra.mxu0 %v16383_v46  ;;  %v16401_v38 = vcombine.low %v11190_v35, %v11194_v32  ;;  %v16442_v46 = vcombine.high %v11230_v58, %v11234_v16  ;;  %v11245_v32 = vld [vmem:[#allocation6 + $0xa50] sm:$0xff] }
 0x7f5   :  { %14087 = vmatprep.mubr.bf16.mxu0 %v19860_v50  ;;  %14220 = vmatpush1.bf16.msra.mxu1 %v16385_v52  ;;  %v11238_v52 = vld [vmem:[#allocation6 + $0xa18] sm:$0xff]  ;;  %v11285_v16 = vld [vmem:[#allocation6 + $0xb90] sm:$0xff] }
 0x7f6   :  { %14251 = vmatprep.mubr.bf16.mxu1 %v19860_v50  ;;  %14057 = vmatprep.subr.bf16.mxu0 %v16392_v54  ;;  %v16407_v50 = vcombine.low %v11197_v48, %v11201_v14  ;;  %v11242_v54 = vld [vmem:[#allocation6 + $0xa38] sm:$0xff] }
 0x7f7   :  { %14221 = vmatprep.subr.bf16.mxu1 %v16394_v22  ;;  %v16448_v22 = vcombine.high %v11237_v20, %v11241_v26  ;;  %v16450_v35 = vcombine.high %v11238_v52, %v11242_v54  ;;  %v16449_v48 = vcombine.low %v11238_v52, %v11242_v54  ;;  %v11293_v54 = vld [vmem:[#allocation6 + $0xbd0] sm:$0xff] }
 0x7f8   :  { %14058 = vmatpush1.bf16.msra.mxu0 %v16391_v9  ;;  %v11249_v9 = vld [vmem:[#allocation6 + $0xa70] sm:$0xff] }
 0x7f9   :  { %14222 = vmatpush1.bf16.msra.mxu1 %v16393_v37  ;;  %14059 = vmatprep.subr.bf16.mxu0 %v16400_v41  ;;  %v11246_v37 = vld [vmem:[#allocation6 + $0xa58] sm:$0xff]  ;;  %v16456_v14 = vcombine.high %v11245_v32, %v11249_v9 }
 0x7fa   :  { %14223 = vmatprep.subr.bf16.mxu1 %v16402_v29  ;;  %v11250_v41 = vld [vmem:[#allocation6 + $0xa78] sm:$0xff]  ;;  %v16447_v29 = vcombine.low %v11237_v20, %v11241_v26 }
 0x7fb   :  { %v16458_v59 = vcombine.high %v11246_v37, %v11250_v41  ;;  %v16457_v27 = vcombine.low %v11246_v37, %v11250_v41  ;;  %v11301_v41 = vld [vmem:[#allocation6 + $0xc10] sm:$0xff] }
 0x7fc   :  { %14060 = vmatpush1.bf16.msra.mxu0 %v16399_v45  ;;  %v11257_v45 = vld [vmem:[#allocation6 + $0xab0] sm:$0xff] }
 0x7fd   :  { %14224 = vmatpush1.bf16.msra.mxu1 %v16401_v38  ;;  %14061 = vmatprep.subr.bf16.mxu0 %v16408_v4  ;;  %v11254_v38 = vld [vmem:[#allocation6 + $0xa98] sm:$0xff]  ;;  %v16464_v60 = vcombine.high %v11253_v43, %v11257_v45 }
 0x7fe   :  { %14225 = vmatprep.subr.bf16.mxu1 %v16410_v36  ;;  %v11258_v4 = vld [vmem:[#allocation6 + $0xab8] sm:$0xff]  ;;  %v16455_v36 = vcombine.low %v11245_v32, %v11249_v9 }
 0x7ff   :  { %v16466_v42 = vcombine.high %v11254_v38, %v11258_v4  ;;  %v16465_v2 = vcombine.low %v11254_v38, %v11258_v4  ;;  %v11309_v4 = vld [vmem:[#allocation6 + $0xc50] sm:$0xff] }
 0x800   :  { %14062 = vmatpush1.bf16.msra.mxu0 %v16407_v50  ;;  %v11265_v50 = vld [vmem:[#allocation6 + $0xaf0] sm:$0xff] }
 0x801   :  { %14226 = vmatpush1.bf16.msra.mxu1 %v16409_v51  ;;  %14063 = vmatprep.subr.bf16.mxu0 %v16416_v13  ;;  %v11262_v51 = vld [vmem:[#allocation6 + $0xad8] sm:$0xff]  ;;  %v16472_v15 = vcombine.high %v11261_v56, %v11265_v50 }
 0x802   :  { %14227 = vmatprep.subr.bf16.mxu1 %v16418_v61  ;;  %v11266_v13 = vld [vmem:[#allocation6 + $0xaf8] sm:$0xff]  ;;  %v16463_v61 = vcombine.low %v11253_v43, %v11257_v45 }
 0x803   :  { %v16474_v49 = vcombine.high %v11262_v51, %v11266_v13  ;;  %v16473_v6 = vcombine.low %v11262_v51, %v11266_v13  ;;  %v11317_v13 = vld [vmem:[#allocation6 + $0xc90] sm:$0xff] }
 0x804   :  { %14064 = vmatpush1.bf16.msra.mxu0 %v16415_v10  ;;  %v11273_v10 = vld [vmem:[#allocation6 + $0xb30] sm:$0xff] }
 0x805   :  { %14228 = vmatpush1.bf16.msra.mxu1 %v16417_v53  ;;  %14065 = vmatprep.subr.bf16.mxu0 %v16424_v40  ;;  %v11270_v53 = vld [vmem:[#allocation6 + $0xb18] sm:$0xff]  ;;  %v16480_v3 = vcombine.high %v11269_v57, %v11273_v10 }
 0x806   :  { %14229 = vmatprep.subr.bf16.mxu1 %v16426_v5  ;;  %v11274_v40 = vld [vmem:[#allocation6 + $0xb38] sm:$0xff]  ;;  %v16471_v5 = vcombine.low %v11261_v56, %v11265_v50 }
 0x807   :  { %v16482_v8 = vcombine.high %v11270_v53, %v11274_v40  ;;  %v16481_v25 = vcombine.low %v11270_v53, %v11274_v40  ;;  %v11325_v40 = vld [vmem:[#allocation6 + $0xcd0] sm:$0xff] }
 0x808   :  { %14066 = vmatpush1.bf16.msra.mxu0 %v16423_v47  ;;  %v11281_v47 = vld [vmem:[#allocation6 + $0xb70] sm:$0xff] }
 0x809   :  { %14230 = vmatpush1.bf16.msra.mxu1 %v16425_v18  ;;  %14067 = vmatprep.subr.bf16.mxu0 %v16432_v62  ;;  %v11278_v18 = vld [vmem:[#allocation6 + $0xb58] sm:$0xff]  ;;  %v16488_v44 = vcombine.high %v11277_v55, %v11281_v47 }
 0x80a   :  { %14231 = vmatprep.subr.bf16.mxu1 %v16434_v1  ;;  %v11282_v62 = vld [vmem:[#allocation6 + $0xb78] sm:$0xff]  ;;  %v16479_v1 = vcombine.low %v11269_v57, %v11273_v10 }
 0x80b   :  { %v16490_v58 = vcombine.high %v11278_v18, %v11282_v62  ;;  %v16489_v20 = vcombine.low %v11278_v18, %v11282_v62  ;;  %v11333_v18 = vld [vmem:[#allocation6 + $0xd10] sm:$0xff] }
 0x80c   :  { %14068 = vmatpush1.bf16.msra.mxu0 %v16431_v24  ;;  %v11289_v24 = vld [vmem:[#allocation6 + $0xbb0] sm:$0xff] }
 0x80d   :  { %14232 = vmatpush1.bf16.msra.mxu1 %v16433_v11  ;;  %14069 = vmatprep.subr.bf16.mxu0 %v16440_v17  ;;  %v11286_v11 = vld [vmem:[#allocation6 + $0xb98] sm:$0xff]  ;;  %v16496_v26 = vcombine.high %v11285_v16, %v11289_v24  ;;  %v11337_v62 = vld [vmem:[#allocation6 + $0xd30] sm:$0xff] }
 0x80e   :  { %14233 = vmatprep.subr.bf16.mxu1 %v16442_v46  ;;  %v11290_v17 = vld [vmem:[#allocation6 + $0xbb8] sm:$0xff]  ;;  %v16487_v46 = vcombine.low %v11277_v55, %v11281_v47 }
 0x80f   :  { %v16498_v52 = vcombine.high %v11286_v11, %v11290_v17  ;;  %v16497_v32 = vcombine.low %v11286_v11, %v11290_v17  ;;  %v11345_v11 = vld [vmem:[#allocation6 + $0xd70] sm:$0xff]  ;;  %v11342_v17 = vld [vmem:[#allocation6 + $0xd58] sm:$0xff] }
 0x810   :  { %14070 = vmatpush1.bf16.msra.mxu0 %v16439_v28  ;;  %v11297_v28 = vld [vmem:[#allocation6 + $0xbf0] sm:$0xff] }
 0x811   :  { %14234 = vmatpush1.bf16.msra.mxu1 %v16441_v34  ;;  %14071 = vmatprep.subr.bf16.mxu0 %v16448_v22  ;;  %v11294_v34 = vld [vmem:[#allocation6 + $0xbd8] sm:$0xff]  ;;  %v16504_v9 = vcombine.high %v11293_v54, %v11297_v28 }
 0x812   :  { %14235 = vmatprep.subr.bf16.mxu1 %v16450_v35  ;;  %v11298_v22 = vld [vmem:[#allocation6 + $0xbf8] sm:$0xff]  ;;  %v16495_v35 = vcombine.low %v11285_v16, %v11289_v24  ;;  %v16544_v16 = vcombine.high %v11333_v18, %v11337_v62  ;;  %v11341_v24 = vld [vmem:[#allocation6 + $0xd50] sm:$0xff] }
 0x813   :  { %v16506_v37 = vcombine.high %v11294_v34, %v11298_v22  ;;  %v16505_v43 = vcombine.low %v11294_v34, %v11298_v22  ;;  %v11349_v34 = vld [vmem:[#allocation6 + $0xd90] sm:$0xff] }
 0x814   :  { %14072 = vmatpush1.bf16.msra.mxu0 %v16447_v29  ;;  %v11305_v29 = vld [vmem:[#allocation6 + $0xc30] sm:$0xff] }
 0x815   :  { %14236 = vmatpush1.bf16.msra.mxu1 %v16449_v48  ;;  %14073 = vmatprep.subr.bf16.mxu0 %v16456_v14  ;;  %v11302_v48 = vld [vmem:[#allocation6 + $0xc18] sm:$0xff]  ;;  %v16512_v45 = vcombine.high %v11301_v41, %v11305_v29  ;;  %v11353_v22 = vld [vmem:[#allocation6 + $0xdb0] sm:$0xff] }
 0x816   :  { %14237 = vmatprep.subr.bf16.mxu1 %v16458_v59  ;;  %v11306_v14 = vld [vmem:[#allocation6 + $0xc38] sm:$0xff]  ;;  %v16503_v59 = vcombine.low %v11293_v54, %v11297_v28  ;;  %v16552_v54 = vcombine.high %v11341_v24, %v11345_v11 }
 0x817   :  { %v16514_v38 = vcombine.high %v11302_v48, %v11306_v14  ;;  %v16513_v56 = vcombine.low %v11302_v48, %v11306_v14  ;;  %v16551_v48 = vcombine.low %v11341_v24, %v11345_v11  ;;  %v19021_v24 = vld [vmem:[#allocation9 + $0x68] sm:$0xff]  }
 0x818   :  { %14074 = vmatpush1.bf16.msra.mxu0 %v16455_v36  ;;  %v11313_v36 = vld [vmem:[#allocation6 + $0xc70] sm:$0xff] }
 0x819   :  { %14238 = vmatpush1.bf16.msra.mxu1 %v16457_v27  ;;  %14075 = vmatprep.subr.bf16.mxu0 %v16464_v60  ;;  %v11310_v27 = vld [vmem:[#allocation6 + $0xc58] sm:$0xff]  ;;  %v16520_v50 = vcombine.high %v11309_v4, %v11313_v36  ;;  %v19022_v11 = vld [vmem:[#allocation9 + $0x28] sm:$0xff]  }
 0x81a   :  { %14239 = vmatprep.subr.bf16.mxu1 %v16466_v42  ;;  %v11314_v60 = vld [vmem:[#allocation6 + $0xc78] sm:$0xff]  ;;  %v16511_v42 = vcombine.low %v11301_v41, %v11305_v29 }
 0x81b   :  { %v16522_v51 = vcombine.high %v11310_v27, %v11314_v60  ;;  %v16521_v57 = vcombine.low %v11310_v27, %v11314_v60 }
 0x81c   :  { %14076 = vmatpush1.bf16.msra.mxu0 %v16463_v61  ;;  %v11321_v61 = vld [vmem:[#allocation6 + $0xcb0] sm:$0xff] }
 0x81d   :  { %14240 = vmatpush1.bf16.msra.mxu1 %v16465_v2  ;;  %14077 = vmatprep.subr.bf16.mxu0 %v16472_v15  ;;  %v11318_v2 = vld [vmem:[#allocation6 + $0xc98] sm:$0xff]  ;;  %v16528_v10 = vcombine.high %v11317_v13, %v11321_v61 }
 0x81e   :  { %14241 = vmatprep.subr.bf16.mxu1 %v16474_v49  ;;  %v11322_v15 = vld [vmem:[#allocation6 + $0xcb8] sm:$0xff]  ;;  %v16519_v49 = vcombine.low %v11309_v4, %v11313_v36 }
 0x81f   :  { %v16530_v53 = vcombine.high %v11318_v2, %v11322_v15 }
 0x820   :  { %14078 = vmatpush1.bf16.msra.mxu0 %v16471_v5  ;;  %v11329_v5 = vld [vmem:[#allocation6 + $0xcf0] sm:$0xff] }
 0x821   :  { %14242 = vmatpush1.bf16.msra.mxu1 %v16473_v6  ;;  %14079 = vmatprep.subr.bf16.mxu0 %v16480_v3  ;;  %v11326_v6 = vld [vmem:[#allocation6 + $0xcd8] sm:$0xff]  ;;  %v16536_v55 = vcombine.high %v11325_v40, %v11329_v5 }
 0x822   :  { %14243 = vmatprep.subr.bf16.mxu1 %v16482_v8  ;;  %v11330_v3 = vld [vmem:[#allocation6 + $0xcf8] sm:$0xff]  ;;  %v16527_v8 = vcombine.low %v11317_v13, %v11321_v61  ;;  %v16559_v13 = vcombine.low %v11349_v34, %v11353_v22 }
 0x823   :  { %v16538_v47 = vcombine.high %v11326_v6, %v11330_v3 }
 0x824   :  { %14080 = vmatpush1.bf16.msra.mxu0 %v16479_v1  ;;  %v11334_v1 = vld [vmem:[#allocation6 + $0xd18] sm:$0xff] }
 0x825   :  { %14244 = vmatpush1.bf16.msra.mxu1 %v16481_v25  ;;  %14081 = vmatprep.subr.bf16.mxu0 %v16488_v44  ;;  %v11338_v25 = vld [vmem:[#allocation6 + $0xd38] sm:$0xff]  ;;  %v16535_v44 = vcombine.low %v11325_v40, %v11329_v5 }
 0x826   :  { %14245 = vmatprep.subr.bf16.mxu1 %v16490_v58  ;;  %v16537_v58 = vcombine.low %v11326_v6, %v11330_v3 }
 0x828   :  { %14082 = vmatpush1.bf16.msra.mxu0 %v16487_v46  ;;  %v11346_v46 = vld [vmem:[#allocation6 + $0xd78] sm:$0xff] }
 0x829   :  { %14246 = vmatpush1.bf16.msra.mxu1 %v16489_v20  ;;  %14083 = vmatprep.subr.bf16.mxu0 %v16496_v26  ;;  %v16543_v20 = vcombine.low %v11333_v18, %v11337_v62  ;;  %v19892_v26 = vld [vmem:[#allocation7] sm:$0xff]  ;;  %v16554_v28 = vcombine.high %v11342_v17, %v11346_v46  ;;  %v16553_v14 = vcombine.low %v11342_v17, %v11346_v46  ;;  %v19013_v18 = vld [vmem:[#allocation9 + $0x48] sm:$0xff]   ;;  %v19024_v17 = vld [vmem:[#allocation9 + $0x30] sm:$0xff]  }
 0x82a   :  { %14247 = vmatprep.subr.bf16.mxu1 %v16498_v52  ;;  %v16545_v52 = vcombine.low %v11334_v1, %v11338_v25  ;;  %v11372_v41 = vrot.slane %v19892_v26, %v19573_v21  ;;  %v11380_v29 = vrot.slane %v19892_v26, %v19677_v39  ;;  %v11362_v21 = vld [vmem:[#allocation6 + $0xdf8] sm:$0xff]  ;;  %v19014_v62 = vld [vmem:[#allocation9 + $0x8] sm:$0xff]   ;;  %v19025_v46 = vld [vmem:[#allocation9 + $0x78] sm:$0xff]  }
 0x82c   :  { %14084 = vmatpush1.bf16.msra.mxu0 %v16495_v35  ;;  %v11368_v35 = vrot.slane %v19892_v26, %v19570_v19 }
 0x82d   :  { %14248 = vmatpush1.bf16.msra.mxu1 %v16497_v32  ;;  %14085 = vmatprep.subr.bf16.mxu0 %v16504_v9  ;;  %v11376_v32 = vrot.slane %v19892_v26, %v19653_v23  ;;  %v11350_v9 = vld [vmem:[#allocation6 + $0xd98] sm:$0xff]  ;;  %v11361_v23 = vld [vmem:[#allocation6 + $0xdf0] sm:$0xff] }
 0x82e   :  { %14249 = vmatprep.subr.bf16.mxu1 %v16506_v37  ;;  %v11354_v37 = vld [vmem:[#allocation6 + $0xdb8] sm:$0xff] }
 0x82f   :  { %v16562_v19 = vcombine.high %v11350_v9, %v11354_v37 }
 0x830   :  { %14086 = vmatpush1.bf16.msra.mxu0 %v16503_v59  ;;  %v16560_v59 = vcombine.high %v11349_v34, %v11353_v22  ;;  %v11396_v34 = vrot.slane %v19892_v26, %v19632_v30 }
 0x831   :  { %14250 = vmatpush1.bf16.msra.mxu1 %v16505_v43  ;;  %14096 = vmatprep.subr.bf16.mxu0 %v16512_v45 }
 0x832   :  { %14260 = vmatprep.subr.bf16.mxu1 %v16514_v38  ;;  %v11357_v38 = vld [vmem:[#allocation6 + $0xdd0] sm:$0xff] }
 0x833   :  { %14088 = vmatmul.mubr.bf16.vlgmr.msra.gmra.mrb[32].mxu0 %v19866_v63 }
 0x834   :  { %14252 = vmatmul.mubr.bf16.vlgmr.msra.gmra.mrb[40].mxu1 %v19866_v63  ;;  %14097 = vmatpush1.bf16.msra.mxu0 %v16511_v42  ;;  %v16529_v63 = vcombine.low %v11318_v2, %v11322_v15  ;;  %v11358_v42 = vld [vmem:[#allocation6 + $0xdd8] sm:$0xff] }
 0x835   :  { %14261 = vmatpush1.bf16.msra.mxu1 %v16513_v56  ;;  %14098 = vmatprep.subr.bf16.mxu0 %v16520_v50  ;;  %v16570_v5 = vcombine.high %v11358_v42, %v11362_v21 }
 0x836   :  { %14262 = vmatprep.subr.bf16.mxu1 %v16522_v51  ;;  %14128 = vmatprep.mubr.bf16.mxu0 %v19303_v0 }
 0x837   :  { %14292 = vmatprep.mubr.bf16.mxu1 %v19303_v0  ;;  %v16546_v0 = vcombine.high %v11334_v1, %v11338_v25  ;;  %v19015_v1 = vld [vmem:[#allocation9 + $0x50] sm:$0xff]  }
 0x838   :  { %14099 = vmatpush1.bf16.msra.mxu0 %v16519_v49  ;;  %v19016_v25 = vld [vmem:[#allocation9 + $0x10] sm:$0xff]  }
 0x839   :  { %14263 = vmatpush1.bf16.msra.mxu1 %v16521_v57  ;;  %14100 = vmatprep.subr.bf16.mxu0 %v16528_v10  ;;  %v16561_v57 = vcombine.low %v11350_v9, %v11354_v37  ;;  %v16568_v10 = vcombine.high %v11357_v38, %v11361_v23 }
 0x83a   :  { %14264 = vmatprep.subr.bf16.mxu1 %v16530_v53 }
 0x83c   :  { %14101 = vmatpush1.bf16.msra.mxu0 %v16527_v8  ;;  %v16567_v8 = vcombine.low %v11357_v38, %v11361_v23 }
 0x83d   :  { %14265 = vmatpush1.bf16.msra.mxu1 %v16529_v63  ;;  %14102 = vmatprep.subr.bf16.mxu0 %v16536_v55  ;;  %v16569_v63 = vcombine.low %v11358_v42, %v11362_v21  ;;  %v19011_v55 = vld [vmem:[#allocation9 + $0x40] sm:$0xff]   ;;  %v19028_v42 = vld [vmem:[#allocation12 + $0x8] sm:$0xff]   ;;  %v19029_v21 = vld [vmem:[#allocation12 + $0x10] sm:$0xff]  }
 0x83e   :  { %14266 = vmatprep.subr.bf16.mxu1 %v16538_v47  ;;  %v19012_v47 = vld [vmem:[#allocation9] sm:$0xff]  }
 0x840   :  { %14103 = vmatpush1.bf16.msra.mxu0 %v16535_v44  ;;  %v19017_v44 = vld [vmem:[#allocation9 + $0x58] sm:$0xff]  }
 0x841   :  { %14267 = vmatpush1.bf16.msra.mxu1 %v16537_v58  ;;  %14104 = vmatprep.subr.bf16.mxu0 %v16544_v16  ;;  %v19018_v58 = vld [vmem:[#allocation9 + $0x18] sm:$0xff]   ;;  %v19019_v16 = vld [vmem:[#allocation9 + $0x60] sm:$0xff]  }
 0x842   :  { %14268 = vmatprep.subr.bf16.mxu1 %v16546_v0  ;;  %v19020_v0 = vld [vmem:[#allocation9 + $0x20] sm:$0xff]  }
 0x844   :  { %14105 = vmatpush1.bf16.msra.mxu0 %v16543_v20  ;;  %v19026_v20 = vld [vmem:[#allocation9 + $0x38] sm:$0xff]  }
 0x845   :  { %14269 = vmatpush1.bf16.msra.mxu1 %v16545_v52  ;;  %14106 = vmatprep.subr.bf16.mxu0 %v16552_v54  ;;  %v11384_v52 = vrot.slane %v19892_v26, %v19609_v31  ;;  %v11392_v54 = vrot.slane %v19892_v26, %v19705_v7 }
 0x846   :  { %v13802_v43 = vpop.f32.mrb[28].mxu0  ;;  %v13966_v45 = vpop.f32.mrb[36].mxu1  ;;  %14270 = vmatprep.subr.bf16.mxu1 %v16554_v28  ;;  %v11388_v28 = vrot.slane %v19892_v26, %v19612_v33 }
 0x847   :  { %v16718_v4 = vadd.f32 %v13802_v43, %v11368_v35  ;;  %v16720_v36 = vadd.f32 %v13966_v45, %v11376_v32  ;;  %v13804_v27 = vpop.f32.mrb[29].mxu0  ;;  %v13968_v60 = vpop.f32.mrb[37].mxu1 }
 0x848   :  { %v16719_v56 = vadd.f32 %v13804_v27, %v11372_v41  ;;  %v16721_v50 = vadd.f32 %v13968_v60, %v11380_v29  ;;  %v13806_v39 = vpop.f32.mrb[30].mxu0  ;;  %v13970_v51 = vpop.f32.mrb[38].mxu1  ;;  %14107 = vmatpush1.bf16.msra.mxu0 %v16551_v48  ;;  %v19027_v27 = vld [vmem:[#allocation12] sm:$0xff]   ;;  %v19304_v60 = vmov 0.0  }
 0x849   :  { %v14301_v61 = vmax.f32 %v16718_v4, 0.0  ;;  %v14303_v2 = vmax.f32 %v16720_v36, 0.0  ;;  %14271 = vmatpush1.bf16.msra.mxu1 %v16553_v14  ;;  %v13807_v15 = vpop.f32.mrb[31].mxu0  ;;  %v13971_v49 = vpop.f32.mrb[39].mxu1  ;;  %14108 = vmatprep.subr.bf16.mxu0 %v16560_v59  ;;  %v19032_v39 = vld [vmem:[#allocation12 + $0x28] sm:$0xff]   ;;  %v19033_v51 = vld [vmem:[#allocation12 + $0x30] sm:$0xff]  }
 0x84a   :  { %v14302_v53 = vmax.f32 %v16719_v56, 0.0  ;;  %v14304_v40 = vmax.f32 %v16721_v50, 0.0  ;;  %14272 = vmatprep.subr.bf16.mxu1 %v16562_v19  ;;  %v19030_v56 = vld [vmem:[#allocation12 + $0x18] sm:$0xff]   ;;  %v19031_v50 = vld [vmem:[#allocation12 + $0x20] sm:$0xff]  }
 0x84b   :  { %v19902_v6 = vmax.f32 %v14301_v61, %v14303_v2  ;;  %v16571_v2 = vld [vmem:[#allocation10] ss:$0 sm:$0xff] }
 0x84c   :  { %v19904_v3 = vmax.f32 %v14302_v53, %v14304_v40  ;;  %14109 = vmatpush1.bf16.msra.mxu0 %v16559_v13  ;;  %v19034_v13 = vld [vmem:[#allocation12 + $0x38] sm:$0xff]  }
 0x84d   :  { %14273 = vmatpush1.bf16.msra.mxu1 %v16561_v57  ;;  %14110 = vmatprep.subr.bf16.mxu0 %v16568_v10 }
 0x84e   :  { %14274 = vmatprep.subr.bf16.mxu1 %v16570_v5 }
 0x850   :  { %14111 = vmatpush1.bf16.msra.mxu0 %v16567_v8 }
 0x851   :  { %14275 = vmatpush1.bf16.msra.mxu1 %v16569_v63  ;;  %16606 = vmatprep.subr.bf16.mxu0 %v19011_v55  ;;  %v19035_v55 = vld [vmem:[#allocation15] sm:$0xff]  }
 0x852   :  { %16646 = vmatprep.subr.bf16.mxu1 %v19304_v60 }
 0x853   :  { %14129 = vmatmul.mubr.bf16.vlgmr.msra.gmra.mrb[32].mxu0 %v19874_v12 }
 0x854   :  { %14293 = vmatmul.mubr.bf16.vlgmr.msra.gmra.mrb[40].mxu1 %v19874_v12  ;;  %16607 = vmatpush3.bf16.msra.mxu0 %v19012_v47  ;;  %v19023_v12 = vld [vmem:[#allocation9 + $0x70] sm:$0xff]  }
 0x855   :  { %16608 = vmatprep.subr.bf16.mxu0 %v19013_v18  ;;  %16647 = vmatpush3.bf16.msra.mxu1 %v19027_v27  ;;  %v19036_v47 = vld [vmem:[#allocation15 + $0x8] sm:$0xff]   ;;  %v19037_v18 = vld [vmem:[#allocation15 + $0x10] sm:$0xff]  }
 0x856   :  { %16648 = vmatprep.subr.bf16.mxu1 %v19304_v60  ;;  %16662 = vmatprep.mubr.msk.bf16.mxu1 %vm19305_vm1, %v19304_v60 }
 0x858   :  { %16609 = vmatpush3.bf16.msra.mxu0 %v19014_v62  ;;  %v19038_v62 = vld [vmem:[#allocation15 + $0x18] sm:$0xff]  }
 0x859   :  { %16610 = vmatprep.subr.bf16.mxu0 %v19015_v1  ;;  %16649 = vmatpush3.bf16.msra.mxu1 %v19028_v42  ;;  %v19039_v1 = vld [vmem:[#allocation15 + $0x20] sm:$0xff]  }
 0x85a   :  { %16650 = vmatprep.subr.bf16.mxu1 %v19304_v60 }
 0x85c   :  { %16611 = vmatpush3.bf16.msra.mxu0 %v19016_v25  ;;  %v19040_v25 = vld [vmem:[#allocation15 + $0x28] sm:$0xff]  }
 0x85d   :  { %16612 = vmatprep.subr.bf16.mxu0 %v19017_v44  ;;  %16651 = vmatpush3.bf16.msra.mxu1 %v19029_v21  ;;  %v19041_v44 = vld [vmem:[#allocation15 + $0x30] sm:$0xff]  }
 0x85e   :  { %16652 = vmatprep.subr.bf16.mxu1 %v19304_v60 }
 0x860   :  { %16613 = vmatpush3.bf16.msra.mxu0 %v19018_v58  ;;  %v19042_v58 = vld [vmem:[#allocation15 + $0x38] sm:$0xff]  }
 0x861   :  { %16614 = vmatprep.subr.bf16.mxu0 %v19019_v16  ;;  %16653 = vmatpush3.bf16.msra.mxu1 %v19030_v56  ;;  %v16588_v16 = vld [vmem:[#allocation13] ss:$0 sm:$0xff] }
 0x862   :  { %16654 = vmatprep.subr.bf16.mxu1 %v19304_v60 }
 0x864   :  { %16615 = vmatpush3.bf16.msra.mxu0 %v19020_v0 }
 0x865   :  { %16616 = vmatprep.subr.bf16.mxu0 %v19021_v24  ;;  %16655 = vmatpush3.bf16.msra.mxu1 %v19031_v50 }
 0x866   :  { %16656 = vmatprep.subr.bf16.mxu1 %v19304_v60 }
 0x868   :  { %16617 = vmatpush3.bf16.msra.mxu0 %v19022_v11 }
 0x869   :  { %16618 = vmatprep.subr.bf16.mxu0 %v19023_v12  ;;  %16657 = vmatpush3.bf16.msra.mxu1 %v19032_v39 }
 0x86a   :  { %16658 = vmatprep.subr.bf16.mxu1 %v19304_v60 }
 0x86c   :  { %16619 = vmatpush3.bf16.msra.mxu0 %v19024_v17 }
 0x86d   :  { %16620 = vmatprep.subr.bf16.mxu0 %v19025_v46  ;;  %16659 = vmatpush3.bf16.msra.mxu1 %v19033_v51 }
 0x86e   :  { %16660 = vmatprep.subr.bf16.mxu1 %v19304_v60 }
 0x870   :  { %16621 = vmatpush3.bf16.msra.mxu0 %v19026_v20 }
 0x871   :  { %16666 = vmatprep.subr.bf16.mxu0 %v19304_v60  ;;  %16661 = vmatpush3.bf16.msra.mxu1 %v19034_v13 }
 0x926   :  { %v14130_v22 = vpop.f32.mrb[32].mxu0 }
 0x927   :  { %v16722_v35 = vadd.f32 %v14130_v22, %v11384_v52  ;;  %v14294_v32 = vpop.f32.mrb[40].mxu1  ;;  %v14132_v9 = vpop.f32.mrb[33].mxu0  ;;  %v16597_v22 = vld [vmem:[#allocation16] ss:$0 sm:$0xff] }
 0x928   :  { %v16724_v37 = vadd.f32 %v14294_v32, %v11392_v54  ;;  %v16723_v41 = vadd.f32 %v14132_v9, %v11388_v28  ;;  %v14296_v29 = vpop.f32.mrb[41].mxu1  ;;  %v14134_v48 = vpop.f32.mrb[34].mxu0 }
 0x929   :  { %v14305_v14 = vmax.f32 %v16722_v35, 0.0  ;;  %v16725_v59 = vadd.f32 %v14296_v29, %v11396_v34  ;;  %v14298_v31 = vpop.f32.mrb[42].mxu1  ;;  %v14135_v43 = vpop.f32.mrb[35].mxu0 }
 0x92a   :  { %v14307_v45 = vmax.f32 %v16724_v37, 0.0  ;;  %v14306_v7 = vmax.f32 %v16723_v41, 0.0  ;;  %v14299_v19 = vpop.f32.mrb[43].mxu1 }
 0x92b   :  { %v14308_v38 = vmax.f32 %v16725_v59, 0.0 }
 0x92c   :  { %v14311_v33 = vmax.f32 %v14305_v14, %v14307_v45 }
 0x92d   :  { %v14312_v23 = vmax.f32 %v14306_v7, %v14308_v38 }
 0x92e   :  { %v14313_v30 = vmax.f32 %v19902_v6, %v14311_v33 }
 0x92f   :  { %v14314_v26 = vmax.f32 %v19904_v3, %v14312_v23 }
 0x930   :  { %v14315_v36 = vpack.c.bf16 %v14313_v30, %v14313_v30 }
 0x931   :  { %v14316_v4 = vpack.c.bf16 %v14314_v26, %v14314_v26 }
 0x933   :  { %14484 = vmatprep.mubr.bf16.mxu0 %v14316_v4 }
 0x934   :  { %14485 = vmatmul.mubr.bf16.vlgmr.msra.gmra.mrb[36].mxu0 %v14315_v36 }
 0x935   :  { %16682 = vmatprep.mubr.msk.bf16.mxu0 %vm19305_vm1, %v19304_v60  ;;  %16667 = vmatpush3.bf16.msra.mxu0 %v19035_v55 }
 0x936   :  { %16668 = vmatprep.subr.bf16.mxu0 %v19304_v60 }
 0x939   :  { %16669 = vmatpush3.bf16.msra.mxu0 %v19036_v47 }
 0x93a   :  { %16670 = vmatprep.subr.bf16.mxu0 %v19304_v60 }
 0x93d   :  { %16671 = vmatpush3.bf16.msra.mxu0 %v19037_v18 }
 0x93e   :  { %16672 = vmatprep.subr.bf16.mxu0 %v19304_v60 }
 0x941   :  { %16673 = vmatpush3.bf16.msra.mxu0 %v19038_v62 }
 0x942   :  { %16674 = vmatprep.subr.bf16.mxu0 %v19304_v60 }
 0x945   :  { %16675 = vmatpush3.bf16.msra.mxu0 %v19039_v1 }
 0x946   :  { %16676 = vmatprep.subr.bf16.mxu0 %v19304_v60 }
 0x949   :  { %16677 = vmatpush3.bf16.msra.mxu0 %v19040_v25 }
 0x94a   :  { %16678 = vmatprep.subr.bf16.mxu0 %v19304_v60 }
 0x94d   :  { %16679 = vmatpush3.bf16.msra.mxu0 %v19041_v44 }
 0x94e   :  { %16680 = vmatprep.subr.bf16.mxu0 %v19304_v60 }
 0x951   :  { %16681 = vmatpush3.bf16.msra.mxu0 %v19042_v58 }
 0xa07   :  { %v16622_v61 = vpop.f32.mrb[36].mxu0 }
 0xa08   :  { %v16623_v15 = vpop.f32.mrb[37].mxu0 }
 0xa09   :  { %v16624_v49 = vadd.f32 %v16623_v15, %v16622_v61  ;;  %v16625_v57 = vpop.f32.mrb[38].mxu0 }
 0xa0a   :  { %v16626_v10 = vpop.f32.mrb[39].mxu0 }
 0xa0b   :  { %v14487_v53 = vadd.f32 %v16624_v49, %v16571_v2 }
 0xa0d   :  { %v14492_v40 = vsub.f32 0.0, %v14487_v53 }
 0xa0f   :  { %v14493_v5 = vmul.f32 1.442695, %v14492_v40 }
 0xa11   :  { %19043 = vpow2.f32 %v14493_v5 }
 0xa1b   :  { %v19044_v6 = vpop.eup %19043 }
 0xa1c   :  { %v14495_v3 = vadd.f32 1.0, %v19044_v6 }
 0xa1e   :  { %19045 = vrcp.f32 %v14495_v3 }
 0xa28   :  { %v19046_v8 = vpop.eup %19045 }
 0xa29   :  { %v14497_v63 = vpack.c.bf16 %v19046_v8, %v19046_v8 }
 0xa2b   :  { %16663 = vmatmul.mubr.bf16.vlgmr.msra.gmra.mrb[44].mxu1 %v14497_v63 }
 0xafe   :  { %v14603_v0 = vpop.f32.mrb[44].mxu1 }
 0xaff   :  { %v14604_v24 = vadd.f32 %v16588_v16, %v14603_v0  ;;  %v16664_v11 = vpop.f32.mrb[45].mxu1 }
 0xb00   :  { %v14606_v12 = vpop.f32.mrb[46].mxu1 }
 0xb01   :  { %v14609_v17 = vsub.f32 0.0, %v14604_v24  ;;  %v16665_v46 = vpop.f32.mrb[47].mxu1 }
 0xb03   :  { %v14610_v20 = vmul.f32 1.442695, %v14609_v17 }
 0xb05   :  { %19047 = vpow2.f32 %v14610_v20 }
 0xb0f   :  { %v19048_v52 = vpop.eup %19047 }
 0xb10   :  { %v14612_v54 = vadd.f32 1.0, %v19048_v52 }
 0xb12   :  { %19049 = vrcp.f32 %v14612_v54 }
 0xb1c   :  { %v19050_v28 = vpop.eup %19049 }
 0xb1d   :  { %v14614_v34 = vpack.c.bf16 %v19050_v28, %v19050_v28 }
 0xb1f   :  { %16683 = vmatmul.mubr.bf16.vlgmr.msra.gmra.mrb[40].mxu0 %v14614_v34 }
 0xbf2   :  { %v14720_v35 = vpop.f32.mrb[40].mxu0 }
 0xbf3   :  { %v14721_v32 = vadd.f32 %v16597_v22, %v14720_v35  ;;  %v16684_v9 = vpop.f32.mrb[41].mxu0 }
 0xbf4   :  { %v14723_v37 = vpop.f32.mrb[42].mxu0 }
 0xbf5   :  { %14726 = vst [vmem:[%s19950_s11] sm:$0xff] %v14721_v32  ;;  %v16685_v41 = vpop.f32.mrb[43].mxu0 }
 0xbf6   :  { %14731 = vsyncpa [#allocation3], 1 }
 0xbf7   :  { %14732 = vsyncpa [#allocation5], 1 }
 0xbf8   :  { %14733 = vsyncpa [#allocation8], 1 }
 0xbf9   :  { %14734 = vsyncpa [#allocation11], 1 }
 0xbfa   :  { %14735 = vsyncpa [#allocation14], 1 }
 0xbfb   :  { %14736 = vsyncpa [#allocation17], 1 }

</bundles_post_ra>
